<compile_context>
chip_gen: v5e
topology: v5e:2x2
jax: 0.10.0
libtpu: 0.0.40
codegen_flags: <defaults>
</compile_context>

<pallas_src>
import jax
import jax.numpy as jnp
from jax import lax
from jax.experimental import pallas as pl
from jax.experimental.pallas import tpu as pltpu


KH = KW = 3  # 3x3 conv, padding 1


def _standard_unit_kernel(x_ref, w1_ref, b1_ref, w2_ref, b2_ref, alpha_ref,
                          o_ref, patch1_ref, ypad_ref, patch2_ref):
    """One batch element per grid step.

    x_ref     : (H+2, W+2, Cin)    bf16  zero-padded input tile (NHWC, batch squeezed)
    w1_ref    : (9*Cin,  Cp)       bf16  conv1 weights, BN1 scale folded, Cout padded
    b1_ref    : (1, Cp)            f32   folded conv1+BN1 bias (pad lanes = 0)
    w2_ref    : (9*Cout, Cp)       bf16  conv2 weights, BN2 scale folded
    b2_ref    : (1, Cp)            f32
    alpha_ref : (2,)               f32   SMEM — PReLU slopes [a1, a2]
    o_ref     : (H*W, Cp)          f32   lane-dense output (Cp = Cout padded to 128)
    patch1_ref: (H, W, 9*Cin)      bf16  VMEM scratch, conv1 im2col patch
    ypad_ref  : (H+2, W+2, Cout)   f32   VMEM scratch, padded intermediate
    patch2_ref: (H, W, 9*Cout)     bf16  VMEM scratch, conv2 im2col patch
    """
    Hp, Wp, Cin = x_ref.shape
    H, W = Hp - 2, Wp - 2
    HW, Cp = o_ref.shape
    C = ypad_ref.shape[-1]                      # true (unpadded) Cout

    # ---- conv1: assemble im2col patch, single MXU matmul ---------------------
    for dy in range(KH):
        for dx in range(KW):
            k = dy * KW + dx
            patch1_ref[:, :, k * Cin:(k + 1) * Cin] = x_ref[dy:dy + H, dx:dx + W, :]

    acc1 = jnp.dot(patch1_ref[...].reshape(HW, KH * KW * Cin), w1_ref[...],
                   preferred_element_type=jnp.float32)          # (HW, Cp)

    # Folded bias + PReLU (Dropout2d == identity in eval mode).
    a1 = alpha_ref[0]
    y1 = acc1 + b1_ref[...]
    y1 = jnp.where(y1 >= 0, y1, a1 * y1)

    # ---- re-pad intermediate: zero ONLY the 1-px halo (interior is fully
    #      overwritten every step; done each step so megacore sharding of the
    #      batch axis stays correct) -------------------------------------------
    ypad_ref[0:1, :, :] = jnp.zeros((1, Wp, C), ypad_ref.dtype)
    ypad_ref[H + 1:Hp, :, :] = jnp.zeros((1, Wp, C), ypad_ref.dtype)
    ypad_ref[:, 0:1, :] = jnp.zeros((Hp, 1, C), ypad_ref.dtype)
    ypad_ref[:, W + 1:Wp, :] = jnp.zeros((Hp, 1, C), ypad_ref.dtype)
    ypad_ref[1:H + 1, 1:W + 1, :] = y1[:, :C].reshape(H, W, C)

    # ---- conv2: assemble im2col patch, single MXU matmul ---------------------
    for dy in range(KH):
        for dx in range(KW):
            k = dy * KW + dx
            patch2_ref[:, :, k * C:(k + 1) * C] = (
                ypad_ref[dy:dy + H, dx:dx + W, :].astype(patch2_ref.dtype))

    acc2 = jnp.dot(patch2_ref[...].reshape(HW, KH * KW * C), w2_ref[...],
                   preferred_element_type=jnp.float32)          # (HW, Cp)
    a2 = alpha_ref[1]
    y2 = acc2 + b2_ref[...]
    y2 = jnp.where(y2 >= 0, y2, a2 * y2)

    # Lane-dense (full 128-lane) store; padded channels are exactly zero
    # (padded weights/bias are zero and PReLU(0) == 0).
    o_ref[...] = y2.astype(o_ref.dtype)


def _fold_bn_into_conv(w_oihw, conv_b, gamma, beta, mean, var, eps=1e-5):
    """Fold eval-mode BatchNorm into the conv: returns (kh-kw-ci-co weights, bias)."""
    scale = gamma * lax.rsqrt(var + eps)                     # (Cout,)
    bias = beta + scale * (conv_b - mean)                    # (Cout,)
    w = jnp.transpose(w_oihw, (2, 3, 1, 0)) * scale[None, None, None, :]
    return w, bias


@jax.jit
def standard_unit_forward(x_nchw, params):
    """standard_unit forward (eval mode). x_nchw: (N, Cin, H, W) float32."""
    N, Cin, H, W = x_nchw.shape
    Cout = params["w1"].shape[0]
    Cp = ((Cout + 127) // 128) * 128      # pad Cout to 128 lanes (MXU / dense vst)

    # NCHW -> NHWC, spatial zero-pad (padding=1), carry activations as bf16
    # (matmul operands are bf16 anyway) to halve input HBM->VMEM DMA.
    x = jnp.transpose(x_nchw, (0, 2, 3, 1)).astype(jnp.bfloat16)
    x_pad = jnp.pad(x, ((0, 0), (1, 1), (1, 1), (0, 0)))

    w1, b1 = _fold_bn_into_conv(params["w1"], params["b1"], params["gamma1"],
                                params["beta1"], params["mean1"], params["var1"])
    w2, b2 = _fold_bn_into_conv(params["w2"], params["b2"], params["gamma2"],
                                params["beta2"], params["mean2"], params["var2"])

    def prep_w(w):                        # (3,3,Ci,Co) -> (9*Ci, Cp) bf16
        kh, kw, ci, co = w.shape
        wf = w.reshape(kh * kw * ci, co)
        return jnp.pad(wf, ((0, 0), (0, Cp - co))).astype(jnp.bfloat16)

    def prep_b(b):
        return jnp.pad(b, (0, Cp - Cout)).reshape(1, Cp).astype(jnp.float32)

    w1f, w2f = prep_w(w1), prep_w(w2)
    b1p, b2p = prep_b(b1), prep_b(b2)
    alphas = jnp.stack([jnp.reshape(params["prelu1"], ()),
                        jnp.reshape(params["prelu2"], ())]).astype(jnp.float32)

    full = lambda s: pl.BlockSpec(s, lambda b: (0,) * len(s))

    out = pl.pallas_call(
        _standard_unit_kernel,
        out_shape=jax.ShapeDtypeStruct((N, H * W, Cp), jnp.float32),
        grid_spec=pltpu.PrefetchScalarGridSpec(
            num_scalar_prefetch=0,
            grid=(N,),
            in_specs=[
                pl.BlockSpec((None, H + 2, W + 2, Cin), lambda b: (b, 0, 0, 0)),
                full((KH * KW * Cin, Cp)),       # w1 (constant index_map -> fetched once)
                full((1, Cp)),                   # b1
                full((KH * KW * Cout, Cp)),      # w2
                full((1, Cp)),                   # b2
                pl.BlockSpec(memory_space=pltpu.MemorySpace.SMEM),   # PReLU slopes
            ],
            out_specs=pl.BlockSpec((None, H * W, Cp), lambda b: (b, 0, 0)),
            scratch_shapes=[
                pltpu.VMEM((H, W, KH * KW * Cin), jnp.bfloat16),     # conv1 patch
                pltpu.VMEM((H + 2, W + 2, Cout), jnp.float32),       # padded y1
                pltpu.VMEM((H, W, KH * KW * Cout), jnp.bfloat16),    # conv2 patch
            ],
        ),
        compiler_params=pltpu.CompilerParams(
            dimension_semantics=("parallel",)),   # batch elems independent (v7x 2 TCs)
    )(x_pad, w1f, b1p, w2f, b2p, alphas)

    # Slice off the channel pad, back to NCHW to match PyTorch.
    out = out[:, :, :Cout].reshape(N, H, W, Cout)
    return jnp.transpose(out, (0, 3, 1, 2))


def make_params(key, cin, cout):
    ks = jax.random.split(key, 8)
    return {
        "w1": jax.random.normal(ks[0], (cout, cin, KH, KW), jnp.float32) * 0.1,
        "b1": jax.random.normal(ks[1], (cout,), jnp.float32) * 0.05,
        "w2": jax.random.normal(ks[2], (cout, cout, KH, KW), jnp.float32) * 0.1,
        "b2": jax.random.normal(ks[3], (cout,), jnp.float32) * 0.05,
        "gamma1": 1.0 + 0.1 * jax.random.normal(ks[4], (cout,), jnp.float32),
        "beta1": 0.1 * jax.random.normal(ks[5], (cout,), jnp.float32),
        "mean1": jnp.zeros((cout,), jnp.float32),
        "var1": jnp.ones((cout,), jnp.float32),
        "gamma2": 1.0 + 0.1 * jax.random.normal(ks[6], (cout,), jnp.float32),
        "beta2": 0.1 * jax.random.normal(ks[7], (cout,), jnp.float32),
        "mean2": jnp.zeros((cout,), jnp.float32),
        "var2": jnp.ones((cout,), jnp.float32),
        "prelu1": jnp.array(0.25, jnp.float32),   # PyTorch PReLU default (shared)
        "prelu2": jnp.array(0.25, jnp.float32),
    }


def _reference(x_nchw, p):
    """Pure-JAX f32 reference mirroring eval-mode PyTorch semantics."""
    eps = 1e-5

    def conv(x, w, b):
        y = lax.conv_general_dilated(
            x, w, window_strides=(1, 1), padding=((1, 1), (1, 1)),
            dimension_numbers=("NCHW", "OIHW", "NCHW"))
        return y + b[None, :, None, None]

    def bn(x, gamma, beta, mean, var):
        return (gamma[None, :, None, None] * (x - mean[None, :, None, None])
                / jnp.sqrt(var[None, :, None, None] + eps)
                + beta[None, :, None, None])

    def prelu(x, a):
        return jnp.where(x >= 0, x, a * x)

    y = conv(x_nchw, p["w1"], p["b1"])
    y = bn(y, p["gamma1"], p["beta1"], p["mean1"], p["var1"])
    y = prelu(y, p["prelu1"])
    y = conv(y, p["w2"], p["b2"])
    y = bn(y, p["gamma2"], p["beta2"], p["mean2"], p["var2"])
    y = prelu(y, p["prelu2"])
    return y


if __name__ == "__main__":
    key = jax.random.PRNGKey(0)
    k_x, k_p = jax.random.split(key)

    N, Cin, Cout, H, W = 2, 4, 8, 16, 16
    x = jax.random.normal(k_x, (N, Cin, H, W), jnp.float32)
    params = make_params(k_p, Cin, Cout)

    out = standard_unit_forward(x, params)
    out = jax.block_until_ready(out)

    ref = _reference(x, params)
    assert out.shape == (N, Cout, H, W), out.shape
    # Tolerance accounts for bf16 MXU operands (f32 accumulation) vs f32 reference.
    assert jnp.allclose(out, ref, atol=5e-2, rtol=5e-2), (
        float(jnp.max(jnp.abs(out - ref))))

    print("KERNEL_OK")
</pallas_src>

<mosaic_0001>
module attributes {stable_mosaic.version = 11 : i64} {
  func.func @_standard_unit_kernel(%arg0: i32, %arg1: memref<1x18x18x4xbf16, #tpu.memory_space<vmem>>, %arg2: memref<36x128xbf16, #tpu.memory_space<vmem>>, %arg3: memref<1x128xf32, #tpu.memory_space<vmem>>, %arg4: memref<72x128xbf16, #tpu.memory_space<vmem>>, %arg5: memref<1x128xf32, #tpu.memory_space<vmem>>, %arg6: memref<2xf32, #tpu.memory_space<smem>>, %arg7: memref<1x256x128xf32, #tpu.memory_space<vmem>>, %arg8: memref<16x16x36xbf16, #tpu.memory_space<vmem>>, %arg9: memref<18x18x8xf32, #tpu.memory_space<vmem>>, %arg10: memref<16x16x72xbf16, #tpu.memory_space<vmem>>) attributes {dimension_semantics = [#tpu.dimension_semantics<parallel>], iteration_bounds = array<i64: 2>, scalar_prefetch = 0 : i64, scratch_operands = 3 : i64, tpu.core_type = #tpu.core_type<tc>, window_params = [{transform_indices = @transform_0, window_bounds = array<i64: 1, 18, 18, 4>}, {pipeline_mode = #tpu.pipeline_mode<synchronous>, transform_indices = @transform_1, window_bounds = array<i64: 36, 128>}, {pipeline_mode = #tpu.pipeline_mode<synchronous>, transform_indices = @transform_2, window_bounds = array<i64: 1, 128>}, {pipeline_mode = #tpu.pipeline_mode<synchronous>, transform_indices = @transform_3, window_bounds = array<i64: 72, 128>}, {pipeline_mode = #tpu.pipeline_mode<synchronous>, transform_indices = @transform_4, window_bounds = array<i64: 1, 128>}, {transform_indices = @transform_5, window_bounds = array<i64: 2>}, {transform_indices = @transform_6, window_bounds = array<i64: 1, 256, 128>}]} {
    %c0 = arith.constant 0 : index
    %c0_0 = arith.constant 0 : index
    %c0_1 = arith.constant 0 : index
    %c0_2 = arith.constant 0 : index
    %0 = vector.load %arg1[%c0, %c0_0, %c0_1, %c0_2] : memref<1x18x18x4xbf16, #tpu.memory_space<vmem>>, vector<1x16x16x4xbf16>
    %1 = vector.shape_cast %0 : vector<1x16x16x4xbf16> to vector<16x16x4xbf16>
    %c0_3 = arith.constant 0 : index
    %c0_4 = arith.constant 0 : index
    %c0_5 = arith.constant 0 : index
    %2 = vector.load %arg8[%c0_3, %c0_4, %c0_5] : memref<16x16x36xbf16, #tpu.memory_space<vmem>>, vector<16x16x4xbf16>
    tpu.vector_store %arg8[%c0_3, %c0_4, %c0_5], %1 {strides = array<i32>} : memref<16x16x36xbf16, #tpu.memory_space<vmem>>, vector<16x16x4xbf16>,
    %c0_6 = arith.constant 0 : index
    %c0_7 = arith.constant 0 : index
    %c1 = arith.constant 1 : index
    %c0_8 = arith.constant 0 : index
    %3 = vector.load %arg1[%c0_6, %c0_7, %c1, %c0_8] : memref<1x18x18x4xbf16, #tpu.memory_space<vmem>>, vector<1x16x16x4xbf16>
    %4 = vector.shape_cast %3 : vector<1x16x16x4xbf16> to vector<16x16x4xbf16>
    %c0_9 = arith.constant 0 : index
    %c0_10 = arith.constant 0 : index
    %c4 = arith.constant 4 : index
    %5 = vector.load %arg8[%c0_9, %c0_10, %c4] : memref<16x16x36xbf16, #tpu.memory_space<vmem>>, vector<16x16x4xbf16>
    tpu.vector_store %arg8[%c0_9, %c0_10, %c4], %4 {strides = array<i32>} : memref<16x16x36xbf16, #tpu.memory_space<vmem>>, vector<16x16x4xbf16>,
    %c0_11 = arith.constant 0 : index
    %c0_12 = arith.constant 0 : index
    %c2 = arith.constant 2 : index
    %c0_13 = arith.constant 0 : index
    %6 = vector.load %arg1[%c0_11, %c0_12, %c2, %c0_13] : memref<1x18x18x4xbf16, #tpu.memory_space<vmem>>, vector<1x16x16x4xbf16>
    %7 = vector.shape_cast %6 : vector<1x16x16x4xbf16> to vector<16x16x4xbf16>
    %c0_14 = arith.constant 0 : index
    %c0_15 = arith.constant 0 : index
    %c8 = arith.constant 8 : index
    %8 = vector.load %arg8[%c0_14, %c0_15, %c8] : memref<16x16x36xbf16, #tpu.memory_space<vmem>>, vector<16x16x4xbf16>
    tpu.vector_store %arg8[%c0_14, %c0_15, %c8], %7 {strides = array<i32>} : memref<16x16x36xbf16, #tpu.memory_space<vmem>>, vector<16x16x4xbf16>,
    %c0_16 = arith.constant 0 : index
    %c1_17 = arith.constant 1 : index
    %c0_18 = arith.constant 0 : index
    %c0_19 = arith.constant 0 : index
    %9 = vector.load %arg1[%c0_16, %c1_17, %c0_18, %c0_19] : memref<1x18x18x4xbf16, #tpu.memory_space<vmem>>, vector<1x16x16x4xbf16>
    %10 = vector.shape_cast %9 : vector<1x16x16x4xbf16> to vector<16x16x4xbf16>
    %c0_20 = arith.constant 0 : index
    %c0_21 = arith.constant 0 : index
    %c12 = arith.constant 12 : index
    %11 = vector.load %arg8[%c0_20, %c0_21, %c12] : memref<16x16x36xbf16, #tpu.memory_space<vmem>>, vector<16x16x4xbf16>
    tpu.vector_store %arg8[%c0_20, %c0_21, %c12], %10 {strides = array<i32>} : memref<16x16x36xbf16, #tpu.memory_space<vmem>>, vector<16x16x4xbf16>,
    %c0_22 = arith.constant 0 : index
    %c1_23 = arith.constant 1 : index
    %c1_24 = arith.constant 1 : index
    %c0_25 = arith.constant 0 : index
    %12 = vector.load %arg1[%c0_22, %c1_23, %c1_24, %c0_25] : memref<1x18x18x4xbf16, #tpu.memory_space<vmem>>, vector<1x16x16x4xbf16>
    %13 = vector.shape_cast %12 : vector<1x16x16x4xbf16> to vector<16x16x4xbf16>
    %c0_26 = arith.constant 0 : index
    %c0_27 = arith.constant 0 : index
    %c16 = arith.constant 16 : index
    %14 = vector.load %arg8[%c0_26, %c0_27, %c16] : memref<16x16x36xbf16, #tpu.memory_space<vmem>>, vector<16x16x4xbf16>
    tpu.vector_store %arg8[%c0_26, %c0_27, %c16], %13 {strides = array<i32>} : memref<16x16x36xbf16, #tpu.memory_space<vmem>>, vector<16x16x4xbf16>,
    %c0_28 = arith.constant 0 : index
    %c1_29 = arith.constant 1 : index
    %c2_30 = arith.constant 2 : index
    %c0_31 = arith.constant 0 : index
    %15 = vector.load %arg1[%c0_28, %c1_29, %c2_30, %c0_31] : memref<1x18x18x4xbf16, #tpu.memory_space<vmem>>, vector<1x16x16x4xbf16>
    %16 = vector.shape_cast %15 : vector<1x16x16x4xbf16> to vector<16x16x4xbf16>
    %c0_32 = arith.constant 0 : index
    %c0_33 = arith.constant 0 : index
    %c20 = arith.constant 20 : index
    %17 = vector.load %arg8[%c0_32, %c0_33, %c20] : memref<16x16x36xbf16, #tpu.memory_space<vmem>>, vector<16x16x4xbf16>
    tpu.vector_store %arg8[%c0_32, %c0_33, %c20], %16 {strides = array<i32>} : memref<16x16x36xbf16, #tpu.memory_space<vmem>>, vector<16x16x4xbf16>,
    %c0_34 = arith.constant 0 : index
    %c2_35 = arith.constant 2 : index
    %c0_36 = arith.constant 0 : index
    %c0_37 = arith.constant 0 : index
    %18 = vector.load %arg1[%c0_34, %c2_35, %c0_36, %c0_37] : memref<1x18x18x4xbf16, #tpu.memory_space<vmem>>, vector<1x16x16x4xbf16>
    %19 = vector.shape_cast %18 : vector<1x16x16x4xbf16> to vector<16x16x4xbf16>
    %c0_38 = arith.constant 0 : index
    %c0_39 = arith.constant 0 : index
    %c24 = arith.constant 24 : index
    %20 = vector.load %arg8[%c0_38, %c0_39, %c24] : memref<16x16x36xbf16, #tpu.memory_space<vmem>>, vector<16x16x4xbf16>
    tpu.vector_store %arg8[%c0_38, %c0_39, %c24], %19 {strides = array<i32>} : memref<16x16x36xbf16, #tpu.memory_space<vmem>>, vector<16x16x4xbf16>,
    %c0_40 = arith.constant 0 : index
    %c2_41 = arith.constant 2 : index
    %c1_42 = arith.constant 1 : index
    %c0_43 = arith.constant 0 : index
    %21 = vector.load %arg1[%c0_40, %c2_41, %c1_42, %c0_43] : memref<1x18x18x4xbf16, #tpu.memory_space<vmem>>, vector<1x16x16x4xbf16>
    %22 = vector.shape_cast %21 : vector<1x16x16x4xbf16> to vector<16x16x4xbf16>
    %c0_44 = arith.constant 0 : index
    %c0_45 = arith.constant 0 : index
    %c28 = arith.constant 28 : index
    %23 = vector.load %arg8[%c0_44, %c0_45, %c28] : memref<16x16x36xbf16, #tpu.memory_space<vmem>>, vector<16x16x4xbf16>
    tpu.vector_store %arg8[%c0_44, %c0_45, %c28], %22 {strides = array<i32>} : memref<16x16x36xbf16, #tpu.memory_space<vmem>>, vector<16x16x4xbf16>,
    %c0_46 = arith.constant 0 : index
    %c2_47 = arith.constant 2 : index
    %c2_48 = arith.constant 2 : index
    %c0_49 = arith.constant 0 : index
    %24 = vector.load %arg1[%c0_46, %c2_47, %c2_48, %c0_49] : memref<1x18x18x4xbf16, #tpu.memory_space<vmem>>, vector<1x16x16x4xbf16>
    %25 = vector.shape_cast %24 : vector<1x16x16x4xbf16> to vector<16x16x4xbf16>
    %c0_50 = arith.constant 0 : index
    %c0_51 = arith.constant 0 : index
    %c32 = arith.constant 32 : index
    %26 = vector.load %arg8[%c0_50, %c0_51, %c32] : memref<16x16x36xbf16, #tpu.memory_space<vmem>>, vector<16x16x4xbf16>
    tpu.vector_store %arg8[%c0_50, %c0_51, %c32], %25 {strides = array<i32>} : memref<16x16x36xbf16, #tpu.memory_space<vmem>>, vector<16x16x4xbf16>,
    %c0_52 = arith.constant 0 : index
    %c0_53 = arith.constant 0 : index
    %c0_54 = arith.constant 0 : index
    %27 = vector.load %arg8[%c0_52, %c0_53, %c0_54] : memref<16x16x36xbf16, #tpu.memory_space<vmem>>, vector<16x16x36xbf16>
    %28 = vector.shape_cast %27 : vector<16x16x36xbf16> to vector<256x36xbf16>
    %c0_55 = arith.constant 0 : index
    %c0_56 = arith.constant 0 : index
    %29 = vector.load %arg2[%c0_55, %c0_56] : memref<36x128xbf16, #tpu.memory_space<vmem>>, vector<36x128xbf16>
    %cst = arith.constant dense<0.000000e+00> : vector<256x128xf32>
    %30 = tpu.matmul %28, %29, %cst {dimension_numbers = #tpu.dot_dimension_numbers<[1], [0], [0], [1], [0, 0, 1, 1], [], []>} : vector<256x36xbf16>, vector<36x128xbf16>, vector<256x128xf32> -> vector<256x128xf32>
    %c0_57 = arith.constant 0 : index
    %31 = memref.load %arg6[%c0_57] : memref<2xf32, #tpu.memory_space<smem>>
    %c0_58 = arith.constant 0 : index
    %c0_59 = arith.constant 0 : index
    %32 = vector.load %arg3[%c0_58, %c0_59] : memref<1x128xf32, #tpu.memory_space<vmem>>, vector<1x128xf32>
    %33 = vector.broadcast %32 : vector<1x128xf32> to vector<256x128xf32>
    %34 = arith.addf %30, %33 : vector<256x128xf32>
    %cst_60 = arith.constant 0.000000e+00 : f32
    %35 = vector.broadcast %cst_60 : f32 to vector<256x128xf32>
    %36 = arith.cmpf oge, %34, %35 : vector<256x128xf32>
    %37 = vector.broadcast %31 : f32 to vector<256x128xf32>
    %38 = arith.mulf %37, %34 : vector<256x128xf32>
    %39 = arith.select %36, %34, %38 : vector<256x128xi1>, vector<256x128xf32>
    %cst_61 = arith.constant 0.000000e+00 : f32
    %40 = vector.broadcast %cst_61 : f32 to vector<1x18x8xf32>
    %c0_62 = arith.constant 0 : index
    %c0_63 = arith.constant 0 : index
    %c0_64 = arith.constant 0 : index
    %41 = vector.load %arg9[%c0_62, %c0_63, %c0_64] : memref<18x18x8xf32, #tpu.memory_space<vmem>>, vector<1x18x8xf32>
    tpu.vector_store %arg9[%c0_62, %c0_63, %c0_64], %40 {strides = array<i32>} : memref<18x18x8xf32, #tpu.memory_space<vmem>>, vector<1x18x8xf32>,
    %cst_65 = arith.constant 0.000000e+00 : f32
    %42 = vector.broadcast %cst_65 : f32 to vector<1x18x8xf32>
    %c17 = arith.constant 17 : index
    %c0_66 = arith.constant 0 : index
    %c0_67 = arith.constant 0 : index
    %43 = vector.load %arg9[%c17, %c0_66, %c0_67] : memref<18x18x8xf32, #tpu.memory_space<vmem>>, vector<1x18x8xf32>
    tpu.vector_store %arg9[%c17, %c0_66, %c0_67], %42 {strides = array<i32>} : memref<18x18x8xf32, #tpu.memory_space<vmem>>, vector<1x18x8xf32>,
    %cst_68 = arith.constant 0.000000e+00 : f32
    %44 = vector.broadcast %cst_68 : f32 to vector<18x1x8xf32>
    %c0_69 = arith.constant 0 : index
    %c0_70 = arith.constant 0 : index
    %c0_71 = arith.constant 0 : index
    %45 = vector.load %arg9[%c0_69, %c0_70, %c0_71] : memref<18x18x8xf32, #tpu.memory_space<vmem>>, vector<18x1x8xf32>
    tpu.vector_store %arg9[%c0_69, %c0_70, %c0_71], %44 {strides = array<i32>} : memref<18x18x8xf32, #tpu.memory_space<vmem>>, vector<18x1x8xf32>,
    %cst_72 = arith.constant 0.000000e+00 : f32
    %46 = vector.broadcast %cst_72 : f32 to vector<18x1x8xf32>
    %c0_73 = arith.constant 0 : index
    %c17_74 = arith.constant 17 : index
    %c0_75 = arith.constant 0 : index
    %47 = vector.load %arg9[%c0_73, %c17_74, %c0_75] : memref<18x18x8xf32, #tpu.memory_space<vmem>>, vector<18x1x8xf32>
    tpu.vector_store %arg9[%c0_73, %c17_74, %c0_75], %46 {strides = array<i32>} : memref<18x18x8xf32, #tpu.memory_space<vmem>>, vector<18x1x8xf32>,
    %48 = vector.extract_strided_slice %39 {offsets = [0, 0], sizes = [256, 8], strides = [1, 1]} : vector<256x128xf32> to vector<256x8xf32>
    %49 = vector.shape_cast %48 : vector<256x8xf32> to vector<16x16x8xf32>
    %c1_76 = arith.constant 1 : index
    %c1_77 = arith.constant 1 : index
    %c0_78 = arith.constant 0 : index
    %50 = vector.load %arg9[%c1_76, %c1_77, %c0_78] : memref<18x18x8xf32, #tpu.memory_space<vmem>>, vector<16x16x8xf32>
    tpu.vector_store %arg9[%c1_76, %c1_77, %c0_78], %49 {strides = array<i32>} : memref<18x18x8xf32, #tpu.memory_space<vmem>>, vector<16x16x8xf32>,
    %c0_79 = arith.constant 0 : index
    %c0_80 = arith.constant 0 : index
    %c0_81 = arith.constant 0 : index
    %51 = vector.load %arg9[%c0_79, %c0_80, %c0_81] : memref<18x18x8xf32, #tpu.memory_space<vmem>>, vector<16x16x8xf32>
    %52 = arith.truncf %51 : vector<16x16x8xf32> to vector<16x16x8xbf16>
    %c0_82 = arith.constant 0 : index
    %c0_83 = arith.constant 0 : index
    %c0_84 = arith.constant 0 : index
    %53 = vector.load %arg10[%c0_82, %c0_83, %c0_84] : memref<16x16x72xbf16, #tpu.memory_space<vmem>>, vector<16x16x8xbf16>
    tpu.vector_store %arg10[%c0_82, %c0_83, %c0_84], %52 {strides = array<i32>} : memref<16x16x72xbf16, #tpu.memory_space<vmem>>, vector<16x16x8xbf16>,
    %c0_85 = arith.constant 0 : index
    %c1_86 = arith.constant 1 : index
    %c0_87 = arith.constant 0 : index
    %54 = vector.load %arg9[%c0_85, %c1_86, %c0_87] : memref<18x18x8xf32, #tpu.memory_space<vmem>>, vector<16x16x8xf32>
    %55 = arith.truncf %54 : vector<16x16x8xf32> to vector<16x16x8xbf16>
    %c0_88 = arith.constant 0 : index
    %c0_89 = arith.constant 0 : index
    %c8_90 = arith.constant 8 : index
    %56 = vector.load %arg10[%c0_88, %c0_89, %c8_90] : memref<16x16x72xbf16, #tpu.memory_space<vmem>>, vector<16x16x8xbf16>
    tpu.vector_store %arg10[%c0_88, %c0_89, %c8_90], %55 {strides = array<i32>} : memref<16x16x72xbf16, #tpu.memory_space<vmem>>, vector<16x16x8xbf16>,
    %c0_91 = arith.constant 0 : index
    %c2_92 = arith.constant 2 : index
    %c0_93 = arith.constant 0 : index
    %57 = vector.load %arg9[%c0_91, %c2_92, %c0_93] : memref<18x18x8xf32, #tpu.memory_space<vmem>>, vector<16x16x8xf32>
    %58 = arith.truncf %57 : vector<16x16x8xf32> to vector<16x16x8xbf16>
    %c0_94 = arith.constant 0 : index
    %c0_95 = arith.constant 0 : index
    %c16_96 = arith.constant 16 : index
    %59 = vector.load %arg10[%c0_94, %c0_95, %c16_96] : memref<16x16x72xbf16, #tpu.memory_space<vmem>>, vector<16x16x8xbf16>
    tpu.vector_store %arg10[%c0_94, %c0_95, %c16_96], %58 {strides = array<i32>} : memref<16x16x72xbf16, #tpu.memory_space<vmem>>, vector<16x16x8xbf16>,
    %c1_97 = arith.constant 1 : index
    %c0_98 = arith.constant 0 : index
    %c0_99 = arith.constant 0 : index
    %60 = vector.load %arg9[%c1_97, %c0_98, %c0_99] : memref<18x18x8xf32, #tpu.memory_space<vmem>>, vector<16x16x8xf32>
    %61 = arith.truncf %60 : vector<16x16x8xf32> to vector<16x16x8xbf16>
    %c0_100 = arith.constant 0 : index
    %c0_101 = arith.constant 0 : index
    %c24_102 = arith.constant 24 : index
    %62 = vector.load %arg10[%c0_100, %c0_101, %c24_102] : memref<16x16x72xbf16, #tpu.memory_space<vmem>>, vector<16x16x8xbf16>
    tpu.vector_store %arg10[%c0_100, %c0_101, %c24_102], %61 {strides = array<i32>} : memref<16x16x72xbf16, #tpu.memory_space<vmem>>, vector<16x16x8xbf16>,
    %c1_103 = arith.constant 1 : index
    %c1_104 = arith.constant 1 : index
    %c0_105 = arith.constant 0 : index
    %63 = vector.load %arg9[%c1_103, %c1_104, %c0_105] : memref<18x18x8xf32, #tpu.memory_space<vmem>>, vector<16x16x8xf32>
    %64 = arith.truncf %63 : vector<16x16x8xf32> to vector<16x16x8xbf16>
    %c0_106 = arith.constant 0 : index
    %c0_107 = arith.constant 0 : index
    %c32_108 = arith.constant 32 : index
    %65 = vector.load %arg10[%c0_106, %c0_107, %c32_108] : memref<16x16x72xbf16, #tpu.memory_space<vmem>>, vector<16x16x8xbf16>
    tpu.vector_store %arg10[%c0_106, %c0_107, %c32_108], %64 {strides = array<i32>} : memref<16x16x72xbf16, #tpu.memory_space<vmem>>, vector<16x16x8xbf16>,
    %c1_109 = arith.constant 1 : index
    %c2_110 = arith.constant 2 : index
    %c0_111 = arith.constant 0 : index
    %66 = vector.load %arg9[%c1_109, %c2_110, %c0_111] : memref<18x18x8xf32, #tpu.memory_space<vmem>>, vector<16x16x8xf32>
    %67 = arith.truncf %66 : vector<16x16x8xf32> to vector<16x16x8xbf16>
    %c0_112 = arith.constant 0 : index
    %c0_113 = arith.constant 0 : index
    %c40 = arith.constant 40 : index
    %68 = vector.load %arg10[%c0_112, %c0_113, %c40] : memref<16x16x72xbf16, #tpu.memory_space<vmem>>, vector<16x16x8xbf16>
    tpu.vector_store %arg10[%c0_112, %c0_113, %c40], %67 {strides = array<i32>} : memref<16x16x72xbf16, #tpu.memory_space<vmem>>, vector<16x16x8xbf16>,
    %c2_114 = arith.constant 2 : index
    %c0_115 = arith.constant 0 : index
    %c0_116 = arith.constant 0 : index
    %69 = vector.load %arg9[%c2_114, %c0_115, %c0_116] : memref<18x18x8xf32, #tpu.memory_space<vmem>>, vector<16x16x8xf32>
    %70 = arith.truncf %69 : vector<16x16x8xf32> to vector<16x16x8xbf16>
    %c0_117 = arith.constant 0 : index
    %c0_118 = arith.constant 0 : index
    %c48 = arith.constant 48 : index
    %71 = vector.load %arg10[%c0_117, %c0_118, %c48] : memref<16x16x72xbf16, #tpu.memory_space<vmem>>, vector<16x16x8xbf16>
    tpu.vector_store %arg10[%c0_117, %c0_118, %c48], %70 {strides = array<i32>} : memref<16x16x72xbf16, #tpu.memory_space<vmem>>, vector<16x16x8xbf16>,
    %c2_119 = arith.constant 2 : index
    %c1_120 = arith.constant 1 : index
    %c0_121 = arith.constant 0 : index
    %72 = vector.load %arg9[%c2_119, %c1_120, %c0_121] : memref<18x18x8xf32, #tpu.memory_space<vmem>>, vector<16x16x8xf32>
    %73 = arith.truncf %72 : vector<16x16x8xf32> to vector<16x16x8xbf16>
    %c0_122 = arith.constant 0 : index
    %c0_123 = arith.constant 0 : index
    %c56 = arith.constant 56 : index
    %74 = vector.load %arg10[%c0_122, %c0_123, %c56] : memref<16x16x72xbf16, #tpu.memory_space<vmem>>, vector<16x16x8xbf16>
    tpu.vector_store %arg10[%c0_122, %c0_123, %c56], %73 {strides = array<i32>} : memref<16x16x72xbf16, #tpu.memory_space<vmem>>, vector<16x16x8xbf16>,
    %c2_124 = arith.constant 2 : index
    %c2_125 = arith.constant 2 : index
    %c0_126 = arith.constant 0 : index
    %75 = vector.load %arg9[%c2_124, %c2_125, %c0_126] : memref<18x18x8xf32, #tpu.memory_space<vmem>>, vector<16x16x8xf32>
    %76 = arith.truncf %75 : vector<16x16x8xf32> to vector<16x16x8xbf16>
    %c0_127 = arith.constant 0 : index
    %c0_128 = arith.constant 0 : index
    %c64 = arith.constant 64 : index
    %77 = vector.load %arg10[%c0_127, %c0_128, %c64] : memref<16x16x72xbf16, #tpu.memory_space<vmem>>, vector<16x16x8xbf16>
    tpu.vector_store %arg10[%c0_127, %c0_128, %c64], %76 {strides = array<i32>} : memref<16x16x72xbf16, #tpu.memory_space<vmem>>, vector<16x16x8xbf16>,
    %c0_129 = arith.constant 0 : index
    %c0_130 = arith.constant 0 : index
    %c0_131 = arith.constant 0 : index
    %78 = vector.load %arg10[%c0_129, %c0_130, %c0_131] : memref<16x16x72xbf16, #tpu.memory_space<vmem>>, vector<16x16x72xbf16>
    %79 = vector.shape_cast %78 : vector<16x16x72xbf16> to vector<256x72xbf16>
    %c0_132 = arith.constant 0 : index
    %c0_133 = arith.constant 0 : index
    %80 = vector.load %arg4[%c0_132, %c0_133] : memref<72x128xbf16, #tpu.memory_space<vmem>>, vector<72x128xbf16>
    %cst_134 = arith.constant dense<0.000000e+00> : vector<256x128xf32>
    %81 = tpu.matmul %79, %80, %cst_134 {dimension_numbers = #tpu.dot_dimension_numbers<[1], [0], [0], [1], [0, 0, 1, 1], [], []>} : vector<256x72xbf16>, vector<72x128xbf16>, vector<256x128xf32> -> vector<256x128xf32>
    %c1_135 = arith.constant 1 : index
    %82 = memref.load %arg6[%c1_135] : memref<2xf32, #tpu.memory_space<smem>>
    %c0_136 = arith.constant 0 : index
    %c0_137 = arith.constant 0 : index
    %83 = vector.load %arg5[%c0_136, %c0_137] : memref<1x128xf32, #tpu.memory_space<vmem>>, vector<1x128xf32>
    %84 = vector.broadcast %83 : vector<1x128xf32> to vector<256x128xf32>
    %85 = arith.addf %81, %84 : vector<256x128xf32>
    %cst_138 = arith.constant 0.000000e+00 : f32
    %86 = vector.broadcast %cst_138 : f32 to vector<256x128xf32>
    %87 = arith.cmpf oge, %85, %86 : vector<256x128xf32>
    %88 = vector.broadcast %82 : f32 to vector<256x128xf32>
    %89 = arith.mulf %88, %85 : vector<256x128xf32>
    %90 = arith.select %87, %85, %89 : vector<256x128xi1>, vector<256x128xf32>
    %c0_139 = arith.constant 0 : index
    %c0_140 = arith.constant 0 : index
    %c0_141 = arith.constant 0 : index
    %91 = vector.load %arg7[%c0_139, %c0_140, %c0_141] : memref<1x256x128xf32, #tpu.memory_space<vmem>>, vector<1x256x128xf32>
    %92 = vector.shape_cast %91 : vector<1x256x128xf32> to vector<256x128xf32>
    %93 = vector.shape_cast %90 : vector<256x128xf32> to vector<1x256x128xf32>
    tpu.vector_store %arg7[%c0_139, %c0_140, %c0_141], %93 {strides = array<i32>} : memref<1x256x128xf32, #tpu.memory_space<vmem>>, vector<1x256x128xf32>,
    return
  }
  func.func @transform_0(%arg0: i32) -> (i32, i32, i32, i32) {
    %c0_i32 = arith.constant 0 : i32
    %c0_i32_0 = arith.constant 0 : i32
    %c0_i32_1 = arith.constant 0 : i32
    %c0_i32_2 = arith.constant 0 : i32
    return %arg0, %c0_i32, %c0_i32_0, %c0_i32_1 : i32, i32, i32, i32
  }
  func.func @transform_1(%arg0: i32) -> (i32, i32) {
    %c0_i32 = arith.constant 0 : i32
    %c0_i32_0 = arith.constant 0 : i32
    %c0_i32_1 = arith.constant 0 : i32
    return %c0_i32, %c0_i32_0 : i32, i32
  }
  func.func @transform_2(%arg0: i32) -> (i32, i32) {
    %c0_i32 = arith.constant 0 : i32
    %c0_i32_0 = arith.constant 0 : i32
    %c0_i32_1 = arith.constant 0 : i32
    return %c0_i32, %c0_i32_0 : i32, i32
  }
  func.func @transform_3(%arg0: i32) -> (i32, i32) {
    %c0_i32 = arith.constant 0 : i32
    %c0_i32_0 = arith.constant 0 : i32
    %c0_i32_1 = arith.constant 0 : i32
    return %c0_i32, %c0_i32_0 : i32, i32
  }
  func.func @transform_4(%arg0: i32) -> (i32, i32) {
    %c0_i32 = arith.constant 0 : i32
    %c0_i32_0 = arith.constant 0 : i32
    %c0_i32_1 = arith.constant 0 : i32
    return %c0_i32, %c0_i32_0 : i32, i32
  }
  func.func @transform_5(%arg0: i32) -> i32 {
    %c0_i32 = arith.constant 0 : i32
    %c0_i32_0 = arith.constant 0 : i32
    return %c0_i32 : i32
  }
  func.func @transform_6(%arg0: i32) -> (i32, i32, i32) {
    %c0_i32 = arith.constant 0 : i32
    %c0_i32_0 = arith.constant 0 : i32
    %c0_i32_1 = arith.constant 0 : i32
    return %arg0, %c0_i32, %c0_i32_0 : i32, i32, i32
  }
}

</mosaic_0001>

<bundles_post_ra>
// kernel: standard_unit_forward.1
= control target key start
LH: loop header
LB: loop body
LE: loop exit
PB: predicated region body
PF: predicated region fallthrough
CT: control target
= control target key end

     0   :  { %11 = vsyncpa [#allocation6], 0  ;;  %s6924_s21 = smov 0   ;;  %s9512_s0 = inlined_call_operand.vmem [shape: bf16[2,18,18,4], index: 0, kind: input, shape index: {}]   ;;  %s9513_s1 = inlined_call_operand.vmem [shape: bf16[36,128], index: 1, kind: input, shape index: {}]   ;;  %s9514_s2 = inlined_call_operand.vmem [shape: f32[1,128], index: 2, kind: input, shape index: {}]   ;;  %s9515_s3 = inlined_call_operand.vmem [shape: bf16[72,128], index: 3, kind: input, shape index: {}]   ;;  %s9516_s4 = inlined_call_operand.vmem [shape: f32[1,128], index: 4, kind: input, shape index: {}]   ;;  %s9517_s5 = inlined_call_operand.vmem [shape: f32[2], index: 5, kind: input, shape index: {}]   ;;  %s9518_s6 = inlined_call_operand.vmem [shape: f32[2,256,128], index: 6, kind: output, shape index: {}]  }
   0x1 LB: > { %s6264_s22 = sadd.s32 4294967295, %s6873_s21   ;;  %p6266_p0 = scmp.ge.s32.totalorder %s6873_s21, 1  ;;  %s6873_s21 = sphi %s6924_s21, %s17_s21  }
   0x2   : > { %p179_p1 = scmp.lt.s32.totalorder %s6873_s21, 3  ;;  %s203_s25 = sshll.u32 %s9517_s5, 4  ;;  %s204_s25 = int_to_ptr.vmem [resolvable:$true] %s203_s25 }
   0x3   : > { %p6821_p3 = scmp.eq.s32.totalorder %s6264_s22, 0  ;;  %s6875_s26 = smov [#allocation5]  }
   0x4   : > { %p180_p2 = pnand %p6266_p0, %p179_p1 }
   0x6   : > { %p6817_p4 = pneg %p180_p2  ;;  %224 = sbr.rel (%p180_p2) target bundleno = 1917 (0x77d), region = 44 }
   0x8   : > { %p6818_p5 = pnand %p6821_p3, %p6817_p4 }
   0xa   : > { %6820 = dma.vmem_to_smem (!%p6818_p5), %s204_s25, 16, %s6875_s26, [#allocation6]  }
   0xb   : > { %6868 = dma.done.wait (%p6821_p3), [#allocation6], 16  }
   0xc   : > { %6870 = vsyncadd (%p6821_p3), [#allocation6], 4294967280 }
   0xd   : > { %231 = sfence }
   0xe   : > { %p256_p6 = scmp.lt.s32.totalorder %s6264_s22, 1  ;;  %vm380_vm0 = vsmask.f32 3328  ;;  %vm381_vm1 = vsmask.f32 7440  ;;  %s6876_s7 = smov 4  }
   0xf   : > { %vm6951_vm2 = vmor %vm380_vm0, %vm381_vm1  ;;  %vm992_vm3 = vcmask 1042432   ;;  %vm993_vm4 = vcmask 1046532   ;;  %vm299_vm5 = vcmask 27648   ;;  %s6877_s8 = smov 8   ;;  %vm863_vm7 = vcmask 60448   ;;  %s6878_s9 = smov 12  }
  0x10   : > { %s9524_s22 = smov (!%p256_p6, %s6264_s22), 1  ;;  %vm7110_vm6 = vmor %vm992_vm3, %vm993_vm4  ;;  %vm1203_vm8 = vcmask 93248   ;;  %s6879_s10 = smov 16   ;;  %vm1397_vm9 = vcmask 126048   ;;  %vm1958_vm10 = vcmask 158848   ;;  %vm2295_vm11 = vcmask 191648  }
  0x11   : > { %s6812_s27 = smul.u32 216, %s9524_s22  ;;  %s6880_s11 = smov 20   ;;  %vm2489_vm12 = vcmask 224448   ;;  %vm3050_vm13 = vcmask 257248   ;;  %vm3606_vm14 = vcmask 1041408   ;;  %vm3387_vm15 = vcmask 290048  }
  0x12   : > { %s6881_s12 = smov 24   ;;  %s6882_s13 = smov 28   ;;  %vm3557_vm0 = vcmask 293888   ;;  %vm3796_vm1 = vcmask 64512   ;;  %vm3799_vm3 = vcmask 58368  }
  0x13   : > { %s6941_s30 = scalar_lea.vmem %s9512_s0, %s6812_s27  ;;  %s6883_s14 = smov 32  }
  0x14   : > { %v332_v0 = vld [vmem:[%s6941_s30] sm:$0xf]  ;;  %v333_v1 = vld [vmem:[%s6941_s30 + $0x4] sm:$0xf]  ;;  %v335_v6 = vld [vmem:[%s6941_s30 + $0xc] sm:$0xf] }
  0x15   : > { %v384_v2 = vshrl.u32 %v332_v0, 16  ;;  %v387_v3 = vshll.u32 %v332_v0, 16  ;;  %v393_v4 = vshll.u32 %v333_v1, 16  ;;  %v397_v5 = vshrl.u32 %v333_v1, 16  ;;  %v336_v7 = vld [vmem:[%s6941_s30 + $0x10] sm:$0xf] }
  0x16   : > { %v408_v8 = vshrl.u32 %v335_v6, 16  ;;  %v411_v9 = vshll.u32 %v335_v6, 16  ;;  %v341_v13 = vld [vmem:[%s6941_s30 + $0x24] sm:$0xf]  ;;  %v334_v14 = vld [vmem:[%s6941_s30 + $0x8] sm:$0x1] }
  0x17   : > { %v386_v10 = vrot.slane %v384_v2, 4  ;;  %v389_v11 = vrot.slane %v387_v3, 5  ;;  %v399_v12 = vrot.slane %v397_v5, 4  ;;  %v417_v17 = vshll.u32 %v336_v7, 16  ;;  %v337_v26 = vld [vmem:[%s6941_s30 + $0x14] sm:$0x1] }
  0x18   : > { %v410_v15 = vrot.slane %v408_v8, 4  ;;  %v413_v16 = vrot.slane %v411_v9, 5  ;;  %v395_v19 = vrot.slane %v393_v4, 5  ;;  %v421_v20 = vshrl.u32 %v336_v7, 16  ;;  %v342_v31 = vld [vmem:[%s6941_s30 + $0x28] sm:$0xf] }
  0x19   : > { %v390_v18 = vor.u32 %v389_v11, %v386_v10  ;;  %v456_v21 = vshrl.u32 %v341_v13, 16  ;;  %v419_v24 = vrot.slane %v417_v17, 5  ;;  %v459_v25 = vshll.u32 %v341_v13, 16  ;;  %v338_v34 = vld [vmem:[%s6941_s30 + $0x18] sm:$0xf]  ;;  %s3457_s23 = sld [smem:[#allocation5]] }
  0x1a   : > { %v414_v23 = vor.u32 %v413_v16, %v410_v15  ;;  %v400_v28 = vor.u32 %v399_v12, %v395_v19  ;;  %v403_v29 = vshll.u32 %v334_v14, 16  ;;  %v423_v30 = vrot.slane %v421_v20, 4  ;;  %v339_v41 = vld [vmem:[%s6941_s30 + $0x1c] sm:$0xf]  ;;  %v345_v45 = vld [vmem:[%s6941_s30 + $0x34] sm:$0xf] }
  0x1b   : > { %v391_v27 = vrot.slane %v390_v18, 4  ;;  %v458_v33 = vrot.slane %v456_v21, 4  ;;  %v461_v36 = vrot.slane %v459_v25, 5  ;;  %v427_v38 = vshll.u32 %v337_v26, 16  ;;  %v343_v50 = vld [vmem:[%s6941_s30 + $0x2c] sm:$0x1] }
  0x1c   : > { %v415_v32 = vrot.slane %v414_v23, 4  ;;  %v424_v37 = vor.u32 %v423_v30, %v419_v24  ;;  %v465_v40 = vshll.u32 %v342_v31, 16  ;;  %v401_v42 = vrot.slane %v400_v28, 4  ;;  %v340_v2 = vld [vmem:[%s6941_s30 + $0x20] sm:$0x1]  ;;  %s6885_s28 = smov 40  }
  0x1d   : > { %v396_v35 = vsel %vm6951_vm2, %v391_v27, %v395_v19  ;;  %v405_v43 = vrot.slane %v403_v29, 5  ;;  %v469_v44 = vshrl.u32 %v342_v31, 16  ;;  %v432_v46 = vshrl.u32 %v338_v34, 16  ;;  %v347_v5 = vld [vmem:[%s6941_s30 + $0x3c] sm:$0xf]  ;;  %s6886_s29 = smov 48  }
  0x1e   : > { %767 = vrot.lane.b32.xlu0 %v396_v35, %s6876_s7  ;;  %v420_v39 = vsel %vm6951_vm2, %v415_v32, %v419_v24  ;;  %v425_v47 = vrot.slane %v424_v37, 4  ;;  %v429_v48 = vrot.slane %v427_v38, 5  ;;  %v435_v49 = vshll.u32 %v338_v34, 16  ;;  %v346_v6 = vld [vmem:[%s6941_s30 + $0x38] sm:$0x1]  ;;  %s6666_s18 = sld [smem:[#allocation5 + $0x1]] }
  0x1f   : > { %771 = vrot.lane.b32.xlu1 %v420_v39, %s6876_s7  ;;  %v462_v51 = vor.u32 %v461_v36, %v458_v33  ;;  %v434_v52 = vrot.slane %v432_v46, 4  ;;  %v441_v53 = vshll.u32 %v339_v41, 16  ;;  %v467_v54 = vrot.slane %v465_v40, 5  ;;  %v350_v15 = vld [vmem:[%s6941_s30 + $0x48] sm:$0xf] }
  0x20   : > { %v489_v55 = vshll.u32 %v345_v45, 16  ;;  %v437_v56 = vrot.slane %v435_v49, 5  ;;  %v445_v57 = vshrl.u32 %v339_v41, 16  ;;  %v406_v58 = vsel %vm6951_vm2, %v401_v42, %v405_v43  ;;  %v348_v20 = vld [vmem:[%s6941_s30 + $0x40] sm:$0xf] }
  0x21   : > { %v493_v59 = vshrl.u32 %v345_v45, 16  ;;  %v471_v60 = vrot.slane %v469_v44, 4  ;;  %v475_v61 = vshll.u32 %v343_v50, 16  ;;  %v430_v62 = vsel %vm6951_vm2, %v425_v47, %v429_v48  ;;  %v344_v21 = vld [vmem:[%s6941_s30 + $0x30] sm:$0xf] }
  0x22   : > { %v438_v63 = vor.u32 %v437_v56, %v434_v52  ;;  %v443_v0 = vrot.slane %v441_v53, 5  ;;  %v447_v1 = vrot.slane %v445_v57, 4  ;;  %v463_v3 = vrot.slane %v462_v51, 4  ;;  %v351_v23 = vld [vmem:[%s6941_s30 + $0x4c] sm:$0xf] }
  0x23   : > { %v472_v4 = vor.u32 %v471_v60, %v467_v54  ;;  %v6975_v7 = vrot.slane %v489_v55, 5  ;;  %v495_v9 = vrot.slane %v493_v59, 4  ;;  %v477_v10 = vrot.slane %v475_v61, 5  ;;  %v354_v41 = vld [vmem:[%s6941_s30 + $0x58] sm:$0xf] }
  0x24   : > { %v439_v8 = vrot.slane %v438_v63, 4  ;;  %v448_v11 = vor.u32 %v447_v1, %v443_v0  ;;  %v451_v12 = vshll.u32 %v340_v2, 16  ;;  %v504_v16 = vshrl.u32 %v347_v5, 16  ;;  %v352_v49 = vld [vmem:[%s6941_s30 + $0x50] sm:$0x1] }
  0x25   : > { %v473_v14 = vrot.slane %v472_v4, 4  ;;  %v507_v17 = vshll.u32 %v347_v5, 16  ;;  %v468_v18 = vsel %vm6951_vm2, %v463_v3, %v467_v54  ;;  %v499_v19 = vshll.u32 %v346_v6, 16  ;;  %v356_v53 = vld [vmem:[%s6941_s30 + $0x60] sm:$0xf] }
  0x26   : > { %769 = vrot.lane.b32.xlu0 %v406_v58, %s6876_s7  ;;  %v444_v13 = vsel %vm6951_vm2, %v439_v8, %v443_v0  ;;  %v449_v24 = vrot.slane %v448_v11, 4  ;;  %v453_v25 = vrot.slane %v451_v12, 5  ;;  %v506_v26 = vrot.slane %v504_v16, 4  ;;  %v349_v61 = vld [vmem:[%s6941_s30 + $0x44] sm:$0x1] }
  0x27   : > { %773 = vrot.lane.b32.xlu1 %v430_v62, %s6876_s7  ;;  %775 = vrot.lane.b32.xlu2 %v444_v13, %s6876_s7  ;;  %v509_v27 = vrot.slane %v507_v17, 5  ;;  %v496_v28 = vor.u32 %v495_v9, %v6975_v7  ;;  %v528_v29 = vshrl.u32 %v350_v15, 16  ;;  %v531_v30 = vshll.u32 %v350_v15, 16  ;;  %v353_v3 = vld [vmem:[%s6941_s30 + $0x54] sm:$0xf] }
  0x28   : > { %v541_v31 = vshrl.u32 %v351_v23, 16  ;;  %v478_v32 = vsel %vm6951_vm2, %v473_v14, %v477_v10  ;;  %v513_v34 = vshll.u32 %v348_v20, 16  ;;  %v480_v35 = vshrl.u32 %v344_v21, 16  ;;  %v355_v4 = vld [vmem:[%s6941_s30 + $0x5c] sm:$0x1] }
  0x29   : > { %v510_v33 = vor.u32 %v509_v27, %v506_v26  ;;  %v501_v36 = vrot.slane %v499_v19, 5  ;;  %v483_v37 = vshll.u32 %v344_v21, 16  ;;  %v537_v38 = vshll.u32 %v351_v23, 16  ;;  %v359_v13 = vld [vmem:[%s6941_s30 + $0x6c] sm:$0xf] }
  0x2a   : > { %v454_v39 = vsel %vm6951_vm2, %v449_v24, %v453_v25  ;;  %v517_v40 = vshrl.u32 %v348_v20, 16  ;;  %v482_v42 = vrot.slane %v480_v35, 4  ;;  %v497_v43 = vrot.slane %v496_v28, 4 }
  0x2b   : > { %v530_v44 = vrot.slane %v528_v29, 4  ;;  %v533_v45 = vrot.slane %v531_v30, 5  ;;  %v485_v46 = vrot.slane %v483_v37, 5  ;;  %v511_v47 = vrot.slane %v510_v33, 4 }
  0x2c   : > { %v515_v48 = vrot.slane %v513_v34, 5  ;;  %v543_v50 = vrot.slane %v541_v31, 4  ;;  %v561_v51 = vshll.u32 %v354_v41, 16  ;;  %v539_v54 = vrot.slane %v537_v38, 5 }
  0x2d   : > { %v486_v52 = vor.u32 %v485_v46, %v482_v42  ;;  %v565_v55 = vshrl.u32 %v354_v41, 16  ;;  %v519_v56 = vrot.slane %v517_v40, 4  ;;  %v502_v57 = vsel %vm6951_vm2, %v497_v43, %v501_v36  ;;  %v363_v41 = vld [vmem:[%s6941_s30 + $0x7c] sm:$0xf]  ;;  %v365_v46 = vld [vmem:[%s6941_s30 + $0x84] sm:$0xf] }
  0x2e   : > { %779 = vrot.lane.b32.xlu0 %v468_v18, %s6876_s7  ;;  %v534_v58 = vor.u32 %v533_v45, %v530_v44  ;;  %v547_v60 = vshll.u32 %v352_v49, 16  ;;  %v516_v62 = vsel %vm6951_vm2, %v511_v47, %v515_v48  ;;  %v544_v63 = vor.u32 %v543_v50, %v539_v54  ;;  %v357_v18 = vld [vmem:[%s6941_s30 + $0x64] sm:$0xf]  ;;  %v361_v44 = vld [vmem:[%s6941_s30 + $0x74] sm:$0x1] }
  0x2f   : > { %781 = vrot.lane.b32.xlu1 %v478_v32, %s6876_s7  ;;  %777 = vrot.lane.b32.xlu2 %v454_v39, %s6876_s7  ;;  %v487_v59 = vrot.slane %v486_v52, 4  ;;  %v576_v0 = vshrl.u32 %v356_v53, 16  ;;  %v579_v1 = vshll.u32 %v356_v53, 16  ;;  %v7003_v2 = vrot.slane %v561_v51, 5 }
  0x30   : > { %v567_v5 = vrot.slane %v565_v55, 4  ;;  %v520_v8 = vor.u32 %v519_v56, %v515_v48  ;;  %v523_v9 = vshll.u32 %v349_v61, 16  ;;  %v535_v10 = vrot.slane %v534_v58, 4  ;;  %v358_v55 = vld [vmem:[%s6941_s30 + $0x68] sm:$0x1] }
  0x31   : > { %v492_v6 = vsel %vm6951_vm2, %v487_v59, %v6975_v7  ;;  %v549_v11 = vrot.slane %v547_v60, 5  ;;  %v545_v12 = vrot.slane %v544_v63, 4  ;;  %v578_v14 = vrot.slane %v576_v0, 4  ;;  %v360_v7 = vld [vmem:[%s6941_s30 + $0x70] sm:$0xf] }
  0x32   : > { %v581_v15 = vrot.slane %v579_v1, 5  ;;  %v552_v16 = vshrl.u32 %v353_v3, 16  ;;  %v571_v17 = vshll.u32 %v355_v4, 16  ;;  %v555_v19 = vshll.u32 %v353_v3, 16  ;;  %v362_v60 = vld [vmem:[%s6941_s30 + $0x78] sm:$0xf] }
  0x33   : > { %v568_v20 = vor.u32 %v567_v5, %v7003_v2  ;;  %v521_v21 = vrot.slane %v520_v8, 4  ;;  %v525_v23 = vrot.slane %v523_v9, 5  ;;  %v540_v25 = vsel %vm6951_vm2, %v535_v10, %v539_v54  ;;  %v368_v0 = vld [vmem:[%s6941_s30 + $0x90] sm:$0xf]  ;;  %v364_v8 = vld [vmem:[%s6941_s30 + $0x80] sm:$0x1] }
  0x34   : > { %v554_v24 = vrot.slane %v552_v16, 4  ;;  %v600_v26 = vshrl.u32 %v359_v13, 16  ;;  %v603_v27 = vshll.u32 %v359_v13, 16  ;;  %v557_v28 = vrot.slane %v555_v19, 5 }
  0x35   : > { %v550_v29 = vsel %vm6951_vm2, %v545_v12, %v549_v11  ;;  %v613_v30 = vshrl.u32 %v360_v7, 16  ;;  %v582_v31 = vor.u32 %v581_v15, %v578_v14  ;;  %v585_v32 = vshll.u32 %v357_v18, 16  ;;  %v366_v14 = vld [vmem:[%s6941_s30 + $0x88] sm:$0xf] }
  0x36   : > { %785 = vrot.lane.b32.xlu0 %v502_v57, %s6876_s7  ;;  %v573_v33 = vrot.slane %v571_v17, 5  ;;  %v609_v34 = vshll.u32 %v360_v7, 16  ;;  %v569_v35 = vrot.slane %v568_v20, 4  ;;  %v526_v36 = vsel %vm6951_vm2, %v521_v21, %v525_v23  ;;  %v369_v21 = vld [vmem:[%s6941_s30 + $0x94] sm:$0xf] }
  0x37   : > { %787 = vrot.lane.b32.xlu1 %v516_v62, %s6876_s7  ;;  %783 = vrot.lane.b32.xlu2 %v492_v6, %s6876_s7  ;;  %v589_v37 = vshrl.u32 %v357_v18, 16  ;;  %v558_v38 = vor.u32 %v557_v28, %v554_v24  ;;  %v602_v39 = vrot.slane %v600_v26, 4  ;;  %v605_v40 = vrot.slane %v603_v27, 5 }
  0x38   : > { %v583_v42 = vrot.slane %v582_v31, 4  ;;  %v587_v43 = vrot.slane %v585_v32, 5  ;;  %v615_v45 = vrot.slane %v613_v30, 4  ;;  %v574_v47 = vsel %vm6951_vm2, %v569_v35, %v573_v33  ;;  %v372_v35 = vld [vmem:[%s6941_s30 + $0xa0] sm:$0xf] }
  0x39   : > { %v611_v48 = vrot.slane %v609_v34, 5  ;;  %v559_v49 = vrot.slane %v558_v38, 4  ;;  %v591_v50 = vrot.slane %v589_v37, 4  ;;  %v606_v51 = vor.u32 %v605_v40, %v602_v39  ;;  %v370_v38 = vld [vmem:[%s6941_s30 + $0x98] sm:$0x1] }
  0x3a   : > { %v633_v52 = vshll.u32 %v363_v41, 16  ;;  %v637_v53 = vshrl.u32 %v363_v41, 16  ;;  %v619_v54 = vshll.u32 %v361_v44, 16  ;;  %v588_v56 = vsel %vm6951_vm2, %v583_v42, %v587_v43  ;;  %v374_v42 = vld [vmem:[%s6941_s30 + $0xa8] sm:$0xf] }
  0x3b   : > { %v616_v57 = vor.u32 %v615_v45, %v611_v48  ;;  %v648_v58 = vshrl.u32 %v365_v46, 16  ;;  %v651_v59 = vshll.u32 %v365_v46, 16  ;;  %v624_v61 = vshrl.u32 %v362_v60, 16 }
  0x3c   : > { %v627_v62 = vshll.u32 %v362_v60, 16  ;;  %v564_v63 = vsel %vm6951_vm2, %v559_v49, %v7003_v2  ;;  %v592_v1 = vor.u32 %v591_v50, %v587_v43  ;;  %v595_v3 = vshll.u32 %v358_v55, 16  ;;  %v367_v49 = vld [vmem:[%s6941_s30 + $0x8c] sm:$0x1] }
  0x3d   : > { %v607_v4 = vrot.slane %v606_v51, 4  ;;  %v7041_v5 = vrot.slane %v633_v52, 5  ;;  %v639_v6 = vrot.slane %v637_v53, 4  ;;  %v617_v9 = vrot.slane %v616_v57, 4 }
  0x3e   : > { %791 = vrot.lane.b32.xlu0 %v540_v25, %s6876_s7  ;;  %v621_v10 = vrot.slane %v619_v54, 5  ;;  %v650_v11 = vrot.slane %v648_v58, 4  ;;  %v653_v12 = vrot.slane %v651_v59, 5  ;;  %v672_v13 = vshrl.u32 %v368_v0, 16  ;;  %v371_v54 = vld [vmem:[%s6941_s30 + $0x9c] sm:$0xf] }
  0x3f   : > { %793 = vrot.lane.b32.xlu1 %v550_v29, %s6876_s7  ;;  %789 = vrot.lane.b32.xlu2 %v526_v36, %s6876_s7  ;;  %v675_v2 = vshll.u32 %v368_v0, 16  ;;  %v626_v15 = vrot.slane %v624_v61, 4  ;;  %v629_v16 = vrot.slane %v627_v62, 5  ;;  %v593_v17 = vrot.slane %v592_v1, 4  ;;  %v373_v61 = vld [vmem:[%s6941_s30 + $0xa4] sm:$0x1] }
  0x40   : > { %v597_v18 = vrot.slane %v595_v3, 5  ;;  %v612_v19 = vsel %vm6951_vm2, %v607_v4, %v611_v48  ;;  %v640_v20 = vor.u32 %v639_v6, %v7041_v5  ;;  %v643_v7 = vshll.u32 %v364_v8, 16  ;;  %v377_v3 = vld [vmem:[%s6941_s30 + $0xb4] sm:$0xf]  ;;  %v375_v8 = vld [vmem:[%s6941_s30 + $0xac] sm:$0xf] }
  0x41   : > { %v622_v23 = vsel %vm6951_vm2, %v617_v9, %v621_v10  ;;  %v685_v24 = vshrl.u32 %v369_v21, 16  ;;  %v654_v25 = vor.u32 %v653_v12, %v650_v11  ;;  %v657_v26 = vshll.u32 %v366_v14, 16 }
  0x42   : > { %v674_v27 = vrot.slane %v672_v13, 4  ;;  %v677_v28 = vrot.slane %v675_v2, 5  ;;  %v630_v29 = vor.u32 %v629_v16, %v626_v15  ;;  %v681_v30 = vshll.u32 %v369_v21, 16 }
  0x43   : > { %v598_v31 = vsel %vm6951_vm2, %v593_v17, %v597_v18  ;;  %v661_v32 = vshrl.u32 %v366_v14, 16  ;;  %v641_v33 = vrot.slane %v640_v20, 4  ;;  %v645_v34 = vrot.slane %v643_v7, 5  ;;  %v378_v14 = vld [vmem:[%s6941_s30 + $0xb8] sm:$0xf] }
  0x44   : > { %v655_v36 = vrot.slane %v654_v25, 4  ;;  %v659_v37 = vrot.slane %v657_v26, 5  ;;  %v687_v39 = vrot.slane %v685_v24, 4  ;;  %v678_v40 = vor.u32 %v677_v28, %v674_v27 }
  0x45   : > { %v631_v41 = vrot.slane %v630_v29, 4  ;;  %v683_v43 = vrot.slane %v681_v30, 5  ;;  %v663_v44 = vrot.slane %v661_v32, 4  ;;  %v646_v45 = vsel %vm6951_vm2, %v641_v33, %v645_v34  ;;  %v379_v32 = vld [vmem:[%s6941_s30 + $0xbc] sm:$0x1] }
  0x46   : > { %797 = vrot.lane.b32.xlu0 %v574_v47, %s6876_s7  ;;  %v705_v46 = vshll.u32 %v372_v35, 16  ;;  %v709_v47 = vshrl.u32 %v372_v35, 16  ;;  %v691_v48 = vshll.u32 %v370_v38, 16  ;;  %v660_v50 = vsel %vm6951_vm2, %v655_v36, %v659_v37  ;;  %v376_v38 = vld [vmem:[%s6941_s30 + $0xb0] sm:$0x1] }
  0x47   : > { %799 = vrot.lane.b32.xlu1 %v588_v56, %s6876_s7  ;;  %795 = vrot.lane.b32.xlu2 %v564_v63, %s6876_s7  ;;  %v688_v51 = vor.u32 %v687_v39, %v683_v43  ;;  %v720_v52 = vshrl.u32 %v374_v42, 16  ;;  %v723_v53 = vshll.u32 %v374_v42, 16  ;;  %v679_v55 = vrot.slane %v678_v40, 4 }
  0x48   : > { %v636_v56 = vsel %vm6951_vm2, %v631_v41, %v7041_v5  ;;  %v664_v57 = vor.u32 %v663_v44, %v659_v37  ;;  %v667_v58 = vshll.u32 %v367_v49, 16  ;;  %v696_v59 = vshrl.u32 %v371_v54, 16 }
  0x49   : > { %v699_v60 = vshll.u32 %v371_v54, 16  ;;  %v707_v62 = vrot.slane %v705_v46, 5  ;;  %v711_v63 = vrot.slane %v709_v47, 4  ;;  %v689_v0 = vrot.slane %v688_v51, 4  ;;  %v897_v46 = vld [vmem:[%s6941_s30 + $0x4] sm:$0xf] }
  0x4a   : > { %v693_v1 = vrot.slane %v691_v48, 5  ;;  %v722_v4 = vrot.slane %v720_v52, 4  ;;  %v725_v6 = vrot.slane %v723_v53, 5  ;;  %v684_v5 = vsel %vm6951_vm2, %v679_v55, %v683_v43  ;;  %v898_v53 = vld [vmem:[%s6941_s30 + $0x8] sm:$0x1] }
  0x4b   : > { %v665_v9 = vrot.slane %v664_v57, 4  ;;  %v669_v10 = vrot.slane %v667_v58, 5  ;;  %v698_v11 = vrot.slane %v696_v59, 4  ;;  %v701_v12 = vrot.slane %v699_v60, 5  ;;  %v899_v55 = vld [vmem:[%s6941_s30 + $0xc] sm:$0xe] }
  0x4c   : > { %v712_v13 = vor.u32 %v711_v63, %v707_v62  ;;  %v715_v2 = vshll.u32 %v373_v61, 16  ;;  %v744_v15 = vshrl.u32 %v377_v3, 16  ;;  %v747_v16 = vshll.u32 %v377_v3, 16  ;;  %v896_v60 = vld [vmem:[%s6941_s30] sm:$0xe] }
  0x4d   : > { %v694_v17 = vsel %vm6951_vm2, %v689_v0, %v693_v1  ;;  %v757_v18 = vshrl.u32 %v378_v14, 16  ;;  %v729_v20 = vshll.u32 %v375_v8, 16  ;;  %v753_v7 = vshll.u32 %v378_v14, 16  ;;  %v267_v61 = vld [vmem:[%s6941_s30] sm:$0xf] }
  0x4e   : > { %803 = vrot.lane.b32.xlu0 %v612_v19, %s6876_s7  ;;  %v726_v19 = vor.u32 %v725_v6, %v722_v4  ;;  %v670_v21 = vsel %vm6951_vm2, %v665_v9, %v669_v10  ;;  %v702_v24 = vor.u32 %v701_v12, %v698_v11  ;;  %v713_v25 = vrot.slane %v712_v13, 4  ;;  %300 = vst.msk [vmem:[#allocation2] sm:$0xf] %vm299_vm5, %v267_v61  ;;  %v902_v4 = vld [vmem:[%s6941_s30 + $0x18] sm:$0xe] }
  0x4f   : > { %805 = vrot.lane.b32.xlu1 %v622_v23, %s6876_s7  ;;  %801 = vrot.lane.b32.xlu2 %v598_v31, %s6876_s7  ;;  %v733_v23 = vshrl.u32 %v375_v8, 16  ;;  %v717_v26 = vrot.slane %v715_v2, 5  ;;  %v746_v27 = vrot.slane %v744_v15, 4  ;;  %v749_v28 = vrot.slane %v747_v16, 5  ;;  %v903_v6 = vld [vmem:[%s6941_s30 + $0x1c] sm:$0xf] }
  0x50   : > { %v727_v29 = vrot.slane %v726_v19, 4  ;;  %v731_v30 = vrot.slane %v729_v20, 5  ;;  %v759_v31 = vrot.slane %v757_v18, 4  ;;  %v755_v33 = vrot.slane %v753_v7, 5  ;;  %v904_v8 = vld [vmem:[%s6941_s30 + $0x20] sm:$0x1] }
  0x51   : > { %v703_v34 = vrot.slane %v702_v24, 4  ;;  %v735_v35 = vrot.slane %v733_v23, 4  ;;  %v718_v36 = vsel %vm6951_vm2, %v713_v25, %v717_v26  ;;  %v750_v37 = vor.u32 %v749_v28, %v746_v27  ;;  %v906_v11 = vld [vmem:[%s6941_s30 + $0x28] sm:$0xf]  ;;  %v271_v13 = vld [vmem:[%s6941_s30 + $0x18] sm:$0xf] }
  0x52   : > { %v732_v39 = vsel %vm6951_vm2, %v727_v29, %v731_v30  ;;  %v760_v40 = vor.u32 %v759_v31, %v755_v33  ;;  %v763_v41 = vshll.u32 %v379_v32, 16  ;;  %v739_v44 = vshll.u32 %v376_v38, 16  ;;  %v901_v2 = vld [vmem:[%s6941_s30 + $0x14] sm:$0x1]  ;;  %304 = vst.msk [vmem:[#allocation2 + $0x10] sm:$0xf] %vm299_vm5, %v271_v13 }
  0x53   : > { %v708_v42 = vsel %vm6951_vm2, %v703_v34, %v707_v62  ;;  %v736_v43 = vor.u32 %v735_v35, %v731_v30  ;;  %v997_v52 = vrot.slane %v897_v46, 5  ;;  %v1000_v59 = vrot.slane %v898_v53, 5  ;;  %v268_v14 = vld [vmem:[%s6941_s30 + $0x4] sm:$0xf]  ;;  %v907_v7 = vld [vmem:[%s6941_s30 + $0x2c] sm:$0x1] }
  0x54   : > { %v761_v47 = vrot.slane %v760_v40, 4  ;;  %v765_v48 = vrot.slane %v763_v41, 5  ;;  %v6275_v63 = vrot.slane %v899_v55, 9  ;;  %v6274_v1 = vrot.slane %v896_v60, 9  ;;  %301 = vst.msk [vmem:[#allocation2 + $0x4] sm:$0xf] %vm299_vm5, %v268_v14 }
  0x55   : > { %v737_v49 = vrot.slane %v736_v43, 4  ;;  %v999_v58 = vrot.slane %v997_v52, 4  ;;  %v6276_v9 = vrot.slane %v902_v4, 9  ;;  %v1011_v10 = vrot.slane %v903_v6, 5  ;;  %v908_v23 = vld [vmem:[%s6941_s30 + $0x30] sm:$0xe] }
  0x56   : > { %809 = vrot.lane.b32.xlu0 %v646_v45, %s6876_s7  ;;  %v751_v45 = vrot.slane %v750_v37, 4  ;;  %v766_v54 = vsel %vm6951_vm2, %v761_v47, %v765_v48  ;;  %v998_v12 = vsel %vm7110_vm6, %v6274_v1, %v997_v52  ;;  %v1014_v16 = vrot.slane %v904_v8, 5  ;;  %v909_v24 = vld [vmem:[%s6941_s30 + $0x34] sm:$0xf]  ;;  %v272_v28 = vld [vmem:[%s6941_s30 + $0x1c] sm:$0xf] }
  0x57   : > { %811 = vrot.lane.b32.xlu1 %v660_v50, %s6876_s7  ;;  %807 = vrot.lane.b32.xlu2 %v636_v56, %s6876_s7  ;;  %v741_v50 = vrot.slane %v739_v44, 5  ;;  %v900_v56 = vld [vmem:[%s6941_s30 + $0x10] sm:$0xf]  ;;  %v1001_v3 = vsel %vm7110_vm6, %v999_v58, %v1000_v59  ;;  %v1013_v15 = vrot.slane %v1011_v10, 4  ;;  %v1007_v19 = vrot.slane %v901_v2, 5 }
  0x58   : > { %v756_v51 = vsel %vm6951_vm2, %v751_v45, %v755_v33  ;;  %v1004_v0 = vrot.slane %v900_v56, 5  ;;  %v1012_v20 = vsel %vm7110_vm6, %v6276_v9, %v1011_v10  ;;  %v1021_v26 = vrot.slane %v907_v7, 5  ;;  %v269_v29 = vld [vmem:[%s6941_s30 + $0xc] sm:$0xf]  ;;  %v905_v30 = vld [vmem:[%s6941_s30 + $0x24] sm:$0xe] }
  0x59   : > { %v742_v57 = vsel %vm6951_vm2, %v737_v49, %v741_v50  ;;  %305 = vst.msk [vmem:[#allocation2 + $0x14] sm:$0xf] %vm299_vm5, %v272_v28  ;;  %v273_v31 = vld [vmem:[%s6941_s30 + $0x24] sm:$0xf]  ;;  %v6278_v32 = vrot.slane %v908_v23, 9  ;;  %v1025_v33 = vrot.slane %v909_v24, 5 }
  0x5a   : > { %v1006_v18 = vrot.slane %v1004_v0, 4  ;;  %302 = vst.msk [vmem:[#allocation2 + $0x8] sm:$0xf] %vm299_vm5, %v269_v29  ;;  %v6277_v34 = vrot.slane %v905_v30, 9  ;;  %v912_v37 = vld [vmem:[%s6941_s30 + $0x40] sm:$0xf] }
  0x5b   : > { %306 = vst.msk [vmem:[#allocation2 + $0x18] sm:$0xf] %vm299_vm5, %v273_v31  ;;  %v913_v40 = vld [vmem:[%s6941_s30 + $0x44] sm:$0x1]  ;;  %v275_v44 = vld [vmem:[%s6941_s30 + $0x30] sm:$0xf] }
  0x5c   : > { %v1008_v27 = vsel %vm7110_vm6, %v1006_v18, %v1007_v19  ;;  %v270_v45 = vld [vmem:[%s6941_s30 + $0x10] sm:$0xf]  ;;  %v910_v46 = vld [vmem:[%s6941_s30 + $0x38] sm:$0x1]  ;;  %308 = vst.msk [vmem:[#allocation2 + $0x20] sm:$0xf] %vm299_vm5, %v275_v44 }
  0x5d   : > { %v276_v47 = vld [vmem:[%s6941_s30 + $0x34] sm:$0xf]  ;;  %v915_v48 = vld [vmem:[%s6941_s30 + $0x4c] sm:$0xf]  ;;  %v1035_v50 = vrot.slane %v913_v40, 5  ;;  %v1028_v52 = vrot.slane %v910_v46, 5 }
  0x5e   : > { %815 = vrot.lane.b32.xlu0 %v684_v5, %s6876_s7  ;;  %v1005_v5 = vsel %vm7110_vm6, %v6275_v63, %v1004_v0  ;;  %303 = vst.msk [vmem:[#allocation2 + $0xc] sm:$0xf] %vm299_vm5, %v270_v45  ;;  %v916_v56 = vld [vmem:[%s6941_s30 + $0x50] sm:$0x1]  ;;  %v917_v58 = vld [vmem:[%s6941_s30 + $0x54] sm:$0xe] }
  0x5f   : > { %817 = vrot.lane.b32.xlu1 %v694_v17, %s6876_s7  ;;  %813 = vrot.lane.b32.xlu2 %v670_v21, %s6876_s7  ;;  %v1018_v17 = vrot.slane %v906_v11, 5  ;;  %v1015_v21 = vsel %vm7110_vm6, %v1013_v15, %v1014_v16  ;;  %309 = vst.msk [vmem:[#allocation2 + $0x24] sm:$0xf] %vm299_vm5, %v276_v47  ;;  %v918_v59 = vld [vmem:[%s6941_s30 + $0x58] sm:$0xf]  ;;  %v1042_v1 = vrot.slane %v916_v56, 5 }
  0x60   : > { %v278_v61 = vld [vmem:[%s6941_s30 + $0x40] sm:$0xf]  ;;  %v274_v63 = vld [vmem:[%s6941_s30 + $0x28] sm:$0xf]  ;;  %v6281_v6 = vrot.slane %v917_v58, 9 }
  0x61   : > { %v1020_v25 = vrot.slane %v1018_v17, 4  ;;  %v1019_v43 = vsel %vm7110_vm6, %v6277_v34, %v1018_v17  ;;  %311 = vst.msk [vmem:[#allocation2 + $0x2c] sm:$0xf] %vm299_vm5, %v278_v61  ;;  %v279_v8 = vld [vmem:[%s6941_s30 + $0x48] sm:$0xf] }
  0x62   : > { %307 = vst.msk [vmem:[#allocation2 + $0x1c] sm:$0xf] %vm299_vm5, %v274_v63  ;;  %v921_v13 = vld [vmem:[%s6941_s30 + $0x64] sm:$0xf]  ;;  %v922_v15 = vld [vmem:[%s6941_s30 + $0x68] sm:$0x1] }
  0x63   : > { %v1022_v35 = vsel %vm7110_vm6, %v1020_v25, %v1021_v26  ;;  %312 = vst.msk [vmem:[#allocation2 + $0x30] sm:$0xf] %vm299_vm5, %v279_v8  ;;  %v1053_v17 = vrot.slane %v921_v13, 5  ;;  %v281_v19 = vld [vmem:[%s6941_s30 + $0x54] sm:$0xf]  ;;  %v1056_v25 = vrot.slane %v922_v15, 5 }
  0x64   : > { %v924_v7 = vld [vmem:[%s6941_s30 + $0x70] sm:$0xf]  ;;  %314 = vst.msk [vmem:[#allocation2 + $0x38] sm:$0xf] %vm299_vm5, %v281_v19  ;;  %v282_v26 = vld [vmem:[%s6941_s30 + $0x58] sm:$0xf] }
  0x65   : > { %v1055_v24 = vrot.slane %v1053_v17, 4  ;;  %v1060_v31 = vrot.slane %v924_v7, 5  ;;  %315 = vst.msk [vmem:[#allocation2 + $0x3c] sm:$0xf] %vm299_vm5, %v282_v26  ;;  %v285_v46 = vld [vmem:[%s6941_s30 + $0x6c] sm:$0xf] }
  0x66   : > { %821 = vrot.lane.b32.xlu0 %v718_v36, %s6876_s7  ;;  %v911_v36 = vld [vmem:[%s6941_s30 + $0x3c] sm:$0xe]  ;;  %318 = vst.msk [vmem:[#allocation2 + $0x48] sm:$0xf] %vm299_vm5, %v285_v46  ;;  %v287_v58 = vld [vmem:[%s6941_s30 + $0x78] sm:$0xf] }
  0x67   : > { %823 = vrot.lane.b32.xlu1 %v732_v39, %s6876_s7  ;;  %819 = vrot.lane.b32.xlu2 %v708_v42, %s6876_s7  ;;  %v1026_v39 = vsel %vm7110_vm6, %v6278_v32, %v1025_v33  ;;  %v6279_v41 = vrot.slane %v911_v36, 9  ;;  %v1032_v42 = vrot.slane %v912_v37, 5  ;;  %v1057_v34 = vsel %vm7110_vm6, %v1055_v24, %v1056_v25  ;;  %v927_v36 = vld [vmem:[%s6941_s30 + $0x7c] sm:$0xf]  ;;  %v928_v61 = vld [vmem:[%s6941_s30 + $0x80] sm:$0x1] }
  0x68   : > { %v1062_v40 = vrot.slane %v1060_v31, 4  ;;  %v1067_v45 = vrot.slane %v927_v36, 5  ;;  %320 = vst.msk [vmem:[#allocation2 + $0x50] sm:$0xf] %vm299_vm5, %v287_v58  ;;  %v935_v13 = vld [vmem:[%s6941_s30 + $0x9c] sm:$0xe] }
  0x69   : > { %v1034_v49 = vrot.slane %v1032_v42, 4  ;;  %v1033_v53 = vsel %vm7110_vm6, %v6279_v41, %v1032_v42  ;;  %v923_v42 = vld [vmem:[%s6941_s30 + $0x6c] sm:$0xe]  ;;  %v290_v15 = vld [vmem:[%s6941_s30 + $0x88] sm:$0xf]  ;;  %v6287_v7 = vrot.slane %v935_v13, 9 }
  0x6a   : > { %v932_v19 = vld [vmem:[%s6941_s30 + $0x90] sm:$0xe]  ;;  %323 = vst.msk [vmem:[#allocation2 + $0x5c] sm:$0xf] %vm299_vm5, %v290_v15  ;;  %v289_v36 = vld [vmem:[%s6941_s30 + $0x84] sm:$0xf] }
  0x6b   : > { %v6286_v25 = vrot.slane %v932_v19, 9  ;;  %322 = vst.msk [vmem:[#allocation2 + $0x58] sm:$0xf] %vm299_vm5, %v289_v36  ;;  %v297_v58 = vld [vmem:[%s6941_s30 + $0xb4] sm:$0xf] }
  0x6c   : > { %330 = vst.msk [vmem:[#allocation2 + $0x78] sm:$0xf] %vm299_vm5, %v297_v58  ;;  %v6296_v15 = vld [vmem:[%s6941_s30 + $0x30] sm:$0xf]  ;;  %v6298_v19 = vld [vmem:[%s6941_s30 + $0x3c] sm:$0xf] }
  0x6d   : > { %v6316_v58 = vld [vmem:[%s6941_s30 + $0xa8] sm:$0xf] }
  0x6e   : > { %827 = vrot.lane.b32.xlu0 %v756_v51, %s6876_s7  ;;  %v1027_v51 = vrot.slane %v1025_v33, 4  ;;  %v925_v33 = vld [vmem:[%s6941_s30 + $0x74] sm:$0x1] }
  0x6f   : > { %829 = vrot.lane.b32.xlu1 %v766_v54, %s6876_s7  ;;  %825 = vrot.lane.b32.xlu2 %v742_v57, %s6876_s7  ;;  %v1039_v54 = vrot.slane %v915_v48, 5  ;;  %v1036_v57 = vsel %vm7110_vm6, %v1034_v49, %v1035_v50  ;;  %v1063_v41 = vrot.slane %v925_v33, 5  ;;  %v6283_v48 = vrot.slane %v923_v42, 9  ;;  %v929_v50 = vld [vmem:[%s6941_s30 + $0x84] sm:$0xe]  ;;  %s6888_s7 = smov 64  }
  0x70   : > { %v1029_v60 = vsel %vm7110_vm6, %v1027_v51, %v1028_v52  ;;  %v930_v51 = vld [vmem:[%s6941_s30 + $0x88] sm:$0xf]  ;;  %v294_v42 = vld [vmem:[%s6941_s30 + $0xa0] sm:$0xf] }
  0x71   : > { %v1041_v0 = vrot.slane %v1039_v54, 4  ;;  %v1064_v49 = vsel %vm7110_vm6, %v1062_v40, %v1063_v41  ;;  %v1074_v56 = vrot.slane %v930_v51, 5  ;;  %327 = vst.msk [vmem:[#allocation2 + $0x6c] sm:$0xf] %vm299_vm5, %v294_v42 }
  0x73   : > { %v1043_v11 = vsel %vm7110_vm6, %v1041_v0, %v1042_v1  ;;  %v1076_v0 = vrot.slane %v1074_v56, 4 }
  0x76   : > { %1109 = vrot.lane.b32.xlu0 %v1001_v3, %s6877_s8  ;;  %v914_v3 = vld [vmem:[%s6941_s30 + $0x48] sm:$0xe] }
  0x77   : > { %1111 = vrot.lane.b32.xlu1 %v1005_v5, %s6877_s8  ;;  %1107 = vrot.lane.b32.xlu2 %v998_v12, %s6877_s8  ;;  %v1046_v5 = vrot.slane %v918_v59, 5  ;;  %v6280_v10 = vrot.slane %v914_v3, 9  ;;  %v920_v12 = vld [vmem:[%s6941_s30 + $0x60] sm:$0xe]  ;;  %v288_v3 = vld [vmem:[%s6941_s30 + $0x7c] sm:$0xf] }
  0x78   : > { %v6282_v16 = vrot.slane %v920_v12, 9  ;;  %v283_v59 = vld [vmem:[%s6941_s30 + $0x60] sm:$0xf]  ;;  %321 = vst.msk [vmem:[#allocation2 + $0x54] sm:$0xf] %vm299_vm5, %v288_v3 }
  0x79   : > { %v1047_v14 = vsel %vm7110_vm6, %v6281_v6, %v1046_v5  ;;  %v1040_v18 = vsel %vm7110_vm6, %v6280_v10, %v1039_v54  ;;  %v1048_v28 = vrot.slane %v1046_v5, 4  ;;  %v931_v54 = vld [vmem:[%s6941_s30 + $0x8c] sm:$0x1]  ;;  %316 = vst.msk [vmem:[#allocation2 + $0x40] sm:$0xf] %vm299_vm5, %v283_v59  ;;  %v1069_v6 = vrot.slane %v1067_v45, 4 }
  0x7a   : > { %v1054_v30 = vsel %vm7110_vm6, %v6282_v16, %v1053_v17  ;;  %v1077_v1 = vrot.slane %v931_v54, 5  ;;  %v1070_v5 = vrot.slane %v928_v61, 5  ;;  %v286_v16 = vld [vmem:[%s6941_s30 + $0x70] sm:$0xf]  ;;  %v295_v3 = vld [vmem:[%s6941_s30 + $0xa8] sm:$0xf] }
  0x7b   : > { %319 = vst.msk [vmem:[#allocation2 + $0x4c] sm:$0xf] %vm299_vm5, %v286_v16  ;;  %v6294_v16 = vld [vmem:[%s6941_s30 + $0x24] sm:$0xf] }
  0x7c   : > { %v1078_v12 = vsel %vm7110_vm6, %v1076_v0, %v1077_v1  ;;  %v6290_v0 = vld [vmem:[%s6941_s30 + $0xc] sm:$0xf]  ;;  %328 = vst.msk [vmem:[#allocation2 + $0x70] sm:$0xf] %vm299_vm5, %v295_v3 }
  0x7e   : > { %1115 = vrot.lane.b32.xlu0 %v1012_v20, %s6877_s8  ;;  %v277_v20 = vld [vmem:[%s6941_s30 + $0x3c] sm:$0xf] }
  0x7f   : > { %1117 = vrot.lane.b32.xlu1 %v1015_v21, %s6877_s8  ;;  %1113 = vrot.lane.b32.xlu2 %v1008_v27, %s6877_s8  ;;  %v919_v21 = vld [vmem:[%s6941_s30 + $0x5c] sm:$0x1]  ;;  %310 = vst.msk [vmem:[#allocation2 + $0x28] sm:$0xf] %vm299_vm5, %v277_v20 }
  0x80   : > { %v1049_v29 = vrot.slane %v919_v21, 5 }
  0x81   : > { %v776_v38 = vpop.permute.xlu2 %775 }
  0x82   : > { %868 = vst.msk [vmem:[#allocation2 + $0x10] sm:$0xf] %vm863_vm7, %v776_v38  ;;  %v1050_v37 = vsel %vm7110_vm6, %v1048_v28, %v1049_v29  ;;  %v284_v38 = vld [vmem:[%s6941_s30 + $0x64] sm:$0xf]  ;;  %v939_v28 = vld [vmem:[%s6941_s30 + $0xac] sm:$0xf] }
  0x83   : > { %317 = vst.msk [vmem:[#allocation2 + $0x44] sm:$0xf] %vm299_vm5, %v284_v38  ;;  %v1095_v33 = vrot.slane %v939_v28, 5  ;;  %v937_v38 = vld [vmem:[%s6941_s30 + $0xa4] sm:$0x1] }
  0x84   : > { %v6300_v28 = vld [vmem:[%s6941_s30 + $0x48] sm:$0xf] }
  0x85   : > { %v1097_v40 = vrot.slane %v1095_v33, 4 }
  0x86   : > { %1121 = vrot.lane.b32.xlu0 %v1022_v35, %s6877_s8  ;;  %v926_v35 = vld [vmem:[%s6941_s30 + $0x78] sm:$0xe] }
  0x87   : > { %1123 = vrot.lane.b32.xlu1 %v1026_v39, %s6877_s8  ;;  %1119 = vrot.lane.b32.xlu2 %v1019_v43, %s6877_s8  ;;  %v280_v39 = vld [vmem:[%s6941_s30 + $0x4c] sm:$0xf]  ;;  %v6284_v44 = vrot.slane %v926_v35, 9  ;;  %v293_v35 = vld [vmem:[%s6941_s30 + $0x9c] sm:$0xf] }
  0x88   : > { %313 = vst.msk [vmem:[#allocation2 + $0x34] sm:$0xf] %vm299_vm5, %v280_v39 }
  0x89   : > { %v778_v55 = vpop.permute.xlu2 %777  ;;  %326 = vst.msk [vmem:[#allocation2 + $0x68] sm:$0xf] %vm299_vm5, %v293_v35 }
  0x8a   : > { %869 = vst.msk [vmem:[#allocation2 + $0x14] sm:$0xf] %vm863_vm7, %v778_v55  ;;  %v6285_v55 = vrot.slane %v929_v50, 9 }
  0x8c   : > { %v1075_v8 = vsel %vm7110_vm6, %v6285_v55, %v1074_v56  ;;  %v941_v56 = vld [vmem:[%s6941_s30 + $0xb4] sm:$0xe] }
  0x8e   : > { %1127 = vrot.lane.b32.xlu0 %v1033_v53, %s6877_s8  ;;  %v1068_v53 = vsel %vm7110_vm6, %v6284_v44, %v1067_v45  ;;  %v1091_v45 = vrot.slane %v937_v38, 5 }
  0x8f   : > { %1129 = vrot.lane.b32.xlu1 %v1036_v57, %s6877_s8  ;;  %1125 = vrot.lane.b32.xlu2 %v1029_v60, %s6877_s8  ;;  %v1061_v57 = vsel %vm7110_vm6, %v6283_v48, %v1060_v31  ;;  %v933_v60 = vld [vmem:[%s6941_s30 + $0x94] sm:$0xf]  ;;  %v940_v31 = vld [vmem:[%s6941_s30 + $0xb0] sm:$0x1] }
  0x90   : > { %v768_v4 = vpop.permute.xlu0 %767  ;;  %v1098_v41 = vrot.slane %v940_v31, 5  ;;  %v6304_v31 = vld [vmem:[%s6941_s30 + $0x60] sm:$0xf] }
  0x91   : > { %864 = vst.msk [vmem:[#allocation2] sm:$0xf] %vm863_vm7, %v768_v4  ;;  %v772_v9 = vpop.permute.xlu1 %771  ;;  %v784_v2 = vpop.permute.xlu2 %783 }
  0x92   : > { %866 = vst.msk [vmem:[#allocation2 + $0x8] sm:$0xf] %vm863_vm7, %v772_v9  ;;  %v1081_v9 = vrot.slane %v933_v60, 5  ;;  %v1099_v50 = vsel %vm7110_vm6, %v1097_v40, %v1098_v41  ;;  %v6289_v60 = vrot.slane %v941_v56, 9  ;;  %v6306_v40 = vld [vmem:[%s6941_s30 + $0x6c] sm:$0xf] }
  0x93   : > { %872 = vst.msk [vmem:[#allocation2 + $0x20] sm:$0xf] %vm863_vm7, %v784_v2  ;;  %v936_v2 = vld [vmem:[%s6941_s30 + $0xa0] sm:$0xf] }
  0x94   : > { %v1083_v17 = vrot.slane %v1081_v9, 4  ;;  %v1088_v21 = vrot.slane %v936_v2, 5  ;;  %v6295_v2 = vld [vmem:[%s6941_s30 + $0x28] sm:$0xf] }
  0x96   : > { %1133 = vrot.lane.b32.xlu0 %v1043_v11, %s6877_s8  ;;  %v934_v11 = vld [vmem:[%s6941_s30 + $0x98] sm:$0x1]  ;;  %v1090_v44 = vrot.slane %v1088_v21, 4 }
  0x97   : > { %1135 = vrot.lane.b32.xlu1 %v1047_v14, %s6877_s8  ;;  %1131 = vrot.lane.b32.xlu2 %v1040_v18, %s6877_s8  ;;  %v1071_v14 = vsel %vm7110_vm6, %v1069_v6, %v1070_v5  ;;  %v1084_v18 = vrot.slane %v934_v11, 5  ;;  %v6292_v5 = vld [vmem:[%s6941_s30 + $0x18] sm:$0xf] }
  0x98   : > { %v770_v23 = vpop.permute.xlu0 %769  ;;  %v1092_v51 = vsel %vm7110_vm6, %v1090_v44, %v1091_v45  ;;  %v298_v11 = vld [vmem:[%s6941_s30 + $0xb8] sm:$0xf]  ;;  %v6311_v45 = vld [vmem:[%s6941_s30 + $0x88] sm:$0xf] }
  0x99   : > { %865 = vst.msk [vmem:[#allocation2 + $0x4] sm:$0xf] %vm863_vm7, %v770_v23  ;;  %v774_v27 = vpop.permute.xlu1 %773  ;;  %v790_v32 = vpop.permute.xlu2 %789  ;;  %v291_v23 = vld [vmem:[%s6941_s30 + $0x90] sm:$0xf]  ;;  %v1085_v26 = vsel %vm7110_vm6, %v1083_v17, %v1084_v18 }
  0x9a   : > { %867 = vst.msk [vmem:[#allocation2 + $0xc] sm:$0xf] %vm863_vm7, %v774_v27  ;;  %v938_v27 = vld [vmem:[%s6941_s30 + $0xa8] sm:$0xe] }
  0x9b   : > { %875 = vst.msk [vmem:[#allocation2 + $0x2c] sm:$0xf] %vm863_vm7, %v790_v32  ;;  %v6288_v32 = vrot.slane %v938_v27, 9  ;;  %v6302_v27 = vld [vmem:[%s6941_s30 + $0x54] sm:$0xf] }
  0x9c   : > { %324 = vst.msk [vmem:[#allocation2 + $0x60] sm:$0xf] %vm299_vm5, %v291_v23 }
  0x9d   : > { %v1096_v46 = vsel %vm7110_vm6, %v6288_v32, %v1095_v33  ;;  %331 = vst.msk [vmem:[#allocation2 + $0x7c] sm:$0xf] %vm299_vm5, %v298_v11  ;;  %v6305_v33 = vld [vmem:[%s6941_s30 + $0x64] sm:$0xf] }
  0x9e   : > { %1139 = vrot.lane.b32.xlu0 %v1054_v30, %s6877_s8  ;;  %v1089_v30 = vsel %vm7110_vm6, %v6287_v7, %v1088_v21  ;;  %v6299_v7 = vld [vmem:[%s6941_s30 + $0x40] sm:$0xf]  ;;  %v6297_v21 = vld [vmem:[%s6941_s30 + $0x34] sm:$0xf] }
  0x9f   : > { %1141 = vrot.lane.b32.xlu1 %v1057_v34, %s6877_s8  ;;  %1137 = vrot.lane.b32.xlu2 %v1050_v37, %s6877_s8  ;;  %v1082_v34 = vsel %vm7110_vm6, %v6286_v25, %v1081_v9  ;;  %v942_v37 = vld [vmem:[%s6941_s30 + $0xb8] sm:$0xf]  ;;  %v6293_v9 = vld [vmem:[%s6941_s30 + $0x1c] sm:$0xf] }
  0xa0   : > { %v780_v43 = vpop.permute.xlu0 %779  ;;  %v6301_v25 = vld [vmem:[%s6941_s30 + $0x4c] sm:$0xf] }
  0xa1   : > { %870 = vst.msk [vmem:[#allocation2 + $0x18] sm:$0xf] %vm863_vm7, %v780_v43  ;;  %v782_v47 = vpop.permute.xlu1 %781  ;;  %v796_v52 = vpop.permute.xlu2 %795 }
  0xa2   : > { %871 = vst.msk [vmem:[#allocation2 + $0x1c] sm:$0xf] %vm863_vm7, %v782_v47  ;;  %v1102_v47 = vrot.slane %v942_v37, 5  ;;  %v6307_v37 = vld [vmem:[%s6941_s30 + $0x70] sm:$0xf] }
  0xa3   : > { %878 = vst.msk [vmem:[#allocation2 + $0x38] sm:$0xf] %vm863_vm7, %v796_v52  ;;  %v296_v52 = vld [vmem:[%s6941_s30 + $0xac] sm:$0xf] }
  0xa4   : > { %v1104_v54 = vrot.slane %v1102_v47, 4  ;;  %329 = vst.msk [vmem:[#allocation2 + $0x74] sm:$0xf] %vm299_vm5, %v296_v52  ;;  %v1103_v1 = vsel %vm7110_vm6, %v6289_v60, %v1102_v47  ;;  %v6312_v52 = vld [vmem:[%s6941_s30 + $0x90] sm:$0xf] }
  0xa6   : > { %1145 = vrot.lane.b32.xlu0 %v1064_v49, %s6877_s8  ;;  %v943_v49 = vld [vmem:[%s6941_s30 + $0xbc] sm:$0x1] }
  0xa7   : > { %1147 = vrot.lane.b32.xlu1 %v1068_v53, %s6877_s8  ;;  %1143 = vrot.lane.b32.xlu2 %v1061_v57, %s6877_s8  ;;  %v292_v53 = vld [vmem:[%s6941_s30 + $0x94] sm:$0xf]  ;;  %v1105_v55 = vrot.slane %v943_v49, 5 }
  0xa8   : > { %v786_v63 = vpop.permute.xlu0 %785  ;;  %325 = vst.msk [vmem:[#allocation2 + $0x64] sm:$0xf] %vm299_vm5, %v292_v53  ;;  %v6313_v49 = vld [vmem:[%s6941_s30 + $0x94] sm:$0xf]  ;;  %v6322_v53 = vld [vmem:[%s6941_s30 + $0xc] sm:$0xf] }
  0xa9   : > { %873 = vst.msk [vmem:[#allocation2 + $0x24] sm:$0xf] %vm863_vm7, %v786_v63  ;;  %v788_v4 = vpop.permute.xlu1 %787  ;;  %v802_v10 = vpop.permute.xlu2 %801  ;;  %v1106_v61 = vsel %vm7110_vm6, %v1104_v54, %v1105_v55  ;;  %v1479_v56 = vshrl.u32 %v6322_v53, 16 }
  0xaa   : > { %874 = vst.msk [vmem:[#allocation2 + $0x28] sm:$0xf] %vm863_vm7, %v788_v4 }
  0xab   : > { %881 = vst.msk [vmem:[#allocation2 + $0x44] sm:$0xf] %vm863_vm7, %v802_v10  ;;  %v6291_v10 = vld [vmem:[%s6941_s30 + $0x10] sm:$0xf] }
  0xae   : > { %1151 = vrot.lane.b32.xlu0 %v1075_v8, %s6877_s8 }
  0xaf   : > { %1153 = vrot.lane.b32.xlu1 %v1078_v12, %s6877_s8  ;;  %1149 = vrot.lane.b32.xlu2 %v1071_v14, %s6877_s8 }
  0xb0   : > { %v792_v20 = vpop.permute.xlu0 %791 }
  0xb1   : > { %876 = vst.msk [vmem:[#allocation2 + $0x30] sm:$0xf] %vm863_vm7, %v792_v20  ;;  %v794_v24 = vpop.permute.xlu1 %793  ;;  %v808_v29 = vpop.permute.xlu2 %807 }
  0xb2   : > { %877 = vst.msk [vmem:[#allocation2 + $0x34] sm:$0xf] %vm863_vm7, %v794_v24 }
  0xb3   : > { %884 = vst.msk [vmem:[#allocation2 + $0x50] sm:$0xf] %vm863_vm7, %v808_v29 }
  0xb6   : > { %1157 = vrot.lane.b32.xlu0 %v1085_v26, %s6877_s8 }
  0xb7   : > { %1159 = vrot.lane.b32.xlu1 %v1089_v30, %s6877_s8  ;;  %1155 = vrot.lane.b32.xlu2 %v1082_v34, %s6877_s8  ;;  %v6303_v34 = vld [vmem:[%s6941_s30 + $0x58] sm:$0xf] }
  0xb8   : > { %v798_v39 = vpop.permute.xlu0 %797 }
  0xb9   : > { %879 = vst.msk [vmem:[#allocation2 + $0x3c] sm:$0xf] %vm863_vm7, %v798_v39  ;;  %v800_v43 = vpop.permute.xlu1 %799  ;;  %v814_v48 = vpop.permute.xlu2 %813  ;;  %v6308_v39 = vld [vmem:[%s6941_s30 + $0x78] sm:$0xf] }
  0xba   : > { %880 = vst.msk [vmem:[#allocation2 + $0x40] sm:$0xf] %vm863_vm7, %v800_v43  ;;  %v6310_v43 = vld [vmem:[%s6941_s30 + $0x84] sm:$0xf] }
  0xbb   : > { %887 = vst.msk [vmem:[#allocation2 + $0x5c] sm:$0xf] %vm863_vm7, %v814_v48 }
  0xbe   : > { %1163 = vrot.lane.b32.xlu0 %v1096_v46, %s6877_s8  ;;  %v6309_v46 = vld [vmem:[%s6941_s30 + $0x7c] sm:$0xf] }
  0xbf   : > { %1165 = vrot.lane.b32.xlu1 %v1099_v50, %s6877_s8  ;;  %1161 = vrot.lane.b32.xlu2 %v1092_v51, %s6877_s8  ;;  %v6314_v51 = vld [vmem:[%s6941_s30 + $0x9c] sm:$0xf] }
  0xc0   : > { %v804_v57 = vpop.permute.xlu0 %803 }
  0xc1   : > { %882 = vst.msk [vmem:[#allocation2 + $0x48] sm:$0xf] %vm863_vm7, %v804_v57  ;;  %v806_v59 = vpop.permute.xlu1 %805  ;;  %v820_v63 = vpop.permute.xlu2 %819  ;;  %v1482_v57 = vshll.u32 %v6322_v53, 16  ;;  %v6321_v53 = vld [vmem:[%s6941_s30 + $0xc4] sm:$0xf] }
  0xc2   : > { %883 = vst.msk [vmem:[#allocation2 + $0x4c] sm:$0xf] %vm863_vm7, %v806_v59  ;;  %v6323_v59 = vld [vmem:[%s6941_s30 + $0x10] sm:$0xf] }
  0xc3   : > { %890 = vst.msk [vmem:[#allocation2 + $0x68] sm:$0xf] %vm863_vm7, %v820_v63  ;;  %v1492_v63 = vshrl.u32 %v6323_v59, 16  ;;  %v1488_v3 = vshll.u32 %v6323_v59, 16 }
  0xc6   : > { %1169 = vrot.lane.b32.xlu0 %v1106_v61, %s6877_s8  ;;  %v6317_v61 = vld [vmem:[%s6941_s30 + $0xac] sm:$0xf] }
  0xc7   : > { %1301 = vrot.lane.b32.xlu1 %v6290_v0, %s6878_s9  ;;  %1167 = vrot.lane.b32.xlu2 %v1103_v1, %s6877_s8  ;;  %v1481_v0 = vrot.slane %v1479_v56, 4  ;;  %v1484_v1 = vrot.slane %v1482_v57, 5 }
  0xc8   : > { %v810_v4 = vpop.permute.xlu0 %809 }
  0xc9   : > { %885 = vst.msk [vmem:[#allocation2 + $0x54] sm:$0xf] %vm863_vm7, %v810_v4  ;;  %v812_v6 = vpop.permute.xlu1 %811  ;;  %v826_v8 = vpop.permute.xlu2 %825  ;;  %v6315_v4 = vld [vmem:[%s6941_s30 + $0xa0] sm:$0xf] }
  0xca   : > { %886 = vst.msk [vmem:[#allocation2 + $0x58] sm:$0xf] %vm863_vm7, %v812_v6  ;;  %v6326_v6 = vld [vmem:[%s6941_s30 + $0x1c] sm:$0xf] }
  0xcb   : > { %893 = vst.msk [vmem:[#allocation2 + $0x74] sm:$0xf] %vm863_vm7, %v826_v8  ;;  %v6324_v8 = vld [vmem:[%s6941_s30 + $0x14] sm:$0x1] }
  0xce   : > { %1305 = vrot.lane.b32.xlu0 %v6292_v5, %s6878_s9 }
  0xcf   : > { %1307 = vrot.lane.b32.xlu1 %v6293_v9, %s6878_s9  ;;  %1303 = vrot.lane.b32.xlu2 %v6291_v10, %s6878_s9  ;;  %v1494_v9 = vrot.slane %v1492_v63, 4  ;;  %v1485_v10 = vor.u32 %v1484_v1, %v1481_v0 }
  0xd0   : > { %v816_v12 = vpop.permute.xlu0 %815 }
  0xd1   : > { %888 = vst.msk [vmem:[#allocation2 + $0x60] sm:$0xf] %vm863_vm7, %v816_v12  ;;  %v818_v13 = vpop.permute.xlu1 %817  ;;  %v1108_v14 = vpop.permute.xlu2 %1107  ;;  %v6328_v12 = vld [vmem:[%s6941_s30 + $0x24] sm:$0xf] }
  0xd2   : > { %889 = vst.msk [vmem:[#allocation2 + $0x64] sm:$0xf] %vm863_vm7, %v818_v13  ;;  %v1490_v13 = vrot.slane %v1488_v3, 5  ;;  %v6333_v3 = vld [vmem:[%s6941_s30 + $0x38] sm:$0x1] }
  0xd3   : > { %1204 = vst.msk [vmem:[#allocation2] sm:$0xf] %vm1203_vm8, %v1108_v14  ;;  %v1516_v14 = vshrl.u32 %v6326_v6, 16 }
  0xd6   : > { %1311 = vrot.lane.b32.xlu0 %v6295_v2, %s6878_s9  ;;  %v1512_v2 = vshll.u32 %v6326_v6, 16 }
  0xd7   : > { %1313 = vrot.lane.b32.xlu1 %v6296_v15, %s6878_s9  ;;  %1309 = vrot.lane.b32.xlu2 %v6294_v16, %s6878_s9  ;;  %v6319_v15 = vld [vmem:[%s6941_s30 + $0xb8] sm:$0xf]  ;;  %v6320_v16 = vld [vmem:[%s6941_s30 + $0xc0] sm:$0xf] }
  0xd8   : > { %v822_v17 = vpop.permute.xlu0 %821 }
  0xd9   : > { %891 = vst.msk [vmem:[#allocation2 + $0x6c] sm:$0xf] %vm863_vm7, %v822_v17  ;;  %v824_v18 = vpop.permute.xlu1 %823  ;;  %v1114_v20 = vpop.permute.xlu2 %1113 }
  0xda   : > { %892 = vst.msk [vmem:[#allocation2 + $0x70] sm:$0xf] %vm863_vm7, %v824_v18  ;;  %v1498_v18 = vshll.u32 %v6324_v8, 16  ;;  %v6337_v8 = vld [vmem:[%s6941_s30 + $0x48] sm:$0xf] }
  0xdb   : > { %1207 = vst.msk [vmem:[#allocation2 + $0xc] sm:$0xf] %vm1203_vm8, %v1114_v20  ;;  %v1527_v20 = vshrl.u32 %v6328_v12, 16 }
  0xde   : > { %1317 = vrot.lane.b32.xlu0 %v6298_v19, %s6878_s9  ;;  %v1495_v19 = vor.u32 %v1494_v9, %v1490_v13 }
  0xdf   : > { %1319 = vrot.lane.b32.xlu1 %v6299_v7, %s6878_s9  ;;  %1315 = vrot.lane.b32.xlu2 %v6297_v21, %s6878_s9  ;;  %v1530_v7 = vshll.u32 %v6328_v12, 16  ;;  %v6325_v21 = vld [vmem:[%s6941_s30 + $0x18] sm:$0xf] }
  0xe0   : > { %v828_v23 = vpop.permute.xlu0 %827 }
  0xe1   : > { %894 = vst.msk [vmem:[#allocation2 + $0x78] sm:$0xf] %vm863_vm7, %v828_v23  ;;  %v830_v24 = vpop.permute.xlu1 %829  ;;  %v1120_v26 = vpop.permute.xlu2 %1119  ;;  %v1486_v23 = vrot.slane %v1485_v10, 4 }
  0xe2   : > { %895 = vst.msk [vmem:[#allocation2 + $0x7c] sm:$0xf] %vm863_vm7, %v830_v24  ;;  %v7435_v24 = vrot.slane %v1512_v2, 5 }
  0xe3   : > { %1210 = vst.msk [vmem:[#allocation2 + $0x18] sm:$0xf] %vm1203_vm8, %v1120_v26  ;;  %v6318_v26 = vld [vmem:[%s6941_s30 + $0xb4] sm:$0xf] }
  0xe6   : > { %1323 = vrot.lane.b32.xlu0 %v6301_v25, %s6878_s9  ;;  %v1518_v25 = vrot.slane %v1516_v14, 4  ;;  %v1570_v14 = vshll.u32 %v6333_v3, 16 }
  0xe7   : > { %1325 = vrot.lane.b32.xlu1 %v6302_v27, %s6878_s9  ;;  %1321 = vrot.lane.b32.xlu2 %v6300_v28, %s6878_s9  ;;  %v1503_v27 = vshrl.u32 %v6325_v21, 16  ;;  %v1506_v28 = vshll.u32 %v6325_v21, 16 }
  0xe8   : > { %v1110_v29 = vpop.permute.xlu0 %1109 }
  0xe9   : > { %1205 = vst.msk [vmem:[#allocation2 + $0x4] sm:$0xf] %vm1203_vm8, %v1110_v29  ;;  %v1112_v30 = vpop.permute.xlu1 %1111  ;;  %v1126_v32 = vpop.permute.xlu2 %1125  ;;  %v6327_v29 = vld [vmem:[%s6941_s30 + $0x20] sm:$0x1] }
  0xea   : > { %1206 = vst.msk [vmem:[#allocation2 + $0x8] sm:$0xf] %vm1203_vm8, %v1112_v30 }
  0xeb   : > { %1213 = vst.msk [vmem:[#allocation2 + $0x24] sm:$0xf] %vm1203_vm8, %v1126_v32  ;;  %v1500_v32 = vrot.slane %v1498_v18, 5  ;;  %v1602_v18 = vshll.u32 %v6337_v8, 16 }
  0xee   : > { %1329 = vrot.lane.b32.xlu0 %v6304_v31, %s6878_s9  ;;  %v1496_v31 = vrot.slane %v1495_v19, 4  ;;  %v6334_v19 = vld [vmem:[%s6941_s30 + $0x3c] sm:$0xf] }
  0xef   : > { %1331 = vrot.lane.b32.xlu1 %v6305_v33, %s6878_s9  ;;  %1327 = vrot.lane.b32.xlu2 %v6303_v34, %s6878_s9  ;;  %v6331_v33 = vld [vmem:[%s6941_s30 + $0x30] sm:$0xf]  ;;  %v1529_v34 = vrot.slane %v1527_v20, 4  ;;  %v1575_v21 = vshrl.u32 %v6334_v19, 16 }
  0xf0   : > { %v1116_v35 = vpop.permute.xlu0 %1115 }
  0xf1   : > { %1208 = vst.msk [vmem:[#allocation2 + $0x10] sm:$0xf] %vm1203_vm8, %v1116_v35  ;;  %v1118_v36 = vpop.permute.xlu1 %1117  ;;  %v1132_v38 = vpop.permute.xlu2 %1131  ;;  %v1532_v35 = vrot.slane %v1530_v7, 5 }
  0xf2   : > { %1209 = vst.msk [vmem:[#allocation2 + $0x14] sm:$0xf] %vm1203_vm8, %v1118_v36 }
  0xf3   : > { %1216 = vst.msk [vmem:[#allocation2 + $0x30] sm:$0xf] %vm1203_vm8, %v1132_v38  ;;  %v6329_v38 = vld [vmem:[%s6941_s30 + $0x28] sm:$0xf] }
  0xf6   : > { %1335 = vrot.lane.b32.xlu0 %v6307_v37, %s6878_s9  ;;  %v6332_v37 = vld [vmem:[%s6941_s30 + $0x34] sm:$0xf] }
  0xf7   : > { %1337 = vrot.lane.b32.xlu1 %v6308_v39, %s6878_s9  ;;  %1333 = vrot.lane.b32.xlu2 %v6306_v40, %s6878_s9  ;;  %v1491_v39 = vsel %vm6951_vm2, %v1486_v23, %v1490_v13  ;;  %v1519_v40 = vor.u32 %v1518_v25, %v7435_v24  ;;  %v1578_v23 = vshll.u32 %v6334_v19, 16 }
  0xf8   : > { %v1122_v41 = vpop.permute.xlu0 %1121 }
  0xf9   : > { %1211 = vst.msk [vmem:[#allocation2 + $0x1c] sm:$0xf] %vm1203_vm8, %v1122_v41  ;;  %v1124_v42 = vpop.permute.xlu1 %1123  ;;  %v1138_v44 = vpop.permute.xlu2 %1137  ;;  %v1505_v41 = vrot.slane %v1503_v27, 4 }
  0xfa   : > { %1212 = vst.msk [vmem:[#allocation2 + $0x20] sm:$0xf] %vm1203_vm8, %v1124_v42  ;;  %v1508_v42 = vrot.slane %v1506_v28, 5 }
  0xfb   : > { %1219 = vst.msk [vmem:[#allocation2 + $0x3c] sm:$0xf] %vm1203_vm8, %v1138_v44  ;;  %v1551_v44 = vshrl.u32 %v6331_v33, 16 }
  0xfc   : > { %v1509_v56 = vor.u32 %v1508_v42, %v1505_v41 }
  0xfe   : > { %1341 = vrot.lane.b32.xlu0 %v6310_v43, %s6878_s9  ;;  %v1522_v43 = vshll.u32 %v6327_v29, 16  ;;  %v1510_v9 = vrot.slane %v1509_v56, 4  ;;  %v6336_v29 = vld [vmem:[%s6941_s30 + $0x44] sm:$0x1] }
  0xff   : > { %1343 = vrot.lane.b32.xlu1 %v6311_v45, %s6878_s9  ;;  %1339 = vrot.lane.b32.xlu2 %v6309_v46, %s6878_s9  ;;  %v1554_v45 = vshll.u32 %v6331_v33, 16  ;;  %v1564_v46 = vshrl.u32 %v6332_v37, 16  ;;  %v6340_v33 = vld [vmem:[%s6941_s30 + $0x54] sm:$0xf] }
 0x100   : > { %v1128_v47 = vpop.permute.xlu0 %1127  ;;  %v1524_v57 = vrot.slane %v1522_v43, 5  ;;  %v1515_v25 = vsel %vm6951_vm2, %v1510_v9, %v7435_v24 }
 0x101   : > { %1214 = vst.msk [vmem:[#allocation2 + $0x28] sm:$0xf] %vm1203_vm8, %v1128_v47  ;;  %v1130_v48 = vpop.permute.xlu1 %1129  ;;  %v1144_v50 = vpop.permute.xlu2 %1143  ;;  %v1556_v59 = vrot.slane %v1554_v45, 5  ;;  %v1623_v45 = vshrl.u32 %v6340_v33, 16 }
 0x102   : > { %1215 = vst.msk [vmem:[#allocation2 + $0x2c] sm:$0xf] %vm1203_vm8, %v1130_v48  ;;  %v1501_v48 = vsel %vm6951_vm2, %v1496_v31, %v1500_v32  ;;  %v1572_v32 = vrot.slane %v1570_v14, 5 }
 0x103   : > { %1222 = vst.msk [vmem:[#allocation2 + $0x48] sm:$0xf] %vm1203_vm8, %v1144_v50  ;;  %v1533_v50 = vor.u32 %v1532_v35, %v1529_v34  ;;  %v1604_v35 = vrot.slane %v1602_v18, 5 }
 0x105   : > { %v1534_v0 = vrot.slane %v1533_v50, 4 }
 0x106   : > { %1347 = vrot.lane.b32.xlu0 %v6313_v49, %s6878_s9  ;;  %v1560_v49 = vshll.u32 %v6332_v37, 16  ;;  %v6338_v37 = vld [vmem:[%s6941_s30 + $0x4c] sm:$0xf] }
 0x107   : > { %1349 = vrot.lane.b32.xlu1 %v6314_v51, %s6878_s9  ;;  %1345 = vrot.lane.b32.xlu2 %v6312_v52, %s6878_s9  ;;  %v1536_v51 = vshll.u32 %v6329_v38, 16  ;;  %v1520_v52 = vrot.slane %v1519_v40, 4  ;;  %v1594_v40 = vshll.u32 %v6336_v29, 16 }
 0x108   : > { %v1134_v54 = vpop.permute.xlu0 %1133  ;;  %v7456_v63 = vrot.slane %v1560_v49, 5 }
 0x109   : > { %1217 = vst.msk [vmem:[#allocation2 + $0x34] sm:$0xf] %vm1203_vm8, %v1134_v54  ;;  %v1136_v55 = vpop.permute.xlu1 %1135  ;;  %v1150_v60 = vpop.permute.xlu2 %1149  ;;  %v1540_v54 = vshrl.u32 %v6329_v38, 16  ;;  %v1538_v1 = vrot.slane %v1536_v51, 5  ;;  %v1577_v38 = vrot.slane %v1575_v21, 4  ;;  %v1608_v51 = vshll.u32 %v6338_v37, 16 }
 0x10a   : > { %1218 = vst.msk [vmem:[#allocation2 + $0x38] sm:$0xf] %vm1203_vm8, %v1136_v55  ;;  %v6335_v55 = vld [vmem:[%s6941_s30 + $0x40] sm:$0xf] }
 0x10b   : > { %1225 = vst.msk [vmem:[#allocation2 + $0x54] sm:$0xf] %vm1203_vm8, %v1150_v60  ;;  %v1566_v60 = vrot.slane %v1564_v46, 4  ;;  %v1584_v6 = vshll.u32 %v6335_v55, 16  ;;  %v1542_v10 = vrot.slane %v1540_v54, 4  ;;  %v1626_v46 = vshll.u32 %v6340_v33, 16 }
 0x10c   : > { %v1596_v54 = vrot.slane %v1594_v40, 5  ;;  %v6345_v33 = vld [vmem:[%s6941_s30 + $0x68] sm:$0x1] }
 0x10d   : > { %v1567_v2 = vor.u32 %v1566_v60, %v7456_v63  ;;  %v7471_v20 = vrot.slane %v1584_v6, 5  ;;  %v6344_v60 = vld [vmem:[%s6941_s30 + $0x64] sm:$0xf] }
 0x10e   : > { %1353 = vrot.lane.b32.xlu0 %v6316_v58, %s6878_s9  ;;  %v1553_v58 = vrot.slane %v1551_v44, 4  ;;  %v6341_v44 = vld [vmem:[%s6941_s30 + $0x58] sm:$0xf] }
 0x10f   : > { %1355 = vrot.lane.b32.xlu1 %v6317_v61, %s6878_s9  ;;  %1351 = vrot.lane.b32.xlu2 %v6315_v4, %s6878_s9  ;;  %v1636_v49 = vshrl.u32 %v6341_v44, 16 }
 0x110   : > { %v1140_v5 = vpop.permute.xlu0 %1139  ;;  %v1557_v12 = vor.u32 %v1556_v59, %v1553_v58  ;;  %v1625_v58 = vrot.slane %v1623_v45, 4  ;;  %v1628_v59 = vrot.slane %v1626_v46, 5  ;;  %v1666_v46 = vshll.u32 %v6345_v33, 16 }
 0x111   : > { %1220 = vst.msk [vmem:[#allocation2 + $0x40] sm:$0xf] %vm1203_vm8, %v1140_v5  ;;  %v1142_v11 = vpop.permute.xlu1 %1141  ;;  %v1156_v17 = vpop.permute.xlu2 %1155  ;;  %v1588_v5 = vshrl.u32 %v6335_v55, 16  ;;  %v1632_v55 = vshll.u32 %v6341_v44, 16  ;;  %v1638_v3 = vrot.slane %v1636_v49, 4 }
 0x112   : > { %1221 = vst.msk [vmem:[#allocation2 + $0x44] sm:$0xf] %vm1203_vm8, %v1142_v11  ;;  %v1525_v11 = vsel %vm6951_vm2, %v1520_v52, %v1524_v57  ;;  %v1558_v28 = vrot.slane %v1557_v12, 4  ;;  %v1612_v57 = vshrl.u32 %v6338_v37, 16  ;;  %v1656_v12 = vshll.u32 %v6344_v60, 16 }
 0x113   : > { %1228 = vst.msk [vmem:[#allocation2 + $0x60] sm:$0xf] %vm1203_vm8, %v1156_v17  ;;  %v1599_v17 = vshrl.u32 %v6337_v8, 16  ;;  %v1590_v7 = vrot.slane %v1588_v5, 4  ;;  %v6346_v5 = vld [vmem:[%s6941_s30 + $0x6c] sm:$0xf] }
 0x114   : > { %v1563_v43 = vsel %vm6951_vm2, %v1558_v28, %v7456_v63  ;;  %v1634_v9 = vrot.slane %v1632_v55, 5  ;;  %v1671_v18 = vshrl.u32 %v6346_v5, 16  ;;  %v1674_v19 = vshll.u32 %v6346_v5, 16 }
 0x115   : > { %v1601_v34 = vrot.slane %v1599_v17, 4 }
 0x116   : > { %1359 = vrot.lane.b32.xlu0 %v6319_v15, %s6878_s9  ;;  %v6330_v15 = vld [vmem:[%s6941_s30 + $0x2c] sm:$0x1]  ;;  %v1639_v17 = vor.u32 %v1638_v3, %v1634_v9  ;;  %v6351_v3 = vld [vmem:[%s6941_s30 + $0x80] sm:$0x1] }
 0x117   : > { %1361 = vrot.lane.b32.xlu1 %v6320_v16, %s6878_s9  ;;  %1357 = vrot.lane.b32.xlu2 %v6318_v26, %s6878_s9  ;;  %v1539_v16 = vsel %vm6951_vm2, %v1534_v0, %v1538_v1  ;;  %v1543_v26 = vor.u32 %v1542_v10, %v1538_v1  ;;  %v1546_v27 = vshll.u32 %v6330_v15, 16  ;;  %v1605_v50 = vor.u32 %v1604_v35, %v1601_v34  ;;  %v6342_v1 = vld [vmem:[%s6941_s30 + $0x5c] sm:$0x1]  ;;  %v6339_v15 = vld [vmem:[%s6941_s30 + $0x50] sm:$0x1] }
 0x118   : > { %v1146_v30 = vpop.permute.xlu0 %1145  ;;  %v1610_v0 = vrot.slane %v1608_v51, 5  ;;  %v1614_v10 = vrot.slane %v1612_v57, 4  ;;  %v1642_v14 = vshll.u32 %v6342_v1, 16  ;;  %v1640_v34 = vrot.slane %v1639_v17, 4  ;;  %v6348_v17 = vld [vmem:[%s6941_s30 + $0x74] sm:$0x1] }
 0x119   : > { %1223 = vst.msk [vmem:[#allocation2 + $0x4c] sm:$0xf] %vm1203_vm8, %v1146_v30  ;;  %v1148_v36 = vpop.permute.xlu1 %1147  ;;  %v1162_v47 = vpop.permute.xlu2 %1161  ;;  %v1568_v30 = vrot.slane %v1567_v2, 4  ;;  %v1544_v41 = vrot.slane %v1543_v26, 4  ;;  %v1548_v42 = vrot.slane %v1546_v27, 5  ;;  %v1606_v63 = vrot.slane %v1605_v50, 4 }
 0x11a   : > { %1224 = vst.msk [vmem:[#allocation2 + $0x50] sm:$0xf] %vm1203_vm8, %v1148_v36  ;;  %v1591_v36 = vor.u32 %v1590_v7, %v7471_v20  ;;  %v6343_v7 = vld [vmem:[%s6941_s30 + $0x60] sm:$0xf]  ;;  %v1618_v26 = vshll.u32 %v6339_v15, 16  ;;  %v1644_v35 = vrot.slane %v1642_v14, 5 }
 0x11b   : > { %1231 = vst.msk [vmem:[#allocation2 + $0x6c] sm:$0xf] %vm1203_vm8, %v1162_v47  ;;  %v1549_v56 = vsel %vm6951_vm2, %v1544_v41, %v1548_v42  ;;  %v1647_v27 = vshrl.u32 %v6343_v7, 16  ;;  %v1650_v28 = vshll.u32 %v6343_v7, 16  ;;  %v1714_v15 = vshll.u32 %v6351_v3, 16 }
 0x11c   : > { %v1592_v52 = vrot.slane %v1591_v36, 4  ;;  %v1673_v36 = vrot.slane %v1671_v18, 4  ;;  %v1620_v41 = vrot.slane %v1618_v26, 5  ;;  %v1645_v49 = vsel %vm6951_vm2, %v1640_v34, %v1644_v35 }
 0x11d   : > { %v1649_v42 = vrot.slane %v1647_v27, 4 }
 0x11e   : > { %1862 = vrot.lane.b32.xlu0 %v1491_v39, %s6879_s10  ;;  %v1580_v39 = vrot.slane %v1578_v23, 5  ;;  %v1597_v8 = vsel %vm6951_vm2, %v1592_v52, %v1596_v54  ;;  %v6349_v23 = vld [vmem:[%s6941_s30 + $0x78] sm:$0xf] }
 0x11f   : > { %1864 = vrot.lane.b32.xlu1 %v1501_v48, %s6879_s10  ;;  %1363 = vrot.lane.b32.xlu2 %v6321_v53, %s6878_s9  ;;  %v1573_v48 = vsel %vm6951_vm2, %v1568_v30, %v1572_v32  ;;  %v7515_v30 = vrot.slane %v1656_v12, 5  ;;  %v1695_v37 = vshrl.u32 %v6349_v23, 16 }
 0x120   : > { %v1152_v61 = vpop.permute.xlu0 %1151  ;;  %v1581_v53 = vor.u32 %v1580_v39, %v1577_v38  ;;  %v1698_v38 = vshll.u32 %v6349_v23, 16  ;;  %v6347_v39 = vld [vmem:[%s6941_s30 + $0x70] sm:$0xf]  ;;  %v6352_v23 = vld [vmem:[%s6941_s30 + $0x84] sm:$0xf] }
 0x121   : > { %1226 = vst.msk [vmem:[#allocation2 + $0x58] sm:$0xf] %vm1203_vm8, %v1152_v61  ;;  %v1154_v4 = vpop.permute.xlu1 %1153  ;;  %v1168_v13 = vpop.permute.xlu2 %1167  ;;  %v1680_v52 = vshll.u32 %v6347_v39, 16  ;;  %v1684_v57 = vshrl.u32 %v6347_v39, 16  ;;  %v1722_v26 = vshll.u32 %v6352_v23, 16 }
 0x122   : > { %1227 = vst.msk [vmem:[#allocation2 + $0x5c] sm:$0xf] %vm1203_vm8, %v1154_v4  ;;  %v1582_v6 = vrot.slane %v1581_v53, 4  ;;  %v1697_v53 = vrot.slane %v1695_v37, 4  ;;  %v1700_v54 = vrot.slane %v1698_v38, 5  ;;  %v1716_v37 = vrot.slane %v1714_v15, 5 }
 0x123   : > { %1234 = vst.msk [vmem:[#allocation2 + $0x78] sm:$0xf] %vm1203_vm8, %v1168_v13  ;;  %v1660_v13 = vshrl.u32 %v6344_v60, 16  ;;  %v1668_v60 = vrot.slane %v1666_v46, 5  ;;  %v1682_v1 = vrot.slane %v1680_v52, 5  ;;  %v1686_v12 = vrot.slane %v1684_v57, 4 }
 0x124   : > { %v1587_v21 = vsel %vm6951_vm2, %v1582_v6, %v7471_v20  ;;  %v1676_v20 = vrot.slane %v1674_v19, 5  ;;  %v1701_v6 = vor.u32 %v1700_v54, %v1697_v53 }
 0x126   : > { %1868 = vrot.lane.b32.xlu0 %v1525_v11, %s6879_s10  ;;  %v1629_v11 = vor.u32 %v1628_v59, %v1625_v58  ;;  %v1677_v51 = vor.u32 %v1676_v20, %v1673_v36  ;;  %v1702_v27 = vrot.slane %v1701_v6, 4  ;;  %v6354_v20 = vld [vmem:[%s6941_s30 + $0x8c] sm:$0x1] }
 0x127   : > { %1870 = vrot.lane.b32.xlu1 %v1539_v16, %s6879_s10  ;;  %1866 = vrot.lane.b32.xlu2 %v1515_v25, %s6879_s10  ;;  %v1611_v16 = vsel %vm6951_vm2, %v1606_v63, %v1610_v0  ;;  %v1615_v25 = vor.u32 %v1614_v10, %v1610_v0 }
 0x128   : > { %v1158_v31 = vpop.permute.xlu0 %1157  ;;  %v1630_v29 = vrot.slane %v1629_v11, 4  ;;  %v1678_v0 = vrot.slane %v1677_v51, 4 }
 0x129   : > { %1229 = vst.msk [vmem:[#allocation2 + $0x64] sm:$0xf] %vm1203_vm8, %v1158_v31  ;;  %v1160_v24 = vpop.permute.xlu1 %1159  ;;  %v1304_v47 = vpop.permute.xlu2 %1303  ;;  %v1662_v31 = vrot.slane %v1660_v13, 4  ;;  %v1616_v40 = vrot.slane %v1615_v25, 4  ;;  %v1719_v25 = vshrl.u32 %v6352_v23, 16 }
 0x12a   : > { %1230 = vst.msk [vmem:[#allocation2 + $0x68] sm:$0xf] %vm1203_vm8, %v1160_v24  ;;  %v1635_v44 = vsel %vm6951_vm2, %v1630_v29, %v1634_v9  ;;  %v1683_v18 = vsel %vm6951_vm2, %v1678_v0, %v1682_v1  ;;  %v1687_v29 = vor.u32 %v1686_v12, %v1682_v1  ;;  %v6361_v23 = vld [vmem:[%s6941_s30 + $0xa8] sm:$0xf] }
 0x12b   : > { %1399 = vst.msk [vmem:[#allocation2 + $0x4] sm:$0xf] %vm1397_vm9, %v1304_v47  ;;  %v1663_v45 = vor.u32 %v1662_v31, %v7515_v30  ;;  %v6350_v47 = vld [vmem:[%s6941_s30 + $0x7c] sm:$0xf]  ;;  %v1690_v31 = vshll.u32 %v6348_v17, 16 }
 0x12c   : > { %v1708_v50 = vshrl.u32 %v6350_v47, 16  ;;  %v1704_v55 = vshll.u32 %v6350_v47, 16  ;;  %v1738_v47 = vshll.u32 %v6354_v20, 16  ;;  %v6357_v17 = vld [vmem:[%s6941_s30 + $0x98] sm:$0x1] }
 0x12d   : > { %v1664_v59 = vrot.slane %v1663_v45, 4 }
 0x12e   : > { %1874 = vrot.lane.b32.xlu0 %v1563_v43, %s6879_s10  ;;  %v1652_v43 = vrot.slane %v1650_v28, 5  ;;  %v1706_v9 = vrot.slane %v1704_v55, 5 }
 0x12f   : > { %1876 = vrot.lane.b32.xlu1 %v1573_v48, %s6879_s10  ;;  %1872 = vrot.lane.b32.xlu2 %v1549_v56, %s6879_s10  ;;  %v1621_v56 = vsel %vm6951_vm2, %v1616_v40, %v1620_v41  ;;  %v1669_v13 = vsel %vm6951_vm2, %v1664_v59, %v1668_v60  ;;  %v6356_v40 = vld [vmem:[%s6941_s30 + $0x94] sm:$0xf]  ;;  %v1721_v41 = vrot.slane %v1719_v25, 4 }
 0x130   : > { %v1164_v61 = vpop.permute.xlu0 %1163  ;;  %v1653_v58 = vor.u32 %v1652_v43, %v1649_v42  ;;  %v1724_v42 = vrot.slane %v1722_v26, 5  ;;  %v1688_v43 = vrot.slane %v1687_v29, 4  ;;  %v1707_v45 = vsel %vm6951_vm2, %v1702_v27, %v1706_v9 }
 0x131   : > { %1232 = vst.msk [vmem:[#allocation2 + $0x70] sm:$0xf] %vm1203_vm8, %v1164_v61  ;;  %v1166_v4 = vpop.permute.xlu1 %1165  ;;  %v1310_v2 = vpop.permute.xlu2 %1309  ;;  %v6353_v61 = vld [vmem:[%s6941_s30 + $0x88] sm:$0xf]  ;;  %v1752_v53 = vshll.u32 %v6356_v40, 16  ;;  %v1756_v59 = vshrl.u32 %v6356_v40, 16 }
 0x132   : > { %1233 = vst.msk [vmem:[#allocation2 + $0x74] sm:$0xf] %vm1203_vm8, %v1166_v4  ;;  %v1710_v4 = vrot.slane %v1708_v50, 4  ;;  %v1728_v10 = vshll.u32 %v6353_v61, 16  ;;  %v1654_v11 = vrot.slane %v1653_v58, 4  ;;  %v1791_v29 = vshrl.u32 %v6361_v23, 16 }
 0x133   : > { %1402 = vst.msk [vmem:[#allocation2 + $0x10] sm:$0xf] %vm1397_vm9, %v1310_v2  ;;  %v1732_v2 = vshrl.u32 %v6353_v61, 16  ;;  %v1740_v61 = vrot.slane %v1738_v47, 5  ;;  %v1754_v3 = vrot.slane %v1752_v53, 5  ;;  %v1758_v12 = vrot.slane %v1756_v59, 4 }
 0x134   : > { %v1711_v19 = vor.u32 %v1710_v4, %v1706_v9  ;;  %v1659_v28 = vsel %vm6951_vm2, %v1654_v11, %v7515_v30  ;;  %v6360_v4 = vld [vmem:[%s6941_s30 + $0xa4] sm:$0x1]  ;;  %v6365_v40 = vld [vmem:[%s6941_s30 + $0xb8] sm:$0xf] }
 0x135   : > { %v1734_v33 = vrot.slane %v1732_v2, 4  ;;  %v1759_v27 = vor.u32 %v1758_v12, %v1754_v3  ;;  %v6368_v47 = vld [vmem:[%s6941_s30 + $0xc4] sm:$0xf] }
 0x136   : > { %1880 = vrot.lane.b32.xlu0 %v1597_v8, %s6879_s10  ;;  %v6355_v8 = vld [vmem:[%s6941_s30 + $0x90] sm:$0xf] }
 0x137   : > { %1882 = vrot.lane.b32.xlu1 %v1611_v16, %s6879_s10  ;;  %1878 = vrot.lane.b32.xlu2 %v1587_v21, %s6879_s10  ;;  %v6358_v16 = vld [vmem:[%s6941_s30 + $0x9c] sm:$0xf]  ;;  %v1743_v7 = vshrl.u32 %v6355_v8, 16  ;;  %v1746_v21 = vshll.u32 %v6355_v8, 16 }
 0x138   : > { %v1170_v32 = vpop.permute.xlu0 %1169  ;;  %v1767_v34 = vshrl.u32 %v6358_v16, 16  ;;  %v1770_v35 = vshll.u32 %v6358_v16, 16  ;;  %v1786_v16 = vshll.u32 %v6360_v4, 16 }
 0x139   : > { %1235 = vst.msk [vmem:[#allocation2 + $0x7c] sm:$0xf] %vm1203_vm8, %v1170_v32  ;;  %v1302_v24 = vpop.permute.xlu1 %1301  ;;  %v1316_v48 = vpop.permute.xlu2 %1315  ;;  %v7552_v32 = vrot.slane %v1728_v10, 5  ;;  %v1745_v38 = vrot.slane %v1743_v7, 4  ;;  %v1748_v39 = vrot.slane %v1746_v21, 5 }
 0x13a   : > { %1398 = vst.msk [vmem:[#allocation2] sm:$0xf] %vm1397_vm9, %v1302_v24  ;;  %v1712_v24 = vrot.slane %v1711_v19, 4  ;;  %v1769_v54 = vrot.slane %v1767_v34, 4  ;;  %v1772_v55 = vrot.slane %v1770_v35, 5 }
 0x13b   : > { %1405 = vst.msk [vmem:[#allocation2 + $0x1c] sm:$0xf] %vm1397_vm9, %v1316_v48  ;;  %v1735_v46 = vor.u32 %v1734_v33, %v7552_v32  ;;  %v6359_v48 = vld [vmem:[%s6941_s30 + $0xa0] sm:$0xf]  ;;  %v1749_v52 = vor.u32 %v1748_v39, %v1745_v38  ;;  %v6364_v10 = vld [vmem:[%s6941_s30 + $0xb4] sm:$0xf] }
 0x13c   : > { %v1717_v50 = vsel %vm6951_vm2, %v1712_v24, %v1716_v37  ;;  %v1780_v51 = vshrl.u32 %v6359_v48, 16  ;;  %v1776_v57 = vshll.u32 %v6359_v48, 16  ;;  %v1815_v7 = vshrl.u32 %v6364_v10, 16  ;;  %v6363_v33 = vld [vmem:[%s6941_s30 + $0xb0] sm:$0x1] }
 0x13d   : > { %v1736_v60 = vrot.slane %v1735_v46, 4  ;;  %v1750_v1 = vrot.slane %v1749_v52, 4  ;;  %v1818_v21 = vshll.u32 %v6364_v10, 16  ;;  %v1788_v24 = vrot.slane %v1786_v16, 5  ;;  %v6367_v37 = vld [vmem:[%s6941_s30 + $0xc0] sm:$0xf] }
 0x13e   : > { %1886 = vrot.lane.b32.xlu0 %v1635_v44, %s6879_s10  ;;  %v1692_v44 = vrot.slane %v1690_v31, 5  ;;  %v1782_v6 = vrot.slane %v1780_v51, 4  ;;  %v1778_v11 = vrot.slane %v1776_v57, 5  ;;  %v1794_v31 = vshll.u32 %v6361_v23, 16  ;;  %v6371_v23 = vld [vmem:[%s6941_s30 + $0x10] sm:$0xf] }
 0x13f   : > { %1888 = vrot.lane.b32.xlu1 %v1645_v49, %s6879_s10  ;;  %1884 = vrot.lane.b32.xlu2 %v1621_v56, %s6879_s10  ;;  %v1725_v56 = vor.u32 %v1724_v42, %v1721_v41  ;;  %v1817_v38 = vrot.slane %v1815_v7, 4  ;;  %v1760_v41 = vrot.slane %v1759_v27, 4  ;;  %v1810_v46 = vshll.u32 %v6363_v33, 16 }
 0x140   : > { %v1306_v63 = vpop.permute.xlu0 %1305  ;;  %v1693_v58 = vsel %vm6951_vm2, %v1688_v43, %v1692_v44  ;;  %v1783_v19 = vor.u32 %v1782_v6, %v1778_v11  ;;  %v1793_v43 = vrot.slane %v1791_v29, 4  ;;  %v1796_v44 = vrot.slane %v1794_v31, 5 }
 0x141   : > { %1400 = vst.msk [vmem:[#allocation2 + $0x8] sm:$0xf] %vm1397_vm9, %v1306_v63  ;;  %v1308_v5 = vpop.permute.xlu1 %1307  ;;  %v1322_v14 = vpop.permute.xlu2 %1321  ;;  %v6362_v63 = vld [vmem:[%s6941_s30 + $0xac] sm:$0xf]  ;;  %v1726_v9 = vrot.slane %v1725_v56, 4  ;;  %v1839_v48 = vshrl.u32 %v6367_v37, 16 }
 0x142   : > { %1401 = vst.msk [vmem:[#allocation2 + $0xc] sm:$0xf] %vm1397_vm9, %v1308_v5  ;;  %v1773_v5 = vor.u32 %v1772_v55, %v1769_v54  ;;  %v1800_v2 = vshll.u32 %v6362_v63, 16  ;;  %v1784_v20 = vrot.slane %v1783_v19, 4  ;;  %v1852_v52 = vshrl.u32 %v6368_v47, 16 }
 0x143   : > { %1408 = vst.msk [vmem:[#allocation2 + $0x28] sm:$0xf] %vm1397_vm9, %v1322_v14  ;;  %v1804_v14 = vshrl.u32 %v6362_v63, 16  ;;  %v1731_v26 = vsel %vm6951_vm2, %v1726_v9, %v7552_v32  ;;  %v1820_v32 = vrot.slane %v1818_v21, 5  ;;  %v1824_v54 = vshll.u32 %v6365_v40, 16 }
 0x144   : > { %v1774_v25 = vrot.slane %v1773_v5, 4  ;;  %v7589_v34 = vrot.slane %v1800_v2, 5  ;;  %v1789_v51 = vsel %vm6951_vm2, %v1784_v20, %v1788_v24  ;;  %v1848_v55 = vshll.u32 %v6368_v47, 16  ;;  %v6369_v5 = vld [vmem:[%s6941_s30 + $0xc8] sm:$0x1] }
 0x145   : > { %v1806_v35 = vrot.slane %v1804_v14, 4  ;;  %v1821_v53 = vor.u32 %v1820_v32, %v1817_v38  ;;  %v1828_v57 = vshrl.u32 %v6365_v40, 16  ;;  %v1854_v4 = vrot.slane %v1852_v52, 4  ;;  %v6366_v2 = vld [vmem:[%s6941_s30 + $0xbc] sm:$0x1] }
 0x146   : > { %1892 = vrot.lane.b32.xlu0 %v1669_v13, %s6879_s10  ;;  %v1741_v13 = vsel %vm6951_vm2, %v1736_v60, %v1740_v61  ;;  %v1779_v39 = vsel %vm6951_vm2, %v1774_v25, %v1778_v11  ;;  %v1812_v60 = vrot.slane %v1810_v46, 5  ;;  %v1841_v61 = vrot.slane %v1839_v48, 4  ;;  %v6373_v20 = vld [vmem:[%s6941_s30 + $0x18] sm:$0xe]  ;;  %v6374_v24 = vld [vmem:[%s6941_s30 + $0x1c] sm:$0xf] }
 0x147   : > { %1894 = vrot.lane.b32.xlu1 %v1683_v18, %s6879_s10  ;;  %1890 = vrot.lane.b32.xlu2 %v1659_v28, %s6879_s10  ;;  %v1755_v18 = vsel %vm6951_vm2, %v1750_v1, %v1754_v3  ;;  %v1762_v28 = vshll.u32 %v6357_v17, 16  ;;  %v1822_v1 = vrot.slane %v1821_v53, 4  ;;  %v1826_v3 = vrot.slane %v1824_v54, 5  ;;  %v6376_v47 = vld [vmem:[%s6941_s30 + $0x24] sm:$0xe] }
 0x148   : > { %v1312_v36 = vpop.permute.xlu0 %1311  ;;  %v1830_v10 = vrot.slane %v1828_v57, 4  ;;  %v1858_v16 = vshll.u32 %v6369_v5, 16  ;;  %v1834_v19 = vshll.u32 %v6366_v2, 16  ;;  %v2089_v33 = vrot.slane %v6371_v23, 5  ;;  %v6375_v53 = vld [vmem:[%s6941_s30 + $0x20] sm:$0x1] }
 0x149   : > { %1403 = vst.msk [vmem:[#allocation2 + $0x14] sm:$0xf] %vm1397_vm9, %v1312_v36  ;;  %v1314_v30 = vpop.permute.xlu1 %1313  ;;  %v1328_v49 = vpop.permute.xlu2 %1327  ;;  %v1764_v42 = vrot.slane %v1762_v28, 5  ;;  %v1827_v14 = vsel %vm6951_vm2, %v1822_v1, %v1826_v3  ;;  %v6419_v40 = vrot.slane %v6373_v20, 9  ;;  %v6420_v52 = vrot.slane %v6376_v47, 9 }
 0x14a   : > { %1404 = vst.msk [vmem:[#allocation2 + $0x18] sm:$0xf] %vm1397_vm9, %v1314_v30  ;;  %v1836_v29 = vrot.slane %v1834_v19, 5  ;;  %v2091_v38 = vrot.slane %v2089_v33, 4  ;;  %v6381_v1 = vld [vmem:[%s6941_s30 + $0x38] sm:$0x1] }
 0x14b   : > { %1411 = vst.msk [vmem:[#allocation2 + $0x34] sm:$0xf] %vm1397_vm9, %v1328_v49  ;;  %v1842_v49 = vshll.u32 %v6367_v37, 16  ;;  %v1765_v56 = vsel %vm6951_vm2, %v1760_v41, %v1764_v42  ;;  %v2096_v41 = vrot.slane %v6374_v24, 5 }
 0x14d   : > { %v1844_v63 = vrot.slane %v1842_v49, 5  ;;  %v2097_v48 = vsel %vm7110_vm6, %v6419_v40, %v2096_v41  ;;  %v6378_v49 = vld [vmem:[%s6941_s30 + $0x2c] sm:$0x1] }
 0x14e   : > { %1898 = vrot.lane.b32.xlu0 %v1707_v45, %s6879_s10  ;;  %v1807_v45 = vor.u32 %v1806_v35, %v7589_v34  ;;  %v6372_v35 = vld [vmem:[%s6941_s30 + $0x14] sm:$0x1]  ;;  %v2106_v57 = vrot.slane %v6378_v49, 5  ;;  %v6395_v49 = vld [vmem:[%s6941_s30 + $0x70] sm:$0xf] }
 0x14f   : > { %1900 = vrot.lane.b32.xlu1 %v1717_v50, %s6879_s10  ;;  %1896 = vrot.lane.b32.xlu2 %v1693_v58, %s6879_s10  ;;  %v1797_v58 = vor.u32 %v1796_v44, %v1793_v43  ;;  %v1845_v12 = vor.u32 %v1844_v63, %v1841_v61  ;;  %v2092_v32 = vrot.slane %v6372_v35, 5 }
 0x150   : > { %v1318_v0 = vpop.permute.xlu0 %1317  ;;  %v1808_v59 = vrot.slane %v1807_v45, 4  ;;  %v6377_v45 = vld [vmem:[%s6941_s30 + $0x28] sm:$0xf] }
 0x151   : > { %1406 = vst.msk [vmem:[#allocation2 + $0x20] sm:$0xf] %vm1397_vm9, %v1318_v0  ;;  %v1320_v8 = vpop.permute.xlu1 %1319  ;;  %v1334_v15 = vpop.permute.xlu2 %1333  ;;  %v1798_v9 = vrot.slane %v1797_v58, 4  ;;  %v1846_v7 = vrot.slane %v1845_v12, 4  ;;  %v2093_v44 = vsel %vm7110_vm6, %v2091_v38, %v2092_v32  ;;  %v6391_v32 = vld [vmem:[%s6941_s30 + $0x60] sm:$0xe] }
 0x152   : > { %1407 = vst.msk [vmem:[#allocation2 + $0x24] sm:$0xf] %vm1397_vm9, %v1320_v8  ;;  %v1850_v8 = vrot.slane %v1848_v55, 5  ;;  %v1813_v11 = vsel %vm6951_vm2, %v1808_v59, %v1812_v60  ;;  %v6380_v55 = vld [vmem:[%s6941_s30 + $0x34] sm:$0xf]  ;;  %v2098_v59 = vrot.slane %v2096_v41, 4 }
 0x153   : > { %1414 = vst.msk [vmem:[#allocation2 + $0x40] sm:$0xf] %vm1397_vm9, %v1334_v15  ;;  %v1803_v17 = vsel %vm6951_vm2, %v1798_v9, %v7589_v34  ;;  %v2099_v60 = vrot.slane %v6375_v53, 5  ;;  %v2110_v63 = vrot.slane %v6380_v55, 5  ;;  %v2113_v9 = vrot.slane %v6381_v1, 5 }
 0x154   : > { %v1855_v15 = vor.u32 %v1854_v4, %v1850_v8  ;;  %v1851_v31 = vsel %vm6951_vm2, %v1846_v7, %v1850_v8  ;;  %v6382_v4 = vld [vmem:[%s6941_s30 + $0x3c] sm:$0xe]  ;;  %v6387_v7 = vld [vmem:[%s6941_s30 + $0x50] sm:$0x1]  ;;  %v6396_v53 = vld [vmem:[%s6941_s30 + $0x74] sm:$0x1] }
 0x155   : > { %v2100_v5 = vsel %vm7110_vm6, %v2098_v59, %v2099_v60  ;;  %v2112_v8 = vrot.slane %v2110_v63, 4  ;;  %v6422_v12 = vrot.slane %v6382_v4, 9  ;;  %v6398_v59 = vld [vmem:[%s6941_s30 + $0x7c] sm:$0xf] }
 0x156   : > { %1904 = vrot.lane.b32.xlu0 %v1741_v13, %s6879_s10  ;;  %v1856_v25 = vrot.slane %v1855_v15, 4  ;;  %v2152_v4 = vrot.slane %v6398_v59, 5 }
 0x157   : > { %1906 = vrot.lane.b32.xlu1 %v1755_v18, %s6879_s10  ;;  %1902 = vrot.lane.b32.xlu2 %v1731_v26, %s6879_s10  ;;  %v1831_v18 = vor.u32 %v1830_v10, %v1826_v3  ;;  %v1860_v26 = vrot.slane %v1858_v16, 5  ;;  %v6379_v10 = vld [vmem:[%s6941_s30 + $0x30] sm:$0xe]  ;;  %v2114_v15 = vsel %vm7110_vm6, %v2112_v8, %v2113_v9  ;;  %v6386_v16 = vld [vmem:[%s6941_s30 + $0x4c] sm:$0xf] }
 0x158   : > { %v1324_v36 = vpop.permute.xlu0 %1323  ;;  %v6400_v9 = vld [vmem:[%s6941_s30 + $0x84] sm:$0xe] }
 0x159   : > { %1409 = vst.msk [vmem:[#allocation2 + $0x2c] sm:$0xf] %vm1397_vm9, %v1324_v36  ;;  %v1326_v30 = vpop.permute.xlu1 %1325  ;;  %v1340_v50 = vpop.permute.xlu2 %1339  ;;  %v1832_v28 = vrot.slane %v1831_v18, 4  ;;  %v1861_v36 = vsel %vm6951_vm2, %v1856_v25, %v1860_v26  ;;  %v6385_v18 = vld [vmem:[%s6941_s30 + $0x48] sm:$0xe] }
 0x15a   : > { %1410 = vst.msk [vmem:[#allocation2 + $0x30] sm:$0xf] %vm1397_vm9, %v1326_v30  ;;  %v6423_v25 = vrot.slane %v6385_v18, 9  ;;  %v6384_v26 = vld [vmem:[%s6941_s30 + $0x44] sm:$0x1] }
 0x15b   : > { %1417 = vst.msk [vmem:[#allocation2 + $0x4c] sm:$0xf] %vm1397_vm9, %v1340_v50  ;;  %v1837_v37 = vsel %vm6951_vm2, %v1832_v28, %v1836_v29  ;;  %v2103_v50 = vrot.slane %v6377_v45, 5  ;;  %v6389_v28 = vld [vmem:[%s6941_s30 + $0x58] sm:$0xf]  ;;  %v2120_v35 = vrot.slane %v6384_v26, 5 }
 0x15c   : > { %v2131_v20 = vrot.slane %v6389_v28, 5  ;;  %v6405_v26 = vld [vmem:[%s6941_s30 + $0x98] sm:$0x1] }
 0x15d   : > { %v2104_v61 = vsel %vm7110_vm6, %v6420_v52, %v2103_v50 }
 0x15e   : > { %1910 = vrot.lane.b32.xlu0 %v1779_v39, %s6879_s10  ;;  %v6370_v39 = vld [vmem:[%s6941_s30 + $0xc] sm:$0xe]  ;;  %v2133_v40 = vrot.slane %v2131_v20, 4 }
 0x15f   : > { %1912 = vrot.lane.b32.xlu1 %v1789_v51, %s6879_s10  ;;  %1908 = vrot.lane.b32.xlu2 %v1765_v56, %s6879_s10  ;;  %v6418_v43 = vrot.slane %v6370_v39, 9  ;;  %v2105_v56 = vrot.slane %v2103_v50, 4  ;;  %v6392_v39 = vld [vmem:[%s6941_s30 + $0x64] sm:$0xf] }
 0x160   : > { %v1330_v0 = vpop.permute.xlu0 %1329  ;;  %v2138_v45 = vrot.slane %v6392_v39, 5 }
 0x161   : > { %1412 = vst.msk [vmem:[#allocation2 + $0x38] sm:$0xf] %vm1397_vm9, %v1330_v0  ;;  %v1332_v6 = vpop.permute.xlu1 %1331  ;;  %v1346_v13 = vpop.permute.xlu2 %1345  ;;  %v2090_v51 = vsel %vm7110_vm6, %v6418_v43, %v2089_v33  ;;  %v2107_v3 = vsel %vm7110_vm6, %v2105_v56, %v2106_v57  ;;  %v6393_v57 = vld [vmem:[%s6941_s30 + $0x68] sm:$0x1] }
 0x162   : > { %1413 = vst.msk [vmem:[#allocation2 + $0x3c] sm:$0xf] %vm1397_vm9, %v1332_v6  ;;  %v6383_v6 = vld [vmem:[%s6941_s30 + $0x40] sm:$0xf]  ;;  %v2141_v1 = vrot.slane %v6393_v57, 5 }
 0x163   : > { %1420 = vst.msk [vmem:[#allocation2 + $0x58] sm:$0xf] %vm1397_vm9, %v1346_v13  ;;  %v2117_v13 = vrot.slane %v6383_v6, 5  ;;  %v6414_v57 = vld [vmem:[%s6941_s30 + $0xbc] sm:$0x1] }
 0x165   : > { %v2118_v19 = vsel %vm7110_vm6, %v6422_v12, %v2117_v13  ;;  %v2154_v12 = vrot.slane %v2152_v4, 4 }
 0x166   : > { %1916 = vrot.lane.b32.xlu0 %v1813_v11, %s6879_s10 }
 0x167   : > { %1918 = vrot.lane.b32.xlu1 %v1827_v14, %s6879_s10  ;;  %1914 = vrot.lane.b32.xlu2 %v1803_v17, %s6879_s10  ;;  %v6421_v14 = vrot.slane %v6379_v10, 9  ;;  %v6401_v10 = vld [vmem:[%s6941_s30 + $0x88] sm:$0xf] }
 0x168   : > { %v1336_v21 = vpop.permute.xlu0 %1335 }
 0x169   : > { %1415 = vst.msk [vmem:[#allocation2 + $0x44] sm:$0xf] %vm1397_vm9, %v1336_v21  ;;  %v1338_v27 = vpop.permute.xlu1 %1337  ;;  %v1352_v34 = vpop.permute.xlu2 %1351  ;;  %v2124_v21 = vrot.slane %v6386_v16, 5  ;;  %v2111_v23 = vsel %vm7110_vm6, %v6421_v14, %v2110_v63  ;;  %v2159_v16 = vrot.slane %v6401_v10, 5 }
 0x16a   : > { %1416 = vst.msk [vmem:[#allocation2 + $0x48] sm:$0xf] %vm1397_vm9, %v1338_v27 }
 0x16b   : > { %1423 = vst.msk [vmem:[#allocation2 + $0x64] sm:$0xf] %vm1397_vm9, %v1352_v34  ;;  %v2126_v29 = vrot.slane %v2124_v21, 4  ;;  %v2119_v34 = vrot.slane %v2117_v13, 4 }
 0x16e   : > { %1922 = vrot.lane.b32.xlu0 %v1851_v31, %s6879_s10  ;;  %v2127_v31 = vrot.slane %v6387_v7, 5  ;;  %v6404_v7 = vld [vmem:[%s6941_s30 + $0x94] sm:$0xf] }
 0x16f   : > { %1924 = vrot.lane.b32.xlu1 %v1861_v36, %s6879_s10  ;;  %1920 = vrot.lane.b32.xlu2 %v1837_v37, %s6879_s10  ;;  %v2125_v36 = vsel %vm7110_vm6, %v6423_v25, %v2124_v21  ;;  %v6390_v37 = vld [vmem:[%s6941_s30 + $0x5c] sm:$0x1] }
 0x170   : > { %v1342_v30 = vpop.permute.xlu0 %1341  ;;  %v2128_v38 = vsel %vm7110_vm6, %v2126_v29, %v2127_v31  ;;  %v2134_v41 = vrot.slane %v6390_v37, 5  ;;  %v6402_v31 = vld [vmem:[%s6941_s30 + $0x8c] sm:$0x1] }
 0x171   : > { %1418 = vst.msk [vmem:[#allocation2 + $0x50] sm:$0xf] %vm1397_vm9, %v1342_v30  ;;  %v1344_v42 = vpop.permute.xlu1 %1343  ;;  %v1358_v46 = vpop.permute.xlu2 %1357  ;;  %v2121_v30 = vsel %vm7110_vm6, %v2119_v34, %v2120_v35  ;;  %v6407_v34 = vld [vmem:[%s6941_s30 + $0xa0] sm:$0xf]  ;;  %v2162_v37 = vrot.slane %v6402_v31, 5 }
 0x172   : > { %1419 = vst.msk [vmem:[#allocation2 + $0x54] sm:$0xf] %vm1397_vm9, %v1344_v42  ;;  %v6388_v42 = vld [vmem:[%s6941_s30 + $0x54] sm:$0xe]  ;;  %v6435_v31 = vld [vmem:[%s6941_s30 + $0x1c] sm:$0xf] }
 0x173   : > { %1426 = vst.msk [vmem:[#allocation2 + $0x70] sm:$0xf] %vm1397_vm9, %v1358_v46  ;;  %v6424_v47 = vrot.slane %v6388_v42, 9  ;;  %v6410_v42 = vld [vmem:[%s6941_s30 + $0xac] sm:$0xf] }
 0x175   : > { %v2132_v55 = vsel %vm7110_vm6, %v6424_v47, %v2131_v20 }
 0x176   : > { %2201 = vrot.lane.b32.xlu0 %v2093_v44, %s6880_s11  ;;  %v6425_v44 = vrot.slane %v6391_v32, 9  ;;  %v2173_v32 = vrot.slane %v6407_v34, 5 }
 0x177   : > { %2203 = vrot.lane.b32.xlu1 %v2097_v48, %s6880_s11  ;;  %2199 = vrot.lane.b32.xlu2 %v2090_v51, %s6880_s11  ;;  %v2135_v48 = vsel %vm7110_vm6, %v2133_v40, %v2134_v41  ;;  %v6394_v51 = vld [vmem:[%s6941_s30 + $0x6c] sm:$0xe]  ;;  %v6409_v41 = vld [vmem:[%s6941_s30 + $0xa8] sm:$0xe] }
 0x178   : > { %v1348_v54 = vpop.permute.xlu0 %1347  ;;  %v2139_v52 = vsel %vm7110_vm6, %v6425_v44, %v2138_v45  ;;  %v6426_v56 = vrot.slane %v6394_v51, 9  ;;  %v2175_v44 = vrot.slane %v2173_v32, 4 }
 0x179   : > { %1421 = vst.msk [vmem:[#allocation2 + $0x5c] sm:$0xf] %vm1397_vm9, %v1348_v54  ;;  %v1350_v58 = vpop.permute.xlu1 %1349  ;;  %v1364_v0 = vpop.permute.xlu2 %1363  ;;  %v2145_v54 = vrot.slane %v6395_v49, 5  ;;  %v2180_v49 = vrot.slane %v6410_v42, 5 }
 0x17a   : > { %1422 = vst.msk [vmem:[#allocation2 + $0x60] sm:$0xf] %vm1397_vm9, %v1350_v58 }
 0x17b   : > { %1429 = vst.msk [vmem:[#allocation2 + $0x7c] sm:$0xf] %vm1397_vm9, %v1364_v0  ;;  %v2147_v60 = vrot.slane %v2145_v54, 4  ;;  %v2140_v0 = vrot.slane %v2138_v45, 4 }
 0x17e   : > { %2207 = vrot.lane.b32.xlu0 %v2104_v61, %s6880_s11  ;;  %v2148_v61 = vrot.slane %v6396_v53, 5  ;;  %v6413_v53 = vld [vmem:[%s6941_s30 + $0xb8] sm:$0xf] }
 0x17f   : > { %2209 = vrot.lane.b32.xlu1 %v2107_v3, %s6880_s11  ;;  %2205 = vrot.lane.b32.xlu2 %v2100_v5, %s6880_s11  ;;  %v2146_v3 = vsel %vm7110_vm6, %v6426_v56, %v2145_v54  ;;  %v6399_v5 = vld [vmem:[%s6941_s30 + $0x80] sm:$0x1] }
 0x180   : > { %v1354_v11 = vpop.permute.xlu0 %1353  ;;  %v2149_v8 = vsel %vm7110_vm6, %v2147_v60, %v2148_v61  ;;  %v2155_v13 = vrot.slane %v6399_v5, 5  ;;  %v6411_v61 = vld [vmem:[%s6941_s30 + $0xb0] sm:$0x1] }
 0x181   : > { %1424 = vst.msk [vmem:[#allocation2 + $0x68] sm:$0xf] %vm1397_vm9, %v1354_v11  ;;  %v1356_v2 = vpop.permute.xlu1 %1355  ;;  %v1867_v17 = vpop.permute.xlu2 %1866  ;;  %v2142_v11 = vsel %vm7110_vm6, %v2140_v0, %v2141_v1  ;;  %v6416_v0 = vld [vmem:[%s6941_s30 + $0xc4] sm:$0xf]  ;;  %v2183_v5 = vrot.slane %v6411_v61, 5 }
 0x182   : > { %1425 = vst.msk [vmem:[#allocation2 + $0x6c] sm:$0xf] %vm1397_vm9, %v1356_v2  ;;  %v6397_v2 = vld [vmem:[%s6941_s30 + $0x78] sm:$0xe]  ;;  %v6454_v61 = vld [vmem:[%s6941_s30 + $0x90] sm:$0xf] }
 0x183   : > { %1961 = vst.msk [vmem:[#allocation2 + $0x8] sm:$0xf] %vm1958_vm10, %v1867_v17  ;;  %v6427_v18 = vrot.slane %v6397_v2, 9 }
 0x185   : > { %v2153_v28 = vsel %vm7110_vm6, %v6427_v18, %v2152_v4 }
 0x186   : > { %2213 = vrot.lane.b32.xlu0 %v2114_v15, %s6880_s11  ;;  %v6428_v15 = vrot.slane %v6400_v9, 9  ;;  %v2194_v9 = vrot.slane %v6416_v0, 5  ;;  %v6455_v0 = vld [vmem:[%s6941_s30 + $0x94] sm:$0xf] }
 0x187   : > { %2215 = vrot.lane.b32.xlu1 %v2118_v19, %s6880_s11  ;;  %2211 = vrot.lane.b32.xlu2 %v2111_v23, %s6880_s11  ;;  %v2156_v19 = vsel %vm7110_vm6, %v2154_v12, %v2155_v13  ;;  %v6403_v23 = vld [vmem:[%s6941_s30 + $0x90] sm:$0xe] }
 0x188   : > { %v1360_v27 = vpop.permute.xlu0 %1359  ;;  %v2160_v25 = vsel %vm7110_vm6, %v6428_v15, %v2159_v16  ;;  %v6429_v29 = vrot.slane %v6403_v23, 9  ;;  %v2196_v2 = vrot.slane %v2194_v9, 4  ;;  %v6415_v15 = vld [vmem:[%s6941_s30 + $0xc0] sm:$0xe] }
 0x189   : > { %1427 = vst.msk [vmem:[#allocation2 + $0x74] sm:$0xf] %vm1397_vm9, %v1360_v27  ;;  %v1362_v33 = vpop.permute.xlu1 %1361  ;;  %v1873_v24 = vpop.permute.xlu2 %1872  ;;  %v2166_v27 = vrot.slane %v6404_v7, 5  ;;  %v6433_v18 = vrot.slane %v6415_v15, 9  ;;  %v6467_v15 = vld [vmem:[%s6941_s30 + $0x1c] sm:$0xf] }
 0x18a   : > { %1428 = vst.msk [vmem:[#allocation2 + $0x78] sm:$0xf] %vm1397_vm9, %v1362_v33 }
 0x18b   : > { %1964 = vst.msk [vmem:[#allocation2 + $0x14] sm:$0xf] %vm1958_vm10, %v1873_v24  ;;  %v2168_v35 = vrot.slane %v2166_v27, 4  ;;  %v2161_v24 = vrot.slane %v2159_v16, 4  ;;  %v2195_v23 = vsel %vm7110_vm6, %v6433_v18, %v2194_v9  ;;  %v6456_v9 = vld [vmem:[%s6941_s30 + $0x9c] sm:$0xf] }
 0x18c   : > { %v2584_v18 = vshrl.u32 %v6467_v15, 16 }
 0x18e   : > { %2219 = vrot.lane.b32.xlu0 %v2125_v36, %s6880_s11  ;;  %v2169_v36 = vrot.slane %v6405_v26, 5 }
 0x18f   : > { %2221 = vrot.lane.b32.xlu1 %v2128_v38, %s6880_s11  ;;  %2217 = vrot.lane.b32.xlu2 %v2121_v30, %s6880_s11  ;;  %v2167_v38 = vsel %vm7110_vm6, %v6429_v29, %v2166_v27  ;;  %v6408_v30 = vld [vmem:[%s6941_s30 + $0xa4] sm:$0x1]  ;;  %v6437_v29 = vld [vmem:[%s6941_s30 + $0x28] sm:$0xf] }
 0x190   : > { %v1863_v43 = vpop.permute.xlu0 %1862  ;;  %v2170_v40 = vsel %vm7110_vm6, %v2168_v35, %v2169_v36  ;;  %v2176_v45 = vrot.slane %v6408_v30, 5  ;;  %v6436_v27 = vld [vmem:[%s6941_s30 + $0x24] sm:$0xf]  ;;  %v6439_v35 = vld [vmem:[%s6941_s30 + $0x34] sm:$0xf] }
 0x191   : > { %1959 = vst.msk [vmem:[#allocation2] sm:$0xf] %vm1958_vm10, %v1863_v43  ;;  %v1865_v46 = vpop.permute.xlu1 %1864  ;;  %v1879_v50 = vpop.permute.xlu2 %1878  ;;  %v2163_v43 = vsel %vm7110_vm6, %v2161_v24, %v2162_v37  ;;  %v6438_v24 = vld [vmem:[%s6941_s30 + $0x30] sm:$0xf]  ;;  %v6443_v30 = vld [vmem:[%s6941_s30 + $0x4c] sm:$0xf] }
 0x192   : > { %1960 = vst.msk [vmem:[#allocation2 + $0x4] sm:$0xf] %vm1958_vm10, %v1865_v46  ;;  %v6406_v46 = vld [vmem:[%s6941_s30 + $0x9c] sm:$0xe] }
 0x193   : > { %1967 = vst.msk [vmem:[#allocation2 + $0x20] sm:$0xf] %vm1958_vm10, %v1879_v50  ;;  %v6430_v51 = vrot.slane %v6406_v46, 9  ;;  %v6444_v46 = vld [vmem:[%s6941_s30 + $0x54] sm:$0xf] }
 0x195   : > { %v2174_v59 = vsel %vm7110_vm6, %v6430_v51, %v2173_v32  ;;  %v6442_v32 = vld [vmem:[%s6941_s30 + $0x48] sm:$0xf]  ;;  %v6449_v51 = vld [vmem:[%s6941_s30 + $0x70] sm:$0xf] }
 0x196   : > { %2225 = vrot.lane.b32.xlu0 %v2135_v48, %s6880_s11  ;;  %v6431_v48 = vrot.slane %v6409_v41, 9 }
 0x197   : > { %2227 = vrot.lane.b32.xlu1 %v2139_v52, %s6880_s11  ;;  %2223 = vrot.lane.b32.xlu2 %v2132_v55, %s6880_s11  ;;  %v2177_v52 = vsel %vm7110_vm6, %v2175_v44, %v2176_v45  ;;  %v6412_v55 = vld [vmem:[%s6941_s30 + $0xb4] sm:$0xe]  ;;  %v6446_v45 = vld [vmem:[%s6941_s30 + $0x60] sm:$0xf] }
 0x198   : > { %v1869_v58 = vpop.permute.xlu0 %1868  ;;  %v2181_v56 = vsel %vm7110_vm6, %v6431_v48, %v2180_v49  ;;  %v6432_v60 = vrot.slane %v6412_v55, 9  ;;  %v6451_v55 = vld [vmem:[%s6941_s30 + $0x7c] sm:$0xf] }
 0x199   : > { %1962 = vst.msk [vmem:[#allocation2 + $0xc] sm:$0xf] %vm1958_vm10, %v1869_v58  ;;  %v1871_v63 = vpop.permute.xlu1 %1870  ;;  %v1885_v6 = vpop.permute.xlu2 %1884  ;;  %v2187_v58 = vrot.slane %v6413_v53, 5 }
 0x19a   : > { %1963 = vst.msk [vmem:[#allocation2 + $0x10] sm:$0xf] %vm1958_vm10, %v1871_v63 }
 0x19b   : > { %1970 = vst.msk [vmem:[#allocation2 + $0x2c] sm:$0xf] %vm1958_vm10, %v1885_v6  ;;  %v2189_v1 = vrot.slane %v2187_v58, 4  ;;  %v2182_v6 = vrot.slane %v2180_v49, 4  ;;  %v6448_v49 = vld [vmem:[%s6941_s30 + $0x6c] sm:$0xf] }
 0x19d   : > { %v2184_v13 = vsel %vm7110_vm6, %v2182_v6, %v2183_v5  ;;  %v6457_v6 = vld [vmem:[%s6941_s30 + $0xa0] sm:$0xf] }
 0x19e   : > { %2231 = vrot.lane.b32.xlu0 %v2146_v3, %s6880_s11  ;;  %v2190_v3 = vrot.slane %v6414_v57, 5  ;;  %v6452_v57 = vld [vmem:[%s6941_s30 + $0x84] sm:$0xf] }
 0x19f   : > { %2233 = vrot.lane.b32.xlu1 %v2149_v8, %s6880_s11  ;;  %2229 = vrot.lane.b32.xlu2 %v2142_v11, %s6880_s11  ;;  %v2188_v8 = vsel %vm7110_vm6, %v6432_v60, %v2187_v58  ;;  %v6417_v11 = vld [vmem:[%s6941_s30 + $0xc8] sm:$0x1]  ;;  %v6450_v58 = vld [vmem:[%s6941_s30 + $0x78] sm:$0xf] }
 0x1a0   : > { %v1875_v14 = vpop.permute.xlu0 %1874  ;;  %v2191_v12 = vsel %vm7110_vm6, %v2189_v1, %v2190_v3  ;;  %v6453_v1 = vld [vmem:[%s6941_s30 + $0x88] sm:$0xf] }
 0x1a1   : > { %1965 = vst.msk [vmem:[#allocation2 + $0x18] sm:$0xf] %vm1958_vm10, %v1875_v14  ;;  %v1877_v17 = vpop.permute.xlu1 %1876  ;;  %v1891_v21 = vpop.permute.xlu2 %1890  ;;  %v2197_v14 = vrot.slane %v6417_v11, 5 }
 0x1a2   : > { %1966 = vst.msk [vmem:[#allocation2 + $0x1c] sm:$0xf] %vm1958_vm10, %v1877_v17 }
 0x1a3   : > { %1973 = vst.msk [vmem:[#allocation2 + $0x38] sm:$0xf] %vm1958_vm10, %v1891_v21  ;;  %v6434_v21 = vld [vmem:[%s6941_s30 + $0x18] sm:$0xf] }
 0x1a6   : > { %2237 = vrot.lane.b32.xlu0 %v2156_v19, %s6880_s11  ;;  %v2198_v19 = vsel %vm7110_vm6, %v2196_v2, %v2197_v14  ;;  %v6460_v14 = vld [vmem:[%s6941_s30 + $0xb4] sm:$0xf] }
 0x1a7   : > { %2239 = vrot.lane.b32.xlu1 %v2160_v25, %s6880_s11  ;;  %2235 = vrot.lane.b32.xlu2 %v2153_v28, %s6880_s11 }
 0x1a8   : > { %v1881_v33 = vpop.permute.xlu0 %1880 }
 0x1a9   : > { %1968 = vst.msk [vmem:[#allocation2 + $0x24] sm:$0xf] %vm1958_vm10, %v1881_v33  ;;  %v1883_v20 = vpop.permute.xlu1 %1882  ;;  %v1897_v39 = vpop.permute.xlu2 %1896 }
 0x1aa   : > { %1969 = vst.msk [vmem:[#allocation2 + $0x28] sm:$0xf] %vm1958_vm10, %v1883_v20  ;;  %v6440_v20 = vld [vmem:[%s6941_s30 + $0x3c] sm:$0xf] }
 0x1ab   : > { %1976 = vst.msk [vmem:[#allocation2 + $0x44] sm:$0xf] %vm1958_vm10, %v1897_v39 }
 0x1ae   : > { %2243 = vrot.lane.b32.xlu0 %v2167_v38, %s6880_s11 }
 0x1af   : > { %2245 = vrot.lane.b32.xlu1 %v2170_v40, %s6880_s11  ;;  %2241 = vrot.lane.b32.xlu2 %v2163_v43, %s6880_s11  ;;  %v6441_v40 = vld [vmem:[%s6941_s30 + $0x40] sm:$0xf]  ;;  %v6445_v43 = vld [vmem:[%s6941_s30 + $0x58] sm:$0xf] }
 0x1b0   : > { %v1887_v47 = vpop.permute.xlu0 %1886 }
 0x1b1   : > { %1971 = vst.msk [vmem:[#allocation2 + $0x30] sm:$0xf] %vm1958_vm10, %v1887_v47  ;;  %v1889_v50 = vpop.permute.xlu1 %1888  ;;  %v1903_v54 = vpop.permute.xlu2 %1902 }
 0x1b2   : > { %1972 = vst.msk [vmem:[#allocation2 + $0x34] sm:$0xf] %vm1958_vm10, %v1889_v50 }
 0x1b3   : > { %1979 = vst.msk [vmem:[#allocation2 + $0x50] sm:$0xf] %vm1958_vm10, %v1903_v54 }
 0x1b6   : > { %2249 = vrot.lane.b32.xlu0 %v2177_v52, %s6880_s11  ;;  %v6447_v52 = vld [vmem:[%s6941_s30 + $0x64] sm:$0xf] }
 0x1b7   : > { %2251 = vrot.lane.b32.xlu1 %v2181_v56, %s6880_s11  ;;  %2247 = vrot.lane.b32.xlu2 %v2174_v59, %s6880_s11 }
 0x1b8   : > { %v1893_v63 = vpop.permute.xlu0 %1892 }
 0x1b9   : > { %1974 = vst.msk [vmem:[#allocation2 + $0x3c] sm:$0xf] %vm1958_vm10, %v1893_v63  ;;  %v1895_v4 = vpop.permute.xlu1 %1894  ;;  %v1909_v10 = vpop.permute.xlu2 %1908 }
 0x1ba   : > { %1975 = vst.msk [vmem:[#allocation2 + $0x40] sm:$0xf] %vm1958_vm10, %v1895_v4 }
 0x1bb   : > { %1982 = vst.msk [vmem:[#allocation2 + $0x5c] sm:$0xf] %vm1958_vm10, %v1909_v10  ;;  %v6466_v10 = vld [vmem:[%s6941_s30 + $0x18] sm:$0xf] }
 0x1bc   : > { %v2574_v2 = vshll.u32 %v6466_v10, 16 }
 0x1be   : > { %2255 = vrot.lane.b32.xlu0 %v2188_v8, %s6880_s11  ;;  %v6458_v8 = vld [vmem:[%s6941_s30 + $0xa8] sm:$0xf] }
 0x1bf   : > { %2257 = vrot.lane.b32.xlu1 %v2191_v12, %s6880_s11  ;;  %2253 = vrot.lane.b32.xlu2 %v2184_v13, %s6880_s11  ;;  %v2571_v13 = vshrl.u32 %v6466_v10, 16  ;;  %v6465_v10 = vld [vmem:[%s6941_s30 + $0xd0] sm:$0xf] }
 0x1c0   : > { %v1899_v16 = vpop.permute.xlu0 %1898 }
 0x1c1   : > { %1977 = vst.msk [vmem:[#allocation2 + $0x48] sm:$0xf] %vm1958_vm10, %v1899_v16  ;;  %v1901_v17 = vpop.permute.xlu1 %1900  ;;  %v1915_v7 = vpop.permute.xlu2 %1914 }
 0x1c2   : > { %1978 = vst.msk [vmem:[#allocation2 + $0x4c] sm:$0xf] %vm1958_vm10, %v1901_v17  ;;  %v6461_v17 = vld [vmem:[%s6941_s30 + $0xb8] sm:$0xf] }
 0x1c3   : > { %1985 = vst.msk [vmem:[#allocation2 + $0x68] sm:$0xf] %vm1958_vm10, %v1915_v7  ;;  %v2576_v7 = vrot.slane %v2574_v2, 5 }
 0x1c6   : > { %2261 = vrot.lane.b32.xlu0 %v2198_v19, %s6880_s11  ;;  %v2573_v19 = vrot.slane %v2571_v13, 4 }
 0x1c7   : > { %2393 = vrot.lane.b32.xlu1 %v6434_v21, %s6881_s12  ;;  %2259 = vrot.lane.b32.xlu2 %v2195_v23, %s6880_s11  ;;  %v2580_v21 = vshll.u32 %v6467_v15, 16  ;;  %v6459_v23 = vld [vmem:[%s6941_s30 + $0xac] sm:$0xf] }
 0x1c8   : > { %v1905_v25 = vpop.permute.xlu0 %1904 }
 0x1c9   : > { %1980 = vst.msk [vmem:[#allocation2 + $0x54] sm:$0xf] %vm1958_vm10, %v1905_v25  ;;  %v1907_v26 = vpop.permute.xlu1 %1906  ;;  %v1921_v28 = vpop.permute.xlu2 %1920  ;;  %v6470_v25 = vld [vmem:[%s6941_s30 + $0x28] sm:$0xf] }
 0x1ca   : > { %1981 = vst.msk [vmem:[#allocation2 + $0x58] sm:$0xf] %vm1958_vm10, %v1907_v26 }
 0x1cb   : > { %1988 = vst.msk [vmem:[#allocation2 + $0x74] sm:$0xf] %vm1958_vm10, %v1921_v28  ;;  %v2586_v28 = vrot.slane %v2584_v18, 4 }
 0x1ce   : > { %2397 = vrot.lane.b32.xlu0 %v6436_v27, %s6881_s12  ;;  %v6468_v27 = vld [vmem:[%s6941_s30 + $0x20] sm:$0x1] }
 0x1cf   : > { %2399 = vrot.lane.b32.xlu1 %v6437_v29, %s6881_s12  ;;  %2395 = vrot.lane.b32.xlu2 %v6435_v31, %s6881_s12  ;;  %v2577_v29 = vor.u32 %v2576_v7, %v2573_v19 }
 0x1d0   : > { %v1911_v33 = vpop.permute.xlu0 %1910 }
 0x1d1   : > { %1983 = vst.msk [vmem:[#allocation2 + $0x60] sm:$0xf] %vm1958_vm10, %v1911_v33  ;;  %v1913_v34 = vpop.permute.xlu1 %1912  ;;  %v2200_v36 = vpop.permute.xlu2 %2199  ;;  %v6472_v33 = vld [vmem:[%s6941_s30 + $0x30] sm:$0xf] }
 0x1d2   : > { %1984 = vst.msk [vmem:[#allocation2 + $0x64] sm:$0xf] %vm1958_vm10, %v1913_v34  ;;  %v2582_v34 = vrot.slane %v2580_v21, 5  ;;  %v6477_v21 = vld [vmem:[%s6941_s30 + $0x44] sm:$0x1] }
 0x1d3   : > { %2296 = vst.msk [vmem:[#allocation2] sm:$0xf] %vm2295_vm11, %v2200_v36  ;;  %v2608_v36 = vshrl.u32 %v6470_v25, 16 }
 0x1d6   : > { %2403 = vrot.lane.b32.xlu0 %v6439_v35, %s6881_s12  ;;  %v2604_v35 = vshll.u32 %v6470_v25, 16 }
 0x1d7   : > { %2405 = vrot.lane.b32.xlu1 %v6440_v20, %s6881_s12  ;;  %2401 = vrot.lane.b32.xlu2 %v6438_v24, %s6881_s12  ;;  %v6463_v20 = vld [vmem:[%s6941_s30 + $0xc4] sm:$0xf]  ;;  %v6464_v24 = vld [vmem:[%s6941_s30 + $0xcc] sm:$0xf] }
 0x1d8   : > { %v1917_v37 = vpop.permute.xlu0 %1916 }
 0x1d9   : > { %1986 = vst.msk [vmem:[#allocation2 + $0x6c] sm:$0xf] %vm1958_vm10, %v1917_v37  ;;  %v1919_v38 = vpop.permute.xlu1 %1918  ;;  %v2206_v39 = vpop.permute.xlu2 %2205 }
 0x1da   : > { %1987 = vst.msk [vmem:[#allocation2 + $0x70] sm:$0xf] %vm1958_vm10, %v1919_v38  ;;  %v2590_v38 = vshll.u32 %v6468_v27, 16  ;;  %v6481_v27 = vld [vmem:[%s6941_s30 + $0x54] sm:$0xf] }
 0x1db   : > { %2299 = vst.msk [vmem:[#allocation2 + $0xc] sm:$0xf] %vm2295_vm11, %v2206_v39  ;;  %v2619_v39 = vshrl.u32 %v6472_v33, 16 }
 0x1de   : > { %2409 = vrot.lane.b32.xlu0 %v6442_v32, %s6881_s12  ;;  %v2587_v32 = vor.u32 %v2586_v28, %v2582_v34 }
 0x1df   : > { %2411 = vrot.lane.b32.xlu1 %v6443_v30, %s6881_s12  ;;  %2407 = vrot.lane.b32.xlu2 %v6441_v40, %s6881_s12  ;;  %v2622_v30 = vshll.u32 %v6472_v33, 16  ;;  %v6469_v40 = vld [vmem:[%s6941_s30 + $0x24] sm:$0xf] }
 0x1e0   : > { %v1923_v41 = vpop.permute.xlu0 %1922 }
 0x1e1   : > { %1989 = vst.msk [vmem:[#allocation2 + $0x78] sm:$0xf] %vm1958_vm10, %v1923_v41  ;;  %v1925_v42 = vpop.permute.xlu1 %1924  ;;  %v2212_v44 = vpop.permute.xlu2 %2211  ;;  %v2578_v41 = vrot.slane %v2577_v29, 4 }
 0x1e2   : > { %1990 = vst.msk [vmem:[#allocation2 + $0x7c] sm:$0xf] %vm1958_vm10, %v1925_v42  ;;  %v7907_v42 = vrot.slane %v2604_v35, 5 }
 0x1e3   : > { %2302 = vst.msk [vmem:[#allocation2 + $0x18] sm:$0xf] %vm2295_vm11, %v2212_v44  ;;  %v6462_v44 = vld [vmem:[%s6941_s30 + $0xc0] sm:$0xf] }
 0x1e6   : > { %2415 = vrot.lane.b32.xlu0 %v6445_v43, %s6881_s12  ;;  %v2610_v43 = vrot.slane %v2608_v36, 4  ;;  %v2662_v36 = vshll.u32 %v6477_v21, 16 }
 0x1e7   : > { %2417 = vrot.lane.b32.xlu1 %v6446_v45, %s6881_s12  ;;  %2413 = vrot.lane.b32.xlu2 %v6444_v46, %s6881_s12  ;;  %v2595_v45 = vshrl.u32 %v6469_v40, 16  ;;  %v2598_v46 = vshll.u32 %v6469_v40, 16 }
 0x1e8   : > { %v2202_v47 = vpop.permute.xlu0 %2201 }
 0x1e9   : > { %2297 = vst.msk [vmem:[#allocation2 + $0x4] sm:$0xf] %vm2295_vm11, %v2202_v47  ;;  %v2204_v48 = vpop.permute.xlu1 %2203  ;;  %v2218_v50 = vpop.permute.xlu2 %2217  ;;  %v6471_v47 = vld [vmem:[%s6941_s30 + $0x2c] sm:$0x1] }
 0x1ea   : > { %2298 = vst.msk [vmem:[#allocation2 + $0x8] sm:$0xf] %vm2295_vm11, %v2204_v48 }
 0x1eb   : > { %2305 = vst.msk [vmem:[#allocation2 + $0x24] sm:$0xf] %vm2295_vm11, %v2218_v50  ;;  %v2592_v50 = vrot.slane %v2590_v38, 5  ;;  %v2694_v38 = vshll.u32 %v6481_v27, 16 }
 0x1ee   : > { %2421 = vrot.lane.b32.xlu0 %v6448_v49, %s6881_s12  ;;  %v2588_v49 = vrot.slane %v2587_v32, 4  ;;  %v6478_v32 = vld [vmem:[%s6941_s30 + $0x48] sm:$0xf] }
 0x1ef   : > { %2423 = vrot.lane.b32.xlu1 %v6449_v51, %s6881_s12  ;;  %2419 = vrot.lane.b32.xlu2 %v6447_v52, %s6881_s12  ;;  %v6475_v51 = vld [vmem:[%s6941_s30 + $0x3c] sm:$0xf]  ;;  %v2621_v52 = vrot.slane %v2619_v39, 4  ;;  %v2667_v40 = vshrl.u32 %v6478_v32, 16 }
 0x1f0   : > { %v2208_v53 = vpop.permute.xlu0 %2207 }
 0x1f1   : > { %2300 = vst.msk [vmem:[#allocation2 + $0x10] sm:$0xf] %vm2295_vm11, %v2208_v53  ;;  %v2210_v54 = vpop.permute.xlu1 %2209  ;;  %v2224_v56 = vpop.permute.xlu2 %2223  ;;  %v2624_v53 = vrot.slane %v2622_v30, 5 }
 0x1f2   : > { %2301 = vst.msk [vmem:[#allocation2 + $0x14] sm:$0xf] %vm2295_vm11, %v2210_v54 }
 0x1f3   : > { %2308 = vst.msk [vmem:[#allocation2 + $0x30] sm:$0xf] %vm2295_vm11, %v2224_v56  ;;  %v6473_v56 = vld [vmem:[%s6941_s30 + $0x34] sm:$0xf] }
 0x1f6   : > { %2427 = vrot.lane.b32.xlu0 %v6451_v55, %s6881_s12  ;;  %v6476_v55 = vld [vmem:[%s6941_s30 + $0x40] sm:$0xf] }
 0x1f7   : > { %2429 = vrot.lane.b32.xlu1 %v6452_v57, %s6881_s12  ;;  %2425 = vrot.lane.b32.xlu2 %v6450_v58, %s6881_s12  ;;  %v2583_v57 = vsel %vm6951_vm2, %v2578_v41, %v2582_v34  ;;  %v2611_v58 = vor.u32 %v2610_v43, %v7907_v42  ;;  %v2670_v41 = vshll.u32 %v6478_v32, 16 }
 0x1f8   : > { %v2214_v59 = vpop.permute.xlu0 %2213 }
 0x1f9   : > { %2303 = vst.msk [vmem:[#allocation2 + $0x1c] sm:$0xf] %vm2295_vm11, %v2214_v59  ;;  %v2216_v60 = vpop.permute.xlu1 %2215  ;;  %v2230_v63 = vpop.permute.xlu2 %2229  ;;  %v2597_v59 = vrot.slane %v2595_v45, 4 }
 0x1fa   : > { %2304 = vst.msk [vmem:[#allocation2 + $0x20] sm:$0xf] %vm2295_vm11, %v2216_v60  ;;  %v2600_v60 = vrot.slane %v2598_v46, 5 }
 0x1fb   : > { %2311 = vst.msk [vmem:[#allocation2 + $0x3c] sm:$0xf] %vm2295_vm11, %v2230_v63  ;;  %v2643_v63 = vshrl.u32 %v6475_v51, 16 }
 0x1fc   : > { %v2601_v13 = vor.u32 %v2600_v60, %v2597_v59 }
 0x1fe   : > { %2433 = vrot.lane.b32.xlu0 %v6454_v61, %s6881_s12  ;;  %v2614_v61 = vshll.u32 %v6471_v47, 16  ;;  %v2602_v28 = vrot.slane %v2601_v13, 4  ;;  %v6480_v47 = vld [vmem:[%s6941_s30 + $0x50] sm:$0x1] }
 0x1ff   : > { %2435 = vrot.lane.b32.xlu1 %v6455_v0, %s6881_s12  ;;  %2431 = vrot.lane.b32.xlu2 %v6453_v1, %s6881_s12  ;;  %v2646_v0 = vshll.u32 %v6475_v51, 16  ;;  %v2656_v1 = vshrl.u32 %v6476_v55, 16  ;;  %v6484_v51 = vld [vmem:[%s6941_s30 + $0x60] sm:$0xf] }
 0x200   : > { %v2220_v3 = vpop.permute.xlu0 %2219  ;;  %v2616_v2 = vrot.slane %v2614_v61, 5  ;;  %v2607_v43 = vsel %vm6951_vm2, %v2602_v28, %v7907_v42 }
 0x201   : > { %2306 = vst.msk [vmem:[#allocation2 + $0x28] sm:$0xf] %vm2295_vm11, %v2220_v3  ;;  %v2222_v4 = vpop.permute.xlu1 %2221  ;;  %v2236_v5 = vpop.permute.xlu2 %2235  ;;  %v2648_v15 = vrot.slane %v2646_v0, 5  ;;  %v2715_v0 = vshrl.u32 %v6484_v51, 16 }
 0x202   : > { %2307 = vst.msk [vmem:[#allocation2 + $0x2c] sm:$0xf] %vm2295_vm11, %v2222_v4  ;;  %v2593_v4 = vsel %vm6951_vm2, %v2588_v49, %v2592_v50  ;;  %v2664_v50 = vrot.slane %v2662_v36, 5 }
 0x203   : > { %2314 = vst.msk [vmem:[#allocation2 + $0x48] sm:$0xf] %vm2295_vm11, %v2236_v5  ;;  %v2625_v5 = vor.u32 %v2624_v53, %v2621_v52  ;;  %v2696_v53 = vrot.slane %v2694_v38, 5 }
 0x205   : > { %v2626_v19 = vrot.slane %v2625_v5, 4 }
 0x206   : > { %2439 = vrot.lane.b32.xlu0 %v6457_v6, %s6881_s12  ;;  %v2652_v6 = vshll.u32 %v6476_v55, 16  ;;  %v6482_v55 = vld [vmem:[%s6941_s30 + $0x58] sm:$0xf] }
 0x207   : > { %2441 = vrot.lane.b32.xlu1 %v6458_v8, %s6881_s12  ;;  %2437 = vrot.lane.b32.xlu2 %v6456_v9, %s6881_s12  ;;  %v2628_v8 = vshll.u32 %v6473_v56, 16  ;;  %v2612_v9 = vrot.slane %v2611_v58, 4  ;;  %v2686_v58 = vshll.u32 %v6480_v47, 16 }
 0x208   : > { %v2226_v11 = vpop.permute.xlu0 %2225  ;;  %v7928_v18 = vrot.slane %v2652_v6, 5 }
 0x209   : > { %2309 = vst.msk [vmem:[#allocation2 + $0x34] sm:$0xf] %vm2295_vm11, %v2226_v11  ;;  %v2228_v12 = vpop.permute.xlu1 %2227  ;;  %v2242_v16 = vpop.permute.xlu2 %2241  ;;  %v2632_v11 = vshrl.u32 %v6473_v56, 16  ;;  %v2630_v7 = vrot.slane %v2628_v8, 5  ;;  %v2669_v56 = vrot.slane %v2667_v40, 4  ;;  %v2700_v8 = vshll.u32 %v6482_v55, 16 }
 0x20a   : > { %2310 = vst.msk [vmem:[#allocation2 + $0x38] sm:$0xf] %vm2295_vm11, %v2228_v12  ;;  %v6479_v12 = vld [vmem:[%s6941_s30 + $0x4c] sm:$0xf] }
 0x20b   : > { %2317 = vst.msk [vmem:[#allocation2 + $0x54] sm:$0xf] %vm2295_vm11, %v2242_v16  ;;  %v2658_v16 = vrot.slane %v2656_v1, 4  ;;  %v2676_v25 = vshll.u32 %v6479_v12, 16  ;;  %v2634_v29 = vrot.slane %v2632_v11, 4  ;;  %v2718_v1 = vshll.u32 %v6484_v51, 16 }
 0x20c   : > { %v2688_v11 = vrot.slane %v2686_v58, 5  ;;  %v6489_v51 = vld [vmem:[%s6941_s30 + $0x74] sm:$0x1] }
 0x20d   : > { %v2659_v35 = vor.u32 %v2658_v16, %v7928_v18  ;;  %v7943_v39 = vrot.slane %v2676_v25, 5  ;;  %v6488_v16 = vld [vmem:[%s6941_s30 + $0x70] sm:$0xf] }
 0x20e   : > { %2445 = vrot.lane.b32.xlu0 %v6460_v14, %s6881_s12  ;;  %v2645_v14 = vrot.slane %v2643_v63, 4  ;;  %v6485_v63 = vld [vmem:[%s6941_s30 + $0x64] sm:$0xf] }
 0x20f   : > { %2447 = vrot.lane.b32.xlu1 %v6461_v17, %s6881_s12  ;;  %2443 = vrot.lane.b32.xlu2 %v6459_v23, %s6881_s12  ;;  %v2728_v6 = vshrl.u32 %v6485_v63, 16 }
 0x210   : > { %v2232_v26 = vpop.permute.xlu0 %2231  ;;  %v2649_v33 = vor.u32 %v2648_v15, %v2645_v14  ;;  %v2717_v14 = vrot.slane %v2715_v0, 4  ;;  %v2720_v15 = vrot.slane %v2718_v1, 5  ;;  %v2758_v1 = vshll.u32 %v6489_v51, 16 }
 0x211   : > { %2312 = vst.msk [vmem:[#allocation2 + $0x40] sm:$0xf] %vm2295_vm11, %v2232_v26  ;;  %v2234_v31 = vpop.permute.xlu1 %2233  ;;  %v2248_v37 = vpop.permute.xlu2 %2247  ;;  %v2680_v26 = vshrl.u32 %v6479_v12, 16  ;;  %v2724_v12 = vshll.u32 %v6485_v63, 16  ;;  %v2730_v21 = vrot.slane %v2728_v6, 4 }
 0x212   : > { %2313 = vst.msk [vmem:[#allocation2 + $0x44] sm:$0xf] %vm2295_vm11, %v2234_v31  ;;  %v2617_v31 = vsel %vm6951_vm2, %v2612_v9, %v2616_v2  ;;  %v2650_v46 = vrot.slane %v2649_v33, 4  ;;  %v2704_v2 = vshrl.u32 %v6482_v55, 16  ;;  %v2748_v33 = vshll.u32 %v6488_v16, 16 }
 0x213   : > { %2320 = vst.msk [vmem:[#allocation2 + $0x60] sm:$0xf] %vm2295_vm11, %v2248_v37  ;;  %v2691_v37 = vshrl.u32 %v6481_v27, 16  ;;  %v2682_v30 = vrot.slane %v2680_v26, 4  ;;  %v6490_v26 = vld [vmem:[%s6941_s30 + $0x78] sm:$0xf] }
 0x214   : > { %v2655_v61 = vsel %vm6951_vm2, %v2650_v46, %v7928_v18  ;;  %v2726_v28 = vrot.slane %v2724_v12, 5  ;;  %v2763_v38 = vshrl.u32 %v6490_v26, 16  ;;  %v2766_v32 = vshll.u32 %v6490_v26, 16 }
 0x215   : > { %v2693_v52 = vrot.slane %v2691_v37, 4 }
 0x216   : > { %2451 = vrot.lane.b32.xlu0 %v6463_v20, %s6881_s12  ;;  %v6474_v20 = vld [vmem:[%s6941_s30 + $0x38] sm:$0x1]  ;;  %v2731_v37 = vor.u32 %v2730_v21, %v2726_v28  ;;  %v6495_v21 = vld [vmem:[%s6941_s30 + $0x8c] sm:$0x1] }
 0x217   : > { %2453 = vrot.lane.b32.xlu1 %v6464_v24, %s6881_s12  ;;  %2449 = vrot.lane.b32.xlu2 %v6462_v44, %s6881_s12  ;;  %v2631_v24 = vsel %vm6951_vm2, %v2626_v19, %v2630_v7  ;;  %v2635_v44 = vor.u32 %v2634_v29, %v2630_v7  ;;  %v2638_v45 = vshll.u32 %v6474_v20, 16  ;;  %v2697_v5 = vor.u32 %v2696_v53, %v2693_v52  ;;  %v6486_v7 = vld [vmem:[%s6941_s30 + $0x68] sm:$0x1]  ;;  %v6483_v20 = vld [vmem:[%s6941_s30 + $0x5c] sm:$0x1] }
 0x218   : > { %v2238_v48 = vpop.permute.xlu0 %2237  ;;  %v2702_v19 = vrot.slane %v2700_v8, 5  ;;  %v2706_v29 = vrot.slane %v2704_v2, 4  ;;  %v2734_v36 = vshll.u32 %v6486_v7, 16  ;;  %v2732_v52 = vrot.slane %v2731_v37, 4  ;;  %v6492_v37 = vld [vmem:[%s6941_s30 + $0x80] sm:$0x1] }
 0x219   : > { %2315 = vst.msk [vmem:[#allocation2 + $0x4c] sm:$0xf] %vm2295_vm11, %v2238_v48  ;;  %v2240_v54 = vpop.permute.xlu1 %2239  ;;  %v2254_v3 = vpop.permute.xlu2 %2253  ;;  %v2660_v48 = vrot.slane %v2659_v35, 4  ;;  %v2636_v59 = vrot.slane %v2635_v44, 4  ;;  %v2640_v60 = vrot.slane %v2638_v45, 5  ;;  %v2698_v18 = vrot.slane %v2697_v5, 4 }
 0x21a   : > { %2316 = vst.msk [vmem:[#allocation2 + $0x50] sm:$0xf] %vm2295_vm11, %v2240_v54  ;;  %v2683_v54 = vor.u32 %v2682_v30, %v7943_v39  ;;  %v6487_v30 = vld [vmem:[%s6941_s30 + $0x6c] sm:$0xf]  ;;  %v2710_v44 = vshll.u32 %v6483_v20, 16  ;;  %v2736_v53 = vrot.slane %v2734_v36, 5 }
 0x21b   : > { %2323 = vst.msk [vmem:[#allocation2 + $0x6c] sm:$0xf] %vm2295_vm11, %v2254_v3  ;;  %v2641_v13 = vsel %vm6951_vm2, %v2636_v59, %v2640_v60  ;;  %v2739_v45 = vshrl.u32 %v6487_v30, 16  ;;  %v2742_v46 = vshll.u32 %v6487_v30, 16  ;;  %v2806_v20 = vshll.u32 %v6495_v21, 16 }
 0x21c   : > { %v2684_v9 = vrot.slane %v2683_v54, 4  ;;  %v2765_v54 = vrot.slane %v2763_v38, 4  ;;  %v2712_v59 = vrot.slane %v2710_v44, 5  ;;  %v2737_v6 = vsel %vm6951_vm2, %v2732_v52, %v2736_v53 }
 0x21d   : > { %v2741_v60 = vrot.slane %v2739_v45, 4 }
 0x21e   : > { %2954 = vrot.lane.b32.xlu0 %v2583_v57, %s6882_s13  ;;  %v2672_v57 = vrot.slane %v2670_v41, 5  ;;  %v2689_v27 = vsel %vm6951_vm2, %v2684_v9, %v2688_v11  ;;  %v6493_v41 = vld [vmem:[%s6941_s30 + $0x84] sm:$0xf] }
 0x21f   : > { %2956 = vrot.lane.b32.xlu1 %v2593_v4, %s6882_s13  ;;  %2455 = vrot.lane.b32.xlu2 %v6465_v10, %s6881_s12  ;;  %v2665_v4 = vsel %vm6951_vm2, %v2660_v48, %v2664_v50  ;;  %v7987_v48 = vrot.slane %v2748_v33, 5  ;;  %v2787_v55 = vshrl.u32 %v6493_v41, 16 }
 0x220   : > { %v2244_v17 = vpop.permute.xlu0 %2243  ;;  %v2673_v10 = vor.u32 %v2672_v57, %v2669_v56  ;;  %v2790_v56 = vshll.u32 %v6493_v41, 16  ;;  %v6491_v57 = vld [vmem:[%s6941_s30 + $0x7c] sm:$0xf]  ;;  %v6496_v41 = vld [vmem:[%s6941_s30 + $0x90] sm:$0xf] }
 0x221   : > { %2318 = vst.msk [vmem:[#allocation2 + $0x58] sm:$0xf] %vm2295_vm11, %v2244_v17  ;;  %v2246_v23 = vpop.permute.xlu1 %2245  ;;  %v2260_v34 = vpop.permute.xlu2 %2259  ;;  %v2772_v9 = vshll.u32 %v6491_v57, 16  ;;  %v2776_v2 = vshrl.u32 %v6491_v57, 16  ;;  %v2814_v44 = vshll.u32 %v6496_v41, 16 }
 0x222   : > { %2319 = vst.msk [vmem:[#allocation2 + $0x5c] sm:$0xf] %vm2295_vm11, %v2246_v23  ;;  %v2674_v25 = vrot.slane %v2673_v10, 4  ;;  %v2789_v10 = vrot.slane %v2787_v55, 4  ;;  %v2792_v11 = vrot.slane %v2790_v56, 5  ;;  %v2808_v55 = vrot.slane %v2806_v20, 5 }
 0x223   : > { %2326 = vst.msk [vmem:[#allocation2 + $0x78] sm:$0xf] %vm2295_vm11, %v2260_v34  ;;  %v2752_v34 = vshrl.u32 %v6488_v16, 16  ;;  %v2760_v16 = vrot.slane %v2758_v1, 5  ;;  %v2774_v7 = vrot.slane %v2772_v9, 5  ;;  %v2778_v33 = vrot.slane %v2776_v2, 4 }
 0x224   : > { %v2679_v40 = vsel %vm6951_vm2, %v2674_v25, %v7943_v39  ;;  %v2768_v39 = vrot.slane %v2766_v32, 5  ;;  %v2793_v25 = vor.u32 %v2792_v11, %v2789_v10 }
 0x226   : > { %2960 = vrot.lane.b32.xlu0 %v2617_v31, %s6882_s13  ;;  %v2721_v31 = vor.u32 %v2720_v15, %v2717_v14  ;;  %v2769_v8 = vor.u32 %v2768_v39, %v2765_v54  ;;  %v2794_v45 = vrot.slane %v2793_v25, 4  ;;  %v6498_v39 = vld [vmem:[%s6941_s30 + $0x98] sm:$0x1] }
 0x227   : > { %2962 = vrot.lane.b32.xlu1 %v2631_v24, %s6882_s13  ;;  %2958 = vrot.lane.b32.xlu2 %v2607_v43, %s6882_s13  ;;  %v2703_v24 = vsel %vm6951_vm2, %v2698_v18, %v2702_v19  ;;  %v2707_v43 = vor.u32 %v2706_v29, %v2702_v19 }
 0x228   : > { %v2250_v49 = vpop.permute.xlu0 %2249  ;;  %v2722_v47 = vrot.slane %v2721_v31, 4  ;;  %v2770_v19 = vrot.slane %v2769_v8, 4 }
 0x229   : > { %2321 = vst.msk [vmem:[#allocation2 + $0x64] sm:$0xf] %vm2295_vm11, %v2250_v49  ;;  %v2252_v42 = vpop.permute.xlu1 %2251  ;;  %v2396_v3 = vpop.permute.xlu2 %2395  ;;  %v2754_v49 = vrot.slane %v2752_v34, 4  ;;  %v2708_v58 = vrot.slane %v2707_v43, 4  ;;  %v2811_v43 = vshrl.u32 %v6496_v41, 16 }
 0x22a   : > { %2322 = vst.msk [vmem:[#allocation2 + $0x68] sm:$0xf] %vm2295_vm11, %v2252_v42  ;;  %v2727_v63 = vsel %vm6951_vm2, %v2722_v47, %v2726_v28  ;;  %v2775_v38 = vsel %vm6951_vm2, %v2770_v19, %v2774_v7  ;;  %v2779_v47 = vor.u32 %v2778_v33, %v2774_v7  ;;  %v6505_v41 = vld [vmem:[%s6941_s30 + $0xb4] sm:$0xf] }
 0x22b   : > { %2491 = vst.msk [vmem:[#allocation2 + $0x4] sm:$0xf] %vm2489_vm12, %v2396_v3  ;;  %v2755_v0 = vor.u32 %v2754_v49, %v7987_v48  ;;  %v6494_v3 = vld [vmem:[%s6941_s30 + $0x88] sm:$0xf]  ;;  %v2782_v49 = vshll.u32 %v6492_v37, 16 }
 0x22c   : > { %v2800_v5 = vshrl.u32 %v6494_v3, 16  ;;  %v2796_v12 = vshll.u32 %v6494_v3, 16  ;;  %v2830_v3 = vshll.u32 %v6498_v39, 16  ;;  %v6501_v37 = vld [vmem:[%s6941_s30 + $0xa4] sm:$0x1] }
 0x22d   : > { %v2756_v15 = vrot.slane %v2755_v0, 4 }
 0x22e   : > { %2966 = vrot.lane.b32.xlu0 %v2655_v61, %s6882_s13  ;;  %v2744_v61 = vrot.slane %v2742_v46, 5  ;;  %v2798_v28 = vrot.slane %v2796_v12, 5 }
 0x22f   : > { %2968 = vrot.lane.b32.xlu1 %v2665_v4, %s6882_s13  ;;  %2964 = vrot.lane.b32.xlu2 %v2641_v13, %s6882_s13  ;;  %v2713_v13 = vsel %vm6951_vm2, %v2708_v58, %v2712_v59  ;;  %v2761_v34 = vsel %vm6951_vm2, %v2756_v15, %v2760_v16  ;;  %v6500_v58 = vld [vmem:[%s6941_s30 + $0xa0] sm:$0xf]  ;;  %v2813_v59 = vrot.slane %v2811_v43, 4 }
 0x230   : > { %v2256_v17 = vpop.permute.xlu0 %2255  ;;  %v2745_v14 = vor.u32 %v2744_v61, %v2741_v60  ;;  %v2816_v60 = vrot.slane %v2814_v44, 5  ;;  %v2780_v61 = vrot.slane %v2779_v47, 4  ;;  %v2799_v0 = vsel %vm6951_vm2, %v2794_v45, %v2798_v28 }
 0x231   : > { %2324 = vst.msk [vmem:[#allocation2 + $0x70] sm:$0xf] %vm2295_vm11, %v2256_v17  ;;  %v2258_v23 = vpop.permute.xlu1 %2257  ;;  %v2402_v35 = vpop.permute.xlu2 %2401  ;;  %v6497_v17 = vld [vmem:[%s6941_s30 + $0x94] sm:$0xf]  ;;  %v2844_v10 = vshll.u32 %v6500_v58, 16  ;;  %v2848_v15 = vshrl.u32 %v6500_v58, 16 }
 0x232   : > { %2325 = vst.msk [vmem:[#allocation2 + $0x74] sm:$0xf] %vm2295_vm11, %v2258_v23  ;;  %v2802_v23 = vrot.slane %v2800_v5, 4  ;;  %v2820_v29 = vshll.u32 %v6497_v17, 16  ;;  %v2746_v31 = vrot.slane %v2745_v14, 4  ;;  %v2883_v47 = vshrl.u32 %v6505_v41, 16 }
 0x233   : > { %2494 = vst.msk [vmem:[#allocation2 + $0x10] sm:$0xf] %vm2489_vm12, %v2402_v35  ;;  %v2824_v35 = vshrl.u32 %v6497_v17, 16  ;;  %v2832_v17 = vrot.slane %v2830_v3, 5  ;;  %v2846_v21 = vrot.slane %v2844_v10, 5  ;;  %v2850_v33 = vrot.slane %v2848_v15, 4 }
 0x234   : > { %v2803_v32 = vor.u32 %v2802_v23, %v2798_v28  ;;  %v2751_v46 = vsel %vm6951_vm2, %v2746_v31, %v7987_v48  ;;  %v6504_v23 = vld [vmem:[%s6941_s30 + $0xb0] sm:$0x1]  ;;  %v6509_v58 = vld [vmem:[%s6941_s30 + $0xc4] sm:$0xf] }
 0x235   : > { %v2826_v51 = vrot.slane %v2824_v35, 4  ;;  %v2851_v45 = vor.u32 %v2850_v33, %v2846_v21  ;;  %v6512_v3 = vld [vmem:[%s6941_s30 + $0xd0] sm:$0xf] }
 0x236   : > { %2972 = vrot.lane.b32.xlu0 %v2689_v27, %s6882_s13  ;;  %v6499_v27 = vld [vmem:[%s6941_s30 + $0x9c] sm:$0xf] }
 0x237   : > { %2974 = vrot.lane.b32.xlu1 %v2703_v24, %s6882_s13  ;;  %2970 = vrot.lane.b32.xlu2 %v2679_v40, %s6882_s13  ;;  %v6502_v24 = vld [vmem:[%s6941_s30 + $0xa8] sm:$0xf]  ;;  %v2835_v30 = vshrl.u32 %v6499_v27, 16  ;;  %v2838_v40 = vshll.u32 %v6499_v27, 16 }
 0x238   : > { %v2262_v50 = vpop.permute.xlu0 %2261  ;;  %v2859_v52 = vshrl.u32 %v6502_v24, 16  ;;  %v2862_v53 = vshll.u32 %v6502_v24, 16  ;;  %v2878_v24 = vshll.u32 %v6504_v23, 16 }
 0x239   : > { %2327 = vst.msk [vmem:[#allocation2 + $0x7c] sm:$0xf] %vm2295_vm11, %v2262_v50  ;;  %v2394_v42 = vpop.permute.xlu1 %2393  ;;  %v2408_v4 = vpop.permute.xlu2 %2407  ;;  %v8024_v50 = vrot.slane %v2820_v29, 5  ;;  %v2837_v56 = vrot.slane %v2835_v30, 4  ;;  %v2840_v57 = vrot.slane %v2838_v40, 5 }
 0x23a   : > { %2490 = vst.msk [vmem:[#allocation2] sm:$0xf] %vm2489_vm12, %v2394_v42  ;;  %v2804_v42 = vrot.slane %v2803_v32, 4  ;;  %v2861_v11 = vrot.slane %v2859_v52, 4  ;;  %v2864_v12 = vrot.slane %v2862_v53, 5 }
 0x23b   : > { %2497 = vst.msk [vmem:[#allocation2 + $0x1c] sm:$0xf] %vm2489_vm12, %v2408_v4  ;;  %v2827_v1 = vor.u32 %v2826_v51, %v8024_v50  ;;  %v6503_v4 = vld [vmem:[%s6941_s30 + $0xac] sm:$0xf]  ;;  %v2841_v9 = vor.u32 %v2840_v57, %v2837_v56  ;;  %v6508_v29 = vld [vmem:[%s6941_s30 + $0xc0] sm:$0xf] }
 0x23c   : > { %v2809_v5 = vsel %vm6951_vm2, %v2804_v42, %v2808_v55  ;;  %v2872_v8 = vshrl.u32 %v6503_v4, 16  ;;  %v2868_v2 = vshll.u32 %v6503_v4, 16  ;;  %v2907_v30 = vshrl.u32 %v6508_v29, 16  ;;  %v6507_v51 = vld [vmem:[%s6941_s30 + $0xbc] sm:$0x1] }
 0x23d   : > { %v2828_v16 = vrot.slane %v2827_v1, 4  ;;  %v2842_v7 = vrot.slane %v2841_v9, 4  ;;  %v2910_v40 = vshll.u32 %v6508_v29, 16  ;;  %v2880_v42 = vrot.slane %v2878_v24, 5  ;;  %v6511_v55 = vld [vmem:[%s6941_s30 + $0xcc] sm:$0xf] }
 0x23e   : > { %2978 = vrot.lane.b32.xlu0 %v2727_v63, %s6882_s13  ;;  %v2784_v63 = vrot.slane %v2782_v49, 5  ;;  %v2874_v25 = vrot.slane %v2872_v8, 4  ;;  %v2870_v31 = vrot.slane %v2868_v2, 5  ;;  %v2886_v49 = vshll.u32 %v6505_v41, 16  ;;  %v6515_v41 = vld [vmem:[%s6941_s30 + $0x1c] sm:$0xf] }
 0x23f   : > { %2980 = vrot.lane.b32.xlu1 %v2737_v6, %s6882_s13  ;;  %2976 = vrot.lane.b32.xlu2 %v2713_v13, %s6882_s13  ;;  %v2817_v13 = vor.u32 %v2816_v60, %v2813_v59  ;;  %v2909_v56 = vrot.slane %v2907_v30, 4  ;;  %v2852_v59 = vrot.slane %v2851_v45, 4  ;;  %v2902_v1 = vshll.u32 %v6507_v51, 16 }
 0x240   : > { %v2398_v18 = vpop.permute.xlu0 %2397  ;;  %v2785_v14 = vsel %vm6951_vm2, %v2780_v61, %v2784_v63  ;;  %v2875_v32 = vor.u32 %v2874_v25, %v2870_v31  ;;  %v2885_v61 = vrot.slane %v2883_v47, 4  ;;  %v2888_v63 = vrot.slane %v2886_v49, 5 }
 0x241   : > { %2492 = vst.msk [vmem:[#allocation2 + $0x8] sm:$0xf] %vm2489_vm12, %v2398_v18  ;;  %v2400_v26 = vpop.permute.xlu1 %2399  ;;  %v2414_v36 = vpop.permute.xlu2 %2413  ;;  %v6506_v18 = vld [vmem:[%s6941_s30 + $0xb8] sm:$0xf]  ;;  %v2818_v28 = vrot.slane %v2817_v13, 4  ;;  %v2931_v4 = vshrl.u32 %v6511_v55, 16 }
 0x242   : > { %2493 = vst.msk [vmem:[#allocation2 + $0xc] sm:$0xf] %vm2489_vm12, %v2400_v26  ;;  %v2865_v26 = vor.u32 %v2864_v12, %v2861_v11  ;;  %v2892_v35 = vshll.u32 %v6506_v18, 16  ;;  %v2876_v39 = vrot.slane %v2875_v32, 4  ;;  %v2944_v9 = vshrl.u32 %v6512_v3, 16 }
 0x243   : > { %2500 = vst.msk [vmem:[#allocation2 + $0x28] sm:$0xf] %vm2489_vm12, %v2414_v36  ;;  %v2896_v36 = vshrl.u32 %v6506_v18, 16  ;;  %v2823_v44 = vsel %vm6951_vm2, %v2818_v28, %v8024_v50  ;;  %v2912_v50 = vrot.slane %v2910_v40, 5  ;;  %v2916_v11 = vshll.u32 %v6509_v58, 16 }
 0x244   : > { %v2866_v43 = vrot.slane %v2865_v26, 4  ;;  %v8061_v52 = vrot.slane %v2892_v35, 5  ;;  %v2881_v8 = vsel %vm6951_vm2, %v2876_v39, %v2880_v42  ;;  %v2940_v12 = vshll.u32 %v6512_v3, 16  ;;  %v6513_v26 = vld [vmem:[%s6941_s30 + $0xd4] sm:$0x1] }
 0x245   : > { %v2898_v53 = vrot.slane %v2896_v36, 4  ;;  %v2913_v10 = vor.u32 %v2912_v50, %v2909_v56  ;;  %v2920_v2 = vshrl.u32 %v6509_v58, 16  ;;  %v2946_v23 = vrot.slane %v2944_v9, 4  ;;  %v6510_v35 = vld [vmem:[%s6941_s30 + $0xc8] sm:$0x1] }
 0x246   : > { %2984 = vrot.lane.b32.xlu0 %v2761_v34, %s6882_s13  ;;  %v2833_v34 = vsel %vm6951_vm2, %v2828_v16, %v2832_v17  ;;  %v2871_v57 = vsel %vm6951_vm2, %v2866_v43, %v2870_v31  ;;  %v2904_v16 = vrot.slane %v2902_v1, 5  ;;  %v2933_v17 = vrot.slane %v2931_v4, 4  ;;  %v6517_v39 = vld [vmem:[%s6941_s30 + $0x24] sm:$0xe]  ;;  %v6518_v42 = vld [vmem:[%s6941_s30 + $0x28] sm:$0xf] }
 0x247   : > { %2986 = vrot.lane.b32.xlu1 %v2775_v38, %s6882_s13  ;;  %2982 = vrot.lane.b32.xlu2 %v2751_v46, %s6882_s13  ;;  %v2847_v38 = vsel %vm6951_vm2, %v2842_v7, %v2846_v21  ;;  %v2854_v46 = vshll.u32 %v6501_v37, 16  ;;  %v2914_v7 = vrot.slane %v2913_v10, 4  ;;  %v2918_v21 = vrot.slane %v2916_v11, 5  ;;  %v6520_v3 = vld [vmem:[%s6941_s30 + $0x30] sm:$0xe] }
 0x248   : > { %v2404_v54 = vpop.permute.xlu0 %2403  ;;  %v2922_v29 = vrot.slane %v2920_v2, 4  ;;  %v2950_v24 = vshll.u32 %v6513_v26, 16  ;;  %v2926_v32 = vshll.u32 %v6510_v35, 16  ;;  %v3181_v51 = vrot.slane %v6515_v41, 5  ;;  %v6522_v4 = vld [vmem:[%s6941_s30 + $0x38] sm:$0x1] }
 0x249   : > { %2495 = vst.msk [vmem:[#allocation2 + $0x14] sm:$0xf] %vm2489_vm12, %v2404_v54  ;;  %v2406_v48 = vpop.permute.xlu1 %2405  ;;  %v2420_v6 = vpop.permute.xlu2 %2419  ;;  %v2856_v60 = vrot.slane %v2854_v46, 5  ;;  %v2919_v36 = vsel %vm6951_vm2, %v2914_v7, %v2918_v21  ;;  %v6563_v58 = vrot.slane %v6517_v39, 9  ;;  %v3198_v11 = vrot.slane %v6522_v4, 5 }
 0x24a   : > { %2496 = vst.msk [vmem:[#allocation2 + $0x18] sm:$0xf] %vm2489_vm12, %v2406_v48  ;;  %v2928_v47 = vrot.slane %v2926_v32, 5  ;;  %v3183_v56 = vrot.slane %v3181_v51, 4  ;;  %v6519_v2 = vld [vmem:[%s6941_s30 + $0x2c] sm:$0x1] }
 0x24b   : > { %2503 = vst.msk [vmem:[#allocation2 + $0x34] sm:$0xf] %vm2489_vm12, %v2420_v6  ;;  %v2934_v6 = vshll.u32 %v6511_v55, 16  ;;  %v2857_v13 = vsel %vm6951_vm2, %v2852_v59, %v2856_v60  ;;  %v3188_v59 = vrot.slane %v6518_v42, 5  ;;  %v6525_v7 = vld [vmem:[%s6941_s30 + $0x44] sm:$0x1] }
 0x24c   : > { %v6535_v39 = vld [vmem:[%s6941_s30 + $0x6c] sm:$0xe]  ;;  %v6536_v42 = vld [vmem:[%s6941_s30 + $0x70] sm:$0xf] }
 0x24d   : > { %v2936_v18 = vrot.slane %v2934_v6, 5  ;;  %v3189_v1 = vsel %vm7110_vm6, %v6563_v58, %v3188_v59 }
 0x24e   : > { %2990 = vrot.lane.b32.xlu0 %v2799_v0, %s6882_s13  ;;  %v2899_v0 = vor.u32 %v2898_v53, %v8061_v52  ;;  %v6516_v53 = vld [vmem:[%s6941_s30 + $0x20] sm:$0x1] }
 0x24f   : > { %2992 = vrot.lane.b32.xlu1 %v2809_v5, %s6882_s13  ;;  %2988 = vrot.lane.b32.xlu2 %v2785_v14, %s6882_s13  ;;  %v2889_v14 = vor.u32 %v2888_v63, %v2885_v61  ;;  %v2937_v33 = vor.u32 %v2936_v18, %v2933_v17  ;;  %v3184_v50 = vrot.slane %v6516_v53, 5 }
 0x250   : > { %v2410_v19 = vpop.permute.xlu0 %2409  ;;  %v2900_v15 = vrot.slane %v2899_v0, 4  ;;  %v6521_v0 = vld [vmem:[%s6941_s30 + $0x34] sm:$0xf] }
 0x251   : > { %2498 = vst.msk [vmem:[#allocation2 + $0x20] sm:$0xf] %vm2489_vm12, %v2410_v19  ;;  %v2412_v27 = vpop.permute.xlu1 %2411  ;;  %v2426_v20 = vpop.permute.xlu2 %2425  ;;  %v2890_v28 = vrot.slane %v2889_v14, 4  ;;  %v2938_v30 = vrot.slane %v2937_v33, 4  ;;  %v3185_v61 = vsel %vm7110_vm6, %v3183_v56, %v3184_v50  ;;  %v3190_v14 = vrot.slane %v3188_v59, 4 }
 0x252   : > { %2499 = vst.msk [vmem:[#allocation2 + $0x24] sm:$0xf] %vm2489_vm12, %v2412_v27  ;;  %v2942_v27 = vrot.slane %v2940_v12, 5  ;;  %v2905_v31 = vsel %vm6951_vm2, %v2900_v15, %v2904_v16  ;;  %v6524_v12 = vld [vmem:[%s6941_s30 + $0x40] sm:$0xf]  ;;  %v3191_v15 = vrot.slane %v6519_v2, 5 }
 0x253   : > { %2506 = vst.msk [vmem:[#allocation2 + $0x40] sm:$0xf] %vm2489_vm12, %v2426_v20  ;;  %v2895_v37 = vsel %vm6951_vm2, %v2890_v28, %v8061_v52  ;;  %v3202_v18 = vrot.slane %v6524_v12, 5  ;;  %v6528_v59 = vld [vmem:[%s6941_s30 + $0x50] sm:$0x1] }
 0x254   : > { %v2947_v20 = vor.u32 %v2946_v23, %v2942_v27  ;;  %v2943_v49 = vsel %vm6951_vm2, %v2938_v30, %v2942_v27  ;;  %v6527_v23 = vld [vmem:[%s6941_s30 + $0x4c] sm:$0xf]  ;;  %v3205_v27 = vrot.slane %v6525_v7, 5  ;;  %v6532_v2 = vld [vmem:[%s6941_s30 + $0x60] sm:$0xe] }
 0x255   : > { %v3204_v26 = vrot.slane %v3202_v18, 4 }
 0x256   : > { %2996 = vrot.lane.b32.xlu0 %v2833_v34, %s6882_s13  ;;  %v2948_v43 = vrot.slane %v2947_v20, 4  ;;  %v6529_v20 = vld [vmem:[%s6941_s30 + $0x54] sm:$0xe] }
 0x257   : > { %2998 = vrot.lane.b32.xlu1 %v2847_v38, %s6882_s13  ;;  %2994 = vrot.lane.b32.xlu2 %v2823_v44, %s6882_s13  ;;  %v2923_v38 = vor.u32 %v2922_v29, %v2918_v21  ;;  %v2952_v44 = vrot.slane %v2950_v24, 5  ;;  %v6526_v21 = vld [vmem:[%s6941_s30 + $0x48] sm:$0xe]  ;;  %v6567_v32 = vrot.slane %v6529_v20, 9 }
 0x258   : > { %v2416_v54 = vpop.permute.xlu0 %2415  ;;  %v6566_v29 = vrot.slane %v6526_v21, 9 }
 0x259   : > { %2501 = vst.msk [vmem:[#allocation2 + $0x2c] sm:$0xf] %vm2489_vm12, %v2416_v54  ;;  %v2418_v48 = vpop.permute.xlu1 %2417  ;;  %v2432_v5 = vpop.permute.xlu2 %2431  ;;  %v2924_v46 = vrot.slane %v2923_v38, 4  ;;  %v2953_v54 = vsel %vm6951_vm2, %v2948_v43, %v2952_v44 }
 0x25a   : > { %2502 = vst.msk [vmem:[#allocation2 + $0x30] sm:$0xf] %vm2489_vm12, %v2418_v48 }
 0x25b   : > { %2509 = vst.msk [vmem:[#allocation2 + $0x4c] sm:$0xf] %vm2489_vm12, %v2432_v5  ;;  %v2929_v55 = vsel %vm6951_vm2, %v2924_v46, %v2928_v47  ;;  %v3195_v5 = vrot.slane %v6521_v0, 5  ;;  %v6539_v0 = vld [vmem:[%s6941_s30 + $0x7c] sm:$0xf]  ;;  %vm3805_vm2 = vcmask 57344  }
 0x25d   : > { %v3197_v10 = vrot.slane %v3195_v5, 4 }
 0x25e   : > { %3002 = vrot.lane.b32.xlu0 %v2871_v57, %s6882_s13  ;;  %v6514_v57 = vld [vmem:[%s6941_s30 + $0x18] sm:$0xe] }
 0x25f   : > { %3004 = vrot.lane.b32.xlu1 %v2881_v8, %s6882_s13  ;;  %3000 = vrot.lane.b32.xlu2 %v2857_v13, %s6882_s13  ;;  %v6562_v22 = vrot.slane %v6514_v57, 9  ;;  %v6564_v8 = vrot.slane %v6520_v3, 9  ;;  %v6569_v57 = vrot.slane %v6535_v39, 9 }
 0x260   : > { %v2422_v19 = vpop.permute.xlu0 %2421 }
 0x261   : > { %2504 = vst.msk [vmem:[#allocation2 + $0x38] sm:$0xf] %vm2489_vm12, %v2422_v19  ;;  %v2424_v25 = vpop.permute.xlu1 %2423  ;;  %v2438_v34 = vpop.permute.xlu2 %2437  ;;  %v3182_v6 = vsel %vm7110_vm6, %v6562_v22, %v3181_v51  ;;  %v3196_v16 = vsel %vm7110_vm6, %v6564_v8, %v3195_v5  ;;  %v3199_v19 = vsel %vm7110_vm6, %v3197_v10, %v3198_v11  ;;  %v3212_v22 = vrot.slane %v6528_v59, 5  ;;  %v6542_v10 = vld [vmem:[%s6941_s30 + $0x88] sm:$0xf] }
 0x262   : > { %2505 = vst.msk [vmem:[#allocation2 + $0x3c] sm:$0xf] %vm2489_vm12, %v2424_v25  ;;  %v3192_v25 = vsel %vm7110_vm6, %v3190_v14, %v3191_v15  ;;  %v3237_v5 = vrot.slane %v6539_v0, 5  ;;  %v6568_v14 = vrot.slane %v6532_v2, 9  ;;  %v6552_v0 = vld [vmem:[%s6941_s30 + $0xb0] sm:$0x1] }
 0x263   : > { %2512 = vst.msk [vmem:[#allocation2 + $0x58] sm:$0xf] %vm2489_vm12, %v2438_v34  ;;  %v3206_v34 = vsel %vm7110_vm6, %v3204_v26, %v3205_v27  ;;  %v6537_v27 = vld [vmem:[%s6941_s30 + $0x74] sm:$0x1]  ;;  %v6783_v2 = vld [vmem:[%s9513_s1 + $0x8] sm:$0xff] }
 0x264   : > { %v3239_v11 = vrot.slane %v3237_v5, 4 }
 0x266   : > { %3008 = vrot.lane.b32.xlu0 %v2905_v31, %s6882_s13  ;;  %v3209_v31 = vrot.slane %v6527_v23, 5 }
 0x267   : > { %3010 = vrot.lane.b32.xlu1 %v2919_v36, %s6882_s13  ;;  %3006 = vrot.lane.b32.xlu2 %v2895_v37, %s6882_s13  ;;  %v6530_v36 = vld [vmem:[%s6941_s30 + $0x58] sm:$0xf]  ;;  %v6531_v37 = vld [vmem:[%s6941_s30 + $0x5c] sm:$0x1] }
 0x268   : > { %v2428_v40 = vpop.permute.xlu0 %2427  ;;  %v3210_v24 = vsel %vm7110_vm6, %v6566_v29, %v3209_v31  ;;  %v3216_v38 = vrot.slane %v6530_v36, 5  ;;  %v3219_v43 = vrot.slane %v6531_v37, 5  ;;  %v3233_v29 = vrot.slane %v6537_v27, 5 }
 0x269   : > { %2507 = vst.msk [vmem:[#allocation2 + $0x44] sm:$0xf] %vm2489_vm12, %v2428_v40  ;;  %v2430_v45 = vpop.permute.xlu1 %2429  ;;  %v2444_v52 = vpop.permute.xlu2 %2443  ;;  %v6533_v40 = vld [vmem:[%s6941_s30 + $0x64] sm:$0xf] }
 0x26a   : > { %2508 = vst.msk [vmem:[#allocation2 + $0x48] sm:$0xf] %vm2489_vm12, %v2430_v45  ;;  %v3218_v41 = vrot.slane %v3216_v38, 4  ;;  %v6523_v45 = vld [vmem:[%s6941_s30 + $0x3c] sm:$0xe]  ;;  %v3217_v47 = vsel %vm7110_vm6, %v6567_v32, %v3216_v38  ;;  %v3223_v51 = vrot.slane %v6533_v40, 5 }
 0x26b   : > { %2515 = vst.msk [vmem:[#allocation2 + $0x64] sm:$0xf] %vm2489_vm12, %v2444_v52  ;;  %v6565_v46 = vrot.slane %v6523_v45, 9  ;;  %v6534_v52 = vld [vmem:[%s6941_s30 + $0x68] sm:$0x1] }
 0x26c   : > { %v3220_v53 = vsel %vm7110_vm6, %v3218_v41, %v3219_v43  ;;  %v3226_v56 = vrot.slane %v6534_v52, 5  ;;  %v3224_v7 = vsel %vm7110_vm6, %v6568_v14, %v3223_v51  ;;  %v6548_v45 = vld [vmem:[%s6941_s30 + $0xa0] sm:$0xf]  ;;  %v6547_v52 = vld [vmem:[%s6941_s30 + $0x9c] sm:$0xe] }
 0x26d   : > { %v6573_v39 = vrot.slane %v6547_v52, 9 }
 0x26e   : > { %3014 = vrot.lane.b32.xlu0 %v2943_v49, %s6882_s13 }
 0x26f   : > { %3016 = vrot.lane.b32.xlu1 %v2953_v54, %s6882_s13  ;;  %3012 = vrot.lane.b32.xlu2 %v2929_v55, %s6882_s13  ;;  %v3203_v54 = vsel %vm7110_vm6, %v6565_v46, %v3202_v18  ;;  %v3225_v55 = vrot.slane %v3223_v51, 4  ;;  %v6543_v18 = vld [vmem:[%s6941_s30 + $0x8c] sm:$0x1] }
 0x270   : > { %v2434_v48 = vpop.permute.xlu0 %2433  ;;  %v3247_v23 = vrot.slane %v6543_v18, 5  ;;  %v6553_v18 = vld [vmem:[%s6941_s30 + $0xb4] sm:$0xe] }
 0x271   : > { %2510 = vst.msk [vmem:[#allocation2 + $0x50] sm:$0xf] %vm2489_vm12, %v2434_v48  ;;  %v2436_v60 = vpop.permute.xlu1 %2435  ;;  %v2450_v63 = vpop.permute.xlu2 %2449  ;;  %v3230_v48 = vrot.slane %v6536_v42, 5 }
 0x272   : > { %2511 = vst.msk [vmem:[#allocation2 + $0x54] sm:$0xf] %vm2489_vm12, %v2436_v60  ;;  %v3211_v60 = vrot.slane %v3209_v31, 4  ;;  %v6544_v31 = vld [vmem:[%s6941_s30 + $0x90] sm:$0xe] }
 0x273   : > { %2518 = vst.msk [vmem:[#allocation2 + $0x70] sm:$0xf] %vm2489_vm12, %v2450_v63  ;;  %v3231_v3 = vsel %vm7110_vm6, %v6569_v57, %v3230_v48  ;;  %v6572_v36 = vrot.slane %v6544_v31, 9  ;;  %v6546_v57 = vld [vmem:[%s6941_s30 + $0x98] sm:$0x1] }
 0x274   : > { %v3213_v4 = vsel %vm7110_vm6, %v3211_v60, %v3212_v22 }
 0x276   : > { %3293 = vrot.lane.b32.xlu0 %v3185_v61, %s6883_s14  ;;  %v3227_v61 = vsel %vm7110_vm6, %v3225_v55, %v3226_v56 }
 0x277   : > { %3295 = vrot.lane.b32.xlu1 %v3189_v1, %s6883_s14  ;;  %3291 = vrot.lane.b32.xlu2 %v3182_v6, %s6883_s14  ;;  %v6538_v1 = vld [vmem:[%s6941_s30 + $0x78] sm:$0xe]  ;;  %v6540_v6 = vld [vmem:[%s6941_s30 + $0x80] sm:$0x1] }
 0x278   : > { %v2440_v9 = vpop.permute.xlu0 %2439  ;;  %v6570_v8 = vrot.slane %v6538_v1, 9  ;;  %v3240_v12 = vrot.slane %v6540_v6, 5 }
 0x279   : > { %2513 = vst.msk [vmem:[#allocation2 + $0x5c] sm:$0xf] %vm2489_vm12, %v2440_v9  ;;  %v2442_v13 = vpop.permute.xlu1 %2441  ;;  %v2456_v17 = vpop.permute.xlu2 %2455 }
 0x27a   : > { %2514 = vst.msk [vmem:[#allocation2 + $0x60] sm:$0xf] %vm2489_vm12, %v2442_v13  ;;  %v3238_v15 = vsel %vm7110_vm6, %v6570_v8, %v3237_v5 }
 0x27b   : > { %2521 = vst.msk [vmem:[#allocation2 + $0x7c] sm:$0xf] %vm2489_vm12, %v2456_v17  ;;  %v3244_v17 = vrot.slane %v6542_v10, 5 }
 0x27d   : > { %v3246_v21 = vrot.slane %v3244_v17, 4 }
 0x27e   : > { %3299 = vrot.lane.b32.xlu0 %v3196_v16, %s6883_s14 }
 0x27f   : > { %3301 = vrot.lane.b32.xlu1 %v3199_v19, %s6883_s14  ;;  %3297 = vrot.lane.b32.xlu2 %v3192_v25, %s6883_s14  ;;  %v3241_v19 = vsel %vm7110_vm6, %v3239_v11, %v3240_v12 }
 0x280   : > { %v2446_v28 = vpop.permute.xlu0 %2445 }
 0x281   : > { %2516 = vst.msk [vmem:[#allocation2 + $0x68] sm:$0xf] %vm2489_vm12, %v2446_v28  ;;  %v2448_v33 = vpop.permute.xlu1 %2447  ;;  %v2959_v35 = vpop.permute.xlu2 %2958  ;;  %v3232_v28 = vrot.slane %v3230_v48, 4 }
 0x282   : > { %2517 = vst.msk [vmem:[#allocation2 + $0x6c] sm:$0xf] %vm2489_vm12, %v2448_v33  ;;  %v3248_v33 = vsel %vm7110_vm6, %v3246_v21, %v3247_v23  ;;  %v6575_v21 = vrot.slane %v6553_v18, 9 }
 0x283   : > { %3053 = vst.msk [vmem:[#allocation2 + $0x8] sm:$0xf] %vm3050_vm13, %v2959_v35  ;;  %v6545_v35 = vld [vmem:[%s6941_s30 + $0x94] sm:$0xf]  ;;  %v3234_v20 = vsel %vm7110_vm6, %v3232_v28, %v3233_v29 }
 0x286   : > { %3305 = vrot.lane.b32.xlu0 %v3206_v34, %s6883_s14 }
 0x287   : > { %3307 = vrot.lane.b32.xlu1 %v3210_v24, %s6883_s14  ;;  %3303 = vrot.lane.b32.xlu2 %v3203_v54, %s6883_s14  ;;  %v3251_v24 = vrot.slane %v6545_v35, 5  ;;  %v6557_v35 = vld [vmem:[%s6941_s30 + $0xc4] sm:$0xf] }
 0x288   : > { %v2452_v30 = vpop.permute.xlu0 %2451 }
 0x289   : > { %2519 = vst.msk [vmem:[#allocation2 + $0x74] sm:$0xf] %vm2489_vm12, %v2452_v30  ;;  %v2454_v44 = vpop.permute.xlu1 %2453  ;;  %v2965_v49 = vpop.permute.xlu2 %2964  ;;  %v3252_v37 = vsel %vm7110_vm6, %v6572_v36, %v3251_v24  ;;  %v6541_v30 = vld [vmem:[%s6941_s30 + $0x84] sm:$0xe]  ;;  %v3253_v48 = vrot.slane %v3251_v24, 4 }
 0x28a   : > { %2520 = vst.msk [vmem:[#allocation2 + $0x78] sm:$0xf] %vm2489_vm12, %v2454_v44  ;;  %v6571_v40 = vrot.slane %v6541_v30, 9  ;;  %v6558_v24 = vld [vmem:[%s6941_s30 + $0xc8] sm:$0x1] }
 0x28b   : > { %3056 = vst.msk [vmem:[#allocation2 + $0x14] sm:$0xf] %vm3050_vm13, %v2965_v49  ;;  %v3258_v49 = vrot.slane %v6548_v45, 5 }
 0x28c   : > { %v3245_v43 = vsel %vm7110_vm6, %v6571_v40, %v3244_v17  ;;  %v6555_v40 = vld [vmem:[%s6941_s30 + $0xbc] sm:$0x1] }
 0x28d   : > { %v3260_v54 = vrot.slane %v3258_v49, 4  ;;  %v3259_v55 = vsel %vm7110_vm6, %v6573_v39, %v3258_v49 }
 0x28e   : > { %3311 = vrot.lane.b32.xlu0 %v3217_v47, %s6883_s14  ;;  %v6549_v47 = vld [vmem:[%s6941_s30 + $0xa4] sm:$0x1] }
 0x28f   : > { %3313 = vrot.lane.b32.xlu1 %v3220_v53, %s6883_s14  ;;  %3309 = vrot.lane.b32.xlu2 %v3213_v4, %s6883_s14  ;;  %v3261_v51 = vrot.slane %v6549_v47, 5  ;;  %v3456_v4 = vld [vmem:[%s9513_s1 + $0x10] sm:$0x3] }
 0x290   : > { %v2955_v50 = vpop.permute.xlu0 %2954  ;;  %v3551_v8 = vunpack.c.l.b16 %v3456_v4 }
 0x291   : > { %3051 = vst.msk [vmem:[#allocation2] sm:$0xf] %vm3050_vm13, %v2955_v50  ;;  %v2957_v58 = vpop.permute.xlu1 %2956  ;;  %v2971_v63 = vpop.permute.xlu2 %2970  ;;  %v3262_v42 = vsel %vm7110_vm6, %v3260_v54, %v3261_v51 }
 0x292   : > { %3052 = vst.msk [vmem:[#allocation2 + $0x4] sm:$0xf] %vm3050_vm13, %v2957_v58  ;;  %v3254_v58 = vrot.slane %v6546_v57, 5  ;;  %v3554_v10 = vpack.c.b16 %v3551_v8, %v3551_v8 }
 0x293   : > { %3059 = vst.msk [vmem:[#allocation2 + $0x20] sm:$0xf] %vm3050_vm13, %v2971_v63 }
 0x294   : > { %v3255_v60 = vsel %vm7110_vm6, %v3253_v48, %v3254_v58  ;;  %v3608_v11 = vsel %vm3606_vm14, %v3554_v10, 0 }
 0x295   : > { %3615 = vmatpush.bf16.msra.mxu0 %v3608_v11  ;;  %6804 = vmatpush.bf16.msra.mxu3 %v3608_v11 }
 0x296   : > { %3317 = vrot.lane.b32.xlu0 %v3227_v61, %s6883_s14  ;;  %v6551_v61 = vld [vmem:[%s6941_s30 + $0xac] sm:$0xf] }
 0x297   : > { %3319 = vrot.lane.b32.xlu1 %v3231_v3, %s6883_s14  ;;  %3315 = vrot.lane.b32.xlu2 %v3224_v7, %s6883_s14  ;;  %v3265_v1 = vrot.slane %v6551_v61, 5  ;;  %v3268_v3 = vrot.slane %v6552_v0, 5 }
 0x298   : > { %v2961_v9 = vpop.permute.xlu0 %2960 }
 0x299   : > { %3054 = vst.msk [vmem:[#allocation2 + $0xc] sm:$0xf] %vm3050_vm13, %v2961_v9  ;;  %v2963_v13 = vpop.permute.xlu1 %2962  ;;  %v2977_v16 = vpop.permute.xlu2 %2976  ;;  %v3267_v5 = vrot.slane %v3265_v1, 4  ;;  %3616 = vmatpush.bf16.msra.mxu0 %v6783_v2  ;;  %6805 = vmatpush.bf16.msra.mxu3 %v6783_v2 }
 0x29a   : > { %3055 = vst.msk [vmem:[#allocation2 + $0x10] sm:$0xf] %vm3050_vm13, %v2963_v13 }
 0x29b   : > { %3062 = vst.msk [vmem:[#allocation2 + $0x2c] sm:$0xf] %vm3050_vm13, %v2977_v16  ;;  %v3269_v9 = vsel %vm7110_vm6, %v3267_v5, %v3268_v3 }
 0x29e   : > { %3323 = vrot.lane.b32.xlu0 %v3238_v15, %s6883_s14  ;;  %v6782_v15 = vld [vmem:[%s9513_s1] sm:$0xff] }
 0x29f   : > { %3325 = vrot.lane.b32.xlu1 %v3241_v19, %s6883_s14  ;;  %3321 = vrot.lane.b32.xlu2 %v3234_v20, %s6883_s14  ;;  %v6554_v19 = vld [vmem:[%s6941_s30 + $0xb8] sm:$0xf]  ;;  %v3279_v20 = vrot.slane %v6557_v35, 5 }
 0x2a0   : > { %v2967_v25 = vpop.permute.xlu0 %2966  ;;  %3617 = vmatpush.bf16.msra.mxu0 %v6782_v15  ;;  %6806 = vmatpush.bf16.msra.mxu3 %v6782_v15  ;;  %v3272_v23 = vrot.slane %v6554_v19, 5  ;;  %v6560_v19 = vld [vmem:[%s6941_s30 + $0xd0] sm:$0xf] }
 0x2a1   : > { %3057 = vst.msk [vmem:[#allocation2 + $0x18] sm:$0xf] %vm3050_vm13, %v2967_v25  ;;  %v2969_v26 = vpop.permute.xlu1 %2968  ;;  %v2983_v34 = vpop.permute.xlu2 %2982  ;;  %v6550_v25 = vld [vmem:[%s6941_s30 + $0xa8] sm:$0xe] }
 0x2a2   : > { %3058 = vst.msk [vmem:[#allocation2 + $0x1c] sm:$0xf] %vm3050_vm13, %v2969_v26  ;;  %v6574_v26 = vrot.slane %v6550_v25, 9  ;;  %v3273_v27 = vsel %vm7110_vm6, %v6575_v21, %v3272_v23  ;;  %v6561_v21 = vld [vmem:[%s6941_s30 + $0xd4] sm:$0x1] }
 0x2a3   : > { %3065 = vst.msk [vmem:[#allocation2 + $0x38] sm:$0xf] %vm3050_vm13, %v2983_v34  ;;  %v3289_v25 = vrot.slane %v6561_v21, 5 }
 0x2a4   : > { %v3266_v28 = vsel %vm7110_vm6, %v6574_v26, %v3265_v1  ;;  %v6884_v26 = vmov 0.0  }
 0x2a5   : > { %3797 = vst.msk [vmem:[#allocation3] sm:$0xff] %vm3796_vm1, %v6884_v26 }
 0x2a6   : > { %3329 = vrot.lane.b32.xlu0 %v3248_v33, %s6883_s14  ;;  %3798 = vst.msk [vmem:[#allocation3 + $0x8] sm:$0xff] %vm3796_vm1, %v6884_v26 }
 0x2a7   : > { %3331 = vrot.lane.b32.xlu1 %v3252_v37, %s6883_s14  ;;  %3327 = vrot.lane.b32.xlu2 %v3245_v43, %s6883_s14  ;;  %v6556_v37 = vld [vmem:[%s6941_s30 + $0xc0] sm:$0xe]  ;;  %v3275_v43 = vrot.slane %v6555_v40, 5  ;;  %3802 = vst.msk [vmem:[#allocation3 + $0x198] sm:$0xff] %vm3796_vm1, %v6884_v26  ;;  %v8398_v40 = vstv %s3457_s23  ;;  %s6765_s23 = sshll.u32 %s9524_s22, 8 }
 0x2a8   : > { %v2973_v38 = vpop.permute.xlu0 %2972  ;;  %v6576_v30 = vrot.slane %v6556_v37, 9  ;;  %3803 = vst.msk [vmem:[#allocation3 + $0x1a0] sm:$0xff] %vm3796_vm1, %v6884_v26  ;;  %s9363_s26 = scalar_lea.vmem %s9518_s6, %s6765_s23 }
 0x2a9   : > { %3060 = vst.msk [vmem:[#allocation2 + $0x24] sm:$0xf] %vm3050_vm13, %v2973_v38  ;;  %v2975_v32 = vpop.permute.xlu1 %2974  ;;  %v2989_v41 = vpop.permute.xlu2 %2988  ;;  %v3281_v38 = vrot.slane %v3279_v20, 4 }
 0x2aa   : > { %3061 = vst.msk [vmem:[#allocation2 + $0x28] sm:$0xf] %vm3050_vm13, %v2975_v32  ;;  %v3282_v32 = vrot.slane %v6558_v24, 5  ;;  %v3280_v45 = vsel %vm7110_vm6, %v6576_v30, %v3279_v20 }
 0x2ab   : > { %3068 = vst.msk [vmem:[#allocation2 + $0x44] sm:$0xf] %vm3050_vm13, %v2989_v41  ;;  %v3274_v41 = vrot.slane %v3272_v23, 4 }
 0x2ac   : > { %3808 = vst.msk [vmem:[#allocation3 + $0x30] sm:$0x1] %vm3805_vm2, %v6884_v26 }
 0x2ad   : > { %3806 = vst.msk [vmem:[#allocation3] sm:$0x1] %vm3805_vm2, %v6884_v26 }
 0x2ae   : > { %3335 = vrot.lane.b32.xlu0 %v3259_v55, %s6883_s14  ;;  %3800 = vst.msk [vmem:[#allocation3 + $0x10] sm:$0x3] %vm3799_vm3, %v6884_v26 }
 0x2af   : > { %3337 = vrot.lane.b32.xlu1 %v3262_v42, %s6883_s14  ;;  %3333 = vrot.lane.b32.xlu2 %v3255_v60, %s6883_s14  ;;  %3804 = vst.msk [vmem:[#allocation3 + $0x1a8] sm:$0x3] %vm3799_vm3, %v6884_v26 }
 0x2b0   : > { %v2979_v44 = vpop.permute.xlu0 %2978  ;;  %3807 = vst.msk [vmem:[#allocation3 + $0x18] sm:$0x1] %vm3805_vm2, %v6884_v26 }
 0x2b1   : > { %3063 = vst.msk [vmem:[#allocation2 + $0x30] sm:$0xf] %vm3050_vm13, %v2979_v44  ;;  %v2981_v46 = vpop.permute.xlu1 %2980  ;;  %v2995_v53 = vpop.permute.xlu2 %2994  ;;  %v3283_v44 = vsel %vm7110_vm6, %v3281_v38, %v3282_v32  ;;  %v8390_v38 = vld [vmem:[%s9514_s2] ss:$0 sm:$0xff] }
 0x2b2   : > { %3064 = vst.msk [vmem:[#allocation2 + $0x34] sm:$0xf] %vm3050_vm13, %v2981_v46  ;;  %v3276_v46 = vsel %vm7110_vm6, %v3274_v41, %v3275_v43 }
 0x2b3   : > { %3071 = vst.msk [vmem:[#allocation2 + $0x50] sm:$0xf] %vm3050_vm13, %v2995_v53 }
 0x2b4   : > { %3809 = vst.msk [vmem:[#allocation3 + $0x48] sm:$0x1] %vm3805_vm2, %v6884_v26 }
 0x2b5   : > { %3810 = vst.msk [vmem:[#allocation3 + $0x60] sm:$0x1] %vm3805_vm2, %v6884_v26  ;;  %v3973_v62 = vld [vmem:[#allocation3 + $0x9] sm:$0xff] }
 0x2b6   : > { %3341 = vrot.lane.b32.xlu0 %v3269_v9, %s6883_s14  ;;  %3811 = vst.msk [vmem:[#allocation3 + $0x78] sm:$0x1] %vm3805_vm2, %v6884_v26  ;;  %v4005_v37 = vpack.c.bf16 %v3973_v62, %v3973_v62 }
 0x2b7   : > { %3343 = vrot.lane.b32.xlu1 %v3273_v27, %s6883_s14  ;;  %3339 = vrot.lane.b32.xlu2 %v3266_v28, %s6883_s14  ;;  %3812 = vst.msk [vmem:[#allocation3 + $0x90] sm:$0x1] %vm3805_vm2, %v6884_v26 }
 0x2b8   : > { %v2985_v56 = vpop.permute.xlu0 %2984  ;;  %3813 = vst.msk [vmem:[#allocation3 + $0xa8] sm:$0x1] %vm3805_vm2, %v6884_v26 }
 0x2b9   : > { %3066 = vst.msk [vmem:[#allocation2 + $0x3c] sm:$0xf] %vm3050_vm13, %v2985_v56  ;;  %v2987_v50 = vpop.permute.xlu1 %2986  ;;  %v3001_v59 = vpop.permute.xlu2 %3000 }
 0x2ba   : > { %3067 = vst.msk [vmem:[#allocation2 + $0x40] sm:$0xf] %vm3050_vm13, %v2987_v50 }
 0x2bb   : > { %3074 = vst.msk [vmem:[#allocation2 + $0x5c] sm:$0xf] %vm3050_vm13, %v3001_v59 }
 0x2bc   : > { %3814 = vst.msk [vmem:[#allocation3 + $0xc0] sm:$0x1] %vm3805_vm2, %v6884_v26 }
 0x2bd   : > { %3815 = vst.msk [vmem:[#allocation3 + $0xd8] sm:$0x1] %vm3805_vm2, %v6884_v26 }
 0x2be   : > { %3347 = vrot.lane.b32.xlu0 %v3280_v45, %s6883_s14  ;;  %3816 = vst.msk [vmem:[#allocation3 + $0xf0] sm:$0x1] %vm3805_vm2, %v6884_v26 }
 0x2bf   : > { %3349 = vrot.lane.b32.xlu1 %v3283_v44, %s6883_s14  ;;  %3345 = vrot.lane.b32.xlu2 %v3276_v46, %s6883_s14  ;;  %3817 = vst.msk [vmem:[#allocation3 + $0x108] sm:$0x1] %vm3805_vm2, %v6884_v26 }
 0x2c0   : > { %v2991_v22 = vpop.permute.xlu0 %2990  ;;  %3818 = vst.msk [vmem:[#allocation3 + $0x120] sm:$0x1] %vm3805_vm2, %v6884_v26 }
 0x2c1   : > { %3069 = vst.msk [vmem:[#allocation2 + $0x48] sm:$0xf] %vm3050_vm13, %v2991_v22  ;;  %v2993_v63 = vpop.permute.xlu1 %2992  ;;  %v3007_v6 = vpop.permute.xlu2 %3006 }
 0x2c2   : > { %3070 = vst.msk [vmem:[#allocation2 + $0x4c] sm:$0xf] %vm3050_vm13, %v2993_v63 }
 0x2c3   : > { %3077 = vst.msk [vmem:[#allocation2 + $0x68] sm:$0xf] %vm3050_vm13, %v3007_v6 }
 0x2c4   : > { %3819 = vst.msk [vmem:[#allocation3 + $0x138] sm:$0x1] %vm3805_vm2, %v6884_v26 }
 0x2c5   : > { %3820 = vst.msk [vmem:[#allocation3 + $0x150] sm:$0x1] %vm3805_vm2, %v6884_v26 }
 0x2c6   : > { %3821 = vst.msk [vmem:[#allocation3 + $0x168] sm:$0x1] %vm3805_vm2, %v6884_v26 }
 0x2c7   : > { %3822 = vst.msk [vmem:[#allocation3 + $0x180] sm:$0x1] %vm3805_vm2, %v6884_v26 }
 0x2c8   : > { %v2997_v12 = vpop.permute.xlu0 %2996  ;;  %3823 = vst.msk [vmem:[#allocation3 + $0x198] sm:$0x1] %vm3805_vm2, %v6884_v26 }
 0x2c9   : > { %3072 = vst.msk [vmem:[#allocation2 + $0x54] sm:$0xf] %vm3050_vm13, %v2997_v12  ;;  %v2999_v13 = vpop.permute.xlu1 %2998  ;;  %v3013_v14 = vpop.permute.xlu2 %3012 }
 0x2ca   : > { %3073 = vst.msk [vmem:[#allocation2 + $0x58] sm:$0xf] %vm3050_vm13, %v2999_v13 }
 0x2cb   : > { %3080 = vst.msk [vmem:[#allocation2 + $0x74] sm:$0xf] %vm3050_vm13, %v3013_v14 }
 0x2cc   : > { %3824 = vst.msk [vmem:[#allocation3 + $0x11] sm:$0x1] %vm3805_vm2, %v6884_v26 }
 0x2cd   : > { %3825 = vst.msk [vmem:[#allocation3 + $0x29] sm:$0x1] %vm3805_vm2, %v6884_v26 }
 0x2ce   : > { %3826 = vst.msk [vmem:[#allocation3 + $0x41] sm:$0x1] %vm3805_vm2, %v6884_v26 }
 0x2cf   : > { %3827 = vst.msk [vmem:[#allocation3 + $0x59] sm:$0x1] %vm3805_vm2, %v6884_v26 }
 0x2d0   : > { %v3003_v16 = vpop.permute.xlu0 %3002  ;;  %3828 = vst.msk [vmem:[#allocation3 + $0x71] sm:$0x1] %vm3805_vm2, %v6884_v26 }
 0x2d1   : > { %3075 = vst.msk [vmem:[#allocation2 + $0x60] sm:$0xf] %vm3050_vm13, %v3003_v16  ;;  %v3005_v17 = vpop.permute.xlu1 %3004  ;;  %v3292_v7 = vpop.permute.xlu2 %3291 }
 0x2d2   : > { %3076 = vst.msk [vmem:[#allocation2 + $0x64] sm:$0xf] %vm3050_vm13, %v3005_v17 }
 0x2d3   : > { %3388 = vst.msk [vmem:[#allocation2] sm:$0xf] %vm3387_vm15, %v3292_v7  ;;  %v3286_v7 = vrot.slane %v6560_v19, 5 }
 0x2d4   : > { %3829 = vst.msk [vmem:[#allocation3 + $0x89] sm:$0x1] %vm3805_vm2, %v6884_v26 }
 0x2d5   : > { %v3288_v23 = vrot.slane %v3286_v7, 4  ;;  %3830 = vst.msk [vmem:[#allocation3 + $0xa1] sm:$0x1] %vm3805_vm2, %v6884_v26 }
 0x2d6   : > { %3831 = vst.msk [vmem:[#allocation3 + $0xb9] sm:$0x1] %vm3805_vm2, %v6884_v26 }
 0x2d7   : > { %v3290_v27 = vsel %vm7110_vm6, %v3288_v23, %v3289_v25  ;;  %3832 = vst.msk [vmem:[#allocation3 + $0xd1] sm:$0x1] %vm3805_vm2, %v6884_v26 }
 0x2d8   : > { %v3009_v29 = vpop.permute.xlu0 %3008  ;;  %3353 = vrot.lane.b32.xlu0 %v3290_v27, %s6883_s14  ;;  %3833 = vst.msk [vmem:[#allocation3 + $0xe9] sm:$0x1] %vm3805_vm2, %v6884_v26 }
 0x2d9   : > { %3078 = vst.msk [vmem:[#allocation2 + $0x6c] sm:$0xf] %vm3050_vm13, %v3009_v29  ;;  %v3011_v31 = vpop.permute.xlu1 %3010  ;;  %v3298_v33 = vpop.permute.xlu2 %3297 }
 0x2da   : > { %3079 = vst.msk [vmem:[#allocation2 + $0x70] sm:$0xf] %vm3050_vm13, %v3011_v31  ;;  %v6559_v31 = vld [vmem:[%s6941_s30 + $0xcc] sm:$0xe]  ;;  %s6887_s30 = smov 56  }
 0x2db   : > { %3391 = vst.msk [vmem:[#allocation2 + $0xc] sm:$0xf] %vm3387_vm15, %v3298_v33  ;;  %v6577_v33 = vrot.slane %v6559_v31, 9 }
 0x2dc   : > { %3834 = vst.msk [vmem:[#allocation3 + $0x101] sm:$0x1] %vm3805_vm2, %v6884_v26 }
 0x2dd   : > { %3835 = vst.msk [vmem:[#allocation3 + $0x119] sm:$0x1] %vm3805_vm2, %v6884_v26 }
 0x2de   : > { %3836 = vst.msk [vmem:[#allocation3 + $0x131] sm:$0x1] %vm3805_vm2, %v6884_v26 }
 0x2df   : > { %3837 = vst.msk [vmem:[#allocation3 + $0x149] sm:$0x1] %vm3805_vm2, %v6884_v26 }
 0x2e0   : > { %v3015_v34 = vpop.permute.xlu0 %3014  ;;  %3838 = vst.msk [vmem:[#allocation3 + $0x161] sm:$0x1] %vm3805_vm2, %v6884_v26 }
 0x2e1   : > { %3081 = vst.msk [vmem:[#allocation2 + $0x78] sm:$0xf] %vm3050_vm13, %v3015_v34  ;;  %v3017_v36 = vpop.permute.xlu1 %3016  ;;  %v3304_v47 = vpop.permute.xlu2 %3303  ;;  %v3972_v34 = vld [vmem:[#allocation3 + $0x1] sm:$0xff] }
 0x2e2   : > { %3082 = vst.msk [vmem:[#allocation2 + $0x7c] sm:$0xf] %vm3050_vm13, %v3017_v36  ;;  %v3287_v36 = vsel %vm7110_vm6, %v6577_v33, %v3286_v7  ;;  %v4004_v20 = vpack.c.bf16 %v3972_v34, %v3972_v34  ;;  %vm3939_vm6 = vcmask 60416  }
 0x2e3   : > { %3394 = vst.msk [vmem:[#allocation2 + $0x18] sm:$0xf] %vm3387_vm15, %v3304_v47  ;;  %3351 = vrot.lane.b32.xlu2 %v3287_v36, %s6883_s14 }
 0x2e4   : > { %4068 = vrot.lane.b32.xlu1 %v4004_v20, %s6877_s8  ;;  %3839 = vst.msk [vmem:[#allocation3 + $0x179] sm:$0x1] %vm3805_vm2, %v6884_v26 }
 0x2e5   : > { %3840 = vst.msk [vmem:[#allocation3 + $0x191] sm:$0x1] %vm3805_vm2, %v6884_v26 }
 0x2e6   : > { %3841 = vst.msk [vmem:[#allocation3 + $0x1a9] sm:$0x1] %vm3805_vm2, %v6884_v26 }
 0x2e8   : > { %v3294_v49 = vpop.permute.xlu0 %3293 }
 0x2e9   : > { %3389 = vst.msk [vmem:[#allocation2 + $0x4] sm:$0xf] %vm3387_vm15, %v3294_v49  ;;  %v3296_v51 = vpop.permute.xlu1 %3295  ;;  %v3310_v52 = vpop.permute.xlu2 %3309 }
 0x2ea   : > { %3390 = vst.msk [vmem:[#allocation2 + $0x8] sm:$0xf] %vm3387_vm15, %v3296_v51 }
 0x2eb   : > { %3397 = vst.msk [vmem:[#allocation2 + $0x24] sm:$0xf] %vm3387_vm15, %v3310_v52  ;;  %4070 = vrot.lane.b32.xlu2 %v4005_v37, %s6877_s8 }
 0x2f0   : > { %v6766_v53 = vld [vmem:[#allocation2] sm:$0xff]  ;;  %v3300_v54 = vpop.permute.xlu0 %3299 }
 0x2f1   : > { %3392 = vst.msk [vmem:[#allocation2 + $0x10] sm:$0xf] %vm3387_vm15, %v3300_v54  ;;  %v3302_v39 = vpop.permute.xlu1 %3301  ;;  %6650 = vmatmul.msk.bf16.vlgmr.msra.gmra.mxu0 %vm3557_vm0, %v6766_v53  ;;  %v3316_v42 = vpop.permute.xlu2 %3315  ;;  %v6767_v50 = vld [vmem:[#allocation2 + $0x8] sm:$0xff] }
 0x2f2   : > { %3393 = vst.msk [vmem:[#allocation2 + $0x14] sm:$0xf] %vm3387_vm15, %v3302_v39 }
 0x2f3   : > { %3400 = vst.msk [vmem:[#allocation2 + $0x30] sm:$0xf] %vm3387_vm15, %v3316_v42 }
 0x2f8   : > { %v3306_v55 = vpop.permute.xlu0 %3305 }
 0x2f9   : > { %3395 = vst.msk [vmem:[#allocation2 + $0x1c] sm:$0xf] %vm3387_vm15, %v3306_v55  ;;  %v3308_v56 = vpop.permute.xlu1 %3307  ;;  %v3322_v57 = vpop.permute.xlu2 %3321  ;;  %v6768_v61 = vld [vmem:[#allocation2 + $0x10] sm:$0xff] }
 0x2fa   : > { %3396 = vst.msk [vmem:[#allocation2 + $0x20] sm:$0xf] %vm3387_vm15, %v3308_v56 }
 0x2fb   : > { %3403 = vst.msk [vmem:[#allocation2 + $0x3c] sm:$0xf] %vm3387_vm15, %v3322_v57 }
 0x300   : > { %v3312_v48 = vpop.permute.xlu0 %3311  ;;  %v6769_v6 = vld [vmem:[#allocation2 + $0x18] sm:$0xff] }
 0x301   : > { %3398 = vst.msk [vmem:[#allocation2 + $0x28] sm:$0xf] %vm3387_vm15, %v3312_v48  ;;  %v3314_v58 = vpop.permute.xlu1 %3313  ;;  %6651 = vmatmul.msk.bf16.gmra.mxu0 %vm3557_vm0, %v6767_v50  ;;  %v3328_v59 = vpop.permute.xlu2 %3327  ;;  %v6770_v11 = vld [vmem:[#allocation2 + $0x20] sm:$0xff] }
 0x302   : > { %3399 = vst.msk [vmem:[#allocation2 + $0x2c] sm:$0xf] %vm3387_vm15, %v3314_v58 }
 0x303   : > { %3406 = vst.msk [vmem:[#allocation2 + $0x48] sm:$0xf] %vm3387_vm15, %v3328_v59 }
 0x308   : > { %v3318_v60 = vpop.permute.xlu0 %3317 }
 0x309   : > { %3401 = vst.msk [vmem:[#allocation2 + $0x34] sm:$0xf] %vm3387_vm15, %v3318_v60  ;;  %v3320_v22 = vpop.permute.xlu1 %3319  ;;  %v3334_v1 = vpop.permute.xlu2 %3333  ;;  %v6771_v14 = vld [vmem:[#allocation2 + $0x28] sm:$0xff] }
 0x30a   : > { %3402 = vst.msk [vmem:[#allocation2 + $0x38] sm:$0xf] %vm3387_vm15, %v3320_v22 }
 0x30b   : > { %3409 = vst.msk [vmem:[#allocation2 + $0x54] sm:$0xf] %vm3387_vm15, %v3334_v1 }
 0x310   : > { %v3324_v63 = vpop.permute.xlu0 %3323  ;;  %v6772_v18 = vld [vmem:[#allocation2 + $0x30] sm:$0xff] }
 0x311   : > { %3404 = vst.msk [vmem:[#allocation2 + $0x40] sm:$0xf] %vm3387_vm15, %v3324_v63  ;;  %v3326_v0 = vpop.permute.xlu1 %3325  ;;  %6652 = vmatmul.msk.bf16.gmra.mxu0 %vm3557_vm0, %v6768_v61  ;;  %v3340_v12 = vpop.permute.xlu2 %3339  ;;  %v6773_v24 = vld [vmem:[#allocation2 + $0x38] sm:$0xff] }
 0x312   : > { %3405 = vst.msk [vmem:[#allocation2 + $0x44] sm:$0xf] %vm3387_vm15, %v3326_v0 }
 0x313   : > { %3412 = vst.msk [vmem:[#allocation2 + $0x60] sm:$0xf] %vm3387_vm15, %v3340_v12 }
 0x318   : > { %v3330_v3 = vpop.permute.xlu0 %3329 }
 0x319   : > { %3407 = vst.msk [vmem:[#allocation2 + $0x4c] sm:$0xf] %vm3387_vm15, %v3330_v3  ;;  %v3332_v4 = vpop.permute.xlu1 %3331  ;;  %v3346_v15 = vpop.permute.xlu2 %3345  ;;  %v6774_v43 = vld [vmem:[#allocation2 + $0x40] sm:$0xff] }
 0x31a   : > { %3408 = vst.msk [vmem:[#allocation2 + $0x50] sm:$0xf] %vm3387_vm15, %v3332_v4 }
 0x31b   : > { %3415 = vst.msk [vmem:[#allocation2 + $0x6c] sm:$0xf] %vm3387_vm15, %v3346_v15 }
 0x320   : > { %v6775_v5 = vld [vmem:[#allocation2 + $0x48] sm:$0xff]  ;;  %v3336_v9 = vpop.permute.xlu0 %3335 }
 0x321   : > { %6653 = vmatmul.msk.bf16.gmra.mxu0 %vm3557_vm0, %v6769_v6  ;;  %6659 = vmatmul.msk.bf16.vlgmr.msra.gmra.mxu3 %vm3557_vm0, %v6775_v5  ;;  %v3338_v8 = vpop.permute.xlu1 %3337  ;;  %3410 = vst.msk [vmem:[#allocation2 + $0x58] sm:$0xf] %vm3387_vm15, %v3336_v9  ;;  %v6776_v10 = vld [vmem:[#allocation2 + $0x50] sm:$0xff] }
 0x322   : > { %3411 = vst.msk [vmem:[#allocation2 + $0x5c] sm:$0xf] %vm3387_vm15, %v3338_v8 }
 0x328   : > { %v3342_v13 = vpop.permute.xlu0 %3341 }
 0x329   : > { %3413 = vst.msk [vmem:[#allocation2 + $0x64] sm:$0xf] %vm3387_vm15, %v3342_v13  ;;  %v6777_v2 = vld [vmem:[#allocation2 + $0x58] sm:$0xff]  ;;  %v3344_v16 = vpop.permute.xlu1 %3343 }
 0x32a   : > { %3414 = vst.msk [vmem:[#allocation2 + $0x68] sm:$0xf] %vm3387_vm15, %v3344_v16 }
 0x330   : > { %v6778_v17 = vld [vmem:[#allocation2 + $0x60] sm:$0xff]  ;;  %v3348_v29 = vpop.permute.xlu0 %3347 }
 0x331   : > { %6654 = vmatmul.msk.bf16.gmra.mxu0 %vm3557_vm0, %v6770_v11  ;;  %6660 = vmatmul.msk.bf16.gmra.mxu3 %vm3557_vm0, %v6776_v10  ;;  %v3350_v28 = vpop.permute.xlu1 %3349  ;;  %3416 = vst.msk [vmem:[#allocation2 + $0x70] sm:$0xf] %vm3387_vm15, %v3348_v29  ;;  %v6779_v35 = vld [vmem:[#allocation2 + $0x68] sm:$0xff] }
 0x332   : > { %3417 = vst.msk [vmem:[#allocation2 + $0x74] sm:$0xf] %vm3387_vm15, %v3350_v28 }
 0x339   : > { %v6780_v32 = vld [vmem:[#allocation2 + $0x70] sm:$0xff] }
 0x341   : > { %6655 = vmatmul.msk.bf16.gmra.mxu0 %vm3557_vm0, %v6771_v14  ;;  %6661 = vmatmul.msk.bf16.gmra.mxu3 %vm3557_vm0, %v6777_v2 }
 0x351   : > { %6656 = vmatmul.msk.bf16.gmra.mxu0 %vm3557_vm0, %v6772_v18  ;;  %6662 = vmatmul.msk.bf16.gmra.mxu3 %vm3557_vm0, %v6778_v17 }
 0x361   : > { %6657 = vmatmul.msk.bf16.gmra.mxu0 %vm3557_vm0, %v6773_v24  ;;  %6663 = vmatmul.msk.bf16.gmra.mxu3 %vm3557_vm0, %v6779_v35 }
 0x36e   : > { %v3619_v30 = vpop.f32.mrf.mxu0 }
 0x36f   : > { %v3620_v41 = vadd.f32 %v8390_v38, %v3619_v30 }
 0x371   : > { %vm3699_vm4 = vcmp.ge.f32.partialorder %v3620_v41, 0.0  ;;  %v3732_v44 = vmul.f32 %v8398_v40, %v3620_v41  ;;  %6658 = vmatmul.msk.bf16.gmra.mxu0 %vm3557_vm0, %v6774_v43  ;;  %6664 = vmatmul.msk.bf16.gmra.mxu3 %vm3557_vm0, %v6780_v32 }
 0x373   : > { %v3764_v45 = vsel %vm3699_vm4, %v3620_v41, %v3732_v44 }
 0x374   : > { %3843 = vst.msk [vmem:[#allocation3 + $0x19] sm:$0xff] %vm3796_vm1, %v3764_v45 }
 0x376   : > { %v3621_v46 = vpop.f32.mrf.mxu0 }
 0x377   : > { %v3622_v47 = vadd.f32 %v8390_v38, %v3621_v46 }
 0x379   : > { %vm3700_vm5 = vcmp.ge.f32.partialorder %v3622_v47, 0.0  ;;  %v3733_v49 = vmul.f32 %v8398_v40, %v3622_v47 }
 0x37b   : > { %v3765_v51 = vsel %vm3700_vm5, %v3622_v47, %v3733_v49  ;;  %v3974_v52 = vld [vmem:[#allocation3 + $0x19] sm:$0xff] }
 0x37c   : > { %v3877_v53 = vld [vmem:[#allocation3 + $0x18] sm:$0xff]  ;;  %3844 = vst.msk [vmem:[#allocation3 + $0x21] sm:$0xff] %vm3796_vm1, %v3765_v51  ;;  %v4006_v54 = vpack.c.bf16 %v3974_v52, %v3974_v52 }
 0x37d   : > { %v8439_v42 = vpack.c.bf16 %v3877_v53, %v3877_v53 }
 0x37e   : > { %v3624_v39 = vpop.f32.mrf.mxu0  ;;  %4072 = vrot.lane.b32.xlu0 %v4006_v54, %s6877_s8 }
 0x37f   : > { %v3625_v55 = vadd.f32 %v8390_v38, %v3624_v39  ;;  %3942 = vst.msk [vmem:[#allocation4 + $0x8] sm:$0xf] %vm3939_vm6, %v8439_v42 }
 0x381   : > { %vm3701_vm7 = vcmp.ge.f32.partialorder %v3625_v55, 0.0  ;;  %v3734_v56 = vmul.f32 %v8398_v40, %v3625_v55 }
 0x383   : > { %v3766_v50 = vsel %vm3701_vm7, %v3625_v55, %v3734_v56  ;;  %v3975_v57 = vld [vmem:[#allocation3 + $0x21] sm:$0xff] }
 0x384   : > { %v3878_v48 = vld [vmem:[#allocation3 + $0x20] sm:$0xff]  ;;  %3845 = vst.msk [vmem:[#allocation3 + $0x31] sm:$0xff] %vm3796_vm1, %v3766_v50  ;;  %v4007_v58 = vpack.c.bf16 %v3975_v57, %v3975_v57 }
 0x385   : > { %v8452_v59 = vpack.c.bf16 %v3878_v48, %v3878_v48 }
 0x386   : > { %v3626_v60 = vpop.f32.mrf.mxu0  ;;  %4074 = vrot.lane.b32.xlu1 %v4007_v58, %s6877_s8 }
 0x387   : > { %3943 = vst.msk [vmem:[#allocation4 + $0xc] sm:$0xf] %vm3939_vm6, %v8452_v59  ;;  %v3627_v22 = vadd.f32 %v8390_v38, %v3626_v60 }
 0x389   : > { %vm3702_vm8 = vcmp.ge.f32.partialorder %v3627_v22, 0.0  ;;  %v3735_v61 = vmul.f32 %v8398_v40, %v3627_v22 }
 0x38b   : > { %v3767_v63 = vsel %vm3702_vm8, %v3627_v22, %v3735_v61  ;;  %v3976_v0 = vld [vmem:[#allocation3 + $0x31] sm:$0xff] }
 0x38c   : > { %v3879_v1 = vld [vmem:[#allocation3 + $0x30] sm:$0xff]  ;;  %3846 = vst.msk [vmem:[#allocation3 + $0x39] sm:$0xff] %vm3796_vm1, %v3767_v63  ;;  %v4008_v3 = vpack.c.bf16 %v3976_v0, %v3976_v0  ;;  %v3352_v63 = vpop.permute.xlu2 %3351 }
 0x38d   : > { %v8460_v4 = vpack.c.bf16 %v3879_v1, %v3879_v1  ;;  %3418 = vst.msk [vmem:[#allocation2 + $0x78] sm:$0xf] %vm3387_vm15, %v3352_v63 }
 0x38e   : > { %v3629_v6 = vpop.f32.mrf.mxu0  ;;  %4076 = vrot.lane.b32.xlu2 %v4008_v3, %s6877_s8 }
 0x38f   : > { %3944 = vst.msk [vmem:[#allocation4 + $0x10] sm:$0xf] %vm3939_vm6, %v8460_v4  ;;  %v3630_v5 = vadd.f32 %v8390_v38, %v3629_v6 }
 0x391   : > { %vm3703_vm9 = vcmp.ge.f32.partialorder %v3630_v5, 0.0  ;;  %v3736_v8 = vmul.f32 %v8398_v40, %v3630_v5 }
 0x393   : > { %v3768_v9 = vsel %vm3703_vm9, %v3630_v5, %v3736_v8  ;;  %v3977_v10 = vld [vmem:[#allocation3 + $0x39] sm:$0xff]  ;;  %vm4164_vm9 = vcmask 126016  }
 0x394   : > { %v3880_v11 = vld [vmem:[#allocation3 + $0x38] sm:$0xff]  ;;  %3847 = vst.msk [vmem:[#allocation3 + $0x49] sm:$0xff] %vm3796_vm1, %v3768_v9  ;;  %v4009_v12 = vpack.c.bf16 %v3977_v10, %v3977_v10 }
 0x395   : > { %v8468_v13 = vpack.c.bf16 %v3880_v11, %v3880_v11 }
 0x396   : > { %v3631_v2 = vpop.f32.mrf.mxu0  ;;  %4078 = vrot.lane.b32.xlu0 %v4009_v12, %s6877_s8 }
 0x397   : > { %3945 = vst.msk [vmem:[#allocation4 + $0x14] sm:$0xf] %vm3939_vm6, %v8468_v13  ;;  %v3632_v14 = vadd.f32 %v8390_v38, %v3631_v2 }
 0x399   : > { %vm3704_vm10 = vcmp.ge.f32.partialorder %v3632_v14, 0.0  ;;  %v3737_v15 = vmul.f32 %v8398_v40, %v3632_v14 }
 0x39b   : > { %v3769_v16 = vsel %vm3704_vm10, %v3632_v14, %v3737_v15  ;;  %v3978_v17 = vld [vmem:[#allocation3 + $0x49] sm:$0xff] }
 0x39c   : > { %v3881_v18 = vld [vmem:[#allocation3 + $0x48] sm:$0xff]  ;;  %3848 = vst.msk [vmem:[#allocation3 + $0x51] sm:$0xff] %vm3796_vm1, %v3769_v16  ;;  %v4010_v19 = vpack.c.bf16 %v3978_v17, %v3978_v17 }
 0x39d   : > { %v8476_v7 = vpack.c.bf16 %v3881_v18, %v3881_v18 }
 0x39e   : > { %v3634_v21 = vpop.f32.mrf.mxu0  ;;  %4080 = vrot.lane.b32.xlu1 %v4010_v19, %s6877_s8 }
 0x39f   : > { %3946 = vst.msk [vmem:[#allocation4 + $0x18] sm:$0xf] %vm3939_vm6, %v8476_v7  ;;  %v3635_v23 = vadd.f32 %v8390_v38, %v3634_v21 }
 0x3a1   : > { %vm3705_vm11 = vcmp.ge.f32.partialorder %v3635_v23, 0.0  ;;  %v3738_v25 = vmul.f32 %v8398_v40, %v3635_v23 }
 0x3a3   : > { %v3770_v26 = vsel %vm3705_vm11, %v3635_v23, %v3738_v25  ;;  %v3979_v27 = vld [vmem:[#allocation3 + $0x51] sm:$0xff] }
 0x3a4   : > { %v3882_v28 = vld [vmem:[#allocation3 + $0x50] sm:$0xff]  ;;  %3849 = vst.msk [vmem:[#allocation3 + $0x61] sm:$0xff] %vm3796_vm1, %v3770_v26  ;;  %v4011_v29 = vpack.c.bf16 %v3979_v27, %v3979_v27  ;;  %v3664_v31 = vpop.f32.mrf.mxu3 }
 0x3a5   : > { %v8484_v33 = vpack.c.bf16 %v3882_v28, %v3882_v28  ;;  %v3665_v34 = vadd.f32 %v8390_v38, %v3664_v31 }
 0x3a6   : > { %v3636_v35 = vpop.f32.mrf.mxu0  ;;  %4082 = vrot.lane.b32.xlu2 %v4011_v29, %s6877_s8  ;;  %v3876_v29 = vld [vmem:[#allocation3 + $0x8] sm:$0xff] }
 0x3a7   : > { %3947 = vst.msk [vmem:[#allocation4 + $0x1c] sm:$0xf] %vm3939_vm6, %v8484_v33  ;;  %v3637_v36 = vadd.f32 %v8390_v38, %v3636_v35  ;;  %vm3717_vm12 = vcmp.ge.f32.partialorder %v3665_v34, 0.0  ;;  %v3750_v20 = vmul.f32 %v8398_v40, %v3665_v34  ;;  %v3908_v35 = vpack.c.bf16 %v3876_v29, %v3876_v29 }
 0x3a9   : > { %vm3706_vm13 = vcmp.ge.f32.partialorder %v3637_v36, 0.0  ;;  %v3739_v24 = vmul.f32 %v8398_v40, %v3637_v36  ;;  %v3782_v62 = vsel %vm3717_vm12, %v3665_v34, %v3750_v20  ;;  %3941 = vst.msk [vmem:[#allocation4 + $0x4] sm:$0xf] %vm3939_vm6, %v3908_v35 }
 0x3aa   : > { %3861 = vst.msk [vmem:[#allocation3 + $0xf1] sm:$0xff] %vm3796_vm1, %v3782_v62  ;;  %v4071_v62 = vpop.permute.xlu2 %4070 }
 0x3ab   : > { %v3771_v37 = vsel %vm3706_vm13, %v3637_v36, %v3739_v24  ;;  %v3980_v32 = vld [vmem:[#allocation3 + $0x61] sm:$0xff]  ;;  %4166 = vst.msk [vmem:[#allocation4 + $0x4] sm:$0xf] %vm4164_vm9, %v4071_v62 }
 0x3ac   : > { %v3883_v30 = vld [vmem:[#allocation3 + $0x60] sm:$0xff]  ;;  %3850 = vst.msk [vmem:[#allocation3 + $0x69] sm:$0xff] %vm3796_vm1, %v3771_v37  ;;  %v4012_v41 = vpack.c.bf16 %v3980_v32, %v3980_v32  ;;  %v3666_v43 = vpop.f32.mrf.mxu3  ;;  %v3354_v37 = vpop.permute.xlu0 %3353 }
 0x3ad   : > { %v8495_v44 = vpack.c.bf16 %v3883_v30, %v3883_v30  ;;  %v3667_v45 = vadd.f32 %v8390_v38, %v3666_v43  ;;  %3419 = vst.msk [vmem:[#allocation2 + $0x7c] sm:$0xf] %vm3387_vm15, %v3354_v37 }
 0x3ae   : > { %v3639_v46 = vpop.f32.mrf.mxu0  ;;  %4084 = vrot.lane.b32.xlu0 %v4012_v41, %s6877_s8 }
 0x3af   : > { %3948 = vst.msk [vmem:[#allocation4 + $0x20] sm:$0xf] %vm3939_vm6, %v8495_v44  ;;  %v3640_v47 = vadd.f32 %v8390_v38, %v3639_v46  ;;  %vm3718_vm14 = vcmp.ge.f32.partialorder %v3667_v45, 0.0  ;;  %v3751_v49 = vmul.f32 %v8398_v40, %v3667_v45 }
 0x3b1   : > { %vm3707_vm2 = vcmp.ge.f32.partialorder %v3640_v47, 0.0  ;;  %v3740_v51 = vmul.f32 %v8398_v40, %v3640_v47  ;;  %v3783_v52 = vsel %vm3718_vm14, %v3667_v45, %v3751_v49  ;;  %v3895_v53 = vld [vmem:[#allocation3 + $0xf0] sm:$0xff] }
 0x3b2   : > { %3862 = vst.msk [vmem:[#allocation3 + $0xf9] sm:$0xff] %vm3796_vm1, %v3783_v52  ;;  %v8505_v54 = vpack.c.bf16 %v3895_v53, %v3895_v53 }
 0x3b3   : > { %v3772_v39 = vsel %vm3707_vm2, %v3640_v47, %v3740_v51  ;;  %v3981_v55 = vld [vmem:[#allocation3 + $0x69] sm:$0xff] }
 0x3b4   : > { %v3884_v56 = vld [vmem:[#allocation3 + $0x68] sm:$0xff]  ;;  %3851 = vst.msk [vmem:[#allocation3 + $0x79] sm:$0xff] %vm3796_vm1, %v3772_v39  ;;  %v4013_v50 = vpack.c.bf16 %v3981_v55, %v3981_v55  ;;  %v3669_v57 = vpop.f32.mrf.mxu3 }
 0x3b5   : > { %v8508_v48 = vpack.c.bf16 %v3884_v56, %v3884_v56  ;;  %v3670_v58 = vadd.f32 %v8390_v38, %v3669_v57  ;;  %3960 = vst.msk [vmem:[#allocation4 + $0x50] sm:$0xf] %vm3939_vm6, %v8505_v54 }
 0x3b6   : > { %v3641_v60 = vpop.f32.mrf.mxu0  ;;  %4086 = vrot.lane.b32.xlu1 %v4013_v50, %s6877_s8 }
 0x3b7   : > { %3949 = vst.msk [vmem:[#allocation4 + $0x24] sm:$0xf] %vm3939_vm6, %v8508_v48  ;;  %v3642_v22 = vadd.f32 %v8390_v38, %v3641_v60  ;;  %vm3719_vm3 = vcmp.ge.f32.partialorder %v3670_v58, 0.0  ;;  %v3752_v61 = vmul.f32 %v8398_v40, %v3670_v58 }
 0x3b9   : > { %vm3708_vm4 = vcmp.ge.f32.partialorder %v3642_v22, 0.0  ;;  %v3741_v0 = vmul.f32 %v8398_v40, %v3642_v22  ;;  %v3784_v1 = vsel %vm3719_vm3, %v3670_v58, %v3752_v61  ;;  %v3896_v3 = vld [vmem:[#allocation3 + $0xf8] sm:$0xff] }
 0x3ba   : > { %3863 = vst.msk [vmem:[#allocation3 + $0x109] sm:$0xff] %vm3796_vm1, %v3784_v1  ;;  %v8521_v9 = vpack.c.bf16 %v3896_v3, %v3896_v3  ;;  %v3875_v3 = vld [vmem:[#allocation3] sm:$0xff] }
 0x3bb   : > { %v3773_v6 = vsel %vm3708_vm4, %v3642_v22, %v3741_v0  ;;  %v3982_v5 = vld [vmem:[#allocation3 + $0x79] sm:$0xff] }
 0x3bc   : > { %v3885_v8 = vld [vmem:[#allocation3 + $0x78] sm:$0xff]  ;;  %3852 = vst.msk [vmem:[#allocation3 + $0x81] sm:$0xff] %vm3796_vm1, %v3773_v6  ;;  %v4014_v10 = vpack.c.bf16 %v3982_v5, %v3982_v5  ;;  %v3671_v11 = vpop.f32.mrf.mxu3 }
 0x3bd   : > { %v8524_v12 = vpack.c.bf16 %v3885_v8, %v3885_v8  ;;  %v3672_v2 = vadd.f32 %v8390_v38, %v3671_v11  ;;  %3961 = vst.msk [vmem:[#allocation4 + $0x54] sm:$0xf] %vm3939_vm6, %v8521_v9  ;;  %v3907_v8 = vpack.c.bf16 %v3875_v3, %v3875_v3 }
 0x3be   : > { %v3644_v14 = vpop.f32.mrf.mxu0  ;;  %4088 = vrot.lane.b32.xlu2 %v4014_v10, %s6877_s8 }
 0x3bf   : > { %3950 = vst.msk [vmem:[#allocation4 + $0x28] sm:$0xf] %vm3939_vm6, %v8524_v12  ;;  %v3645_v15 = vadd.f32 %v8390_v38, %v3644_v14  ;;  %vm3720_vm5 = vcmp.ge.f32.partialorder %v3672_v2, 0.0  ;;  %v3753_v16 = vmul.f32 %v8398_v40, %v3672_v2  ;;  %v4069_v14 = vpop.permute.xlu1 %4068 }
 0x3c0   : > { %3940 = vst.msk [vmem:[#allocation4] sm:$0xf] %vm3939_vm6, %v3907_v8 }
 0x3c1   : > { %vm3709_vm7 = vcmp.ge.f32.partialorder %v3645_v15, 0.0  ;;  %v3742_v17 = vmul.f32 %v8398_v40, %v3645_v15  ;;  %v3785_v18 = vsel %vm3720_vm5, %v3672_v2, %v3753_v16  ;;  %v3897_v19 = vld [vmem:[#allocation3 + $0x108] sm:$0xff]  ;;  %4165 = vst.msk [vmem:[#allocation4] sm:$0xf] %vm4164_vm9, %v4069_v14 }
 0x3c2   : > { %3864 = vst.msk [vmem:[#allocation3 + $0x111] sm:$0xff] %vm3796_vm1, %v3785_v18  ;;  %v8536_v21 = vpack.c.bf16 %v3897_v19, %v3897_v19 }
 0x3c3   : > { %v3774_v23 = vsel %vm3709_vm7, %v3645_v15, %v3742_v17  ;;  %v3983_v25 = vld [vmem:[#allocation3 + $0x81] sm:$0xff] }
 0x3c4   : > { %v3886_v26 = vld [vmem:[#allocation3 + $0x80] sm:$0xff]  ;;  %3853 = vst.msk [vmem:[#allocation3 + $0x91] sm:$0xff] %vm3796_vm1, %v3774_v23  ;;  %v4015_v27 = vpack.c.bf16 %v3983_v25, %v3983_v25  ;;  %v3674_v28 = vpop.f32.mrf.mxu3 }
 0x3c5   : > { %v8539_v31 = vpack.c.bf16 %v3886_v26, %v3886_v26  ;;  %v3675_v34 = vadd.f32 %v8390_v38, %v3674_v28  ;;  %3962 = vst.msk [vmem:[#allocation4 + $0x58] sm:$0xf] %vm3939_vm6, %v8536_v21 }
 0x3c6   : > { %v3646_v36 = vpop.f32.mrf.mxu0  ;;  %4090 = vrot.lane.b32.xlu0 %v4015_v27, %s6877_s8 }
 0x3c7   : > { %3951 = vst.msk [vmem:[#allocation4 + $0x2c] sm:$0xf] %vm3939_vm6, %v8539_v31  ;;  %v3647_v20 = vadd.f32 %v8390_v38, %v3646_v36  ;;  %vm3721_vm8 = vcmp.ge.f32.partialorder %v3675_v34, 0.0  ;;  %v3754_v24 = vmul.f32 %v8398_v40, %v3675_v34 }
 0x3c9   : > { %vm3710_vm10 = vcmp.ge.f32.partialorder %v3647_v20, 0.0  ;;  %v3743_v32 = vmul.f32 %v8398_v40, %v3647_v20  ;;  %v3786_v30 = vsel %vm3721_vm8, %v3675_v34, %v3754_v24  ;;  %v3898_v41 = vld [vmem:[#allocation3 + $0x110] sm:$0xff] }
 0x3ca   : > { %3865 = vst.msk [vmem:[#allocation3 + $0x121] sm:$0xff] %vm3796_vm1, %v3786_v30  ;;  %v8554_v47 = vpack.c.bf16 %v3898_v41, %v3898_v41 }
 0x3cb   : > { %v3775_v43 = vsel %vm3710_vm10, %v3647_v20, %v3743_v32  ;;  %v3984_v45 = vld [vmem:[#allocation3 + $0x91] sm:$0xff] }
 0x3cc   : > { %v3887_v46 = vld [vmem:[#allocation3 + $0x90] sm:$0xff]  ;;  %3854 = vst.msk [vmem:[#allocation3 + $0x99] sm:$0xff] %vm3796_vm1, %v3775_v43  ;;  %v4016_v49 = vpack.c.bf16 %v3984_v45, %v3984_v45  ;;  %v3676_v51 = vpop.f32.mrf.mxu3 }
 0x3cd   : > { %v8557_v52 = vpack.c.bf16 %v3887_v46, %v3887_v46  ;;  %v3677_v53 = vadd.f32 %v8390_v38, %v3676_v51  ;;  %3963 = vst.msk [vmem:[#allocation4 + $0x5c] sm:$0xf] %vm3939_vm6, %v8554_v47 }
 0x3ce   : > { %v3649_v39 = vpop.f32.mrf.mxu0  ;;  %4092 = vrot.lane.b32.xlu1 %v4016_v49, %s6877_s8 }
 0x3cf   : > { %3952 = vst.msk [vmem:[#allocation4 + $0x30] sm:$0xf] %vm3939_vm6, %v8557_v52  ;;  %v3650_v55 = vadd.f32 %v8390_v38, %v3649_v39  ;;  %vm3722_vm15 = vcmp.ge.f32.partialorder %v3677_v53, 0.0  ;;  %v3755_v56 = vmul.f32 %v8398_v40, %v3677_v53 }
 0x3d1   : > { %vm3711_vm11 = vcmp.ge.f32.partialorder %v3650_v55, 0.0  ;;  %v3744_v50 = vmul.f32 %v8398_v40, %v3650_v55  ;;  %v3787_v57 = vsel %vm3722_vm15, %v3677_v53, %v3755_v56  ;;  %v3899_v58 = vld [vmem:[#allocation3 + $0x120] sm:$0xff] }
 0x3d2   : > { %3866 = vst.msk [vmem:[#allocation3 + $0x129] sm:$0xff] %vm3796_vm1, %v3787_v57  ;;  %v8569_v60 = vpack.c.bf16 %v3899_v58, %v3899_v58 }
 0x3d3   : > { %v3776_v22 = vsel %vm3711_vm11, %v3650_v55, %v3744_v50  ;;  %v3985_v61 = vld [vmem:[#allocation3 + $0x99] sm:$0xff]  ;;  %vm4839_vm11 = vcmask 322816  }
 0x3d4   : > { %v3888_v63 = vld [vmem:[#allocation3 + $0x98] sm:$0xff]  ;;  %3855 = vst.msk [vmem:[#allocation3 + $0xa9] sm:$0xff] %vm3796_vm1, %v3776_v22  ;;  %v4017_v0 = vpack.c.bf16 %v3985_v61, %v3985_v61  ;;  %v3679_v1 = vpop.f32.mrf.mxu3 }
 0x3d5   : > { %v8572_v6 = vpack.c.bf16 %v3888_v63, %v3888_v63  ;;  %v3680_v5 = vadd.f32 %v8390_v38, %v3679_v1  ;;  %3964 = vst.msk [vmem:[#allocation4 + $0x60] sm:$0xf] %vm3939_vm6, %v8569_v60 }
 0x3d6   : > { %v3651_v10 = vpop.f32.mrf.mxu0  ;;  %4094 = vrot.lane.b32.xlu2 %v4017_v0, %s6877_s8 }
 0x3d7   : > { %3953 = vst.msk [vmem:[#allocation4 + $0x34] sm:$0xf] %vm3939_vm6, %v8572_v6  ;;  %v3652_v11 = vadd.f32 %v8390_v38, %v3651_v10  ;;  %vm3723_vm12 = vcmp.ge.f32.partialorder %v3680_v5, 0.0  ;;  %v3756_v2 = vmul.f32 %v8398_v40, %v3680_v5 }
 0x3d9   : > { %vm3712_vm13 = vcmp.ge.f32.partialorder %v3652_v11, 0.0  ;;  %v3745_v15 = vmul.f32 %v8398_v40, %v3652_v11  ;;  %v3788_v16 = vsel %vm3723_vm12, %v3680_v5, %v3756_v2  ;;  %v3900_v17 = vld [vmem:[#allocation3 + $0x128] sm:$0xff]  ;;  %vm5064_vm12 = vcmask 388416  }
 0x3da   : > { %3867 = vst.msk [vmem:[#allocation3 + $0x139] sm:$0xff] %vm3796_vm1, %v3788_v16  ;;  %v8586_v25 = vpack.c.bf16 %v3900_v17, %v3900_v17 }
 0x3db   : > { %v3777_v18 = vsel %vm3712_vm13, %v3652_v11, %v3745_v15  ;;  %v3986_v19 = vld [vmem:[#allocation3 + $0xa9] sm:$0xff]  ;;  %vm5975_vm13 = vcmask 1043456  }
 0x3dc   : > { %v3889_v23 = vld [vmem:[#allocation3 + $0xa8] sm:$0xff]  ;;  %3856 = vst.msk [vmem:[#allocation3 + $0xb1] sm:$0xff] %vm3796_vm1, %v3777_v18  ;;  %v4018_v26 = vpack.c.bf16 %v3986_v19, %v3986_v19  ;;  %v3681_v27 = vpop.f32.mrf.mxu3 }
 0x3dd   : > { %v8589_v28 = vpack.c.bf16 %v3889_v23, %v3889_v23  ;;  %v3682_v29 = vadd.f32 %v8390_v38, %v3681_v27  ;;  %3965 = vst.msk [vmem:[#allocation4 + $0x64] sm:$0xf] %vm3939_vm6, %v8586_v25 }
 0x3de   : > { %v3654_v34 = vpop.f32.mrf.mxu0  ;;  %4096 = vrot.lane.b32.xlu0 %v4018_v26, %s6877_s8 }
 0x3df   : > { %3954 = vst.msk [vmem:[#allocation4 + $0x38] sm:$0xf] %vm3939_vm6, %v8589_v28  ;;  %v3655_v35 = vadd.f32 %v8390_v38, %v3654_v34  ;;  %vm3724_vm14 = vcmp.ge.f32.partialorder %v3682_v29, 0.0  ;;  %v3757_v36 = vmul.f32 %v8398_v40, %v3682_v29 }
 0x3e1   : > { %vm3713_vm2 = vcmp.ge.f32.partialorder %v3655_v35, 0.0  ;;  %v3746_v20 = vmul.f32 %v8398_v40, %v3655_v35  ;;  %v3789_v24 = vsel %vm3724_vm14, %v3682_v29, %v3757_v36  ;;  %v3901_v62 = vld [vmem:[#allocation3 + $0x138] sm:$0xff]  ;;  %vm5290_vm14 = vcmask 454016  }
 0x3e2   : > { %3868 = vst.msk [vmem:[#allocation3 + $0x141] sm:$0xff] %vm3796_vm1, %v3789_v24  ;;  %v8601_v37 = vpack.c.bf16 %v3901_v62, %v3901_v62 }
 0x3e3   : > { %v3778_v32 = vsel %vm3713_vm2, %v3655_v35, %v3746_v20  ;;  %v3987_v30 = vld [vmem:[#allocation3 + $0xb1] sm:$0xff]  ;;  %vm5515_vm2 = vcmask 519616  }
 0x3e4   : > { %3857 = vst.msk [vmem:[#allocation3 + $0xc1] sm:$0xff] %vm3796_vm1, %v3778_v32  ;;  %v4019_v41 = vpack.c.bf16 %v3987_v30, %v3987_v30  ;;  %v3684_v43 = vpop.f32.mrf.mxu3  ;;  %v3890_v45 = vld [vmem:[#allocation3 + $0xb0] sm:$0xff] }
 0x3e5   : > { %v3685_v46 = vadd.f32 %v8390_v38, %v3684_v43  ;;  %v8605_v49 = vpack.c.bf16 %v3890_v45, %v3890_v45  ;;  %3966 = vst.msk [vmem:[#allocation4 + $0x68] sm:$0xf] %vm3939_vm6, %v8601_v37  ;;  %v3992_v32 = vld [vmem:[#allocation3 + $0xf1] sm:$0xff] }
 0x3e6   : > { %v3656_v51 = vpop.f32.mrf.mxu0  ;;  %4098 = vrot.lane.b32.xlu1 %v4019_v41, %s6877_s8 }
 0x3e7   : > { %v3657_v53 = vadd.f32 %v8390_v38, %v3656_v51  ;;  %vm3725_vm3 = vcmp.ge.f32.partialorder %v3685_v46, 0.0  ;;  %v3758_v39 = vmul.f32 %v8398_v40, %v3685_v46  ;;  %3955 = vst.msk [vmem:[#allocation4 + $0x3c] sm:$0xf] %vm3939_vm6, %v8605_v49 }
 0x3e8   : > { %v4077_v55 = vpop.permute.xlu2 %4076 }
 0x3e9   : > { %vm3714_vm4 = vcmp.ge.f32.partialorder %v3657_v53, 0.0  ;;  %v3747_v56 = vmul.f32 %v8398_v40, %v3657_v53  ;;  %4169 = vst.msk [vmem:[#allocation4 + $0x10] sm:$0xf] %vm4164_vm9, %v4077_v55  ;;  %v3790_v50 = vsel %vm3725_vm3, %v3685_v46, %v3758_v39  ;;  %v3902_v57 = vld [vmem:[#allocation3 + $0x140] sm:$0xff]  ;;  %v4024_v39 = vpack.c.bf16 %v3992_v32, %v3992_v32 }
 0x3ea   : > { %3869 = vst.msk [vmem:[#allocation3 + $0x151] sm:$0xff] %vm3796_vm1, %v3790_v50  ;;  %v8617_v63 = vpack.c.bf16 %v3902_v57, %v3902_v57  ;;  %vm5740_vm3 = vcmask 585216  }
 0x3eb   : > { %v3779_v58 = vsel %vm3714_vm4, %v3657_v53, %v3747_v56  ;;  %v3988_v22 = vld [vmem:[#allocation3 + $0xc1] sm:$0xff]  ;;  %vm5926_vm4 = vcmask 588800  }
 0x3ec   : > { %v3891_v61 = vld [vmem:[#allocation3 + $0xc0] sm:$0xff]  ;;  %3858 = vst.msk [vmem:[#allocation3 + $0xc9] sm:$0xff] %vm3796_vm1, %v3779_v58  ;;  %v4020_v0 = vpack.c.bf16 %v3988_v22, %v3988_v22  ;;  %v3686_v1 = vpop.f32.mrf.mxu3 }
 0x3ed   : > { %v8620_v3 = vpack.c.bf16 %v3891_v61, %v3891_v61  ;;  %v3687_v5 = vadd.f32 %v8390_v38, %v3686_v1  ;;  %3967 = vst.msk [vmem:[#allocation4 + $0x6c] sm:$0xf] %vm3939_vm6, %v8617_v63  ;;  %v3993_v22 = vld [vmem:[#allocation3 + $0xf9] sm:$0xff] }
 0x3ee   : > { %v3659_v8 = vpop.f32.mrf.mxu0  ;;  %4100 = vrot.lane.b32.xlu2 %v4020_v0, %s6877_s8 }
 0x3ef   : > { %3956 = vst.msk [vmem:[#allocation4 + $0x40] sm:$0xf] %vm3939_vm6, %v8620_v3  ;;  %v3660_v10 = vadd.f32 %v8390_v38, %v3659_v8  ;;  %vm3726_vm5 = vcmp.ge.f32.partialorder %v3687_v5, 0.0  ;;  %v3759_v11 = vmul.f32 %v8398_v40, %v3687_v5 }
 0x3f0   : > { %v4073_v2 = vpop.permute.xlu0 %4072 }
 0x3f1   : > { %vm3715_vm7 = vcmp.ge.f32.partialorder %v3660_v10, 0.0  ;;  %v3748_v14 = vmul.f32 %v8398_v40, %v3660_v10  ;;  %4167 = vst.msk [vmem:[#allocation4 + $0x8] sm:$0xf] %vm4164_vm9, %v4073_v2  ;;  %v3791_v15 = vsel %vm3726_vm5, %v3687_v5, %v3759_v11  ;;  %v3903_v16 = vld [vmem:[#allocation3 + $0x150] sm:$0xff] }
 0x3f2   : > { %3870 = vst.msk [vmem:[#allocation3 + $0x159] sm:$0xff] %vm3796_vm1, %v3791_v15  ;;  %v8633_v17 = vpack.c.bf16 %v3903_v16, %v3903_v16  ;;  %v3994_v16 = vld [vmem:[#allocation3 + $0x109] sm:$0xff] }
 0x3f3   : > { %v3780_v18 = vsel %vm3715_vm7, %v3660_v10, %v3748_v14  ;;  %v3989_v19 = vld [vmem:[#allocation3 + $0xc9] sm:$0xff]  ;;  %v4025_v10 = vpack.c.bf16 %v3993_v22, %v3993_v22 }
 0x3f4   : > { %3859 = vst.msk [vmem:[#allocation3 + $0xd9] sm:$0xff] %vm3796_vm1, %v3780_v18  ;;  %v4021_v23 = vpack.c.bf16 %v3989_v19, %v3989_v19  ;;  %v3689_v26 = vpop.f32.mrf.mxu3  ;;  %v3892_v27 = vld [vmem:[#allocation3 + $0xc8] sm:$0xff]  ;;  %v6781_v19 = vld [vmem:[#allocation2 + $0x78] sm:$0xff] }
 0x3f5   : > { %v3690_v29 = vadd.f32 %v8390_v38, %v3689_v26  ;;  %v8637_v34 = vpack.c.bf16 %v3892_v27, %v3892_v27  ;;  %3968 = vst.msk [vmem:[#allocation4 + $0x70] sm:$0xf] %vm3939_vm6, %v8633_v17  ;;  %v3996_v18 = vld [vmem:[#allocation3 + $0x121] sm:$0xff]  ;;  %6665 = vmatmul.msk.bf16.gmra.mxu3 %vm3557_vm0, %v6781_v19  ;;  %vm4389_vm0 = vcmask 191616  }
 0x3f6   : > { %v3661_v35 = vpop.f32.mrf.mxu0  ;;  %4102 = vrot.lane.b32.xlu0 %v4021_v23, %s6877_s8  ;;  %v3998_v23 = vld [vmem:[#allocation3 + $0x139] sm:$0xff] }
 0x3f7   : > { %v3662_v36 = vadd.f32 %v8390_v38, %v3661_v35  ;;  %vm3727_vm8 = vcmp.ge.f32.partialorder %v3690_v29, 0.0  ;;  %v3760_v20 = vmul.f32 %v8398_v40, %v3690_v29  ;;  %3957 = vst.msk [vmem:[#allocation4 + $0x44] sm:$0xf] %vm3939_vm6, %v8637_v34  ;;  %v4028_v35 = vpack.c.bf16 %v3996_v18, %v3996_v18 }
 0x3f8   : > { %v4075_v24 = vpop.permute.xlu1 %4074 }
 0x3f9   : > { %vm3716_vm10 = vcmp.ge.f32.partialorder %v3662_v36, 0.0  ;;  %v3749_v62 = vmul.f32 %v8398_v40, %v3662_v36  ;;  %4168 = vst.msk [vmem:[#allocation4 + $0xc] sm:$0xf] %vm4164_vm9, %v4075_v24  ;;  %v3792_v30 = vsel %vm3727_vm8, %v3690_v29, %v3760_v20  ;;  %v3904_v41 = vld [vmem:[#allocation3 + $0x158] sm:$0xff]  ;;  %v8682_v29 = vpack.c.bf16 %v3994_v16, %v3994_v16  ;;  %v3997_v24 = vld [vmem:[#allocation3 + $0x129] sm:$0xff] }
 0x3fa   : > { %3871 = vst.msk [vmem:[#allocation3 + $0x169] sm:$0xff] %vm3796_vm1, %v3792_v30  ;;  %v8649_v51 = vpack.c.bf16 %v3904_v41, %v3904_v41  ;;  %v4001_v32 = vld [vmem:[#allocation3 + $0x159] sm:$0xff]  ;;  %v8691_v30 = vpack.c.bf16 %v3997_v24, %v3997_v24  ;;  %v4203_v16 = vld [vmem:[#allocation3 + $0x4a] sm:$0xff] }
 0x3fb   : > { %v3781_v43 = vsel %vm3716_vm10, %v3662_v36, %v3749_v62  ;;  %v3990_v45 = vld [vmem:[#allocation3 + $0xd9] sm:$0xff]  ;;  %v4030_v36 = vpack.c.bf16 %v3998_v23, %v3998_v23  ;;  %v3999_v62 = vld [vmem:[#allocation3 + $0x141] sm:$0xff]  ;;  %v4235_v23 = vpack.c.bf16 %v4203_v16, %v4203_v16 }
 0x3fc   : > { %v3893_v46 = vld [vmem:[#allocation3 + $0xd8] sm:$0xff]  ;;  %3860 = vst.msk [vmem:[#allocation3 + $0xe1] sm:$0xff] %vm3796_vm1, %v3781_v43  ;;  %v4022_v53 = vpack.c.bf16 %v3990_v45, %v3990_v45  ;;  %v3691_v55 = vpop.f32.mrf.mxu3  ;;  %v4031_v41 = vpack.c.bf16 %v3999_v62, %v3999_v62  ;;  %v4033_v43 = vpack.c.bf16 %v4001_v32, %v4001_v32 }
 0x3fd   : > { %v8652_v56 = vpack.c.bf16 %v3893_v46, %v3893_v46  ;;  %v3692_v50 = vadd.f32 %v8390_v38, %v3691_v55  ;;  %3969 = vst.msk [vmem:[#allocation4 + $0x74] sm:$0xf] %vm3939_vm6, %v8649_v51  ;;  %v3995_v38 = vld [vmem:[#allocation3 + $0x111] sm:$0xff]  ;;  %v4197_v46 = vld [vmem:[#allocation3 + $0x2] sm:$0xff] }
 0x3fe   : > { %4104 = vrot.lane.b32.xlu1 %v4022_v53, %s6877_s8  ;;  %4108 = vrot.lane.b32.xlu0 %v4024_v39, %s6877_s8  ;;  %v4027_v2 = vpack.c.bf16 %v3995_v38, %v3995_v38  ;;  %v4000_v53 = vld [vmem:[#allocation3 + $0x151] sm:$0xff]  ;;  %v4229_v55 = vpack.c.bf16 %v4197_v46, %v4197_v46  ;;  %v4200_v38 = vld [vmem:[#allocation3 + $0x22] sm:$0xff] }
 0x3ff   : > { %3958 = vst.msk [vmem:[#allocation4 + $0x48] sm:$0xf] %vm3939_vm6, %v8652_v56  ;;  %vm3728_vm15 = vcmp.ge.f32.partialorder %v3692_v50, 0.0  ;;  %v3761_v57 = vmul.f32 %v8398_v40, %v3692_v50  ;;  %v4209_v46 = vld [vmem:[#allocation3 + $0x92] sm:$0xff] }
 0x400   : > { %v4083_v58 = vpop.permute.xlu2 %4082 }
 0x401   : > { %4172 = vst.msk [vmem:[#allocation4 + $0x1c] sm:$0xf] %vm4164_vm9, %v4083_v58  ;;  %v3793_v61 = vsel %vm3728_vm15, %v3692_v50, %v3761_v57  ;;  %v3905_v0 = vld [vmem:[#allocation3 + $0x168] sm:$0xff]  ;;  %v8698_v50 = vpack.c.bf16 %v4000_v53, %v4000_v53 }
 0x402   : > { %3872 = vst.msk [vmem:[#allocation3 + $0x171] sm:$0xff] %vm3796_vm1, %v3793_v61  ;;  %v8664_v1 = vpack.c.bf16 %v3905_v0, %v3905_v0  ;;  %v4002_v39 = vld [vmem:[#allocation3 + $0x169] sm:$0xff] }
 0x403   : > { %v3991_v5 = vld [vmem:[#allocation3 + $0xe1] sm:$0xff]  ;;  %v4034_v57 = vpack.c.bf16 %v4002_v39, %v4002_v39  ;;  %v4198_v58 = vld [vmem:[#allocation3 + $0xa] sm:$0xff] }
 0x404   : > { %v8666_v8 = vpack.c.bf16 %v3991_v5, %v3991_v5  ;;  %v3894_v11 = vld [vmem:[#allocation3 + $0xe0] sm:$0xff]  ;;  %3970 = vst.msk [vmem:[#allocation4 + $0x78] sm:$0xf] %vm3939_vm6, %v8664_v1  ;;  %v4230_v0 = vpack.c.bf16 %v4198_v58, %v4198_v58 }
 0x405   : > { %v8670_v14 = vpack.c.bf16 %v3894_v11, %v3894_v11  ;;  %v4210_v58 = vld [vmem:[#allocation3 + $0x9a] sm:$0xff] }
 0x406   : > { %4106 = vrot.lane.b32.xlu2 %v8666_v8, %s6877_s8  ;;  %4110 = vrot.lane.b32.xlu1 %v4025_v10, %s6877_s8  ;;  %v4232_v10 = vpack.c.bf16 %v4200_v38, %v4200_v38  ;;  %v4215_v16 = vld [vmem:[#allocation3 + $0xda] sm:$0xff] }
 0x407   : > { %4114 = vrot.lane.b32.xlu0 %v4027_v2, %s6877_s8  ;;  %3959 = vst.msk [vmem:[#allocation4 + $0x4c] sm:$0xf] %vm3939_vm6, %v8670_v14  ;;  %v4201_v2 = vld [vmem:[#allocation3 + $0x32] sm:$0xff] }
 0x408   : > { %v4079_v15 = vpop.permute.xlu0 %4078  ;;  %v4233_v18 = vpack.c.bf16 %v4201_v2, %v4201_v2  ;;  %v4213_v2 = vld [vmem:[#allocation3 + $0xc2] sm:$0xff] }
 0x409   : > { %4170 = vst.msk [vmem:[#allocation4 + $0x14] sm:$0xf] %vm4164_vm9, %v4079_v15  ;;  %v3906_v26 = vld [vmem:[#allocation3 + $0x170] sm:$0xff]  ;;  %v4199_v15 = vld [vmem:[#allocation3 + $0x1a] sm:$0xff] }
 0x40a   : > { %v8680_v27 = vpack.c.bf16 %v3906_v26, %v3906_v26  ;;  %v4003_v61 = vld [vmem:[#allocation3 + $0x171] sm:$0xff]  ;;  %v8712_v19 = vpack.c.bf16 %v4199_v15, %v4199_v15 }
 0x40b   : > { %v8705_v5 = vpack.c.bf16 %v4003_v61, %v4003_v61  ;;  %v4212_v61 = vld [vmem:[#allocation3 + $0xb2] sm:$0xff]  ;;  %v4211_v15 = vld [vmem:[#allocation3 + $0xaa] sm:$0xff] }
 0x40c   : > { %3971 = vst.msk [vmem:[#allocation4 + $0x7c] sm:$0xf] %vm3939_vm6, %v8680_v27 }
 0x40e   : > { %4112 = vrot.lane.b32.xlu2 %v8682_v29, %s6877_s8  ;;  %4116 = vrot.lane.b32.xlu1 %v4028_v35, %s6877_s8  ;;  %v4204_v35 = vld [vmem:[#allocation3 + $0x52] sm:$0xff] }
 0x40f   : > { %4120 = vrot.lane.b32.xlu0 %v4030_v36, %s6877_s8  ;;  %v4202_v36 = vld [vmem:[#allocation3 + $0x3a] sm:$0xff]  ;;  %v4236_v24 = vpack.c.bf16 %v4204_v35, %v4204_v35 }
 0x410   : > { %v4081_v20 = vpop.permute.xlu1 %4080  ;;  %v8719_v62 = vpack.c.bf16 %v4202_v36, %v4202_v36  ;;  %v4216_v36 = vld [vmem:[#allocation3 + $0xe2] sm:$0xff] }
 0x411   : > { %4171 = vst.msk [vmem:[#allocation4 + $0x18] sm:$0xf] %vm4164_vm9, %v4081_v20  ;;  %v4206_v20 = vld [vmem:[#allocation3 + $0x6a] sm:$0xff] }
 0x412   : > { %v4238_v32 = vpack.c.bf16 %v4206_v20, %v4206_v20  ;;  %v4214_v20 = vld [vmem:[#allocation3 + $0xca] sm:$0xff] }
 0x416   : > { %4118 = vrot.lane.b32.xlu2 %v8691_v30, %s6877_s8  ;;  %4122 = vrot.lane.b32.xlu1 %v4031_v41, %s6877_s8 }
 0x417   : > { %4126 = vrot.lane.b32.xlu0 %v4033_v43, %s6877_s8  ;;  %v4207_v43 = vld [vmem:[#allocation3 + $0x7a] sm:$0xff] }
 0x418   : > { %v4089_v45 = vpop.permute.xlu2 %4088  ;;  %v4239_v53 = vpack.c.bf16 %v4207_v43, %v4207_v43 }
 0x419   : > { %4175 = vst.msk [vmem:[#allocation4 + $0x28] sm:$0xf] %vm4164_vm9, %v4089_v45  ;;  %v4205_v45 = vld [vmem:[#allocation3 + $0x62] sm:$0xff] }
 0x41a   : > { %v8726_v39 = vpack.c.bf16 %v4205_v45, %v4205_v45 }
 0x41e   : > { %4124 = vrot.lane.b32.xlu2 %v8698_v50, %s6877_s8  ;;  %4128 = vrot.lane.b32.xlu1 %v4034_v57, %s6877_s8 }
 0x41f   : > { %4293 = vrot.lane.b32.xlu0 %v4229_v55, %s6879_s10  ;;  %v4241_v55 = vpack.c.bf16 %v4209_v46, %v4209_v46  ;;  %v4219_v46 = vld [vmem:[#allocation3 + $0x10a] sm:$0xff] }
 0x420   : > { %v4085_v22 = vpop.permute.xlu0 %4084 }
 0x421   : > { %4173 = vst.msk [vmem:[#allocation4 + $0x20] sm:$0xf] %vm4164_vm9, %v4085_v22  ;;  %v4208_v22 = vld [vmem:[#allocation3 + $0x82] sm:$0xff] }
 0x422   : > { %v8733_v38 = vpack.c.bf16 %v4208_v22, %v4208_v22 }
 0x426   : > { %4130 = vrot.lane.b32.xlu2 %v8705_v5, %s6877_s8  ;;  %4295 = vrot.lane.b32.xlu1 %v4230_v0, %s6879_s10  ;;  %v4242_v0 = vpack.c.bf16 %v4210_v58, %v4210_v58 }
 0x427   : > { %4299 = vrot.lane.b32.xlu0 %v4232_v10, %s6879_s10  ;;  %v4244_v10 = vpack.c.bf16 %v4212_v61, %v4212_v61 }
 0x428   : > { %v4087_v11 = vpop.permute.xlu1 %4086 }
 0x429   : > { %4174 = vst.msk [vmem:[#allocation4 + $0x24] sm:$0xf] %vm4164_vm9, %v4087_v11 }
 0x42e   : > { %4301 = vrot.lane.b32.xlu1 %v4233_v18, %s6879_s10  ;;  %4297 = vrot.lane.b32.xlu2 %v8712_v19, %s6879_s10  ;;  %v4245_v18 = vpack.c.bf16 %v4213_v2, %v4213_v2 }
 0x42f   : > { %4305 = vrot.lane.b32.xlu0 %v4235_v23, %s6879_s10  ;;  %v8740_v23 = vpack.c.bf16 %v4211_v15, %v4211_v15 }
 0x430   : > { %v4095_v26 = vpop.permute.xlu2 %4094 }
 0x431   : > { %4178 = vst.msk [vmem:[#allocation4 + $0x34] sm:$0xf] %vm4164_vm9, %v4095_v26  ;;  %v4247_v26 = vpack.c.bf16 %v4215_v16, %v4215_v16 }
 0x436   : > { %4307 = vrot.lane.b32.xlu1 %v4236_v24, %s6879_s10  ;;  %4303 = vrot.lane.b32.xlu2 %v8719_v62, %s6879_s10  ;;  %v4218_v24 = vld [vmem:[#allocation3 + $0xfa] sm:$0xff] }
 0x437   : > { %4311 = vrot.lane.b32.xlu0 %v4238_v32, %s6879_s10  ;;  %v4248_v32 = vpack.c.bf16 %v4216_v36, %v4216_v36  ;;  %v4250_v43 = vpack.c.bf16 %v4218_v24, %v4218_v24  ;;  %v4223_v36 = vld [vmem:[#allocation3 + $0x13a] sm:$0xff] }
 0x438   : > { %v4091_v41 = vpop.permute.xlu0 %4090 }
 0x439   : > { %4176 = vst.msk [vmem:[#allocation4 + $0x2c] sm:$0xf] %vm4164_vm9, %v4091_v41  ;;  %v8747_v41 = vpack.c.bf16 %v4214_v20, %v4214_v20  ;;  %v4227_v20 = vld [vmem:[#allocation3 + $0x16a] sm:$0xff] }
 0x43e   : > { %4313 = vrot.lane.b32.xlu1 %v4239_v53, %s6879_s10  ;;  %4309 = vrot.lane.b32.xlu2 %v8726_v39, %s6879_s10  ;;  %v4217_v53 = vld [vmem:[#allocation3 + $0xf2] sm:$0xff] }
 0x43f   : > { %4317 = vrot.lane.b32.xlu0 %v4241_v55, %s6879_s10  ;;  %v4221_v55 = vld [vmem:[#allocation3 + $0x122] sm:$0xff]  ;;  %v8754_v58 = vpack.c.bf16 %v4217_v53, %v4217_v53 }
 0x440   : > { %v4093_v57 = vpop.permute.xlu1 %4092  ;;  %v4253_v22 = vpack.c.bf16 %v4221_v55, %v4221_v55  ;;  %v4228_v55 = vld [vmem:[#allocation3 + $0x172] sm:$0xff] }
 0x441   : > { %4177 = vst.msk [vmem:[#allocation4 + $0x30] sm:$0xf] %vm4164_vm9, %v4093_v57  ;;  %v4251_v57 = vpack.c.bf16 %v4219_v46, %v4219_v46 }
 0x446   : > { %4319 = vrot.lane.b32.xlu1 %v4242_v0, %s6879_s10  ;;  %4315 = vrot.lane.b32.xlu2 %v8733_v38, %s6879_s10  ;;  %v4222_v0 = vld [vmem:[#allocation3 + $0x12a] sm:$0xff] }
 0x447   : > { %4323 = vrot.lane.b32.xlu0 %v4244_v10, %s6879_s10  ;;  %v4220_v10 = vld [vmem:[#allocation3 + $0x112] sm:$0xff]  ;;  %v4254_v2 = vpack.c.bf16 %v4222_v0, %v4222_v0 }
 0x448   : > { %v4101_v11 = vpop.permute.xlu2 %4100  ;;  %v8761_v15 = vpack.c.bf16 %v4220_v10, %v4220_v10 }
 0x449   : > { %4181 = vst.msk [vmem:[#allocation4 + $0x40] sm:$0xf] %vm4164_vm9, %v4101_v11  ;;  %v4224_v11 = vld [vmem:[#allocation3 + $0x142] sm:$0xff] }
 0x44a   : > { %v4256_v16 = vpack.c.bf16 %v4224_v11, %v4224_v11 }
 0x44e   : > { %4325 = vrot.lane.b32.xlu1 %v4245_v18, %s6879_s10  ;;  %4321 = vrot.lane.b32.xlu2 %v8740_v23, %s6879_s10 }
 0x44f   : > { %4329 = vrot.lane.b32.xlu0 %v4247_v26, %s6879_s10 }
 0x450   : > { %v4097_v35 = vpop.permute.xlu0 %4096 }
 0x451   : > { %4179 = vst.msk [vmem:[#allocation4 + $0x38] sm:$0xf] %vm4164_vm9, %v4097_v35  ;;  %v4225_v35 = vld [vmem:[#allocation3 + $0x152] sm:$0xff] }
 0x452   : > { %v4257_v24 = vpack.c.bf16 %v4225_v35, %v4225_v35 }
 0x456   : > { %4331 = vrot.lane.b32.xlu1 %v4248_v32, %s6879_s10  ;;  %4327 = vrot.lane.b32.xlu2 %v8747_v41, %s6879_s10  ;;  %v8769_v32 = vpack.c.bf16 %v4223_v36, %v4223_v36 }
 0x457   : > { %4335 = vrot.lane.b32.xlu0 %v4250_v43, %s6879_s10  ;;  %v4259_v43 = vpack.c.bf16 %v4227_v20, %v4227_v20 }
 0x458   : > { %v4099_v45 = vpop.permute.xlu1 %4098 }
 0x459   : > { %4180 = vst.msk [vmem:[#allocation4 + $0x3c] sm:$0xf] %vm4164_vm9, %v4099_v45 }
 0x45e   : > { %4337 = vrot.lane.b32.xlu1 %v4251_v57, %s6879_s10  ;;  %4333 = vrot.lane.b32.xlu2 %v8754_v58, %s6879_s10  ;;  %v4226_v57 = vld [vmem:[#allocation3 + $0x15a] sm:$0xff] }
 0x45f   : > { %4341 = vrot.lane.b32.xlu0 %v4253_v22, %s6879_s10  ;;  %v4260_v22 = vpack.c.bf16 %v4228_v55, %v4228_v55 }
 0x460   : > { %v4107_v61 = vpop.permute.xlu2 %4106 }
 0x461   : > { %4184 = vst.msk [vmem:[#allocation4 + $0x4c] sm:$0xf] %vm4164_vm9, %v4107_v61  ;;  %v4258_v61 = vpack.c.bf16 %v4226_v57, %v4226_v57  ;;  %v4647_v57 = vld [vmem:[#allocation3 + $0x19] sm:$0xff] }
 0x466   : > { %4343 = vrot.lane.b32.xlu1 %v4254_v2, %s6879_s10  ;;  %4339 = vrot.lane.b32.xlu2 %v8761_v15, %s6879_s10 }
 0x467   : > { %4347 = vrot.lane.b32.xlu0 %v4256_v16, %s6879_s10 }
 0x468   : > { %v4113_v18 = vpop.permute.xlu2 %4112  ;;  %v4103_v26 = vpop.permute.xlu0 %4102 }
 0x469   : > { %4187 = vst.msk [vmem:[#allocation4 + $0x58] sm:$0xf] %vm4164_vm9, %v4113_v18 }
 0x46a   : > { %4182 = vst.msk [vmem:[#allocation4 + $0x44] sm:$0xf] %vm4164_vm9, %v4103_v26 }
 0x46e   : > { %4349 = vrot.lane.b32.xlu1 %v4257_v24, %s6879_s10  ;;  %4345 = vrot.lane.b32.xlu2 %v8769_v32, %s6879_s10 }
 0x46f   : > { %4353 = vrot.lane.b32.xlu0 %v4259_v43, %s6879_s10 }
 0x470   : > { %v4119_v45 = vpop.permute.xlu2 %4118  ;;  %v4105_v46 = vpop.permute.xlu1 %4104 }
 0x471   : > { %4190 = vst.msk [vmem:[#allocation4 + $0x64] sm:$0xf] %vm4164_vm9, %v4119_v45  ;;  %v4109_v53 = vpop.permute.xlu0 %4108 }
 0x472   : > { %4183 = vst.msk [vmem:[#allocation4 + $0x48] sm:$0xf] %vm4164_vm9, %v4105_v46 }
 0x473   : > { %4185 = vst.msk [vmem:[#allocation4 + $0x50] sm:$0xf] %vm4164_vm9, %v4109_v53 }
 0x476   : > { %4355 = vrot.lane.b32.xlu1 %v4260_v22, %s6879_s10  ;;  %4351 = vrot.lane.b32.xlu2 %v4258_v61, %s6879_s10  ;;  %v4649_v61 = vld [vmem:[#allocation3 + $0x31] sm:$0xff] }
 0x477   : > { %4520 = vrot.lane.b32.xlu0 %v8452_v59, %s6881_s12 }
 0x478   : > { %v4125_v0 = vpop.permute.xlu2 %4124  ;;  %v4111_v10 = vpop.permute.xlu1 %4110 }
 0x479   : > { %4193 = vst.msk [vmem:[#allocation4 + $0x70] sm:$0xf] %vm4164_vm9, %v4125_v0  ;;  %v4115_v11 = vpop.permute.xlu0 %4114  ;;  %v4679_v0 = vpack.c.bf16 %v4647_v57, %v4647_v57 }
 0x47a   : > { %4186 = vst.msk [vmem:[#allocation4 + $0x54] sm:$0xf] %vm4164_vm9, %v4111_v10 }
 0x47b   : > { %4188 = vst.msk [vmem:[#allocation4 + $0x5c] sm:$0xf] %vm4164_vm9, %v4115_v11 }
 0x47e   : > { %4522 = vrot.lane.b32.xlu1 %v8460_v4, %s6881_s12  ;;  %4518 = vrot.lane.b32.xlu2 %v8439_v42, %s6881_s12 }
 0x47f   : > { %4526 = vrot.lane.b32.xlu0 %v8476_v7, %s6881_s12 }
 0x480   : > { %v4131_v2 = vpop.permute.xlu2 %4130  ;;  %v4117_v59 = vpop.permute.xlu1 %4116 }
 0x481   : > { %4196 = vst.msk [vmem:[#allocation4 + $0x7c] sm:$0xf] %vm4164_vm9, %v4131_v2  ;;  %v4121_v16 = vpop.permute.xlu0 %4120 }
 0x482   : > { %4189 = vst.msk [vmem:[#allocation4 + $0x60] sm:$0xf] %vm4164_vm9, %v4117_v59  ;;  %v4650_v59 = vld [vmem:[#allocation3 + $0x39] sm:$0xff] }
 0x483   : > { %4191 = vst.msk [vmem:[#allocation4 + $0x68] sm:$0xf] %vm4164_vm9, %v4121_v16  ;;  %v4648_v16 = vld [vmem:[#allocation3 + $0x21] sm:$0xff] }
 0x486   : > { %4528 = vrot.lane.b32.xlu1 %v8484_v33, %s6881_s12  ;;  %4524 = vrot.lane.b32.xlu2 %v8468_v13, %s6881_s12  ;;  %v3694_v13 = vpop.f32.mrf.mxu3  ;;  %v6847_v33 = vld [vmem:[%s9514_s2] ss:$0 sm:$0xff] }
 0x487   : > { %4532 = vrot.lane.b32.xlu0 %v8508_v48, %s6881_s12  ;;  %v3695_v48 = vadd.f32 %v6847_v33, %v3694_v13 }
 0x488   : > { %v4123_v42 = vpop.permute.xlu1 %4122  ;;  %v4298_v4 = vpop.permute.xlu2 %4297 }
 0x489   : > { %4192 = vst.msk [vmem:[#allocation4 + $0x6c] sm:$0xf] %vm4164_vm9, %v4123_v42  ;;  %v4127_v7 = vpop.permute.xlu0 %4126  ;;  %vm3729_vm6 = vcmp.ge.f32.partialorder %v3695_v48, 0.0  ;;  %v4652_v42 = vld [vmem:[#allocation3 + $0x51] sm:$0xff] }
 0x48a   : > { %4392 = vst.msk [vmem:[#allocation4 + $0x8] sm:$0xf] %vm4389_vm0, %v4298_v4  ;;  %v8890_v4 = vpack.c.bf16 %v4650_v59, %v4650_v59  ;;  %v8892_v13 = vpack.c.bf16 %v4652_v42, %v4652_v42  ;;  %v4666_v42 = vld [vmem:[#allocation3 + $0xf9] sm:$0xff] }
 0x48b   : > { %4194 = vst.msk [vmem:[#allocation4 + $0x74] sm:$0xf] %vm4164_vm9, %v4127_v7  ;;  %v4680_v7 = vpack.c.bf16 %v4648_v16, %v4648_v16  ;;  %v4668_v16 = vld [vmem:[#allocation3 + $0x111] sm:$0xff] }
 0x48e   : > { %4534 = vrot.lane.b32.xlu1 %v8524_v12, %s6881_s12  ;;  %4530 = vrot.lane.b32.xlu2 %v8495_v44, %s6881_s12  ;;  %v3762_v12 = vmul.f32 %v8398_v40, %v3695_v48 }
 0x48f   : > { %4538 = vrot.lane.b32.xlu0 %v8557_v52, %s6881_s12  ;;  %v3696_v52 = vpop.f32.mrf.mxu3 }
 0x490   : > { %v4129_v18 = vpop.permute.xlu1 %4128  ;;  %v4304_v26 = vpop.permute.xlu2 %4303  ;;  %v3794_v44 = vsel %vm3729_vm6, %v3695_v48, %v3762_v12  ;;  %v3697_v36 = vadd.f32 %v6847_v33, %v3696_v52  ;;  %v4655_v12 = vld [vmem:[#allocation3 + $0x79] sm:$0xff] }
 0x491   : > { %4195 = vst.msk [vmem:[#allocation4 + $0x78] sm:$0xf] %vm4164_vm9, %v4129_v18  ;;  %v4294_v35 = vpop.permute.xlu0 %4293 }
 0x492   : > { %4395 = vst.msk [vmem:[#allocation4 + $0x14] sm:$0xf] %vm4389_vm0, %v4304_v26  ;;  %vm3730_vm9 = vcmp.ge.f32.partialorder %v3697_v36, 0.0  ;;  %v3763_v45 = vmul.f32 %v8398_v40, %v3697_v36  ;;  %v4653_v26 = vld [vmem:[#allocation3 + $0x61] sm:$0xff] }
 0x493   : > { %4390 = vst.msk [vmem:[#allocation4] sm:$0xf] %vm4389_vm0, %v4294_v35  ;;  %v4651_v35 = vld [vmem:[#allocation3 + $0x49] sm:$0xff] }
 0x494   : > { %3873 = vst.msk [vmem:[#allocation3 + $0x181] sm:$0xff] %vm3796_vm1, %v3794_v44  ;;  %v8902_v44 = vpack.c.bf16 %v4653_v26, %v4653_v26  ;;  %v8904_v52 = vpack.c.bf16 %v4651_v35, %v4651_v35  ;;  %v4671_v26 = vld [vmem:[#allocation3 + $0x139] sm:$0xff]  ;;  %v4669_v35 = vld [vmem:[#allocation3 + $0x121] sm:$0xff] }
 0x496   : > { %4540 = vrot.lane.b32.xlu1 %v8572_v6, %s6881_s12  ;;  %4536 = vrot.lane.b32.xlu2 %v8539_v31, %s6881_s12  ;;  %v3795_v6 = vsel %vm3730_vm9, %v3697_v36, %v3763_v45  ;;  %v8906_v36 = vpack.c.bf16 %v4655_v12, %v4655_v12  ;;  %v4656_v45 = vld [vmem:[#allocation3 + $0x81] sm:$0xff]  ;;  %v8965_v12 = vpack.c.bf16 %v4671_v26, %v4671_v26 }
 0x497   : > { %4544 = vrot.lane.b32.xlu0 %v8605_v49, %s6881_s12  ;;  %3874 = vst.msk [vmem:[#allocation3 + $0x189] sm:$0xff] %vm3796_vm1, %v3795_v6  ;;  %vm4614_vm1 = vcmask 257216   ;;  %v4654_v6 = vld [vmem:[#allocation3 + $0x69] sm:$0xff] }
 0x498   : > { %v4296_v20 = vpop.permute.xlu1 %4295  ;;  %v4310_v24 = vpop.permute.xlu2 %4309 }
 0x499   : > { %4391 = vst.msk [vmem:[#allocation4 + $0x4] sm:$0xf] %vm4389_vm0, %v4296_v20  ;;  %v4300_v43 = vpop.permute.xlu0 %4299 }
 0x49a   : > { %4398 = vst.msk [vmem:[#allocation4 + $0x20] sm:$0xf] %vm4389_vm0, %v4310_v24 }
 0x49b   : > { %4393 = vst.msk [vmem:[#allocation4 + $0xc] sm:$0xf] %vm4389_vm0, %v4300_v43  ;;  %v4452_v22 = vld [vmem:[#allocation3 + $0x180] sm:$0xff] }
 0x49c   : > { %v4484_v10 = vpack.c.bf16 %v4452_v22, %v4452_v22 }
 0x49e   : > { %4546 = vrot.lane.b32.xlu1 %v8620_v3, %s6881_s12  ;;  %4542 = vrot.lane.b32.xlu2 %v8589_v28, %s6881_s12  ;;  %v4453_v53 = vld [vmem:[#allocation3 + $0x188] sm:$0xff] }
 0x49f   : > { %4550 = vrot.lane.b32.xlu0 %v8652_v56, %s6881_s12  ;;  %v4485_v55 = vpack.c.bf16 %v4453_v53, %v4453_v53 }
 0x4a0   : > { %v4302_v31 = vpop.permute.xlu1 %4301  ;;  %v4316_v49 = vpop.permute.xlu2 %4315 }
 0x4a1   : > { %4394 = vst.msk [vmem:[#allocation4 + $0x10] sm:$0xf] %vm4389_vm0, %v4302_v31  ;;  %v4306_v40 = vpop.permute.xlu0 %4305  ;;  %v4658_v31 = vld [vmem:[#allocation3 + $0x99] sm:$0xff] }
 0x4a2   : > { %4401 = vst.msk [vmem:[#allocation4 + $0x2c] sm:$0xf] %vm4389_vm0, %v4316_v49  ;;  %v8917_v49 = vpack.c.bf16 %v4656_v45, %v4656_v45  ;;  %v4674_v45 = vld [vmem:[#allocation3 + $0x159] sm:$0xff] }
 0x4a3   : > { %4396 = vst.msk [vmem:[#allocation4 + $0x18] sm:$0xf] %vm4389_vm0, %v4306_v40  ;;  %v8919_v40 = vpack.c.bf16 %v4654_v6, %v4654_v6  ;;  %v4672_v6 = vld [vmem:[#allocation3 + $0x141] sm:$0xff] }
 0x4a6   : > { %4552 = vrot.lane.b32.xlu1 %v8670_v14, %s6881_s12  ;;  %4548 = vrot.lane.b32.xlu2 %v8637_v34, %s6881_s12 }
 0x4a7   : > { %4556 = vrot.lane.b32.xlu0 %v8521_v9, %s6881_s12 }
 0x4a8   : > { %v4308_v28 = vpop.permute.xlu1 %4307  ;;  %v4322_v3 = vpop.permute.xlu2 %4321 }
 0x4a9   : > { %4397 = vst.msk [vmem:[#allocation4 + $0x1c] sm:$0xf] %vm4389_vm0, %v4308_v28  ;;  %v4312_v56 = vpop.permute.xlu0 %4311  ;;  %v4690_v28 = vpack.c.bf16 %v4658_v31, %v4658_v31  ;;  %v8978_v31 = vpack.c.bf16 %v4674_v45, %v4674_v45 }
 0x4aa   : > { %4404 = vst.msk [vmem:[#allocation4 + $0x38] sm:$0xf] %vm4389_vm0, %v4322_v3 }
 0x4ab   : > { %4399 = vst.msk [vmem:[#allocation4 + $0x24] sm:$0xf] %vm4389_vm0, %v4312_v56 }
 0x4ae   : > { %4558 = vrot.lane.b32.xlu1 %v8536_v21, %s6881_s12  ;;  %4554 = vrot.lane.b32.xlu2 %v8505_v54, %s6881_s12 }
 0x4af   : > { %4562 = vrot.lane.b32.xlu0 %v8569_v60, %s6881_s12 }
 0x4b0   : > { %v4314_v34 = vpop.permute.xlu1 %4313  ;;  %v4328_v14 = vpop.permute.xlu2 %4327 }
 0x4b1   : > { %4400 = vst.msk [vmem:[#allocation4 + $0x28] sm:$0xf] %vm4389_vm0, %v4314_v34  ;;  %v4318_v46 = vpop.permute.xlu0 %4317 }
 0x4b2   : > { %4407 = vst.msk [vmem:[#allocation4 + $0x44] sm:$0xf] %vm4389_vm0, %v4328_v14  ;;  %v4659_v14 = vld [vmem:[#allocation3 + $0xa9] sm:$0xff] }
 0x4b3   : > { %4402 = vst.msk [vmem:[#allocation4 + $0x30] sm:$0xf] %vm4389_vm0, %v4318_v46  ;;  %v4657_v46 = vld [vmem:[#allocation3 + $0x91] sm:$0xff] }
 0x4b6   : > { %4564 = vrot.lane.b32.xlu1 %v8586_v25, %s6881_s12  ;;  %4560 = vrot.lane.b32.xlu2 %v8554_v47, %s6881_s12 }
 0x4b7   : > { %4568 = vrot.lane.b32.xlu0 %v8617_v63, %s6881_s12 }
 0x4b8   : > { %v4320_v54 = vpop.permute.xlu1 %4319  ;;  %v4334_v21 = vpop.permute.xlu2 %4333 }
 0x4b9   : > { %4403 = vst.msk [vmem:[#allocation4 + $0x34] sm:$0xf] %vm4389_vm0, %v4320_v54  ;;  %v4324_v60 = vpop.permute.xlu0 %4323  ;;  %v4661_v54 = vld [vmem:[#allocation3 + $0xc1] sm:$0xff] }
 0x4ba   : > { %4410 = vst.msk [vmem:[#allocation4 + $0x50] sm:$0xf] %vm4389_vm0, %v4334_v21  ;;  %v4691_v21 = vpack.c.bf16 %v4659_v14, %v4659_v14  ;;  %v4675_v14 = vld [vmem:[#allocation3 + $0x169] sm:$0xff] }
 0x4bb   : > { %4405 = vst.msk [vmem:[#allocation4 + $0x3c] sm:$0xf] %vm4389_vm0, %v4324_v60  ;;  %v4689_v60 = vpack.c.bf16 %v4657_v46, %v4657_v46 }
 0x4be   : > { %4570 = vrot.lane.b32.xlu1 %v8633_v17, %s6881_s12  ;;  %4566 = vrot.lane.b32.xlu2 %v8601_v37, %s6881_s12 }
 0x4bf   : > { %4574 = vrot.lane.b32.xlu0 %v8664_v1, %s6881_s12 }
 0x4c0   : > { %v4326_v47 = vpop.permute.xlu1 %4325  ;;  %v4340_v25 = vpop.permute.xlu2 %4339 }
 0x4c1   : > { %4406 = vst.msk [vmem:[#allocation4 + $0x40] sm:$0xf] %vm4389_vm0, %v4326_v47  ;;  %v4330_v63 = vpop.permute.xlu0 %4329  ;;  %v4693_v47 = vpack.c.bf16 %v4661_v54, %v4661_v54  ;;  %v8991_v54 = vpack.c.bf16 %v4675_v14, %v4675_v14 }
 0x4c2   : > { %4413 = vst.msk [vmem:[#allocation4 + $0x5c] sm:$0xf] %vm4389_vm0, %v4340_v25 }
 0x4c3   : > { %4408 = vst.msk [vmem:[#allocation4 + $0x48] sm:$0xf] %vm4389_vm0, %v4330_v63 }
 0x4c6   : > { %4576 = vrot.lane.b32.xlu1 %v8680_v27, %s6881_s12  ;;  %4572 = vrot.lane.b32.xlu2 %v8649_v51, %s6881_s12  ;;  %v8881_v27 = vpack.c.bf16 %v4649_v61, %v4649_v61 }
 0x4c7   : > { %4580 = vrot.lane.b32.xlu0 %v4485_v55, %s6881_s12  ;;  %v4662_v55 = vld [vmem:[#allocation3 + $0xc9] sm:$0xff] }
 0x4c8   : > { %v4332_v37 = vpop.permute.xlu1 %4331  ;;  %v4346_v17 = vpop.permute.xlu2 %4345 }
 0x4c9   : > { %4409 = vst.msk [vmem:[#allocation4 + $0x4c] sm:$0xf] %vm4389_vm0, %v4332_v37  ;;  %v4336_v1 = vpop.permute.xlu0 %4335  ;;  %v4660_v37 = vld [vmem:[#allocation3 + $0xb1] sm:$0xff] }
 0x4ca   : > { %4416 = vst.msk [vmem:[#allocation4 + $0x68] sm:$0xf] %vm4389_vm0, %v4346_v17  ;;  %v4694_v17 = vpack.c.bf16 %v4662_v55, %v4662_v55 }
 0x4cb   : > { %4411 = vst.msk [vmem:[#allocation4 + $0x54] sm:$0xf] %vm4389_vm0, %v4336_v1  ;;  %v4692_v1 = vpack.c.bf16 %v4660_v37, %v4660_v37 }
 0x4ce   : > { %4743 = vrot.lane.b32.xlu1 %v4679_v0, %s6883_s14  ;;  %4578 = vrot.lane.b32.xlu2 %v4484_v10, %s6881_s12  ;;  %v4665_v0 = vld [vmem:[#allocation3 + $0xf1] sm:$0xff]  ;;  %v4663_v10 = vld [vmem:[#allocation3 + $0xd9] sm:$0xff] }
 0x4cf   : > { %4747 = vrot.lane.b32.xlu0 %v8881_v27, %s6883_s14 }
 0x4d0   : > { %v4338_v51 = vpop.permute.xlu1 %4337  ;;  %v4352_v11 = vpop.permute.xlu2 %4351 }
 0x4d1   : > { %4412 = vst.msk [vmem:[#allocation4 + $0x58] sm:$0xf] %vm4389_vm0, %v4338_v51  ;;  %v4342_v2 = vpop.permute.xlu0 %4341  ;;  %v8942_v51 = vpack.c.bf16 %v4665_v0, %v4665_v0 }
 0x4d2   : > { %4419 = vst.msk [vmem:[#allocation4 + $0x74] sm:$0xf] %vm4389_vm0, %v4352_v11  ;;  %v4695_v11 = vpack.c.bf16 %v4663_v10, %v4663_v10  ;;  %v4879_v10 = vld [vmem:[#allocation3 + $0x6a] sm:$0xff] }
 0x4d3   : > { %4414 = vst.msk [vmem:[#allocation4 + $0x60] sm:$0xf] %vm4389_vm0, %v4342_v2 }
 0x4d6   : > { %4749 = vrot.lane.b32.xlu1 %v8890_v4, %s6883_s14  ;;  %4745 = vrot.lane.b32.xlu2 %v4680_v7, %s6883_s14  ;;  %v8952_v7 = vpack.c.bf16 %v4668_v16, %v4668_v16 }
 0x4d7   : > { %4753 = vrot.lane.b32.xlu0 %v8892_v13, %s6883_s14 }
 0x4d8   : > { %v4344_v33 = vpop.permute.xlu1 %4343  ;;  %v4519_v48 = vpop.permute.xlu2 %4518 }
 0x4d9   : > { %4415 = vst.msk [vmem:[#allocation4 + $0x64] sm:$0xf] %vm4389_vm0, %v4344_v33  ;;  %v4348_v18 = vpop.permute.xlu0 %4347  ;;  %v8954_v33 = vpack.c.bf16 %v4666_v42, %v4666_v42  ;;  %v4882_v42 = vld [vmem:[#allocation3 + $0x92] sm:$0xff] }
 0x4da   : > { %4615 = vst.msk [vmem:[#allocation4] sm:$0xf] %vm4614_vm1, %v4519_v48 }
 0x4db   : > { %4417 = vst.msk [vmem:[#allocation4 + $0x6c] sm:$0xf] %vm4389_vm0, %v4348_v18 }
 0x4de   : > { %4755 = vrot.lane.b32.xlu1 %v8902_v44, %s6883_s14  ;;  %4751 = vrot.lane.b32.xlu2 %v8904_v52, %s6883_s14 }
 0x4df   : > { %4759 = vrot.lane.b32.xlu0 %v8906_v36, %s6883_s14 }
 0x4e0   : > { %v4350_v20 = vpop.permute.xlu1 %4349  ;;  %v4525_v24 = vpop.permute.xlu2 %4524 }
 0x4e1   : > { %4418 = vst.msk [vmem:[#allocation4 + $0x70] sm:$0xf] %vm4389_vm0, %v4350_v20  ;;  %v4354_v43 = vpop.permute.xlu0 %4353  ;;  %v8967_v20 = vpack.c.bf16 %v4669_v35, %v4669_v35 }
 0x4e2   : > { %4618 = vst.msk [vmem:[#allocation4 + $0xc] sm:$0xf] %vm4614_vm1, %v4525_v24 }
 0x4e3   : > { %4420 = vst.msk [vmem:[#allocation4 + $0x78] sm:$0xf] %vm4389_vm0, %v4354_v43 }
 0x4e6   : > { %4761 = vrot.lane.b32.xlu1 %v8917_v49, %s6883_s14  ;;  %4757 = vrot.lane.b32.xlu2 %v8919_v40, %s6883_s14 }
 0x4e7   : > { %4765 = vrot.lane.b32.xlu0 %v4690_v28, %s6883_s14  ;;  %v8980_v28 = vpack.c.bf16 %v4672_v6, %v4672_v6 }
 0x4e8   : > { %v4356_v3 = vpop.permute.xlu1 %4355  ;;  %v4531_v56 = vpop.permute.xlu2 %4530 }
 0x4e9   : > { %4421 = vst.msk [vmem:[#allocation4 + $0x7c] sm:$0xf] %vm4389_vm0, %v4356_v3  ;;  %v4521_v34 = vpop.permute.xlu0 %4520 }
 0x4ea   : > { %4621 = vst.msk [vmem:[#allocation4 + $0x18] sm:$0xf] %vm4614_vm1, %v4531_v56 }
 0x4eb   : > { %4616 = vst.msk [vmem:[#allocation4 + $0x4] sm:$0xf] %vm4614_vm1, %v4521_v34  ;;  %v4677_v34 = vld [vmem:[#allocation3 + $0x181] sm:$0xff] }
 0x4ec   : > { %v4709_v46 = vpack.c.bf16 %v4677_v34, %v4677_v34 }
 0x4ee   : > { %4767 = vrot.lane.b32.xlu1 %v4691_v21, %s6883_s14  ;;  %4763 = vrot.lane.b32.xlu2 %v4689_v60, %s6883_s14 }
 0x4ef   : > { %4771 = vrot.lane.b32.xlu0 %v4693_v47, %s6883_s14  ;;  %v4873_v47 = vld [vmem:[#allocation3 + $0x22] sm:$0xff] }
 0x4f0   : > { %v4523_v25 = vpop.permute.xlu1 %4522  ;;  %v4537_v63 = vpop.permute.xlu2 %4536 }
 0x4f1   : > { %4617 = vst.msk [vmem:[#allocation4 + $0x8] sm:$0xf] %vm4614_vm1, %v4523_v25  ;;  %v4527_v53 = vpop.permute.xlu0 %4526  ;;  %v4678_v25 = vld [vmem:[#allocation3 + $0x189] sm:$0xff] }
 0x4f2   : > { %4624 = vst.msk [vmem:[#allocation4 + $0x24] sm:$0xf] %vm4614_vm1, %v4537_v63  ;;  %v4905_v63 = vpack.c.bf16 %v4873_v47, %v4873_v47 }
 0x4f3   : > { %4619 = vst.msk [vmem:[#allocation4 + $0x10] sm:$0xf] %vm4614_vm1, %v4527_v53  ;;  %v4710_v53 = vpack.c.bf16 %v4678_v25, %v4678_v25 }
 0x4f6   : > { %4773 = vrot.lane.b32.xlu1 %v4694_v17, %s6883_s14  ;;  %4769 = vrot.lane.b32.xlu2 %v4692_v1, %s6883_s14  ;;  %v4876_v17 = vld [vmem:[#allocation3 + $0x4a] sm:$0xff]  ;;  %v4874_v1 = vld [vmem:[#allocation3 + $0x32] sm:$0xff] }
 0x4f7   : > { %4777 = vrot.lane.b32.xlu0 %v8666_v8, %s6883_s14 }
 0x4f8   : > { %v4529_v57 = vpop.permute.xlu1 %4528  ;;  %v4543_v22 = vpop.permute.xlu2 %4542 }
 0x4f9   : > { %4620 = vst.msk [vmem:[#allocation4 + $0x14] sm:$0xf] %vm4614_vm1, %v4529_v57  ;;  %v4533_v61 = vpop.permute.xlu0 %4532  ;;  %v9008_v57 = vpack.c.bf16 %v4876_v17, %v4876_v17 }
 0x4fa   : > { %4627 = vst.msk [vmem:[#allocation4 + $0x30] sm:$0xf] %vm4614_vm1, %v4543_v22  ;;  %v9010_v22 = vpack.c.bf16 %v4874_v1, %v4874_v1 }
 0x4fb   : > { %4622 = vst.msk [vmem:[#allocation4 + $0x1c] sm:$0xf] %vm4614_vm1, %v4533_v61 }
 0x4fe   : > { %4779 = vrot.lane.b32.xlu1 %v8942_v51, %s6883_s14  ;;  %4775 = vrot.lane.b32.xlu2 %v4695_v11, %s6883_s14  ;;  %v4877_v11 = vld [vmem:[#allocation3 + $0x52] sm:$0xff] }
 0x4ff   : > { %4783 = vrot.lane.b32.xlu0 %v8682_v29, %s6883_s14 }
 0x500   : > { %v4535_v8 = vpop.permute.xlu1 %4534  ;;  %v4549_v2 = vpop.permute.xlu2 %4548 }
 0x501   : > { %4623 = vst.msk [vmem:[#allocation4 + $0x20] sm:$0xf] %vm4614_vm1, %v4535_v8  ;;  %v4539_v59 = vpop.permute.xlu0 %4538  ;;  %v9021_v8 = vpack.c.bf16 %v4879_v10, %v4879_v10 }
 0x502   : > { %4630 = vst.msk [vmem:[#allocation4 + $0x3c] sm:$0xf] %vm4614_vm1, %v4549_v2  ;;  %v9023_v2 = vpack.c.bf16 %v4877_v11, %v4877_v11 }
 0x503   : > { %4625 = vst.msk [vmem:[#allocation4 + $0x28] sm:$0xf] %vm4614_vm1, %v4539_v59 }
 0x506   : > { %4785 = vrot.lane.b32.xlu1 %v8952_v7, %s6883_s14  ;;  %4781 = vrot.lane.b32.xlu2 %v8954_v33, %s6883_s14 }
 0x507   : > { %4789 = vrot.lane.b32.xlu0 %v8691_v30, %s6883_s14 }
 0x508   : > { %v4541_v29 = vpop.permute.xlu1 %4540  ;;  %v4555_v48 = vpop.permute.xlu2 %4554 }
 0x509   : > { %4626 = vst.msk [vmem:[#allocation4 + $0x2c] sm:$0xf] %vm4614_vm1, %v4541_v29  ;;  %v4545_v18 = vpop.permute.xlu0 %4544  ;;  %v4880_v29 = vld [vmem:[#allocation3 + $0x7a] sm:$0xff] }
 0x50a   : > { %4633 = vst.msk [vmem:[#allocation4 + $0x48] sm:$0xf] %vm4614_vm1, %v4555_v48  ;;  %v9034_v48 = vpack.c.bf16 %v4882_v42, %v4882_v42  ;;  %v5564_v42 = vld [vmem:[#allocation3 + $0xf2] sm:$0xff] }
 0x50b   : > { %4628 = vst.msk [vmem:[#allocation4 + $0x34] sm:$0xf] %vm4614_vm1, %v4545_v18  ;;  %v9036_v18 = vpack.c.bf16 %v4880_v29, %v4880_v29 }
 0x50e   : > { %4791 = vrot.lane.b32.xlu1 %v8965_v12, %s6883_s14  ;;  %4787 = vrot.lane.b32.xlu2 %v8967_v20, %s6883_s14 }
 0x50f   : > { %4795 = vrot.lane.b32.xlu0 %v8698_v50, %s6883_s14 }
 0x510   : > { %v4547_v30 = vpop.permute.xlu1 %4546  ;;  %v4561_v24 = vpop.permute.xlu2 %4560 }
 0x511   : > { %4629 = vst.msk [vmem:[#allocation4 + $0x38] sm:$0xf] %vm4614_vm1, %v4547_v30  ;;  %v4551_v43 = vpop.permute.xlu0 %4550  ;;  %v4885_v30 = vld [vmem:[#allocation3 + $0xb2] sm:$0xff] }
 0x512   : > { %4636 = vst.msk [vmem:[#allocation4 + $0x54] sm:$0xf] %vm4614_vm1, %v4561_v24  ;;  %v4883_v24 = vld [vmem:[#allocation3 + $0x9a] sm:$0xff] }
 0x513   : > { %4631 = vst.msk [vmem:[#allocation4 + $0x40] sm:$0xf] %vm4614_vm1, %v4551_v43  ;;  %v9047_v43 = vpack.c.bf16 %v4885_v30, %v4885_v30  ;;  %v9049_v45 = vpack.c.bf16 %v4883_v24, %v4883_v24  ;;  %v5099_v30 = vld [vmem:[#allocation3 + $0x38] sm:$0xff] }
 0x514   : > { %v5131_v24 = vpack.c.bf16 %v5099_v30, %v5099_v30  ;;  %v5103_v30 = vld [vmem:[#allocation3 + $0x68] sm:$0xff] }
 0x516   : > { %4797 = vrot.lane.b32.xlu1 %v8978_v31, %s6883_s14  ;;  %4793 = vrot.lane.b32.xlu2 %v8980_v28, %s6883_s14 }
 0x517   : > { %4801 = vrot.lane.b32.xlu0 %v8705_v5, %s6883_s14 }
 0x518   : > { %v4553_v50 = vpop.permute.xlu1 %4552  ;;  %v4567_v3 = vpop.permute.xlu2 %4566 }
 0x519   : > { %4632 = vst.msk [vmem:[#allocation4 + $0x44] sm:$0xf] %vm4614_vm1, %v4553_v50  ;;  %v4557_v56 = vpop.permute.xlu0 %4556 }
 0x51a   : > { %4639 = vst.msk [vmem:[#allocation4 + $0x60] sm:$0xf] %vm4614_vm1, %v4567_v3  ;;  %v4888_v3 = vld [vmem:[#allocation3 + $0xda] sm:$0xff] }
 0x51b   : > { %4634 = vst.msk [vmem:[#allocation4 + $0x4c] sm:$0xf] %vm4614_vm1, %v4557_v56  ;;  %v4886_v56 = vld [vmem:[#allocation3 + $0xc2] sm:$0xff]  ;;  %v4920_v34 = vpack.c.bf16 %v4888_v3, %v4888_v3 }
 0x51c   : > { %v4918_v14 = vpack.c.bf16 %v4886_v56, %v4886_v56 }
 0x51e   : > { %4803 = vrot.lane.b32.xlu1 %v4709_v46, %s6883_s14  ;;  %4799 = vrot.lane.b32.xlu2 %v8991_v54, %s6883_s14 }
 0x51f   : > { %4968 = vrot.lane.b32.xlu0 %v8712_v19, %s6885_s28 }
 0x520   : > { %v4559_v5 = vpop.permute.xlu1 %4558  ;;  %v4573_v21 = vpop.permute.xlu2 %4572 }
 0x521   : > { %4635 = vst.msk [vmem:[#allocation4 + $0x50] sm:$0xf] %vm4614_vm1, %v4559_v5  ;;  %v4563_v60 = vpop.permute.xlu0 %4562 }
 0x522   : > { %4642 = vst.msk [vmem:[#allocation4 + $0x6c] sm:$0xf] %vm4614_vm1, %v4573_v21  ;;  %v4891_v21 = vld [vmem:[#allocation3 + $0xfa] sm:$0xff] }
 0x523   : > { %4637 = vst.msk [vmem:[#allocation4 + $0x58] sm:$0xf] %vm4614_vm1, %v4563_v60  ;;  %v4889_v60 = vld [vmem:[#allocation3 + $0xe2] sm:$0xff]  ;;  %v4923_v47 = vpack.c.bf16 %v4891_v21, %v4891_v21 }
 0x524   : > { %v4921_v25 = vpack.c.bf16 %v4889_v60, %v4889_v60  ;;  %v5341_v60 = vld [vmem:[#allocation3 + $0x109] sm:$0xff] }
 0x526   : > { %4970 = vrot.lane.b32.xlu1 %v4905_v63, %s6885_s28  ;;  %4805 = vrot.lane.b32.xlu2 %v4710_v53, %s6883_s14 }
 0x527   : > { %4974 = vrot.lane.b32.xlu0 %v8719_v62, %s6885_s28 }
 0x528   : > { %v4565_v19 = vpop.permute.xlu1 %4564  ;;  %v4579_v55 = vpop.permute.xlu2 %4578 }
 0x529   : > { %4638 = vst.msk [vmem:[#allocation4 + $0x5c] sm:$0xf] %vm4614_vm1, %v4565_v19  ;;  %v4569_v37 = vpop.permute.xlu0 %4568  ;;  %v4894_v19 = vld [vmem:[#allocation3 + $0x122] sm:$0xff] }
 0x52a   : > { %4645 = vst.msk [vmem:[#allocation4 + $0x78] sm:$0xf] %vm4614_vm1, %v4579_v55  ;;  %v4892_v55 = vld [vmem:[#allocation3 + $0x10a] sm:$0xff] }
 0x52b   : > { %4640 = vst.msk [vmem:[#allocation4 + $0x64] sm:$0xf] %vm4614_vm1, %v4569_v37  ;;  %v9074_v37 = vpack.c.bf16 %v4894_v19, %v4894_v19  ;;  %v9076_v17 = vpack.c.bf16 %v4892_v55, %v4892_v55  ;;  %v5567_v19 = vld [vmem:[#allocation3 + $0x112] sm:$0xff] }
 0x52c   : > { %v5101_v55 = vld [vmem:[#allocation3 + $0x50] sm:$0xff] }
 0x52e   : > { %4976 = vrot.lane.b32.xlu1 %v9008_v57, %s6885_s28  ;;  %4972 = vrot.lane.b32.xlu2 %v9010_v22, %s6885_s28 }
 0x52f   : > { %4980 = vrot.lane.b32.xlu0 %v8726_v39, %s6885_s28 }
 0x530   : > { %v4571_v62 = vpop.permute.xlu1 %4570  ;;  %v4746_v61 = vpop.permute.xlu2 %4745 }
 0x531   : > { %4641 = vst.msk [vmem:[#allocation4 + $0x68] sm:$0xf] %vm4614_vm1, %v4571_v62  ;;  %v4575_v0 = vpop.permute.xlu0 %4574 }
 0x532   : > { %4841 = vst.msk [vmem:[#allocation4 + $0x4] sm:$0xf] %vm4839_vm11, %v4746_v61  ;;  %v4897_v61 = vld [vmem:[#allocation3 + $0x142] sm:$0xff] }
 0x533   : > { %4643 = vst.msk [vmem:[#allocation4 + $0x70] sm:$0xf] %vm4614_vm1, %v4575_v0  ;;  %v4895_v0 = vld [vmem:[#allocation3 + $0x12a] sm:$0xff]  ;;  %v9087_v10 = vpack.c.bf16 %v4897_v61, %v4897_v61 }
 0x534   : > { %v9089_v11 = vpack.c.bf16 %v4895_v0, %v4895_v0  ;;  %v5100_v0 = vld [vmem:[#allocation3 + $0x48] sm:$0xff] }
 0x536   : > { %4982 = vrot.lane.b32.xlu1 %v9021_v8, %s6885_s28  ;;  %4978 = vrot.lane.b32.xlu2 %v9023_v2, %s6885_s28 }
 0x537   : > { %4986 = vrot.lane.b32.xlu0 %v8733_v38, %s6885_s28 }
 0x538   : > { %v4577_v39 = vpop.permute.xlu1 %4576  ;;  %v4752_v59 = vpop.permute.xlu2 %4751 }
 0x539   : > { %4644 = vst.msk [vmem:[#allocation4 + $0x74] sm:$0xf] %vm4614_vm1, %v4577_v39  ;;  %v4581_v16 = vpop.permute.xlu0 %4580 }
 0x53a   : > { %4844 = vst.msk [vmem:[#allocation4 + $0x10] sm:$0xf] %vm4839_vm11, %v4752_v59 }
 0x53b   : > { %4646 = vst.msk [vmem:[#allocation4 + $0x7c] sm:$0xf] %vm4614_vm1, %v4581_v16  ;;  %v5114_v16 = vld [vmem:[#allocation3 + $0xf0] sm:$0xff] }
 0x53c   : > { %v5146_v29 = vpack.c.bf16 %v5114_v16, %v5114_v16  ;;  %v5119_v16 = vld [vmem:[#allocation3 + $0x128] sm:$0xff] }
 0x53e   : > { %4988 = vrot.lane.b32.xlu1 %v9034_v48, %s6885_s28  ;;  %4984 = vrot.lane.b32.xlu2 %v9036_v18, %s6885_s28 }
 0x53f   : > { %4992 = vrot.lane.b32.xlu0 %v8740_v23, %s6885_s28 }
 0x540   : > { %v4744_v38 = vpop.permute.xlu1 %4743  ;;  %v4758_v26 = vpop.permute.xlu2 %4757 }
 0x541   : > { %4840 = vst.msk [vmem:[#allocation4] sm:$0xf] %vm4839_vm11, %v4744_v38  ;;  %v4748_v35 = vpop.permute.xlu0 %4747  ;;  %v5596_v38 = vpack.c.bf16 %v5564_v42, %v5564_v42  ;;  %v5151_v42 = vpack.c.bf16 %v5119_v16, %v5119_v16 }
 0x542   : > { %4847 = vst.msk [vmem:[#allocation4 + $0x1c] sm:$0xf] %vm4839_vm11, %v4758_v26 }
 0x543   : > { %4842 = vst.msk [vmem:[#allocation4 + $0x8] sm:$0xf] %vm4839_vm11, %v4748_v35 }
 0x546   : > { %4994 = vrot.lane.b32.xlu1 %v9047_v43, %s6885_s28  ;;  %4990 = vrot.lane.b32.xlu2 %v9049_v45, %s6885_s28 }
 0x547   : > { %4998 = vrot.lane.b32.xlu0 %v8747_v41, %s6885_s28 }
 0x548   : > { %v4750_v23 = vpop.permute.xlu1 %4749  ;;  %v4764_v6 = vpop.permute.xlu2 %4763 }
 0x549   : > { %4843 = vst.msk [vmem:[#allocation4 + $0xc] sm:$0xf] %vm4839_vm11, %v4750_v23  ;;  %v4754_v50 = vpop.permute.xlu0 %4753 }
 0x54a   : > { %4850 = vst.msk [vmem:[#allocation4 + $0x28] sm:$0xf] %vm4839_vm11, %v4764_v6 }
 0x54b   : > { %4845 = vst.msk [vmem:[#allocation4 + $0x14] sm:$0xf] %vm4839_vm11, %v4754_v50  ;;  %v5098_v50 = vld [vmem:[#allocation3 + $0x30] sm:$0xff] }
 0x54c   : > { %v5130_v3 = vpack.c.bf16 %v5098_v50, %v5098_v50  ;;  %v5552_v50 = vld [vmem:[#allocation3 + $0x62] sm:$0xff] }
 0x54e   : > { %5000 = vrot.lane.b32.xlu1 %v4920_v34, %s6885_s28  ;;  %4996 = vrot.lane.b32.xlu2 %v4918_v14, %s6885_s28  ;;  %v5549_v14 = vld [vmem:[#allocation3 + $0x3a] sm:$0xff] }
 0x54f   : > { %5004 = vrot.lane.b32.xlu0 %v8754_v58, %s6885_s28 }
 0x550   : > { %v4756_v41 = vpop.permute.xlu1 %4755  ;;  %v4770_v46 = vpop.permute.xlu2 %4769 }
 0x551   : > { %4846 = vst.msk [vmem:[#allocation4 + $0x18] sm:$0xf] %vm4839_vm11, %v4756_v41  ;;  %v4760_v5 = vpop.permute.xlu0 %4759  ;;  %v5117_v41 = vld [vmem:[#allocation3 + $0x110] sm:$0xff] }
 0x552   : > { %4853 = vst.msk [vmem:[#allocation4 + $0x34] sm:$0xf] %vm4839_vm11, %v4770_v46  ;;  %v5581_v46 = vpack.c.bf16 %v5549_v14, %v5549_v14 }
 0x553   : > { %4848 = vst.msk [vmem:[#allocation4 + $0x20] sm:$0xf] %vm4839_vm11, %v4760_v5  ;;  %v5149_v5 = vpack.c.bf16 %v5117_v41, %v5117_v41 }
 0x556   : > { %5006 = vrot.lane.b32.xlu1 %v4923_v47, %s6885_s28  ;;  %5002 = vrot.lane.b32.xlu2 %v4921_v25, %s6885_s28  ;;  %v5373_v25 = vpack.c.bf16 %v5341_v60, %v5341_v60 }
 0x557   : > { %5010 = vrot.lane.b32.xlu0 %v8761_v15, %s6885_s28 }
 0x558   : > { %v4762_v58 = vpop.permute.xlu1 %4761  ;;  %v4776_v63 = vpop.permute.xlu2 %4775 }
 0x559   : > { %4849 = vst.msk [vmem:[#allocation4 + $0x24] sm:$0xf] %vm4839_vm11, %v4762_v58  ;;  %v4766_v53 = vpop.permute.xlu0 %4765 }
 0x55a   : > { %4856 = vst.msk [vmem:[#allocation4 + $0x40] sm:$0xf] %vm4839_vm11, %v4776_v63 }
 0x55b   : > { %4851 = vst.msk [vmem:[#allocation4 + $0x2c] sm:$0xf] %vm4839_vm11, %v4766_v53 }
 0x55e   : > { %5012 = vrot.lane.b32.xlu1 %v9074_v37, %s6885_s28  ;;  %5008 = vrot.lane.b32.xlu2 %v9076_v17, %s6885_s28 }
 0x55f   : > { %5016 = vrot.lane.b32.xlu0 %v8769_v32, %s6885_s28 }
 0x560   : > { %v4768_v15 = vpop.permute.xlu1 %4767  ;;  %v4782_v1 = vpop.permute.xlu2 %4781 }
 0x561   : > { %4852 = vst.msk [vmem:[#allocation4 + $0x30] sm:$0xf] %vm4839_vm11, %v4768_v15  ;;  %v4772_v62 = vpop.permute.xlu0 %4771  ;;  %v5599_v15 = vpack.c.bf16 %v5567_v19, %v5567_v19 }
 0x562   : > { %4859 = vst.msk [vmem:[#allocation4 + $0x4c] sm:$0xf] %vm4839_vm11, %v4782_v1  ;;  %v5133_v1 = vpack.c.bf16 %v5101_v55, %v5101_v55 }
 0x563   : > { %4854 = vst.msk [vmem:[#allocation4 + $0x38] sm:$0xf] %vm4839_vm11, %v4772_v62 }
 0x566   : > { %5018 = vrot.lane.b32.xlu1 %v9087_v10, %s6885_s28  ;;  %5014 = vrot.lane.b32.xlu2 %v9089_v11, %s6885_s28 }
 0x567   : > { %5228 = vrot.lane.b32.xlu0 %v8521_v9, %s6886_s29 }
 0x568   : > { %v4774_v32 = vpop.permute.xlu1 %4773  ;;  %v4788_v39 = vpop.permute.xlu2 %4787 }
 0x569   : > { %4855 = vst.msk [vmem:[#allocation4 + $0x3c] sm:$0xf] %vm4839_vm11, %v4774_v32  ;;  %v4778_v59 = vpop.permute.xlu0 %4777  ;;  %v5132_v32 = vpack.c.bf16 %v5100_v0, %v5100_v0  ;;  %v5104_v0 = vld [vmem:[#allocation3 + $0x78] sm:$0xff] }
 0x56a   : > { %4862 = vst.msk [vmem:[#allocation4 + $0x58] sm:$0xf] %vm4839_vm11, %v4788_v39 }
 0x56b   : > { %4857 = vst.msk [vmem:[#allocation4 + $0x44] sm:$0xf] %vm4839_vm11, %v4778_v59 }
 0x56e   : > { %5451 = vrot.lane.b32.xlu1 %v8942_v51, %s6887_s30  ;;  %5226 = vrot.lane.b32.xlu2 %v5146_v29, %s6886_s29 }
 0x56f   : > { %5676 = vrot.lane.b32.xlu0 %v5596_v38, %s6888_s7  ;;  %v5118_v38 = vld [vmem:[#allocation3 + $0x120] sm:$0xff] }
 0x570   : > { %v4780_v9 = vpop.permute.xlu1 %4779  ;;  %v4794_v26 = vpop.permute.xlu2 %4793 }
 0x571   : > { %4858 = vst.msk [vmem:[#allocation4 + $0x48] sm:$0xf] %vm4839_vm11, %v4780_v9  ;;  %v4784_v35 = vpop.permute.xlu0 %4783  ;;  %v5150_v9 = vpack.c.bf16 %v5118_v38, %v5118_v38  ;;  %v5572_v38 = vld [vmem:[#allocation3 + $0x152] sm:$0xff] }
 0x572   : > { %4865 = vst.msk [vmem:[#allocation4 + $0x64] sm:$0xf] %vm4839_vm11, %v4794_v26 }
 0x573   : > { %4860 = vst.msk [vmem:[#allocation4 + $0x50] sm:$0xf] %vm4839_vm11, %v4784_v35  ;;  %v5344_v35 = vld [vmem:[#allocation3 + $0x129] sm:$0xff] }
 0x576   : > { %5678 = vrot.lane.b32.xlu1 %v4923_v47, %s6888_s7  ;;  %5453 = vrot.lane.b32.xlu2 %v8954_v33, %s6887_s30  ;;  %v5116_v47 = vld [vmem:[#allocation3 + $0x108] sm:$0xff] }
 0x577   : > { %5196 = vrot.lane.b32.xlu0 %v5131_v24, %s6886_s29  ;;  %v5148_v58 = vpack.c.bf16 %v5116_v47, %v5116_v47  ;;  %v5376_v24 = vpack.c.bf16 %v5344_v35, %v5344_v35 }
 0x578   : > { %v4786_v51 = vpop.permute.xlu1 %4785  ;;  %v4800_v23 = vpop.permute.xlu2 %4799 }
 0x579   : > { %4861 = vst.msk [vmem:[#allocation4 + $0x54] sm:$0xf] %vm4839_vm11, %v4786_v51  ;;  %v4790_v6 = vpop.permute.xlu0 %4789  ;;  %v5135_v51 = vpack.c.bf16 %v5103_v30, %v5103_v30 }
 0x57a   : > { %4868 = vst.msk [vmem:[#allocation4 + $0x70] sm:$0xf] %vm4839_vm11, %v4800_v23 }
 0x57b   : > { %4863 = vst.msk [vmem:[#allocation4 + $0x5c] sm:$0xf] %vm4839_vm11, %v4790_v6  ;;  %v5102_v6 = vld [vmem:[#allocation3 + $0x60] sm:$0xff] }
 0x57e   : > { %5419 = vrot.lane.b32.xlu1 %v8881_v27, %s6887_s30  ;;  %5194 = vrot.lane.b32.xlu2 %v5130_v3, %s6886_s29  ;;  %v5134_v3 = vpack.c.bf16 %v5102_v6, %v5102_v6 }
 0x57f   : > { %5644 = vrot.lane.b32.xlu0 %v9010_v22, %s6888_s7 }
 0x580   : > { %v4792_v33 = vpop.permute.xlu1 %4791  ;;  %v4806_v56 = vpop.permute.xlu2 %4805 }
 0x581   : > { %4864 = vst.msk [vmem:[#allocation4 + $0x60] sm:$0xf] %vm4839_vm11, %v4792_v33  ;;  %v4796_v34 = vpop.permute.xlu0 %4795  ;;  %v5584_v33 = vpack.c.bf16 %v5552_v50, %v5552_v50 }
 0x582   : > { %4871 = vst.msk [vmem:[#allocation4 + $0x7c] sm:$0xf] %vm4839_vm11, %v4806_v56 }
 0x583   : > { %4866 = vst.msk [vmem:[#allocation4 + $0x68] sm:$0xf] %vm4839_vm11, %v4796_v34 }
 0x586   : > { %5646 = vrot.lane.b32.xlu1 %v5581_v46, %s6888_s7  ;;  %5421 = vrot.lane.b32.xlu2 %v8890_v4, %s6887_s30 }
 0x587   : > { %5232 = vrot.lane.b32.xlu0 %v5149_v5, %s6886_s29  ;;  %v5121_v5 = vld [vmem:[#allocation3 + $0x140] sm:$0xff] }
 0x588   : > { %v4798_v27 = vpop.permute.xlu1 %4797  ;;  %v4973_v22 = vpop.permute.xlu2 %4972 }
 0x589   : > { %4867 = vst.msk [vmem:[#allocation4 + $0x6c] sm:$0xf] %vm4839_vm11, %v4798_v27  ;;  %v4802_v21 = vpop.permute.xlu0 %4801 }
 0x58a   : > { %5067 = vst.msk [vmem:[#allocation4 + $0x8] sm:$0xf] %vm5064_vm12, %v4973_v22  ;;  %v5153_v22 = vpack.c.bf16 %v5121_v5, %v5121_v5 }
 0x58b   : > { %4869 = vst.msk [vmem:[#allocation4 + $0x74] sm:$0xf] %vm4839_vm11, %v4802_v21  ;;  %v6802_v21 = vld [vmem:[%s9515_s3 + $0x10] sm:$0xff] }
 0x58e   : > { %5455 = vrot.lane.b32.xlu1 %v5373_v25, %s6887_s30  ;;  %5230 = vrot.lane.b32.xlu2 %v5148_v58, %s6886_s29  ;;  %v5120_v58 = vld [vmem:[#allocation3 + $0x138] sm:$0xff] }
 0x58f   : > { %5680 = vrot.lane.b32.xlu0 %v9076_v17, %s6888_s7 }
 0x590   : > { %v4804_v4 = vpop.permute.xlu1 %4803  ;;  %v4979_v63 = vpop.permute.xlu2 %4978 }
 0x591   : > { %4870 = vst.msk [vmem:[#allocation4 + $0x78] sm:$0xf] %vm4839_vm11, %v4804_v4  ;;  %v4969_v53 = vpop.permute.xlu0 %4968  ;;  %v6801_v4 = vld [vmem:[%s9515_s3 + $0x8] sm:$0xff] }
 0x592   : > { %5070 = vst.msk [vmem:[#allocation4 + $0x14] sm:$0xf] %vm5064_vm12, %v4979_v63 }
 0x593   : > { %5065 = vst.msk [vmem:[#allocation4] sm:$0xf] %vm5064_vm12, %v4969_v53  ;;  %v6800_v53 = vld [vmem:[%s9515_s3] sm:$0xff] }
 0x596   : > { %5682 = vrot.lane.b32.xlu1 %v5599_v15, %s6888_s7  ;;  %5457 = vrot.lane.b32.xlu2 %v8952_v7, %s6887_s30 }
 0x597   : > { %5200 = vrot.lane.b32.xlu0 %v5133_v1, %s6886_s29  ;;  %v5105_v1 = vld [vmem:[#allocation3 + $0x80] sm:$0xff] }
 0x598   : > { %v4971_v17 = vpop.permute.xlu1 %4970  ;;  %v4985_v62 = vpop.permute.xlu2 %4984 }
 0x599   : > { %5066 = vst.msk [vmem:[#allocation4 + $0x4] sm:$0xf] %vm5064_vm12, %v4971_v17  ;;  %v4975_v61 = vpop.permute.xlu0 %4974 }
 0x59a   : > { %5073 = vst.msk [vmem:[#allocation4 + $0x20] sm:$0xf] %vm5064_vm12, %v4985_v62 }
 0x59b   : > { %5068 = vst.msk [vmem:[#allocation4 + $0xc] sm:$0xf] %vm5064_vm12, %v4975_v61 }
 0x59e   : > { %5423 = vrot.lane.b32.xlu1 %v8904_v52, %s6887_s30  ;;  %5198 = vrot.lane.b32.xlu2 %v5132_v32, %s6886_s29  ;;  %v5136_v32 = vpack.c.bf16 %v5104_v0, %v5104_v0 }
 0x59f   : > { %5648 = vrot.lane.b32.xlu0 %v9008_v57, %s6888_s7 }
 0x5a0   : > { %v4977_v7 = vpop.permute.xlu1 %4976  ;;  %v4991_v39 = vpop.permute.xlu2 %4990 }
 0x5a1   : > { %5069 = vst.msk [vmem:[#allocation4 + $0x10] sm:$0xf] %vm5064_vm12, %v4977_v7  ;;  %v4981_v59 = vpop.permute.xlu0 %4980 }
 0x5a2   : > { %5076 = vst.msk [vmem:[#allocation4 + $0x2c] sm:$0xf] %vm5064_vm12, %v4991_v39  ;;  %v5555_v39 = vld [vmem:[#allocation3 + $0x82] sm:$0xff] }
 0x5a3   : > { %5071 = vst.msk [vmem:[#allocation4 + $0x18] sm:$0xf] %vm5064_vm12, %v4981_v59  ;;  %v5123_v59 = vld [vmem:[#allocation3 + $0x158] sm:$0xff]  ;;  %v5587_v16 = vpack.c.bf16 %v5555_v39, %v5555_v39  ;;  %v5109_v39 = vld [vmem:[#allocation3 + $0xb0] sm:$0xff] }
 0x5a6   : > { %5650 = vrot.lane.b32.xlu1 %v9023_v2, %s6888_s7  ;;  %5425 = vrot.lane.b32.xlu2 %v8892_v13, %s6887_s30 }
 0x5a7   : > { %5236 = vrot.lane.b32.xlu0 %v5151_v42, %s6886_s29  ;;  %v5155_v42 = vpack.c.bf16 %v5123_v59, %v5123_v59 }
 0x5a8   : > { %v4983_v52 = vpop.permute.xlu1 %4982  ;;  %v4997_v57 = vpop.permute.xlu2 %4996 }
 0x5a9   : > { %5072 = vst.msk [vmem:[#allocation4 + $0x1c] sm:$0xf] %vm5064_vm12, %v4983_v52  ;;  %v4987_v29 = vpop.permute.xlu0 %4986 }
 0x5aa   : > { %5079 = vst.msk [vmem:[#allocation4 + $0x38] sm:$0xf] %vm5064_vm12, %v4997_v57  ;;  %v5347_v57 = vld [vmem:[#allocation3 + $0x151] sm:$0xff] }
 0x5ab   : > { %5074 = vst.msk [vmem:[#allocation4 + $0x24] sm:$0xf] %vm5064_vm12, %v4987_v29  ;;  %v5122_v29 = vld [vmem:[#allocation3 + $0x150] sm:$0xff] }
 0x5ae   : > { %5459 = vrot.lane.b32.xlu1 %v8967_v20, %s6887_s30  ;;  %5234 = vrot.lane.b32.xlu2 %v5150_v9, %s6886_s29  ;;  %v5379_v9 = vpack.c.bf16 %v5347_v57, %v5347_v57  ;;  %v5126_v57 = vld [vmem:[#allocation3 + $0x180] sm:$0xff] }
 0x5af   : > { %5684 = vrot.lane.b32.xlu0 %v9074_v37, %s6888_s7 }
 0x5b0   : > { %v4989_v13 = vpop.permute.xlu1 %4988  ;;  %v5003_v2 = vpop.permute.xlu2 %5002 }
 0x5b1   : > { %5075 = vst.msk [vmem:[#allocation4 + $0x28] sm:$0xf] %vm5064_vm12, %v4989_v13  ;;  %v4993_v26 = vpop.permute.xlu0 %4992  ;;  %v5154_v13 = vpack.c.bf16 %v5122_v29, %v5122_v29 }
 0x5b2   : > { %5082 = vst.msk [vmem:[#allocation4 + $0x44] sm:$0xf] %vm5064_vm12, %v5003_v2  ;;  %v5604_v2 = vpack.c.bf16 %v5572_v38, %v5572_v38  ;;  %v5158_v38 = vpack.c.bf16 %v5126_v57, %v5126_v57 }
 0x5b3   : > { %5077 = vst.msk [vmem:[#allocation4 + $0x30] sm:$0xf] %vm5064_vm12, %v4993_v26 }
 0x5b6   : > { %5686 = vrot.lane.b32.xlu1 %v9089_v11, %s6888_s7  ;;  %5461 = vrot.lane.b32.xlu2 %v5376_v24, %s6887_s30  ;;  %v5813_v11 = vld [vmem:[%s9515_s3 + $0x20] sm:$0xf] }
 0x5b7   : > { %5204 = vrot.lane.b32.xlu0 %v5135_v51, %s6886_s29  ;;  %v5916_v56 = vunpack.c.l.b16 %v5813_v11  ;;  %v5573_v24 = vld [vmem:[#allocation3 + $0x15a] sm:$0xff] }
 0x5b8   : > { %v4995_v20 = vpop.permute.xlu1 %4994  ;;  %v5009_v37 = vpop.permute.xlu2 %5008  ;;  %v5107_v51 = vld [vmem:[#allocation3 + $0x98] sm:$0xff] }
 0x5b9   : > { %5078 = vst.msk [vmem:[#allocation4 + $0x34] sm:$0xf] %vm5064_vm12, %v4995_v20  ;;  %v4999_v23 = vpop.permute.xlu0 %4998  ;;  %v5921_v41 = vpack.c.b16 %v5916_v56, %v5916_v56  ;;  %v5605_v20 = vpack.c.bf16 %v5573_v24, %v5573_v24 }
 0x5ba   : > { %5085 = vst.msk [vmem:[#allocation4 + $0x50] sm:$0xf] %vm5064_vm12, %v5009_v37  ;;  %v5139_v37 = vpack.c.bf16 %v5107_v51, %v5107_v51 }
 0x5bb   : > { %5080 = vst.msk [vmem:[#allocation4 + $0x3c] sm:$0xf] %vm5064_vm12, %v4999_v23  ;;  %v5977_v27 = vsel %vm5975_vm13, %v5921_v41, 0 }
 0x5bc   : > { %6807 = vmatpush.bf16.msra.mxu2 %v5977_v27  ;;  %5982 = vmatpush.bf16.msra.mxu1 %v5977_v27 }
 0x5be   : > { %5427 = vrot.lane.b32.xlu1 %v8902_v44, %s6887_s30  ;;  %5202 = vrot.lane.b32.xlu2 %v5134_v3, %s6886_s29  ;;  %v6803_v44 = vld [vmem:[%s9515_s3 + $0x18] sm:$0xff] }
 0x5bf   : > { %5652 = vrot.lane.b32.xlu0 %v5584_v33, %s6888_s7  ;;  %v5331_v3 = vld [vmem:[#allocation3 + $0x91] sm:$0xff] }
 0x5c0   : > { %v5001_v34 = vpop.permute.xlu1 %5000  ;;  %v5015_v14 = vpop.permute.xlu2 %5014  ;;  %6808 = vmatpush.bf16.msra.mxu2 %v6803_v44  ;;  %5983 = vmatpush.bf16.msra.mxu1 %v6803_v44  ;;  %v5106_v33 = vld [vmem:[#allocation3 + $0x90] sm:$0xff]  ;;  %v5363_v11 = vpack.c.bf16 %v5331_v3, %v5331_v3 }
 0x5c1   : > { %5081 = vst.msk [vmem:[#allocation4 + $0x40] sm:$0xf] %vm5064_vm12, %v5001_v34  ;;  %v5005_v46 = vpop.permute.xlu0 %5004  ;;  %v5138_v56 = vpack.c.bf16 %v5106_v33, %v5106_v33 }
 0x5c2   : > { %5088 = vst.msk [vmem:[#allocation4 + $0x5c] sm:$0xf] %vm5064_vm12, %v5015_v14 }
 0x5c3   : > { %5083 = vst.msk [vmem:[#allocation4 + $0x48] sm:$0xf] %vm5064_vm12, %v5005_v46  ;;  %v5332_v46 = vld [vmem:[#allocation3 + $0x99] sm:$0xff] }
 0x5c4   : > { %6809 = vmatpush.bf16.msra.mxu2 %v6802_v21  ;;  %5984 = vmatpush.bf16.msra.mxu1 %v6802_v21  ;;  %v5364_v5 = vpack.c.bf16 %v5332_v46, %v5332_v46  ;;  %v5336_v46 = vld [vmem:[#allocation3 + $0xc9] sm:$0xff] }
 0x5c6   : > { %5654 = vrot.lane.b32.xlu1 %v9021_v8, %s6888_s7  ;;  %5429 = vrot.lane.b32.xlu2 %v8919_v40, %s6887_s30  ;;  %v5570_v8 = vld [vmem:[#allocation3 + $0x13a] sm:$0xff]  ;;  %v5152_v40 = vpack.c.bf16 %v5120_v58, %v5120_v58  ;;  %v5350_v58 = vld [vmem:[#allocation3 + $0x171] sm:$0xff] }
 0x5c7   : > { %5240 = vrot.lane.b32.xlu0 %v5153_v22, %s6886_s29  ;;  %v5602_v63 = vpack.c.bf16 %v5570_v8, %v5570_v8  ;;  %v5124_v22 = vld [vmem:[#allocation3 + $0x168] sm:$0xff]  ;;  %v5125_v8 = vld [vmem:[#allocation3 + $0x170] sm:$0xff] }
 0x5c8   : > { %v5007_v60 = vpop.permute.xlu1 %5006  ;;  %v5227_v47 = vpop.permute.xlu2 %5226  ;;  %6810 = vmatpush.bf16.msra.mxu2 %v6801_v4  ;;  %5985 = vmatpush.bf16.msra.mxu1 %v6801_v4  ;;  %v5156_v21 = vpack.c.bf16 %v5124_v22, %v5124_v22  ;;  %v5382_v4 = vpack.c.bf16 %v5350_v58, %v5350_v58 }
 0x5c9   : > { %5084 = vst.msk [vmem:[#allocation4 + $0x4c] sm:$0xf] %vm5064_vm12, %v5007_v60  ;;  %v5011_v25 = vpop.permute.xlu0 %5010 }
 0x5ca   : > { %5307 = vst.msk [vmem:[#allocation4 + $0x40] sm:$0xf] %vm5290_vm14, %v5227_v47 }
 0x5cb   : > { %5086 = vst.msk [vmem:[#allocation4 + $0x54] sm:$0xf] %vm5064_vm12, %v5011_v25 }
 0x5cc   : > { %6811 = vmatpush.bf16.msra.mxu2 %v6800_v53  ;;  %5986 = vmatpush.bf16.msra.mxu1 %v6800_v53 }
 0x5ce   : > { %5463 = vrot.lane.b32.xlu1 %v8965_v12, %s6887_s30  ;;  %5238 = vrot.lane.b32.xlu2 %v5152_v40, %s6886_s29  ;;  %v5137_v12 = vpack.c.bf16 %v5105_v1, %v5105_v1  ;;  %v5575_v40 = vld [vmem:[#allocation3 + $0x172] sm:$0xff]  ;;  %v5574_v1 = vld [vmem:[#allocation3 + $0x16a] sm:$0xff] }
 0x5cf   : > { %5688 = vrot.lane.b32.xlu0 %v5602_v63, %s6888_s7  ;;  %v5157_v63 = vpack.c.bf16 %v5125_v8, %v5125_v8  ;;  %v5607_v53 = vpack.c.bf16 %v5575_v40, %v5575_v40 }
 0x5d0   : > { %v5013_v19 = vpop.permute.xlu1 %5012  ;;  %v5454_v55 = vpop.permute.xlu2 %5453 }
 0x5d1   : > { %5087 = vst.msk [vmem:[#allocation4 + $0x58] sm:$0xf] %vm5064_vm12, %v5013_v19  ;;  %v5017_v15 = vpop.permute.xlu0 %5016 }
 0x5d2   : > { %5089 = vst.msk [vmem:[#allocation4 + $0x60] sm:$0xf] %vm5064_vm12, %v5017_v15  ;;  %v5108_v15 = vld [vmem:[#allocation3 + $0xa8] sm:$0xff] }
 0x5d6   : > { %5690 = vrot.lane.b32.xlu1 %v9087_v10, %s6888_s7  ;;  %5465 = vrot.lane.b32.xlu2 %v8980_v28, %s6887_s30 }
 0x5d7   : > { %5208 = vrot.lane.b32.xlu0 %v5137_v12, %s6886_s29  ;;  %v5333_v12 = vld [vmem:[#allocation3 + $0xa9] sm:$0xff] }
 0x5d8   : > { %v5019_v17 = vpop.permute.xlu1 %5018  ;;  %v5195_v62 = vpop.permute.xlu2 %5194 }
 0x5d9   : > { %5090 = vst.msk [vmem:[#allocation4 + $0x64] sm:$0xf] %vm5064_vm12, %v5019_v17  ;;  %v5229_v61 = vpop.permute.xlu0 %5228  ;;  %v5140_v17 = vpack.c.bf16 %v5108_v15, %v5108_v15  ;;  %v5128_v15 = vld [vmem:[#allocation3 + $0x198] sm:$0xff] }
 0x5da   : > { %5291 = vst.msk [vmem:[#allocation4] sm:$0xf] %vm5290_vm14, %v5195_v62  ;;  %v5606_v62 = vpack.c.bf16 %v5574_v1, %v5574_v1 }
 0x5db   : > { %5308 = vst.msk [vmem:[#allocation4 + $0x44] sm:$0xf] %vm5290_vm14, %v5229_v61  ;;  %v5365_v61 = vpack.c.bf16 %v5333_v12, %v5333_v12 }
 0x5dc   : > { %5533 = vst.msk [vmem:[#allocation4 + $0x44] sm:$0xf] %vm5515_vm2, %v5454_v55 }
 0x5de   : > { %5431 = vrot.lane.b32.xlu1 %v8906_v36, %s6887_s30  ;;  %5206 = vrot.lane.b32.xlu2 %v5136_v32, %s6886_s29 }
 0x5df   : > { %5656 = vrot.lane.b32.xlu0 %v9036_v18, %s6888_s7 }
 0x5e0   : > { %v5452_v28 = vpop.permute.xlu1 %5451  ;;  %v5422_v10 = vpop.permute.xlu2 %5421 }
 0x5e1   : > { %5532 = vst.msk [vmem:[#allocation4 + $0x40] sm:$0xf] %vm5515_vm2, %v5452_v28  ;;  %v5677_v7 = vpop.permute.xlu0 %5676 }
 0x5e2   : > { %5757 = vst.msk [vmem:[#allocation4 + $0x40] sm:$0xf] %vm5740_vm3, %v5677_v7  ;;  %v5334_v7 = vld [vmem:[#allocation3 + $0xb1] sm:$0xff] }
 0x5e3   : > { %v5366_v59 = vpack.c.bf16 %v5334_v7, %v5334_v7 }
 0x5e6   : > { %5658 = vrot.lane.b32.xlu1 %v5587_v16, %s6888_s7  ;;  %5433 = vrot.lane.b32.xlu2 %v8917_v49, %s6887_s30  ;;  %v5141_v16 = vpack.c.bf16 %v5109_v39, %v5109_v39 }
 0x5e7   : > { %5244 = vrot.lane.b32.xlu0 %v5155_v42, %s6886_s29 }
 0x5e8   : > { %v5679_v36 = vpop.permute.xlu1 %5678  ;;  %v5231_v18 = vpop.permute.xlu2 %5230 }
 0x5e9   : > { %5758 = vst.msk [vmem:[#allocation4 + $0x44] sm:$0xf] %vm5740_vm3, %v5679_v36  ;;  %v5197_v52 = vpop.permute.xlu0 %5196 }
 0x5ea   : > { %5309 = vst.msk [vmem:[#allocation4 + $0x48] sm:$0xf] %vm5290_vm14, %v5231_v18 }
 0x5eb   : > { %5292 = vst.msk [vmem:[#allocation4 + $0x4] sm:$0xf] %vm5290_vm14, %v5197_v52  ;;  %v5558_v52 = vld [vmem:[#allocation3 + $0xaa] sm:$0xff] }
 0x5ec   : > { %5517 = vst.msk [vmem:[#allocation4 + $0x4] sm:$0xf] %vm5515_vm2, %v5422_v10  ;;  %v5590_v29 = vpack.c.bf16 %v5558_v52, %v5558_v52 }
 0x5ee   : > { %5467 = vrot.lane.b32.xlu1 %v5379_v9, %s6887_s30  ;;  %5242 = vrot.lane.b32.xlu2 %v5154_v13, %s6886_s29 }
 0x5ef   : > { %5692 = vrot.lane.b32.xlu0 %v5604_v2, %s6888_s7 }
 0x5f0   : > { %v5420_v49 = vpop.permute.xlu1 %5419  ;;  %v5458_v26 = vpop.permute.xlu2 %5457  ;;  %v6792_v35 = vld [vmem:[#allocation4 + $0x40] sm:$0xff] }
 0x5f1   : > { %5516 = vst.msk [vmem:[#allocation4] sm:$0xf] %vm5515_vm2, %v5420_v49  ;;  %v5645_v30 = vpop.permute.xlu0 %5644  ;;  %6755 = vmatmul.msk.bf16.vlgmr.msra.gmra.mxu2 %vm5926_vm4, %v6792_v35  ;;  %v5127_v49 = vld [vmem:[#allocation3 + $0x188] sm:$0xff] }
 0x5f2   : > { %5741 = vst.msk [vmem:[#allocation4] sm:$0xf] %vm5740_vm3, %v5645_v30  ;;  %v5159_v35 = vpack.c.bf16 %v5127_v49, %v5127_v49 }
 0x5f6   : > { %5694 = vrot.lane.b32.xlu1 %v5605_v20, %s6888_s7  ;;  %5469 = vrot.lane.b32.xlu2 %v8978_v31, %s6887_s30 }
 0x5f7   : > { %5212 = vrot.lane.b32.xlu0 %v5139_v37, %s6886_s29  ;;  %v5576_v37 = vld [vmem:[#allocation3 + $0x182] sm:$0xff] }
 0x5f8   : > { %v5647_v23 = vpop.permute.xlu1 %5646  ;;  %v5199_v6 = vpop.permute.xlu2 %5198 }
 0x5f9   : > { %5742 = vst.msk [vmem:[#allocation4 + $0x4] sm:$0xf] %vm5740_vm3, %v5647_v23  ;;  %v5233_v50 = vpop.permute.xlu0 %5232  ;;  %v5351_v23 = vld [vmem:[#allocation3 + $0x181] sm:$0xff] }
 0x5fa   : > { %5293 = vst.msk [vmem:[#allocation4 + $0x8] sm:$0xf] %vm5290_vm14, %v5199_v6  ;;  %v5110_v6 = vld [vmem:[#allocation3 + $0xc0] sm:$0xff]  ;;  %v5383_v3 = vpack.c.bf16 %v5351_v23, %v5351_v23 }
 0x5fb   : > { %5310 = vst.msk [vmem:[#allocation4 + $0x4c] sm:$0xf] %vm5290_vm14, %v5233_v50  ;;  %v5608_v50 = vpack.c.bf16 %v5576_v37, %v5576_v37  ;;  %v5142_v33 = vpack.c.bf16 %v5110_v6, %v5110_v6  ;;  %v5338_v37 = vld [vmem:[#allocation3 + $0xe1] sm:$0xff]  ;;  %v9352_v23 = vld [vmem:[%s9516_s4] ss:$0 sm:$0xff] }
 0x5fc   : > { %5535 = vst.msk [vmem:[#allocation4 + $0x4c] sm:$0xf] %vm5515_vm2, %v5458_v26  ;;  %v5352_v26 = vld [vmem:[#allocation3 + $0x189] sm:$0xff] }
 0x5fd   : > { %v5384_v30 = vpack.c.bf16 %v5352_v26, %v5352_v26 }
 0x5fe   : > { %5435 = vrot.lane.b32.xlu1 %v5363_v11, %s6887_s30  ;;  %5210 = vrot.lane.b32.xlu2 %v5138_v56, %s6886_s29 }
 0x5ff   : > { %5660 = vrot.lane.b32.xlu0 %v9034_v48, %s6888_s7 }
 0x600   : > { %v5456_v31 = vpop.permute.xlu1 %5455  ;;  %v5426_v34 = vpop.permute.xlu2 %5425  ;;  %v6784_v14 = vld [vmem:[#allocation4] sm:$0xff] }
 0x601   : > { %5534 = vst.msk [vmem:[#allocation4 + $0x48] sm:$0xf] %vm5515_vm2, %v5456_v31  ;;  %v5681_v41 = vpop.permute.xlu0 %5680  ;;  %6747 = vmatmul.msk.bf16.vlgmr.msra.gmra.mxu1 %vm5926_vm4, %v6784_v14  ;;  %v5111_v14 = vld [vmem:[#allocation3 + $0xc8] sm:$0xff] }
 0x602   : > { %5759 = vst.msk [vmem:[#allocation4 + $0x48] sm:$0xf] %vm5740_vm3, %v5681_v41  ;;  %v5577_v41 = vld [vmem:[#allocation3 + $0x18a] sm:$0xff] }
 0x606   : > { %5662 = vrot.lane.b32.xlu1 %v9049_v45, %s6888_s7  ;;  %5437 = vrot.lane.b32.xlu2 %v5364_v5, %s6887_s30  ;;  %v5143_v5 = vpack.c.bf16 %v5111_v14, %v5111_v14 }
 0x607   : > { %5022 = vrot.lane.b32.xlu0 %v5605_v20, %s6885_s28 }
 0x608   : > { %v5683_v48 = vpop.permute.xlu1 %5682  ;;  %v5235_v27 = vpop.permute.xlu2 %5234 }
 0x609   : > { %5760 = vst.msk [vmem:[#allocation4 + $0x4c] sm:$0xf] %vm5740_vm3, %v5683_v48  ;;  %v5201_v44 = vpop.permute.xlu0 %5200  ;;  %v5609_v48 = vpack.c.bf16 %v5577_v41, %v5577_v41 }
 0x60a   : > { %5311 = vst.msk [vmem:[#allocation4 + $0x50] sm:$0xf] %vm5290_vm14, %v5235_v27  ;;  %v5368_v27 = vpack.c.bf16 %v5336_v46, %v5336_v46 }
 0x60b   : > { %5294 = vst.msk [vmem:[#allocation4 + $0xc] sm:$0xf] %vm5290_vm14, %v5201_v44 }
 0x60c   : > { %5519 = vst.msk [vmem:[#allocation4 + $0xc] sm:$0xf] %vm5515_vm2, %v5426_v34 }
 0x60e   : > { %5246 = vrot.lane.b32.xlu1 %v5156_v21, %s6886_s29  ;;  %5020 = vrot.lane.b32.xlu2 %v5604_v2, %s6885_s28 }
 0x60f   : > { %5471 = vrot.lane.b32.xlu0 %v8991_v54, %s6887_s30 }
 0x610   : > { %v5424_v45 = vpop.permute.xlu1 %5423  ;;  %v5462_v60 = vpop.permute.xlu2 %5461  ;;  %v6793_v47 = vld [vmem:[#allocation4 + $0x48] sm:$0xff] }
 0x611   : > { %5518 = vst.msk [vmem:[#allocation4 + $0x8] sm:$0xf] %vm5515_vm2, %v5424_v45  ;;  %v5649_v25 = vpop.permute.xlu0 %5648  ;;  %6756 = vmatmul.msk.bf16.gmra.mxu2 %vm5926_vm4, %v6793_v47  ;;  %v5560_v45 = vld [vmem:[#allocation3 + $0xc2] sm:$0xff] }
 0x612   : > { %5743 = vst.msk [vmem:[#allocation4 + $0x8] sm:$0xf] %vm5740_vm3, %v5649_v25  ;;  %v5592_v47 = vpack.c.bf16 %v5560_v45, %v5560_v45 }
 0x616   : > { %5473 = vrot.lane.b32.xlu1 %v5382_v4, %s6887_s30  ;;  %5248 = vrot.lane.b32.xlu2 %v5157_v63, %s6886_s29  ;;  %v5129_v4 = vld [vmem:[#allocation3 + $0x1a0] sm:$0xff] }
 0x617   : > { %5698 = vrot.lane.b32.xlu0 %v5607_v53, %s6888_s7 }
 0x618   : > { %v5651_v54 = vpop.permute.xlu1 %5650  ;;  %v5203_v19 = vpop.permute.xlu2 %5202 }
 0x619   : > { %5744 = vst.msk [vmem:[#allocation4 + $0xc] sm:$0xf] %vm5740_vm3, %v5651_v54  ;;  %v5237_v55 = vpop.permute.xlu0 %5236  ;;  %v5161_v54 = vpack.c.bf16 %v5129_v4, %v5129_v4 }
 0x61a   : > { %5295 = vst.msk [vmem:[#allocation4 + $0x10] sm:$0xf] %vm5290_vm14, %v5203_v19 }
 0x61b   : > { %5312 = vst.msk [vmem:[#allocation4 + $0x54] sm:$0xf] %vm5290_vm14, %v5237_v55  ;;  %v5353_v55 = vld [vmem:[#allocation3 + $0x199] sm:$0xff] }
 0x61c   : > { %5537 = vst.msk [vmem:[#allocation4 + $0x54] sm:$0xf] %vm5515_vm2, %v5462_v60  ;;  %v5335_v60 = vld [vmem:[#allocation3 + $0xc1] sm:$0xff] }
 0x61d   : > { %v5367_v25 = vpack.c.bf16 %v5335_v60, %v5335_v60 }
 0x61e   : > { %5214 = vrot.lane.b32.xlu1 %v5140_v17, %s6886_s29  ;;  %5696 = vrot.lane.b32.xlu2 %v5606_v62, %s6888_s7  ;;  %v5578_v17 = vld [vmem:[#allocation3 + $0x19a] sm:$0xff] }
 0x61f   : > { %5439 = vrot.lane.b32.xlu0 %v5365_v61, %s6887_s30  ;;  %v5385_v61 = vpack.c.bf16 %v5353_v55, %v5353_v55 }
 0x620   : > { %v5460_v0 = vpop.permute.xlu1 %5459  ;;  %v5430_v32 = vpop.permute.xlu2 %5429  ;;  %v6785_v28 = vld [vmem:[#allocation4 + $0x8] sm:$0xff] }
 0x621   : > { %5536 = vst.msk [vmem:[#allocation4 + $0x50] sm:$0xf] %vm5515_vm2, %v5460_v0  ;;  %v5685_v10 = vpop.permute.xlu0 %5684  ;;  %6748 = vmatmul.msk.bf16.gmra.mxu1 %vm5926_vm4, %v6785_v28  ;;  %v5160_v0 = vpack.c.bf16 %v5128_v15, %v5128_v15  ;;  %v5579_v28 = vld [vmem:[#allocation3 + $0x1a2] sm:$0xff] }
 0x622   : > { %5761 = vst.msk [vmem:[#allocation4 + $0x50] sm:$0xf] %vm5740_vm3, %v5685_v10  ;;  %v5354_v10 = vld [vmem:[#allocation3 + $0x1a1] sm:$0xff] }
 0x626   : > { %5441 = vrot.lane.b32.xlu1 %v5366_v59, %s6887_s30  ;;  %5216 = vrot.lane.b32.xlu2 %v5141_v16, %s6886_s29 }
 0x627   : > { %5666 = vrot.lane.b32.xlu0 %v9047_v43, %s6888_s7 }
 0x628   : > { %v5687_v42 = vpop.permute.xlu1 %5686  ;;  %v5239_v36 = vpop.permute.xlu2 %5238 }
 0x629   : > { %5762 = vst.msk [vmem:[#allocation4 + $0x54] sm:$0xf] %vm5740_vm3, %v5687_v42  ;;  %v5205_v18 = vpop.permute.xlu0 %5204  ;;  %v5611_v42 = vpack.c.bf16 %v5579_v28, %v5579_v28 }
 0x62a   : > { %5313 = vst.msk [vmem:[#allocation4 + $0x58] sm:$0xf] %vm5290_vm14, %v5239_v36  ;;  %v5386_v36 = vpack.c.bf16 %v5354_v10, %v5354_v10 }
 0x62b   : > { %5296 = vst.msk [vmem:[#allocation4 + $0x14] sm:$0xf] %vm5290_vm14, %v5205_v18  ;;  %v5113_v18 = vld [vmem:[#allocation3 + $0xe0] sm:$0xff] }
 0x62c   : > { %5521 = vst.msk [vmem:[#allocation4 + $0x14] sm:$0xf] %vm5515_vm2, %v5430_v32  ;;  %v5610_v32 = vpack.c.bf16 %v5578_v17, %v5578_v17  ;;  %v5145_v52 = vpack.c.bf16 %v5113_v18, %v5113_v18 }
 0x62e   : > { %5024 = vrot.lane.b32.xlu1 %v5606_v62, %s6885_s28  ;;  %5664 = vrot.lane.b32.xlu2 %v5590_v29, %s6888_s7 }
 0x62f   : > { %5250 = vrot.lane.b32.xlu0 %v5158_v38, %s6886_s29 }
 0x630   : > { %v5428_v43 = vpop.permute.xlu1 %5427  ;;  %v5466_v9 = vpop.permute.xlu2 %5465  ;;  %v6794_v13 = vld [vmem:[#allocation4 + $0x50] sm:$0xff] }
 0x631   : > { %5520 = vst.msk [vmem:[#allocation4 + $0x10] sm:$0xf] %vm5515_vm2, %v5428_v43  ;;  %v5653_v2 = vpop.permute.xlu0 %5652  ;;  %6757 = vmatmul.msk.bf16.gmra.mxu2 %vm5926_vm4, %v6794_v13  ;;  %v5337_v43 = vld [vmem:[#allocation3 + $0xd9] sm:$0xff] }
 0x632   : > { %5745 = vst.msk [vmem:[#allocation4 + $0x10] sm:$0xf] %vm5740_vm3, %v5653_v2  ;;  %v5562_v13 = vld [vmem:[#allocation3 + $0xda] sm:$0xff]  ;;  %v5369_v2 = vpack.c.bf16 %v5337_v43, %v5337_v43 }
 0x633   : > { %v5594_v26 = vpack.c.bf16 %v5562_v13, %v5562_v13 }
 0x636   : > { %5252 = vrot.lane.b32.xlu1 %v5159_v35, %s6886_s29  ;;  %5026 = vrot.lane.b32.xlu2 %v5607_v53, %s6885_s28  ;;  %v5561_v53 = vld [vmem:[#allocation3 + $0xca] sm:$0xff] }
 0x637   : > { %5477 = vrot.lane.b32.xlu0 %v5384_v30, %s6887_s30  ;;  %v5593_v19 = vpack.c.bf16 %v5561_v53, %v5561_v53 }
 0x638   : > { %v5655_v24 = vpop.permute.xlu1 %5654  ;;  %v5207_v51 = vpop.permute.xlu2 %5206 }
 0x639   : > { %5746 = vst.msk [vmem:[#allocation4 + $0x14] sm:$0xf] %vm5740_vm3, %v5655_v24  ;;  %v5241_v20 = vpop.permute.xlu0 %5240 }
 0x63a   : > { %5297 = vst.msk [vmem:[#allocation4 + $0x18] sm:$0xf] %vm5290_vm14, %v5207_v51 }
 0x63b   : > { %5314 = vst.msk [vmem:[#allocation4 + $0x5c] sm:$0xf] %vm5290_vm14, %v5241_v20  ;;  %v5563_v20 = vld [vmem:[#allocation3 + $0xe2] sm:$0xff] }
 0x63c   : > { %5539 = vst.msk [vmem:[#allocation4 + $0x5c] sm:$0xf] %vm5515_vm2, %v5466_v9  ;;  %v5112_v9 = vld [vmem:[#allocation3 + $0xd8] sm:$0xff]  ;;  %v5595_v6 = vpack.c.bf16 %v5563_v20, %v5563_v20 }
 0x63d   : > { %v5144_v49 = vpack.c.bf16 %v5112_v9, %v5112_v9 }
 0x63e   : > { %5700 = vrot.lane.b32.xlu1 %v5608_v50, %s6888_s7  ;;  %5475 = vrot.lane.b32.xlu2 %v5383_v3, %s6887_s30 }
 0x63f   : > { %5218 = vrot.lane.b32.xlu0 %v5142_v33, %s6886_s29  ;;  %v9355_v33 = vstv %s6666_s18 }
 0x640   : > { %v5464_v11 = vpop.permute.xlu1 %5463  ;;  %v5434_v56 = vpop.permute.xlu2 %5433  ;;  %v6786_v31 = vld [vmem:[#allocation4 + $0x10] sm:$0xff] }
 0x641   : > { %5538 = vst.msk [vmem:[#allocation4 + $0x58] sm:$0xf] %vm5515_vm2, %v5464_v11  ;;  %v5689_v34 = vpop.permute.xlu0 %5688  ;;  %6749 = vmatmul.msk.bf16.gmra.mxu1 %vm5926_vm4, %v6786_v31 }
 0x642   : > { %5763 = vst.msk [vmem:[#allocation4 + $0x58] sm:$0xf] %vm5740_vm3, %v5689_v34 }
 0x646   : > { %5220 = vrot.lane.b32.xlu1 %v5143_v5, %s6886_s29  ;;  %5702 = vrot.lane.b32.xlu2 %v5609_v48, %s6888_s7 }
 0x647   : > { %5445 = vrot.lane.b32.xlu0 %v5368_v27, %s6887_s30 }
 0x648   : > { %v5691_v44 = vpop.permute.xlu1 %5690  ;;  %v5243_v22 = vpop.permute.xlu2 %5242 }
 0x649   : > { %5764 = vst.msk [vmem:[#allocation4 + $0x5c] sm:$0xf] %vm5740_vm3, %v5691_v44  ;;  %v5209_v21 = vpop.permute.xlu0 %5208 }
 0x64a   : > { %5315 = vst.msk [vmem:[#allocation4 + $0x60] sm:$0xf] %vm5290_vm14, %v5243_v22 }
 0x64b   : > { %5298 = vst.msk [vmem:[#allocation4 + $0x1c] sm:$0xf] %vm5290_vm14, %v5209_v21 }
 0x64c   : > { %5523 = vst.msk [vmem:[#allocation4 + $0x1c] sm:$0xf] %vm5515_vm2, %v5434_v56 }
 0x64e   : > { %5668 = vrot.lane.b32.xlu1 %v5592_v47, %s6888_s7  ;;  %5443 = vrot.lane.b32.xlu2 %v5367_v25, %s6887_s30 }
 0x64f   : > { %5028 = vrot.lane.b32.xlu0 %v5608_v50, %s6885_s28  ;;  %v5370_v50 = vpack.c.bf16 %v5338_v37, %v5338_v37 }
 0x650   : > { %v5432_v58 = vpop.permute.xlu1 %5431  ;;  %v5470_v8 = vpop.permute.xlu2 %5469  ;;  %v6795_v40 = vld [vmem:[#allocation4 + $0x58] sm:$0xff] }
 0x651   : > { %5522 = vst.msk [vmem:[#allocation4 + $0x18] sm:$0xf] %vm5515_vm2, %v5432_v58  ;;  %v5657_v63 = vpop.permute.xlu0 %5656  ;;  %6758 = vmatmul.msk.bf16.gmra.mxu2 %vm5926_vm4, %v6795_v40 }
 0x652   : > { %5747 = vst.msk [vmem:[#allocation4 + $0x18] sm:$0xf] %vm5740_vm3, %v5657_v63 }
 0x656   : > { %5030 = vrot.lane.b32.xlu1 %v5609_v48, %s6885_s28  ;;  %5670 = vrot.lane.b32.xlu2 %v5593_v19, %s6888_s7 }
 0x657   : > { %5256 = vrot.lane.b32.xlu0 %v5161_v54, %s6886_s29 }
 0x658   : > { %v5659_v1 = vpop.permute.xlu1 %5658  ;;  %v5211_v12 = vpop.permute.xlu2 %5210 }
 0x659   : > { %5748 = vst.msk [vmem:[#allocation4 + $0x1c] sm:$0xf] %vm5740_vm3, %v5659_v1  ;;  %v5245_v62 = vpop.permute.xlu0 %5244 }
 0x65a   : > { %5299 = vst.msk [vmem:[#allocation4 + $0x20] sm:$0xf] %vm5290_vm14, %v5211_v12 }
 0x65b   : > { %5316 = vst.msk [vmem:[#allocation4 + $0x64] sm:$0xf] %vm5290_vm14, %v5245_v62 }
 0x65c   : > { %5541 = vst.msk [vmem:[#allocation4 + $0x64] sm:$0xf] %vm5515_vm2, %v5470_v8 }
 0x65e   : > { %5479 = vrot.lane.b32.xlu1 %v5385_v61, %s6887_s30  ;;  %5254 = vrot.lane.b32.xlu2 %v5160_v0, %s6886_s29 }
 0x65f   : > { %5704 = vrot.lane.b32.xlu0 %v5610_v32, %s6888_s7 }
 0x660   : > { %v5468_v7 = vpop.permute.xlu1 %5467  ;;  %v5438_v39 = vpop.permute.xlu2 %5437  ;;  %v6787_v59 = vld [vmem:[#allocation4 + $0x18] sm:$0xff] }
 0x661   : > { %5540 = vst.msk [vmem:[#allocation4 + $0x60] sm:$0xf] %vm5515_vm2, %v5468_v7  ;;  %v5693_v16 = vpop.permute.xlu0 %5692  ;;  %6750 = vmatmul.msk.bf16.gmra.mxu1 %vm5926_vm4, %v6787_v59 }
 0x662   : > { %5765 = vst.msk [vmem:[#allocation4 + $0x60] sm:$0xf] %vm5740_vm3, %v5693_v16 }
 0x666   : > { %5706 = vrot.lane.b32.xlu1 %v5611_v42, %s6888_s7  ;;  %5481 = vrot.lane.b32.xlu2 %v5386_v36, %s6887_s30 }
 0x667   : > { %5224 = vrot.lane.b32.xlu0 %v5145_v52, %s6886_s29 }
 0x668   : > { %v5695_v57 = vpop.permute.xlu1 %5694  ;;  %v5021_v29 = vpop.permute.xlu2 %5020 }
 0x669   : > { %5766 = vst.msk [vmem:[#allocation4 + $0x64] sm:$0xf] %vm5740_vm3, %v5695_v57  ;;  %v5213_v38 = vpop.permute.xlu0 %5212 }
 0x66a   : > { %5091 = vst.msk [vmem:[#allocation4 + $0x68] sm:$0xf] %vm5064_vm12, %v5021_v29 }
 0x66b   : > { %5300 = vst.msk [vmem:[#allocation4 + $0x24] sm:$0xf] %vm5290_vm14, %v5213_v38 }
 0x66c   : > { %5525 = vst.msk [vmem:[#allocation4 + $0x24] sm:$0xf] %vm5515_vm2, %v5438_v39 }
 0x66e   : > { %5447 = vrot.lane.b32.xlu1 %v5369_v2, %s6887_s30  ;;  %5222 = vrot.lane.b32.xlu2 %v5144_v49, %s6886_s29 }
 0x66f   : > { %5672 = vrot.lane.b32.xlu0 %v5594_v26, %s6888_s7 }
 0x670   : > { %v5436_v35 = vpop.permute.xlu1 %5435  ;;  %v5249_v30 = vpop.permute.xlu2 %5248  ;;  %v6796_v24 = vld [vmem:[#allocation4 + $0x60] sm:$0xff] }
 0x671   : > { %5524 = vst.msk [vmem:[#allocation4 + $0x20] sm:$0xf] %vm5515_vm2, %v5436_v35  ;;  %v5661_v51 = vpop.permute.xlu0 %5660  ;;  %6759 = vmatmul.msk.bf16.gmra.mxu2 %vm5926_vm4, %v6796_v24 }
 0x672   : > { %5749 = vst.msk [vmem:[#allocation4 + $0x20] sm:$0xf] %vm5740_vm3, %v5661_v51 }
 0x674   : > { %v6028_v3 = vpop.f32.mrf.mxu2 }
 0x675   : > { %v6029_v11 = vadd.f32 %v9352_v23, %v6028_v3 }
 0x676   : > { %5674 = vrot.lane.b32.xlu1 %v5595_v6, %s6888_s7  ;;  %5449 = vrot.lane.b32.xlu2 %v5370_v50, %s6887_s30 }
 0x677   : > { %vm6084_vm5 = vcmp.ge.f32.partialorder %v6029_v11, 0.0  ;;  %v6117_v56 = vmul.f32 %v9355_v33, %v6029_v11 }
 0x678   : > { %v5663_v31 = vpop.permute.xlu1 %5662  ;;  %v5697_v34 = vpop.permute.xlu2 %5696 }
 0x679   : > { %5750 = vst.msk [vmem:[#allocation4 + $0x24] sm:$0xf] %vm5740_vm3, %v5663_v31  ;;  %v5023_v14 = vpop.permute.xlu0 %5022  ;;  %v6149_v41 = vsel %vm6084_vm5, %v6029_v11, %v6117_v56 }
 0x67a   : > { %5092 = vst.msk [vmem:[#allocation4 + $0x6c] sm:$0xf] %vm5064_vm12, %v5023_v14 }
 0x67b   : > { %6181 = vst [vmem:[%s9363_s26 + $0x80] sm:$0xff] %v6149_v41 }
 0x67c   : > { %5318 = vst.msk [vmem:[#allocation4 + $0x6c] sm:$0xf] %vm5290_vm14, %v5249_v30  ;;  %v6030_v46 = vpop.f32.mrf.mxu2 }
 0x67d   : > { %v6031_v5 = vadd.f32 %v9352_v23, %v6030_v46 }
 0x67e   : > { %v5988_v48 = vpop.f32.mrf.mxu1 }
 0x67f   : > { %vm6085_vm7 = vcmp.ge.f32.partialorder %v6031_v5, 0.0  ;;  %v6118_v27 = vmul.f32 %v9355_v33, %v6031_v5  ;;  %v5989_v21 = vadd.f32 %v9352_v23, %v5988_v48 }
 0x680   : > { %v5247_v44 = vpop.permute.xlu1 %5246  ;;  %v5217_v22 = vpop.permute.xlu2 %5216  ;;  %v6788_v45 = vld [vmem:[#allocation4 + $0x20] sm:$0xff] }
 0x681   : > { %5317 = vst.msk [vmem:[#allocation4 + $0x68] sm:$0xf] %vm5290_vm14, %v5247_v44  ;;  %v5472_v60 = vpop.permute.xlu0 %5471  ;;  %v6150_v47 = vsel %vm6085_vm7, %v6031_v5, %v6118_v27  ;;  %vm6068_vm8 = vcmp.ge.f32.partialorder %v5989_v21, 0.0  ;;  %v6101_v25 = vmul.f32 %v9355_v33, %v5989_v21  ;;  %6751 = vmatmul.msk.bf16.gmra.mxu1 %vm5926_vm4, %v6788_v45 }
 0x682   : > { %5302 = vst.msk [vmem:[#allocation4 + $0x2c] sm:$0xf] %vm5290_vm14, %v5217_v22 }
 0x683   : > { %6182 = vst [vmem:[%s9363_s26 + $0x88] sm:$0xff] %v6150_v47  ;;  %v6133_v58 = vsel %vm6068_vm8, %v5989_v21, %v6101_v25 }
 0x684   : > { %5542 = vst.msk [vmem:[#allocation4 + $0x68] sm:$0xf] %vm5515_vm2, %v5472_v60 }
 0x685   : > { %6165 = vst [vmem:[%s9363_s26] sm:$0xff] %v6133_v58 }
 0x686   : > { %5767 = vst.msk [vmem:[#allocation4 + $0x68] sm:$0xf] %vm5740_vm3, %v5697_v34  ;;  %v5990_v8 = vpop.f32.mrf.mxu1 }
 0x687   : > { %v5991_v63 = vadd.f32 %v9352_v23, %v5990_v8 }
 0x688   : > { %v5474_v40 = vpop.permute.xlu1 %5473  ;;  %v5665_v4 = vpop.permute.xlu2 %5664 }
 0x689   : > { %5543 = vst.msk [vmem:[#allocation4 + $0x6c] sm:$0xf] %vm5515_vm2, %v5474_v40  ;;  %v5699_v53 = vpop.permute.xlu0 %5698  ;;  %vm6069_vm10 = vcmp.ge.f32.partialorder %v5991_v63, 0.0  ;;  %v6102_v54 = vmul.f32 %v9355_v33, %v5991_v63 }
 0x68a   : > { %5768 = vst.msk [vmem:[#allocation4 + $0x6c] sm:$0xf] %vm5740_vm3, %v5699_v53 }
 0x68b   : > { %v6134_v19 = vsel %vm6069_vm10, %v5991_v63, %v6102_v54 }
 0x68c   : > { %6166 = vst [vmem:[%s9363_s26 + $0x8] sm:$0xff] %v6134_v19 }
 0x690   : > { %v5215_v55 = vpop.permute.xlu1 %5214  ;;  %v5027_v15 = vpop.permute.xlu2 %5026 }
 0x691   : > { %5301 = vst.msk [vmem:[#allocation4 + $0x28] sm:$0xf] %vm5290_vm14, %v5215_v55  ;;  %v5440_v1 = vpop.permute.xlu0 %5439  ;;  %v6797_v12 = vld [vmem:[#allocation4 + $0x68] sm:$0xff] }
 0x692   : > { %5094 = vst.msk [vmem:[#allocation4 + $0x74] sm:$0xf] %vm5064_vm12, %v5027_v15  ;;  %6760 = vmatmul.msk.bf16.gmra.mxu2 %vm5926_vm4, %v6797_v12 }
 0x693   : > { %5526 = vst.msk [vmem:[#allocation4 + $0x28] sm:$0xf] %vm5515_vm2, %v5440_v1 }
 0x694   : > { %5751 = vst.msk [vmem:[#allocation4 + $0x28] sm:$0xf] %vm5740_vm3, %v5665_v4  ;;  %v6033_v17 = vpop.f32.mrf.mxu2 }
 0x695   : > { %v6034_v62 = vadd.f32 %v9352_v23, %v6033_v17 }
 0x697   : > { %vm6086_vm15 = vcmp.ge.f32.partialorder %v6034_v62, 0.0  ;;  %v6119_v61 = vmul.f32 %v9355_v33, %v6034_v62 }
 0x698   : > { %v5442_v0 = vpop.permute.xlu1 %5441  ;;  %v5476_v32 = vpop.permute.xlu2 %5475 }
 0x699   : > { %5527 = vst.msk [vmem:[#allocation4 + $0x2c] sm:$0xf] %vm5515_vm2, %v5442_v0  ;;  %v5667_v28 = vpop.permute.xlu0 %5666  ;;  %v6151_v10 = vsel %vm6086_vm15, %v6034_v62, %v6119_v61 }
 0x69a   : > { %5752 = vst.msk [vmem:[#allocation4 + $0x2c] sm:$0xf] %vm5740_vm3, %v5667_v28 }
 0x69b   : > { %6183 = vst [vmem:[%s9363_s26 + $0x90] sm:$0xff] %v6151_v10 }
 0x69c   : > { %v6035_v7 = vpop.f32.mrf.mxu2 }
 0x69d   : > { %v6036_v39 = vadd.f32 %v9352_v23, %v6035_v7 }
 0x69e   : > { %v5993_v59 = vpop.f32.mrf.mxu1 }
 0x69f   : > { %vm6087_vm0 = vcmp.ge.f32.partialorder %v6036_v39, 0.0  ;;  %v6120_v16 = vmul.f32 %v9355_v33, %v6036_v39  ;;  %v5994_v18 = vadd.f32 %v9352_v23, %v5993_v59 }
 0x6a0   : > { %v5025_v42 = vpop.permute.xlu1 %5024  ;;  %v5703_v36 = vpop.permute.xlu2 %5702 }
 0x6a1   : > { %5093 = vst.msk [vmem:[#allocation4 + $0x70] sm:$0xf] %vm5064_vm12, %v5025_v42  ;;  %v5251_v52 = vpop.permute.xlu0 %5250  ;;  %v6789_v57 = vld [vmem:[#allocation4 + $0x28] sm:$0xff]  ;;  %v6152_v29 = vsel %vm6087_vm0, %v6036_v39, %v6120_v16  ;;  %vm6070_vm6 = vcmp.ge.f32.partialorder %v5994_v18, 0.0  ;;  %v6103_v38 = vmul.f32 %v9355_v33, %v5994_v18 }
 0x6a2   : > { %5319 = vst.msk [vmem:[#allocation4 + $0x70] sm:$0xf] %vm5290_vm14, %v5251_v52  ;;  %6752 = vmatmul.msk.bf16.gmra.mxu1 %vm5926_vm4, %v6789_v57 }
 0x6a3   : > { %6184 = vst [vmem:[%s9363_s26 + $0x98] sm:$0xff] %v6152_v29  ;;  %v6135_v43 = vsel %vm6070_vm6, %v5994_v18, %v6103_v38 }
 0x6a4   : > { %5544 = vst.msk [vmem:[#allocation4 + $0x70] sm:$0xf] %vm5515_vm2, %v5476_v32 }
 0x6a5   : > { %6167 = vst [vmem:[%s9363_s26 + $0x10] sm:$0xff] %v6135_v43 }
 0x6a6   : > { %v5995_v9 = vpop.f32.mrf.mxu1 }
 0x6a7   : > { %v5996_v49 = vadd.f32 %v9352_v23, %v5995_v9 }
 0x6a8   : > { %v5253_v13 = vpop.permute.xlu1 %5252  ;;  %v5444_v2 = vpop.permute.xlu2 %5443 }
 0x6a9   : > { %5320 = vst.msk [vmem:[#allocation4 + $0x74] sm:$0xf] %vm5290_vm14, %v5253_v13  ;;  %v5478_v26 = vpop.permute.xlu0 %5477  ;;  %vm6071_vm9 = vcmp.ge.f32.partialorder %v5996_v49, 0.0  ;;  %v6104_v35 = vmul.f32 %v9355_v33, %v5996_v49 }
 0x6aa   : > { %5545 = vst.msk [vmem:[#allocation4 + $0x74] sm:$0xf] %vm5515_vm2, %v5478_v26 }
 0x6ab   : > { %5770 = vst.msk [vmem:[#allocation4 + $0x74] sm:$0xf] %vm5740_vm3, %v5703_v36  ;;  %v6136_v30 = vsel %vm6071_vm9, %v5996_v49, %v6104_v35 }
 0x6ac   : > { %6168 = vst [vmem:[%s9363_s26 + $0x18] sm:$0xff] %v6136_v30 }
 0x6b0   : > { %v5701_v24 = vpop.permute.xlu1 %5700  ;;  %v5671_v51 = vpop.permute.xlu2 %5670 }
 0x6b1   : > { %5769 = vst.msk [vmem:[#allocation4 + $0x70] sm:$0xf] %vm5740_vm3, %v5701_v24  ;;  %v5219_v20 = vpop.permute.xlu0 %5218 }
 0x6b2   : > { %5303 = vst.msk [vmem:[#allocation4 + $0x30] sm:$0xf] %vm5290_vm14, %v5219_v20 }
 0x6b3   : > { %5528 = vst.msk [vmem:[#allocation4 + $0x30] sm:$0xf] %vm5515_vm2, %v5444_v2 }
 0x6b4   : > { %v6038_v37 = vpop.f32.mrf.mxu2 }
 0x6b5   : > { %v6039_v6 = vadd.f32 %v9352_v23, %v6038_v37 }
 0x6b7   : > { %vm6088_vm1 = vcmp.ge.f32.partialorder %v6039_v6, 0.0  ;;  %v6121_v50 = vmul.f32 %v9355_v33, %v6039_v6 }
 0x6b8   : > { %v5221_v3 = vpop.permute.xlu1 %5220  ;;  %v5255_v11 = vpop.permute.xlu2 %5254  ;;  %v6798_v56 = vld [vmem:[#allocation4 + $0x70] sm:$0xff] }
 0x6b9   : > { %5304 = vst.msk [vmem:[#allocation4 + $0x34] sm:$0xf] %vm5290_vm14, %v5221_v3  ;;  %v5446_v31 = vpop.permute.xlu0 %5445  ;;  %v6153_v34 = vsel %vm6088_vm1, %v6039_v6, %v6121_v50  ;;  %6761 = vmatmul.msk.bf16.gmra.mxu2 %vm5926_vm4, %v6798_v56 }
 0x6ba   : > { %5529 = vst.msk [vmem:[#allocation4 + $0x34] sm:$0xf] %vm5515_vm2, %v5446_v31 }
 0x6bb   : > { %6185 = vst [vmem:[%s9363_s26 + $0xa0] sm:$0xff] %v6153_v34 }
 0x6bc   : > { %5754 = vst.msk [vmem:[#allocation4 + $0x34] sm:$0xf] %vm5740_vm3, %v5671_v51  ;;  %v6040_v14 = vpop.f32.mrf.mxu2 }
 0x6bd   : > { %v6041_v41 = vadd.f32 %v9352_v23, %v6040_v14 }
 0x6be   : > { %v5998_v46 = vpop.f32.mrf.mxu1 }
 0x6bf   : > { %vm6089_vm11 = vcmp.ge.f32.partialorder %v6041_v41, 0.0  ;;  %v6122_v5 = vmul.f32 %v9355_v33, %v6041_v41  ;;  %v5999_v44 = vadd.f32 %v9352_v23, %v5998_v46 }
 0x6c0   : > { %v5669_v48 = vpop.permute.xlu1 %5668  ;;  %v5482_v27 = vpop.permute.xlu2 %5481 }
 0x6c1   : > { %5753 = vst.msk [vmem:[#allocation4 + $0x30] sm:$0xf] %vm5740_vm3, %v5669_v48  ;;  %v5029_v22 = vpop.permute.xlu0 %5028  ;;  %v6154_v21 = vsel %vm6089_vm11, %v6041_v41, %v6122_v5  ;;  %vm6072_vm13 = vcmp.ge.f32.partialorder %v5999_v44, 0.0  ;;  %v6105_v45 = vmul.f32 %v9355_v33, %v5999_v44 }
 0x6c2   : > { %5095 = vst.msk [vmem:[#allocation4 + $0x78] sm:$0xf] %vm5064_vm12, %v5029_v22 }
 0x6c3   : > { %6186 = vst [vmem:[%s9363_s26 + $0xa8] sm:$0xff] %v6154_v21  ;;  %v6137_v60 = vsel %vm6072_vm13, %v5999_v44, %v6105_v45 }
 0x6c4   : > { %5321 = vst.msk [vmem:[#allocation4 + $0x78] sm:$0xf] %vm5290_vm14, %v5255_v11 }
 0x6c5   : > { %6169 = vst [vmem:[%s9363_s26 + $0x20] sm:$0xff] %v6137_v60 }
 0x6c6   : > { %v6000_v47 = vpop.f32.mrf.mxu1 }
 0x6c7   : > { %v6001_v8 = vadd.f32 %v9352_v23, %v6000_v47 }
 0x6c8   : > { %v5031_v25 = vpop.permute.xlu1 %5030  ;;  %v5223_v58 = vpop.permute.xlu2 %5222  ;;  %v6790_v40 = vld [vmem:[#allocation4 + $0x30] sm:$0xff] }
 0x6c9   : > { %5096 = vst.msk [vmem:[#allocation4 + $0x7c] sm:$0xf] %vm5064_vm12, %v5031_v25  ;;  %v5257_v4 = vpop.permute.xlu0 %5256  ;;  %vm6073_vm5 = vcmp.ge.f32.partialorder %v6001_v8, 0.0  ;;  %v6106_v63 = vmul.f32 %v9355_v33, %v6001_v8  ;;  %6753 = vmatmul.msk.bf16.gmra.mxu1 %vm5926_vm4, %v6790_v40 }
 0x6ca   : > { %5305 = vst.msk [vmem:[#allocation4 + $0x38] sm:$0xf] %vm5290_vm14, %v5223_v58 }
 0x6cb   : > { %5322 = vst.msk [vmem:[#allocation4 + $0x7c] sm:$0xf] %vm5290_vm14, %v5257_v4  ;;  %v6138_v53 = vsel %vm6073_vm5, %v6001_v8, %v6106_v63 }
 0x6cc   : > { %5547 = vst.msk [vmem:[#allocation4 + $0x7c] sm:$0xf] %vm5515_vm2, %v5482_v27 }
 0x6cd   : > { %6170 = vst [vmem:[%s9363_s26 + $0x28] sm:$0xff] %v6138_v53 }
 0x6d0   : > { %v5480_v54 = vpop.permute.xlu1 %5479  ;;  %v5450_v61 = vpop.permute.xlu2 %5449 }
 0x6d1   : > { %5546 = vst.msk [vmem:[#allocation4 + $0x78] sm:$0xf] %vm5515_vm2, %v5480_v54  ;;  %v5705_v19 = vpop.permute.xlu0 %5704 }
 0x6d2   : > { %5771 = vst.msk [vmem:[#allocation4 + $0x78] sm:$0xf] %vm5740_vm3, %v5705_v19 }
 0x6d4   : > { %v6043_v55 = vpop.f32.mrf.mxu2 }
 0x6d5   : > { %v6044_v15 = vadd.f32 %v9352_v23, %v6043_v55 }
 0x6d7   : > { %vm6090_vm12 = vcmp.ge.f32.partialorder %v6044_v15, 0.0  ;;  %v6123_v1 = vmul.f32 %v9355_v33, %v6044_v15 }
 0x6d8   : > { %v5707_v12 = vpop.permute.xlu1 %5706 }
 0x6d9   : > { %5772 = vst.msk [vmem:[#allocation4 + $0x7c] sm:$0xf] %vm5740_vm3, %v5707_v12  ;;  %v5225_v17 = vpop.permute.xlu0 %5224  ;;  %v6155_v62 = vsel %vm6090_vm12, %v6044_v15, %v6123_v1 }
 0x6da   : > { %5306 = vst.msk [vmem:[#allocation4 + $0x3c] sm:$0xf] %vm5290_vm14, %v5225_v17 }
 0x6db   : > { %6187 = vst [vmem:[%s9363_s26 + $0xb0] sm:$0xff] %v6155_v62 }
 0x6dc   : > { %5531 = vst.msk [vmem:[#allocation4 + $0x3c] sm:$0xf] %vm5515_vm2, %v5450_v61  ;;  %v6045_v0 = vpop.f32.mrf.mxu2 }
 0x6dd   : > { %v6046_v32 = vadd.f32 %v9352_v23, %v6045_v0 }
 0x6de   : > { %v6003_v28 = vpop.f32.mrf.mxu1 }
 0x6df   : > { %vm6091_vm7 = vcmp.ge.f32.partialorder %v6046_v32, 0.0  ;;  %v6124_v10 = vmul.f32 %v9355_v33, %v6046_v32  ;;  %v6004_v39 = vadd.f32 %v9352_v23, %v6003_v28 }
 0x6e0   : > { %v5448_v7 = vpop.permute.xlu1 %5447  ;;  %v6799_v59 = vld [vmem:[#allocation4 + $0x78] sm:$0xff] }
 0x6e1   : > { %5530 = vst.msk [vmem:[#allocation4 + $0x38] sm:$0xf] %vm5515_vm2, %v5448_v7  ;;  %v5673_v16 = vpop.permute.xlu0 %5672  ;;  %v6156_v42 = vsel %vm6091_vm7, %v6046_v32, %v6124_v10  ;;  %vm6074_vm14 = vcmp.ge.f32.partialorder %v6004_v39, 0.0  ;;  %v6107_v36 = vmul.f32 %v9355_v33, %v6004_v39  ;;  %6762 = vmatmul.msk.bf16.gmra.mxu2 %vm5926_vm4, %v6799_v59 }
 0x6e2   : > { %5755 = vst.msk [vmem:[#allocation4 + $0x38] sm:$0xf] %vm5740_vm3, %v5673_v16 }
 0x6e3   : > { %6188 = vst [vmem:[%s9363_s26 + $0xb8] sm:$0xff] %v6156_v42  ;;  %v6139_v18 = vsel %vm6074_vm14, %v6004_v39, %v6107_v36 }
 0x6e4   : > { %6171 = vst [vmem:[%s9363_s26 + $0x30] sm:$0xff] %v6139_v18 }
 0x6e6   : > { %v6005_v52 = vpop.f32.mrf.mxu1 }
 0x6e7   : > { %v6006_v29 = vadd.f32 %v9352_v23, %v6005_v52 }
 0x6e8   : > { %v5675_v57 = vpop.permute.xlu1 %5674 }
 0x6e9   : > { %5756 = vst.msk [vmem:[#allocation4 + $0x3c] sm:$0xf] %vm5740_vm3, %v5675_v57  ;;  %vm6075_vm2 = vcmp.ge.f32.partialorder %v6006_v29, 0.0  ;;  %v6108_v38 = vmul.f32 %v9355_v33, %v6006_v29 }
 0x6eb   : > { %v6140_v43 = vsel %vm6075_vm2, %v6006_v29, %v6108_v38 }
 0x6ec   : > { %6172 = vst [vmem:[%s9363_s26 + $0x38] sm:$0xff] %v6140_v43 }
 0x6f0   : > { %v6791_v9 = vld [vmem:[#allocation4 + $0x38] sm:$0xff] }
 0x6f1   : > { %6754 = vmatmul.msk.bf16.gmra.mxu1 %vm5926_vm4, %v6791_v9 }
 0x6f4   : > { %v6048_v13 = vpop.f32.mrf.mxu2 }
 0x6f5   : > { %v6049_v2 = vadd.f32 %v9352_v23, %v6048_v13 }
 0x6f7   : > { %vm6092_vm8 = vcmp.ge.f32.partialorder %v6049_v2, 0.0  ;;  %v6125_v49 = vmul.f32 %v9355_v33, %v6049_v2 }
 0x6f9   : > { %v6157_v26 = vsel %vm6092_vm8, %v6049_v2, %v6125_v49 }
 0x6fa   : > { %6189 = vst [vmem:[%s9363_s26 + $0xc0] sm:$0xff] %v6157_v26 }
 0x6fc   : > { %v6050_v35 = vpop.f32.mrf.mxu2 }
 0x6fd   : > { %v6051_v30 = vadd.f32 %v9352_v23, %v6050_v35 }
 0x6fe   : > { %v6008_v24 = vpop.f32.mrf.mxu1 }
 0x6ff   : > { %vm6093_vm3 = vcmp.ge.f32.partialorder %v6051_v30, 0.0  ;;  %v6126_v51 = vmul.f32 %v9355_v33, %v6051_v30  ;;  %v6009_v20 = vadd.f32 %v9352_v23, %v6008_v24 }
 0x701   : > { %v6158_v37 = vsel %vm6093_vm3, %v6051_v30, %v6126_v51  ;;  %vm6076_vm4 = vcmp.ge.f32.partialorder %v6009_v20, 0.0  ;;  %v6109_v6 = vmul.f32 %v9355_v33, %v6009_v20 }
 0x702   : > { %6190 = vst [vmem:[%s9363_s26 + $0xc8] sm:$0xff] %v6158_v37 }
 0x703   : > { %v6141_v50 = vsel %vm6076_vm4, %v6009_v20, %v6109_v6 }
 0x704   : > { %6173 = vst [vmem:[%s9363_s26 + $0x40] sm:$0xff] %v6141_v50 }
 0x706   : > { %v6010_v3 = vpop.f32.mrf.mxu1 }
 0x707   : > { %v6011_v11 = vadd.f32 %v9352_v23, %v6010_v3 }
 0x709   : > { %vm6077_vm10 = vcmp.ge.f32.partialorder %v6011_v11, 0.0  ;;  %v6110_v56 = vmul.f32 %v9355_v33, %v6011_v11 }
 0x70b   : > { %v6142_v31 = vsel %vm6077_vm10, %v6011_v11, %v6110_v56 }
 0x70c   : > { %6174 = vst [vmem:[%s9363_s26 + $0x48] sm:$0xff] %v6142_v31 }
 0x715   : > { %v6053_v34 = vpop.f32.mrf.mxu2 }
 0x716   : > { %v6054_v14 = vadd.f32 %v9352_v23, %v6053_v34 }
 0x718   : > { %vm6094_vm15 = vcmp.ge.f32.partialorder %v6054_v14, 0.0  ;;  %v6127_v41 = vmul.f32 %v9355_v33, %v6054_v14 }
 0x71a   : > { %v6159_v46 = vsel %vm6094_vm15, %v6054_v14, %v6127_v41 }
 0x71b   : > { %6191 = vst [vmem:[%s9363_s26 + $0xd0] sm:$0xff] %v6159_v46 }
 0x71d   : > { %v6055_v5 = vpop.f32.mrf.mxu2 }
 0x71e   : > { %v6056_v48 = vadd.f32 %v9352_v23, %v6055_v5 }
 0x71f   : > { %v6013_v27 = vpop.f32.mrf.mxu1 }
 0x720   : > { %vm6095_vm0 = vcmp.ge.f32.partialorder %v6056_v48, 0.0  ;;  %v6128_v44 = vmul.f32 %v9355_v33, %v6056_v48  ;;  %v6014_v22 = vadd.f32 %v9352_v23, %v6013_v27 }
 0x722   : > { %v6160_v21 = vsel %vm6095_vm0, %v6056_v48, %v6128_v44  ;;  %vm6078_vm6 = vcmp.ge.f32.partialorder %v6014_v22, 0.0  ;;  %v6111_v45 = vmul.f32 %v9355_v33, %v6014_v22 }
 0x723   : > { %6192 = vst [vmem:[%s9363_s26 + $0xd8] sm:$0xff] %v6160_v21 }
 0x724   : > { %v6143_v60 = vsel %vm6078_vm6, %v6014_v22, %v6111_v45 }
 0x725   : > { %6175 = vst [vmem:[%s9363_s26 + $0x50] sm:$0xff] %v6143_v60 }
 0x727   : > { %v6015_v47 = vpop.f32.mrf.mxu1 }
 0x728   : > { %v6016_v25 = vadd.f32 %v9352_v23, %v6015_v47 }
 0x72a   : > { %vm6079_vm9 = vcmp.ge.f32.partialorder %v6016_v25, 0.0  ;;  %v6112_v58 = vmul.f32 %v9355_v33, %v6016_v25 }
 0x72c   : > { %v6144_v8 = vsel %vm6079_vm9, %v6016_v25, %v6112_v58 }
 0x72d   : > { %6176 = vst [vmem:[%s9363_s26 + $0x58] sm:$0xff] %v6144_v8 }
 0x73c   : > { %v6058_v40 = vpop.f32.mrf.mxu2 }
 0x73d   : > { %v6059_v4 = vadd.f32 %v9352_v23, %v6058_v40 }
 0x73f   : > { %vm6096_vm1 = vcmp.ge.f32.partialorder %v6059_v4, 0.0  ;;  %v6129_v63 = vmul.f32 %v9355_v33, %v6059_v4 }
 0x741   : > { %v6161_v53 = vsel %vm6096_vm1, %v6059_v4, %v6129_v63 }
 0x742   : > { %6193 = vst [vmem:[%s9363_s26 + $0xe0] sm:$0xff] %v6161_v53 }
 0x744   : > { %v6060_v54 = vpop.f32.mrf.mxu2 }
 0x745   : > { %v6061_v19 = vadd.f32 %v9352_v23, %v6060_v54 }
 0x746   : > { %v6018_v55 = vpop.f32.mrf.mxu1 }
 0x747   : > { %vm6097_vm11 = vcmp.ge.f32.partialorder %v6061_v19, 0.0  ;;  %v6130_v15 = vmul.f32 %v9355_v33, %v6061_v19  ;;  %v6019_v1 = vadd.f32 %v9352_v23, %v6018_v55 }
 0x749   : > { %v6162_v12 = vsel %vm6097_vm11, %v6061_v19, %v6130_v15  ;;  %vm6080_vm13 = vcmp.ge.f32.partialorder %v6019_v1, 0.0  ;;  %v6113_v17 = vmul.f32 %v9355_v33, %v6019_v1 }
 0x74a   : > { %6194 = vst [vmem:[%s9363_s26 + $0xe8] sm:$0xff] %v6162_v12 }
 0x74b   : > { %v6145_v62 = vsel %vm6080_vm13, %v6019_v1, %v6113_v17 }
 0x74c   : > { %6177 = vst [vmem:[%s9363_s26 + $0x60] sm:$0xff] %v6145_v62 }
 0x74e   : > { %v6020_v61 = vpop.f32.mrf.mxu1 }
 0x74f   : > { %v6021_v0 = vadd.f32 %v9352_v23, %v6020_v61 }
 0x751   : > { %vm6081_vm5 = vcmp.ge.f32.partialorder %v6021_v0, 0.0  ;;  %v6114_v32 = vmul.f32 %v9355_v33, %v6021_v0 }
 0x753   : > { %v6146_v28 = vsel %vm6081_vm5, %v6021_v0, %v6114_v32 }
 0x754   : > { %6178 = vst [vmem:[%s9363_s26 + $0x68] sm:$0xff] %v6146_v28 }
 0x764   : > { %v6063_v10 = vpop.f32.mrf.mxu2 }
 0x765   : > { %v6064_v7 = vadd.f32 %v9352_v23, %v6063_v10 }
 0x767   : > { %vm6098_vm12 = vcmp.ge.f32.partialorder %v6064_v7, 0.0  ;;  %v6131_v39 = vmul.f32 %v9355_v33, %v6064_v7 }
 0x769   : > { %v6163_v59 = vsel %vm6098_vm12, %v6064_v7, %v6131_v39 }
 0x76a   : > { %6195 = vst [vmem:[%s9363_s26 + $0xf0] sm:$0xff] %v6163_v59 }
 0x76c   : > { %v6065_v16 = vpop.f32.mrf.mxu2 }
 0x76d   : > { %v6066_v42 = vadd.f32 %v9352_v23, %v6065_v16 }
 0x76e   : > { %v6023_v36 = vpop.f32.mrf.mxu1 }
 0x76f   : > { %vm6099_vm7 = vcmp.ge.f32.partialorder %v6066_v42, 0.0  ;;  %v6132_v18 = vmul.f32 %v9355_v33, %v6066_v42  ;;  %v6024_v52 = vadd.f32 %v9352_v23, %v6023_v36 }
 0x771   : > { %v6164_v57 = vsel %vm6099_vm7, %v6066_v42, %v6132_v18  ;;  %vm6082_vm14 = vcmp.ge.f32.partialorder %v6024_v52, 0.0  ;;  %v6115_v29 = vmul.f32 %v9355_v33, %v6024_v52 }
 0x772   : > { %6196 = vst [vmem:[%s9363_s26 + $0xf8] sm:$0xff] %v6164_v57 }
 0x773   : > { %v6147_v38 = vsel %vm6082_vm14, %v6024_v52, %v6115_v29 }
 0x774   : > { %6179 = vst [vmem:[%s9363_s26 + $0x70] sm:$0xff] %v6147_v38 }
 0x776   : > { %v6025_v43 = vpop.f32.mrf.mxu1 }
 0x777   : > { %v6026_v9 = vadd.f32 %v9352_v23, %v6025_v43 }
 0x779   : > { %vm6083_vm2 = vcmp.ge.f32.partialorder %v6026_v9, 0.0  ;;  %v6116_v13 = vmul.f32 %v9355_v33, %v6026_v9 }
 0x77b   : > { %v6148_v2 = vsel %vm6083_vm2, %v6026_v9, %v6116_v13 }
 0x77c   : > { %6180 = vst [vmem:[%s9363_s26 + $0x78] sm:$0xff] %v6148_v2 }
 0x77d PF: > { %s17_s21 = sadd.s32 1, %s6873_s21  }
 0x77e   : > { %p14_p7 = scmp.ge.s32.totalorder %s17_s21, 4  }
 0x780   :  { %16 = sbr.rel (!%p14_p7) target bundleno = 1 (0x1), region = 84 }
 0x785   :  { %6218 = vsyncpa [#allocation6], 1 }
 0x786   :  { %6220 = vsyncpa [#allocation6 + $0x1], 1 }

</bundles_post_ra>
